<compile_context>
chip_gen: v5e
topology: v5e:2x2
jax: 0.10.0
libtpu: 0.0.40
codegen_flags: <defaults>
</compile_context>

<pallas_src>
import jax
import jax.numpy as jnp
from jax.experimental import pallas as pl
from jax.experimental.pallas import tpu as pltpu

LEAKY_SLOPE = 0.2
IN_EPS = 1e-5   # PyTorch InstanceNorm2d default eps
LANE = 128


# ----------------------------- Pallas kernels ------------------------------- #
def _make_kernel(n_samples, normalize, leaky, n_k_steps):
    """Kernel factory.  Output block is (M, tc) with M = n_samples * P."""

    def epilogue(y, b):
        y = y + b                                   # (M, tc) f32 + (1, tc) f32
        if normalize:
            # Per-sample InstanceNorm2d (affine=False, biased variance) over the
            # spatial rows of each sample.  Rows [n*P, (n+1)*P) belong to sample n,
            # so normalize per sample with row-range masks (no reshape needed).
            M = y.shape[0]
            P = M // n_samples
            inv_p = 1.0 / P
            row = jax.lax.broadcasted_iota(jnp.int32, (M, 1), 0)
            for n in range(n_samples):              # static unroll (small N)
                sel = (row >= n * P) & (row < (n + 1) * P)
                mean_n = jnp.sum(jnp.where(sel, y, 0.0), axis=0, keepdims=True) * inv_p
                diff = y - mean_n
                var_n = jnp.sum(jnp.where(sel, diff * diff, 0.0),
                                axis=0, keepdims=True) * inv_p
                y = jnp.where(sel, diff * jax.lax.rsqrt(var_n + IN_EPS), y)
        if leaky:
            y = jnp.where(y > 0, y, LEAKY_SLOPE * y)
        return y

    if n_k_steps == 1:
        # Single K step: no accumulator scratch needed.
        def kernel(p_ref, w_ref, b_ref, o_ref):
            y = jnp.dot(p_ref[...], w_ref[...], preferred_element_type=jnp.float32)
            o_ref[...] = epilogue(y, b_ref[...]).astype(o_ref.dtype)
        return kernel

    def kernel(p_ref, w_ref, b_ref, o_ref, acc_ref):
        k = pl.program_id(1)

        @pl.when(k == 0)
        def _():
            acc_ref[...] = jnp.zeros_like(acc_ref)

        acc_ref[...] += jnp.dot(p_ref[...], w_ref[...],
                                preferred_element_type=jnp.float32)

        @pl.when(k == n_k_steps - 1)
        def _():
            o_ref[...] = epilogue(acc_ref[...], b_ref[...]).astype(o_ref.dtype)

    return kernel


def _pick_k_tile(total, max_tile, multiple=LANE):
    """Largest tile <= max_tile that divides `total` and is a multiple of `multiple`."""
    t = min(total, max_tile)
    t -= t % multiple
    t = max(t, multiple)
    while total % t != 0:
        t -= multiple
    return t


def conv_block_pallas(patches, w_flat, bias, n_samples, *, normalize, leaky,
                      tk_max=2048):
    """patches: (M, K) bf16, M = N * H_out * W_out; w_flat: (K, C) bf16;
    bias: (1, C) f32.  Returns (M, C) f32."""
    M, K = patches.shape
    C = w_flat.shape[1]

    # K (contraction) tiling -> "arbitrary" grid axis with VMEM f32 accumulator.
    tk = _pick_k_tile(K, tk_max)
    nk = K // tk
    # C tiling: split wide layers into 2 parallel tiles (megacore on v7x).
    tc = C // 2 if C >= 256 else C
    nc = C // tc

    kernel = _make_kernel(n_samples, normalize, leaky, nk)

    itemsize = lambda a: a.size * a.dtype.itemsize
    cost = pl.CostEstimate(
        flops=2 * M * K * C,
        transcendentals=0,
        bytes_accessed=itemsize(patches) + itemsize(w_flat) + itemsize(bias)
        + M * C * 4,
    )

    scratch = [] if nk == 1 else [pltpu.VMEM((M, tc), jnp.float32)]

    return pl.pallas_call(
        kernel,
        out_shape=jax.ShapeDtypeStruct((M, C), jnp.float32),
        grid_spec=pltpu.PrefetchScalarGridSpec(
            num_scalar_prefetch=0,
            grid=(nc, nk),
            in_specs=[
                pl.BlockSpec((M, tk), lambda j, k: (0, k)),   # patch K-tile
                pl.BlockSpec((tk, tc), lambda j, k: (k, j)),  # weight tile
                pl.BlockSpec((1, tc), lambda j, k: (0, j)),   # bias tile
            ],
            out_specs=pl.BlockSpec((M, tc), lambda j, k: (0, j)),
            scratch_shapes=scratch,
        ),
        compiler_params=pltpu.CompilerParams(
            # C-tile axis parallel (shards across TensorCores), K axis is a reduction.
            dimension_semantics=("parallel", "arbitrary"),
        ),
        cost_estimate=cost,
    )(patches, w_flat, bias)


# ------------------------------ JAX glue ----------------------------------- #
def im2col(x, k, stride, pad):
    """x: (N, H, W, C); pad = ((top, bottom), (left, right)).
    Returns (N, Ho*Wo, k*k*C), Ho, Wo with feature order (kh, kw, c_in)."""
    N, H, W, C = x.shape
    xp = jnp.pad(x, ((0, 0), pad[0], pad[1], (0, 0)))
    Hp = H + pad[0][0] + pad[0][1]
    Wp = W + pad[1][0] + pad[1][1]
    Ho = (Hp - k) // stride + 1
    Wo = (Wp - k) // stride + 1
    cols = []
    for di in range(k):
        for dj in range(k):
            cols.append(xp[:,
                           di:di + stride * (Ho - 1) + 1:stride,
                           dj:dj + stride * (Wo - 1) + 1:stride, :])
    p = jnp.stack(cols, axis=3)                  # (N, Ho, Wo, k*k, C)
    return p.reshape(N, Ho * Wo, k * k * C), Ho, Wo


def init_params(key, channels):
    """Deterministic synthetic weights (HWIO layout), shapes from Discriminator.__init__."""
    shapes = {
        "w1": (4, 4, channels, 64), "b1": (64,),
        "w2": (4, 4, 64, 128),      "b2": (128,),
        "w3": (4, 4, 128, 256),     "b3": (256,),
        "w4": (4, 4, 256, 512),     "b4": (512,),
        "w5": (4, 4, 512, 1),       "b5": (1,),
    }
    params = {}
    for i, (name, shape) in enumerate(shapes.items()):
        k = jax.random.fold_in(key, i)
        scale = 0.05 if name.startswith("w") else 0.01
        params[name] = scale * jax.random.normal(k, shape, dtype=jnp.float32)
    return params


def discriminator_forward(img_nchw, params):
    """img_nchw: (N, C, H, W) -> (N, 1, H//16, W//16)  (PatchGAN logits)."""
    x = jnp.transpose(img_nchw, (0, 2, 3, 1)).astype(jnp.float32)  # -> NHWC
    N = x.shape[0]
    # (weight, bias, stride, pad=((top,bot),(left,right)), instance_norm, leaky_relu)
    # Final layer: ZeroPad2d((1,0,1,0)) + Conv2d(padding=1) => pad ((2,1),(2,1)).
    cfgs = [
        ("w1", "b1", 2, ((1, 1), (1, 1)), False, True),
        ("w2", "b2", 2, ((1, 1), (1, 1)), True,  True),
        ("w3", "b3", 2, ((1, 1), (1, 1)), True,  True),
        ("w4", "b4", 2, ((1, 1), (1, 1)), True,  True),
        ("w5", "b5", 1, ((2, 1), (2, 1)), False, False),
    ]
    for wn, bn, stride, pad, norm, leaky in cfgs:
        w = params[wn]
        b = params[bn]
        k = w.shape[0]
        c_out = w.shape[-1]

        patches, Ho, Wo = im2col(x, k, stride, pad)      # (N, P, K)
        P = Ho * Wo
        Kdim = patches.shape[-1]

        # Fold batch into the matmul M dimension.
        pm = patches.reshape(N * P, Kdim)
        wf = w.reshape(-1, c_out)
        bf = b.reshape(1, c_out)

        # Pad K to a lane multiple (layer 1: K = 16 -> 128) with zero rows/cols.
        K_pad = ((Kdim + LANE - 1) // LANE) * LANE
        if K_pad != Kdim:
            pm = jnp.pad(pm, ((0, 0), (0, K_pad - Kdim)))
            wf = jnp.pad(wf, ((0, K_pad - Kdim), (0, 0)))

        # Pad the 1-channel final conv to 128 output lanes (lane-dense stores).
        C_pad = c_out
        if c_out < 64:
            C_pad = LANE
            wf = jnp.pad(wf, ((0, 0), (0, C_pad - c_out)))
            bf = jnp.pad(bf, ((0, 0), (0, C_pad - c_out)))

        # bf16 inputs/weights halve HBM traffic and feed the bf16 MXU at full rate.
        y = conv_block_pallas(pm.astype(jnp.bfloat16), wf.astype(jnp.bfloat16), bf,
                              N, normalize=norm, leaky=leaky)
        if C_pad != c_out:
            y = y[:, :c_out]
        x = y.reshape(N, Ho, Wo, c_out)
    return jnp.transpose(x, (0, 3, 1, 2))  # back to NCHW


# --------------------------- pure-JAX reference ----------------------------- #
def reference_forward(img_nchw, params):
    x = jnp.transpose(img_nchw, (0, 2, 3, 1)).astype(jnp.float32)

    def conv(x, w, b, stride, pad):
        y = jax.lax.conv_general_dilated(
            x, w, window_strides=(stride, stride), padding=pad,
            dimension_numbers=("NHWC", "HWIO", "NHWC"))
        return y + b.reshape(1, 1, 1, -1)

    def inorm(y):
        m = jnp.mean(y, axis=(1, 2), keepdims=True)
        v = jnp.mean((y - m) ** 2, axis=(1, 2), keepdims=True)
        return (y - m) * jax.lax.rsqrt(v + IN_EPS)

    def lrelu(y):
        return jnp.where(y > 0, y, LEAKY_SLOPE * y)

    y = lrelu(conv(x, params["w1"], params["b1"], 2, ((1, 1), (1, 1))))
    y = lrelu(inorm(conv(y, params["w2"], params["b2"], 2, ((1, 1), (1, 1)))))
    y = lrelu(inorm(conv(y, params["w3"], params["b3"], 2, ((1, 1), (1, 1)))))
    y = lrelu(inorm(conv(y, params["w4"], params["b4"], 2, ((1, 1), (1, 1)))))
    y = conv(y, params["w5"], params["b5"], 1, ((2, 1), (2, 1)))
    return jnp.transpose(y, (0, 3, 1, 2))


# --------------------------------- main ------------------------------------ #
if __name__ == "__main__":
    key = jax.random.PRNGKey(0)
    # Matches Parse(): channels=1, img_size=32; small batch for the demo.
    N, C_in, H, W = 2, 1, 32, 32
    params = init_params(key, C_in)
    img = jax.random.normal(jax.random.fold_in(key, 999), (N, C_in, H, W),
                            dtype=jnp.float32)

    fwd = jax.jit(lambda x: discriminator_forward(x, params))
    out = jax.block_until_ready(fwd(img))

    assert out.shape == (N, 1, H // 2 ** 4, W // 2 ** 4), out.shape

    ref = jax.block_until_ready(reference_forward(img, params))
    max_err = float(jnp.max(jnp.abs(out - ref)))
    # Tolerance sized for bf16 matmul inputs (f32 accumulation / epilogue).
    tol = 5e-2 + 5e-2 * float(jnp.max(jnp.abs(ref)))
    if not (max_err <= tol):
        raise AssertionError(f"Pallas vs reference mismatch: {max_err} > {tol}")

    print("KERNEL_OK")
</pallas_src>

<mosaic_0001>
module attributes {stable_mosaic.version = 11 : i64} {
  func.func @kernel(%arg0: i32, %arg1: i32, %arg2: memref<512x128xbf16, #tpu.memory_space<vmem>>, %arg3: memref<128x64xbf16, #tpu.memory_space<vmem>>, %arg4: memref<1x64xf32, #tpu.memory_space<vmem>>, %arg5: memref<512x64xf32, #tpu.memory_space<vmem>>) attributes {dimension_semantics = [#tpu.dimension_semantics<parallel>, #tpu.dimension_semantics<arbitrary>], iteration_bounds = array<i64: 1, 1>, scalar_prefetch = 0 : i64, scratch_operands = 0 : i64, tpu.core_type = #tpu.core_type<tc>, window_params = [{transform_indices = @transform_0, window_bounds = array<i64: 512, 128>}, {transform_indices = @transform_1, window_bounds = array<i64: 128, 64>}, {transform_indices = @transform_2, window_bounds = array<i64: 1, 64>}, {transform_indices = @transform_3, window_bounds = array<i64: 512, 64>}]} {
    %c0 = arith.constant 0 : index
    %c0_0 = arith.constant 0 : index
    %0 = vector.load %arg2[%c0, %c0_0] : memref<512x128xbf16, #tpu.memory_space<vmem>>, vector<512x128xbf16>
    %c0_1 = arith.constant 0 : index
    %c0_2 = arith.constant 0 : index
    %1 = vector.load %arg3[%c0_1, %c0_2] : memref<128x64xbf16, #tpu.memory_space<vmem>>, vector<128x64xbf16>
    %cst = arith.constant dense<0.000000e+00> : vector<512x64xf32>
    %2 = tpu.matmul %0, %1, %cst {dimension_numbers = #tpu.dot_dimension_numbers<[1], [0], [0], [1], [0, 0, 1, 1], [], []>} : vector<512x128xbf16>, vector<128x64xbf16>, vector<512x64xf32> -> vector<512x64xf32>
    %c0_3 = arith.constant 0 : index
    %c0_4 = arith.constant 0 : index
    %3 = vector.load %arg4[%c0_3, %c0_4] : memref<1x64xf32, #tpu.memory_space<vmem>>, vector<1x64xf32>
    %4 = vector.broadcast %3 : vector<1x64xf32> to vector<512x64xf32>
    %5 = arith.addf %2, %4 : vector<512x64xf32>
    %cst_5 = arith.constant 0.000000e+00 : f32
    %6 = vector.broadcast %cst_5 : f32 to vector<512x64xf32>
    %7 = arith.cmpf ogt, %5, %6 : vector<512x64xf32>
    %cst_6 = arith.constant 2.000000e-01 : f32
    %8 = vector.broadcast %cst_6 : f32 to vector<512x64xf32>
    %9 = arith.mulf %8, %5 : vector<512x64xf32>
    %10 = arith.select %7, %5, %9 : vector<512x64xi1>, vector<512x64xf32>
    %c0_7 = arith.constant 0 : index
    %c0_8 = arith.constant 0 : index
    %11 = vector.load %arg5[%c0_7, %c0_8] : memref<512x64xf32, #tpu.memory_space<vmem>>, vector<512x64xf32>
    tpu.vector_store %arg5[%c0_7, %c0_8], %10 {strides = array<i32>} : memref<512x64xf32, #tpu.memory_space<vmem>>, vector<512x64xf32>,
    return
  }
  func.func @transform_0(%arg0: i32, %arg1: i32) -> (i32, i32) {
    %c0_i32 = arith.constant 0 : i32
    %c0_i32_0 = arith.constant 0 : i32
    return %c0_i32, %arg1 : i32, i32
  }
  func.func @transform_1(%arg0: i32, %arg1: i32) -> (i32, i32) {
    %c0_i32 = arith.constant 0 : i32
    return %arg1, %arg0 : i32, i32
  }
  func.func @transform_2(%arg0: i32, %arg1: i32) -> (i32, i32) {
    %c0_i32 = arith.constant 0 : i32
    %c0_i32_0 = arith.constant 0 : i32
    return %c0_i32, %arg0 : i32, i32
  }
  func.func @transform_3(%arg0: i32, %arg1: i32) -> (i32, i32) {
    %c0_i32 = arith.constant 0 : i32
    %c0_i32_0 = arith.constant 0 : i32
    return %c0_i32, %arg0 : i32, i32
  }
}

module attributes {stable_mosaic.version = 11 : i64} {
  func.func @kernel(%arg0: i32, %arg1: i32, %arg2: memref<128x1024xbf16, #tpu.memory_space<vmem>>, %arg3: memref<1024x128xbf16, #tpu.memory_space<vmem>>, %arg4: memref<1x128xf32, #tpu.memory_space<vmem>>, %arg5: memref<128x128xf32, #tpu.memory_space<vmem>>) attributes {dimension_semantics = [#tpu.dimension_semantics<parallel>, #tpu.dimension_semantics<arbitrary>], iteration_bounds = array<i64: 1, 1>, scalar_prefetch = 0 : i64, scratch_operands = 0 : i64, tpu.core_type = #tpu.core_type<tc>, window_params = [{transform_indices = @transform_0, window_bounds = array<i64: 128, 1024>}, {transform_indices = @transform_1, window_bounds = array<i64: 1024, 128>}, {transform_indices = @transform_2, window_bounds = array<i64: 1, 128>}, {transform_indices = @transform_3, window_bounds = array<i64: 128, 128>}]} {
    %c0 = arith.constant 0 : index
    %c0_0 = arith.constant 0 : index
    %0 = vector.load %arg2[%c0, %c0_0] : memref<128x1024xbf16, #tpu.memory_space<vmem>>, vector<128x1024xbf16>
    %c0_1 = arith.constant 0 : index
    %c0_2 = arith.constant 0 : index
    %1 = vector.load %arg3[%c0_1, %c0_2] : memref<1024x128xbf16, #tpu.memory_space<vmem>>, vector<1024x128xbf16>
    %cst = arith.constant dense<0.000000e+00> : vector<128x128xf32>
    %2 = tpu.matmul %0, %1, %cst {dimension_numbers = #tpu.dot_dimension_numbers<[1], [0], [0], [1], [0, 0, 1, 1], [], []>} : vector<128x1024xbf16>, vector<1024x128xbf16>, vector<128x128xf32> -> vector<128x128xf32>
    %c0_3 = arith.constant 0 : index
    %c0_4 = arith.constant 0 : index
    %3 = vector.load %arg4[%c0_3, %c0_4] : memref<1x128xf32, #tpu.memory_space<vmem>>, vector<1x128xf32>
    %4 = vector.broadcast %3 : vector<1x128xf32> to vector<128x128xf32>
    %5 = arith.addf %2, %4 : vector<128x128xf32>
    %6 = tpu.iota {dimensions = array<i32: 0>} : vector<128x1xi32>
    %c0_i32 = arith.constant 0 : i32
    %7 = vector.broadcast %c0_i32 : i32 to vector<128x1xi32>
    %8 = arith.cmpi sge, %6, %7 : vector<128x1xi32>
    %c64_i32 = arith.constant 64 : i32
    %9 = vector.broadcast %c64_i32 : i32 to vector<128x1xi32>
    %10 = arith.cmpi slt, %6, %9 : vector<128x1xi32>
    %11 = arith.andi %8, %10 : vector<128x1xi1>
    %cst_5 = arith.constant 0.000000e+00 : f32
    %12 = vector.shape_cast %11 : vector<128x1xi1> to vector<128x1xi1>
    %13 = vector.broadcast %12 : vector<128x1xi1> to vector<128x128xi1>
    %14 = vector.broadcast %cst_5 : f32 to vector<128x128xf32>
    %15 = arith.select %13, %5, %14 : vector<128x128xi1>, vector<128x128xf32>
    %cst_6 = arith.constant dense<0.000000e+00> : vector<128xf32>
    %16 = vector.multi_reduction <add>, %15, %cst_6 [0] : vector<128x128xf32> to vector<128xf32>
    %17 = vector.shape_cast %16 : vector<128xf32> to vector<1x128xf32>
    %cst_7 = arith.constant 1.562500e-02 : f32
    %18 = vector.broadcast %cst_7 : f32 to vector<1x128xf32>
    %19 = arith.mulf %17, %18 : vector<1x128xf32>
    %20 = vector.broadcast %19 : vector<1x128xf32> to vector<128x128xf32>
    %21 = arith.subf %5, %20 : vector<128x128xf32>
    %22 = arith.mulf %21, %21 : vector<128x128xf32>
    %cst_8 = arith.constant 0.000000e+00 : f32
    %23 = vector.shape_cast %11 : vector<128x1xi1> to vector<128x1xi1>
    %24 = vector.broadcast %23 : vector<128x1xi1> to vector<128x128xi1>
    %25 = vector.broadcast %cst_8 : f32 to vector<128x128xf32>
    %26 = arith.select %24, %22, %25 : vector<128x128xi1>, vector<128x128xf32>
    %cst_9 = arith.constant dense<0.000000e+00> : vector<128xf32>
    %27 = vector.multi_reduction <add>, %26, %cst_9 [0] : vector<128x128xf32> to vector<128xf32>
    %28 = vector.shape_cast %27 : vector<128xf32> to vector<1x128xf32>
    %cst_10 = arith.constant 1.562500e-02 : f32
    %29 = vector.broadcast %cst_10 : f32 to vector<1x128xf32>
    %30 = arith.mulf %28, %29 : vector<1x128xf32>
    %cst_11 = arith.constant 9.99999974E-6 : f32
    %31 = vector.broadcast %cst_11 : f32 to vector<1x128xf32>
    %32 = arith.addf %30, %31 : vector<1x128xf32>
    %33 = math.rsqrt %32 : vector<1x128xf32>
    %34 = vector.broadcast %33 : vector<1x128xf32> to vector<128x128xf32>
    %35 = arith.mulf %21, %34 : vector<128x128xf32>
    %36 = vector.shape_cast %11 : vector<128x1xi1> to vector<128x1xi1>
    %37 = vector.broadcast %36 : vector<128x1xi1> to vector<128x128xi1>
    %38 = arith.select %37, %35, %5 : vector<128x128xi1>, vector<128x128xf32>
    %c64_i32_12 = arith.constant 64 : i32
    %39 = vector.broadcast %c64_i32_12 : i32 to vector<128x1xi32>
    %40 = arith.cmpi sge, %6, %39 : vector<128x1xi32>
    %c128_i32 = arith.constant 128 : i32
    %41 = vector.broadcast %c128_i32 : i32 to vector<128x1xi32>
    %42 = arith.cmpi slt, %6, %41 : vector<128x1xi32>
    %43 = arith.andi %40, %42 : vector<128x1xi1>
    %cst_13 = arith.constant 0.000000e+00 : f32
    %44 = vector.shape_cast %43 : vector<128x1xi1> to vector<128x1xi1>
    %45 = vector.broadcast %44 : vector<128x1xi1> to vector<128x128xi1>
    %46 = vector.broadcast %cst_13 : f32 to vector<128x128xf32>
    %47 = arith.select %45, %38, %46 : vector<128x128xi1>, vector<128x128xf32>
    %cst_14 = arith.constant dense<0.000000e+00> : vector<128xf32>
    %48 = vector.multi_reduction <add>, %47, %cst_14 [0] : vector<128x128xf32> to vector<128xf32>
    %49 = vector.shape_cast %48 : vector<128xf32> to vector<1x128xf32>
    %cst_15 = arith.constant 1.562500e-02 : f32
    %50 = vector.broadcast %cst_15 : f32 to vector<1x128xf32>
    %51 = arith.mulf %49, %50 : vector<1x128xf32>
    %52 = vector.broadcast %51 : vector<1x128xf32> to vector<128x128xf32>
    %53 = arith.subf %38, %52 : vector<128x128xf32>
    %54 = arith.mulf %53, %53 : vector<128x128xf32>
    %cst_16 = arith.constant 0.000000e+00 : f32
    %55 = vector.shape_cast %43 : vector<128x1xi1> to vector<128x1xi1>
    %56 = vector.broadcast %55 : vector<128x1xi1> to vector<128x128xi1>
    %57 = vector.broadcast %cst_16 : f32 to vector<128x128xf32>
    %58 = arith.select %56, %54, %57 : vector<128x128xi1>, vector<128x128xf32>
    %cst_17 = arith.constant dense<0.000000e+00> : vector<128xf32>
    %59 = vector.multi_reduction <add>, %58, %cst_17 [0] : vector<128x128xf32> to vector<128xf32>
    %60 = vector.shape_cast %59 : vector<128xf32> to vector<1x128xf32>
    %cst_18 = arith.constant 1.562500e-02 : f32
    %61 = vector.broadcast %cst_18 : f32 to vector<1x128xf32>
    %62 = arith.mulf %60, %61 : vector<1x128xf32>
    %cst_19 = arith.constant 9.99999974E-6 : f32
    %63 = vector.broadcast %cst_19 : f32 to vector<1x128xf32>
    %64 = arith.addf %62, %63 : vector<1x128xf32>
    %65 = math.rsqrt %64 : vector<1x128xf32>
    %66 = vector.broadcast %65 : vector<1x128xf32> to vector<128x128xf32>
    %67 = arith.mulf %53, %66 : vector<128x128xf32>
    %68 = vector.shape_cast %43 : vector<128x1xi1> to vector<128x1xi1>
    %69 = vector.broadcast %68 : vector<128x1xi1> to vector<128x128xi1>
    %70 = arith.select %69, %67, %38 : vector<128x128xi1>, vector<128x128xf32>
    %cst_20 = arith.constant 0.000000e+00 : f32
    %71 = vector.broadcast %cst_20 : f32 to vector<128x128xf32>
    %72 = arith.cmpf ogt, %70, %71 : vector<128x128xf32>
    %cst_21 = arith.constant 2.000000e-01 : f32
    %73 = vector.broadcast %cst_21 : f32 to vector<128x128xf32>
    %74 = arith.mulf %73, %70 : vector<128x128xf32>
    %75 = arith.select %72, %70, %74 : vector<128x128xi1>, vector<128x128xf32>
    %c0_22 = arith.constant 0 : index
    %c0_23 = arith.constant 0 : index
    %76 = vector.load %arg5[%c0_22, %c0_23] : memref<128x128xf32, #tpu.memory_space<vmem>>, vector<128x128xf32>
    tpu.vector_store %arg5[%c0_22, %c0_23], %75 {strides = array<i32>} : memref<128x128xf32, #tpu.memory_space<vmem>>, vector<128x128xf32>,
    return
  }
  func.func @transform_0(%arg0: i32, %arg1: i32) -> (i32, i32) {
    %c0_i32 = arith.constant 0 : i32
    %c0_i32_0 = arith.constant 0 : i32
    return %c0_i32, %arg1 : i32, i32
  }
  func.func @transform_1(%arg0: i32, %arg1: i32) -> (i32, i32) {
    %c0_i32 = arith.constant 0 : i32
    return %arg1, %arg0 : i32, i32
  }
  func.func @transform_2(%arg0: i32, %arg1: i32) -> (i32, i32) {
    %c0_i32 = arith.constant 0 : i32
    %c0_i32_0 = arith.constant 0 : i32
    return %c0_i32, %arg0 : i32, i32
  }
  func.func @transform_3(%arg0: i32, %arg1: i32) -> (i32, i32) {
    %c0_i32 = arith.constant 0 : i32
    %c0_i32_0 = arith.constant 0 : i32
    return %c0_i32, %arg0 : i32, i32
  }
}

module attributes {stable_mosaic.version = 11 : i64} {
  func.func @kernel(%arg0: i32, %arg1: i32, %arg2: memref<32x2048xbf16, #tpu.memory_space<vmem>>, %arg3: memref<2048x128xbf16, #tpu.memory_space<vmem>>, %arg4: memref<1x128xf32, #tpu.memory_space<vmem>>, %arg5: memref<32x128xf32, #tpu.memory_space<vmem>>) attributes {dimension_semantics = [#tpu.dimension_semantics<parallel>, #tpu.dimension_semantics<arbitrary>], iteration_bounds = array<i64: 2, 1>, scalar_prefetch = 0 : i64, scratch_operands = 0 : i64, tpu.core_type = #tpu.core_type<tc>, window_params = [{transform_indices = @transform_0, window_bounds = array<i64: 32, 2048>}, {transform_indices = @transform_1, window_bounds = array<i64: 2048, 128>}, {transform_indices = @transform_2, window_bounds = array<i64: 1, 128>}, {transform_indices = @transform_3, window_bounds = array<i64: 32, 128>}]} {
    %c0 = arith.constant 0 : index
    %c0_0 = arith.constant 0 : index
    %0 = vector.load %arg2[%c0, %c0_0] : memref<32x2048xbf16, #tpu.memory_space<vmem>>, vector<32x2048xbf16>
    %c0_1 = arith.constant 0 : index
    %c0_2 = arith.constant 0 : index
    %1 = vector.load %arg3[%c0_1, %c0_2] : memref<2048x128xbf16, #tpu.memory_space<vmem>>, vector<2048x128xbf16>
    %cst = arith.constant dense<0.000000e+00> : vector<32x128xf32>
    %2 = tpu.matmul %0, %1, %cst {dimension_numbers = #tpu.dot_dimension_numbers<[1], [0], [0], [1], [0, 0, 1, 1], [], []>} : vector<32x2048xbf16>, vector<2048x128xbf16>, vector<32x128xf32> -> vector<32x128xf32>
    %c0_3 = arith.constant 0 : index
    %c0_4 = arith.constant 0 : index
    %3 = vector.load %arg4[%c0_3, %c0_4] : memref<1x128xf32, #tpu.memory_space<vmem>>, vector<1x128xf32>
    %4 = vector.broadcast %3 : vector<1x128xf32> to vector<32x128xf32>
    %5 = arith.addf %2, %4 : vector<32x128xf32>
    %6 = tpu.iota {dimensions = array<i32: 0>} : vector<32x1xi32>
    %c0_i32 = arith.constant 0 : i32
    %7 = vector.broadcast %c0_i32 : i32 to vector<32x1xi32>
    %8 = arith.cmpi sge, %6, %7 : vector<32x1xi32>
    %c16_i32 = arith.constant 16 : i32
    %9 = vector.broadcast %c16_i32 : i32 to vector<32x1xi32>
    %10 = arith.cmpi slt, %6, %9 : vector<32x1xi32>
    %11 = arith.andi %8, %10 : vector<32x1xi1>
    %cst_5 = arith.constant 0.000000e+00 : f32
    %12 = vector.shape_cast %11 : vector<32x1xi1> to vector<32x1xi1>
    %13 = vector.broadcast %12 : vector<32x1xi1> to vector<32x128xi1>
    %14 = vector.broadcast %cst_5 : f32 to vector<32x128xf32>
    %15 = arith.select %13, %5, %14 : vector<32x128xi1>, vector<32x128xf32>
    %cst_6 = arith.constant dense<0.000000e+00> : vector<128xf32>
    %16 = vector.multi_reduction <add>, %15, %cst_6 [0] : vector<32x128xf32> to vector<128xf32>
    %17 = vector.shape_cast %16 : vector<128xf32> to vector<1x128xf32>
    %cst_7 = arith.constant 6.250000e-02 : f32
    %18 = vector.broadcast %cst_7 : f32 to vector<1x128xf32>
    %19 = arith.mulf %17, %18 : vector<1x128xf32>
    %20 = vector.broadcast %19 : vector<1x128xf32> to vector<32x128xf32>
    %21 = arith.subf %5, %20 : vector<32x128xf32>
    %22 = arith.mulf %21, %21 : vector<32x128xf32>
    %cst_8 = arith.constant 0.000000e+00 : f32
    %23 = vector.shape_cast %11 : vector<32x1xi1> to vector<32x1xi1>
    %24 = vector.broadcast %23 : vector<32x1xi1> to vector<32x128xi1>
    %25 = vector.broadcast %cst_8 : f32 to vector<32x128xf32>
    %26 = arith.select %24, %22, %25 : vector<32x128xi1>, vector<32x128xf32>
    %cst_9 = arith.constant dense<0.000000e+00> : vector<128xf32>
    %27 = vector.multi_reduction <add>, %26, %cst_9 [0] : vector<32x128xf32> to vector<128xf32>
    %28 = vector.shape_cast %27 : vector<128xf32> to vector<1x128xf32>
    %cst_10 = arith.constant 6.250000e-02 : f32
    %29 = vector.broadcast %cst_10 : f32 to vector<1x128xf32>
    %30 = arith.mulf %28, %29 : vector<1x128xf32>
    %cst_11 = arith.constant 9.99999974E-6 : f32
    %31 = vector.broadcast %cst_11 : f32 to vector<1x128xf32>
    %32 = arith.addf %30, %31 : vector<1x128xf32>
    %33 = math.rsqrt %32 : vector<1x128xf32>
    %34 = vector.broadcast %33 : vector<1x128xf32> to vector<32x128xf32>
    %35 = arith.mulf %21, %34 : vector<32x128xf32>
    %36 = vector.shape_cast %11 : vector<32x1xi1> to vector<32x1xi1>
    %37 = vector.broadcast %36 : vector<32x1xi1> to vector<32x128xi1>
    %38 = arith.select %37, %35, %5 : vector<32x128xi1>, vector<32x128xf32>
    %c16_i32_12 = arith.constant 16 : i32
    %39 = vector.broadcast %c16_i32_12 : i32 to vector<32x1xi32>
    %40 = arith.cmpi sge, %6, %39 : vector<32x1xi32>
    %c32_i32 = arith.constant 32 : i32
    %41 = vector.broadcast %c32_i32 : i32 to vector<32x1xi32>
    %42 = arith.cmpi slt, %6, %41 : vector<32x1xi32>
    %43 = arith.andi %40, %42 : vector<32x1xi1>
    %cst_13 = arith.constant 0.000000e+00 : f32
    %44 = vector.shape_cast %43 : vector<32x1xi1> to vector<32x1xi1>
    %45 = vector.broadcast %44 : vector<32x1xi1> to vector<32x128xi1>
    %46 = vector.broadcast %cst_13 : f32 to vector<32x128xf32>
    %47 = arith.select %45, %38, %46 : vector<32x128xi1>, vector<32x128xf32>
    %cst_14 = arith.constant dense<0.000000e+00> : vector<128xf32>
    %48 = vector.multi_reduction <add>, %47, %cst_14 [0] : vector<32x128xf32> to vector<128xf32>
    %49 = vector.shape_cast %48 : vector<128xf32> to vector<1x128xf32>
    %cst_15 = arith.constant 6.250000e-02 : f32
    %50 = vector.broadcast %cst_15 : f32 to vector<1x128xf32>
    %51 = arith.mulf %49, %50 : vector<1x128xf32>
    %52 = vector.broadcast %51 : vector<1x128xf32> to vector<32x128xf32>
    %53 = arith.subf %38, %52 : vector<32x128xf32>
    %54 = arith.mulf %53, %53 : vector<32x128xf32>
    %cst_16 = arith.constant 0.000000e+00 : f32
    %55 = vector.shape_cast %43 : vector<32x1xi1> to vector<32x1xi1>
    %56 = vector.broadcast %55 : vector<32x1xi1> to vector<32x128xi1>
    %57 = vector.broadcast %cst_16 : f32 to vector<32x128xf32>
    %58 = arith.select %56, %54, %57 : vector<32x128xi1>, vector<32x128xf32>
    %cst_17 = arith.constant dense<0.000000e+00> : vector<128xf32>
    %59 = vector.multi_reduction <add>, %58, %cst_17 [0] : vector<32x128xf32> to vector<128xf32>
    %60 = vector.shape_cast %59 : vector<128xf32> to vector<1x128xf32>
    %cst_18 = arith.constant 6.250000e-02 : f32
    %61 = vector.broadcast %cst_18 : f32 to vector<1x128xf32>
    %62 = arith.mulf %60, %61 : vector<1x128xf32>
    %cst_19 = arith.constant 9.99999974E-6 : f32
    %63 = vector.broadcast %cst_19 : f32 to vector<1x128xf32>
    %64 = arith.addf %62, %63 : vector<1x128xf32>
    %65 = math.rsqrt %64 : vector<1x128xf32>
    %66 = vector.broadcast %65 : vector<1x128xf32> to vector<32x128xf32>
    %67 = arith.mulf %53, %66 : vector<32x128xf32>
    %68 = vector.shape_cast %43 : vector<32x1xi1> to vector<32x1xi1>
    %69 = vector.broadcast %68 : vector<32x1xi1> to vector<32x128xi1>
    %70 = arith.select %69, %67, %38 : vector<32x128xi1>, vector<32x128xf32>
    %cst_20 = arith.constant 0.000000e+00 : f32
    %71 = vector.broadcast %cst_20 : f32 to vector<32x128xf32>
    %72 = arith.cmpf ogt, %70, %71 : vector<32x128xf32>
    %cst_21 = arith.constant 2.000000e-01 : f32
    %73 = vector.broadcast %cst_21 : f32 to vector<32x128xf32>
    %74 = arith.mulf %73, %70 : vector<32x128xf32>
    %75 = arith.select %72, %70, %74 : vector<32x128xi1>, vector<32x128xf32>
    %c0_22 = arith.constant 0 : index
    %c0_23 = arith.constant 0 : index
    %76 = vector.load %arg5[%c0_22, %c0_23] : memref<32x128xf32, #tpu.memory_space<vmem>>, vector<32x128xf32>
    tpu.vector_store %arg5[%c0_22, %c0_23], %75 {strides = array<i32>} : memref<32x128xf32, #tpu.memory_space<vmem>>, vector<32x128xf32>,
    return
  }
  func.func @transform_0(%arg0: i32, %arg1: i32) -> (i32, i32) {
    %c0_i32 = arith.constant 0 : i32
    %c0_i32_0 = arith.constant 0 : i32
    return %c0_i32, %arg1 : i32, i32
  }
  func.func @transform_1(%arg0: i32, %arg1: i32) -> (i32, i32) {
    %c0_i32 = arith.constant 0 : i32
    return %arg1, %arg0 : i32, i32
  }
  func.func @transform_2(%arg0: i32, %arg1: i32) -> (i32, i32) {
    %c0_i32 = arith.constant 0 : i32
    %c0_i32_0 = arith.constant 0 : i32
    return %c0_i32, %arg0 : i32, i32
  }
  func.func @transform_3(%arg0: i32, %arg1: i32) -> (i32, i32) {
    %c0_i32 = arith.constant 0 : i32
    %c0_i32_0 = arith.constant 0 : i32
    return %c0_i32, %arg0 : i32, i32
  }
}

module attributes {stable_mosaic.version = 11 : i64} {
  func.func @kernel(%arg0: i32, %arg1: i32, %arg2: memref<8x2048xbf16, #tpu.memory_space<vmem>>, %arg3: memref<2048x256xbf16, #tpu.memory_space<vmem>>, %arg4: memref<1x256xf32, #tpu.memory_space<vmem>>, %arg5: memref<8x256xf32, #tpu.memory_space<vmem>>, %arg6: memref<8x256xf32, #tpu.memory_space<vmem>>) attributes {dimension_semantics = [#tpu.dimension_semantics<parallel>, #tpu.dimension_semantics<arbitrary>], iteration_bounds = array<i64: 2, 2>, scalar_prefetch = 0 : i64, scratch_operands = 1 : i64, tpu.core_type = #tpu.core_type<tc>, window_params = [{transform_indices = @transform_0, window_bounds = array<i64: 8, 2048>}, {transform_indices = @transform_1, window_bounds = array<i64: 2048, 256>}, {transform_indices = @transform_2, window_bounds = array<i64: 1, 256>}, {transform_indices = @transform_3, window_bounds = array<i64: 8, 256>}]} {
    %c0_i32 = arith.constant 0 : i32
    %0 = arith.cmpi eq, %arg1, %c0_i32 : i32
    %1 = arith.extui %0 : i1 to i32
    %c0_i32_0 = arith.constant 0 : i32
    %2 = arith.cmpi ne, %1, %c0_i32_0 : i32
    scf.if %2 {
      %cst_9 = arith.constant 0.000000e+00 : f32
      %12 = vector.broadcast %cst_9 : f32 to vector<8x256xf32>
      %c0_10 = arith.constant 0 : index
      %c0_11 = arith.constant 0 : index
      %13 = vector.load %arg6[%c0_10, %c0_11] : memref<8x256xf32, #tpu.memory_space<vmem>>, vector<8x256xf32>
      tpu.vector_store %arg6[%c0_10, %c0_11], %12 {strides = array<i32>} : memref<8x256xf32, #tpu.memory_space<vmem>>, vector<8x256xf32>,
    } else {
    }
    %c0 = arith.constant 0 : index
    %c0_1 = arith.constant 0 : index
    %3 = vector.load %arg6[%c0, %c0_1] : memref<8x256xf32, #tpu.memory_space<vmem>>, vector<8x256xf32>
    %c0_2 = arith.constant 0 : index
    %c0_3 = arith.constant 0 : index
    %4 = vector.load %arg2[%c0_2, %c0_3] : memref<8x2048xbf16, #tpu.memory_space<vmem>>, vector<8x2048xbf16>
    %c0_4 = arith.constant 0 : index
    %c0_5 = arith.constant 0 : index
    %5 = vector.load %arg3[%c0_4, %c0_5] : memref<2048x256xbf16, #tpu.memory_space<vmem>>, vector<2048x256xbf16>
    %cst = arith.constant dense<0.000000e+00> : vector<8x256xf32>
    %6 = tpu.matmul %4, %5, %cst {dimension_numbers = #tpu.dot_dimension_numbers<[1], [0], [0], [1], [0, 0, 1, 1], [], []>} : vector<8x2048xbf16>, vector<2048x256xbf16>, vector<8x256xf32> -> vector<8x256xf32>
    %7 = arith.addf %3, %6 : vector<8x256xf32>
    %c0_6 = arith.constant 0 : index
    %c0_7 = arith.constant 0 : index
    %8 = vector.load %arg6[%c0_6, %c0_7] : memref<8x256xf32, #tpu.memory_space<vmem>>, vector<8x256xf32>
    tpu.vector_store %arg6[%c0_6, %c0_7], %7 {strides = array<i32>} : memref<8x256xf32, #tpu.memory_space<vmem>>, vector<8x256xf32>,
    %c1_i32 = arith.constant 1 : i32
    %9 = arith.cmpi eq, %arg1, %c1_i32 : i32
    %10 = arith.extui %9 : i1 to i32
    %c0_i32_8 = arith.constant 0 : i32
    %11 = arith.cmpi ne, %10, %c0_i32_8 : i32
    scf.if %11 {
      %c0_9 = arith.constant 0 : index
      %c0_10 = arith.constant 0 : index
      %12 = vector.load %arg6[%c0_9, %c0_10] : memref<8x256xf32, #tpu.memory_space<vmem>>, vector<8x256xf32>
      %c0_11 = arith.constant 0 : index
      %c0_12 = arith.constant 0 : index
      %13 = vector.load %arg4[%c0_11, %c0_12] : memref<1x256xf32, #tpu.memory_space<vmem>>, vector<1x256xf32>
      %14 = vector.broadcast %13 : vector<1x256xf32> to vector<8x256xf32>
      %15 = arith.addf %12, %14 : vector<8x256xf32>
      %16 = tpu.iota {dimensions = array<i32: 0>} : vector<8x1xi32>
      %c0_i32_13 = arith.constant 0 : i32
      %17 = vector.broadcast %c0_i32_13 : i32 to vector<8x1xi32>
      %18 = arith.cmpi sge, %16, %17 : vector<8x1xi32>
      %c4_i32 = arith.constant 4 : i32
      %19 = vector.broadcast %c4_i32 : i32 to vector<8x1xi32>
      %20 = arith.cmpi slt, %16, %19 : vector<8x1xi32>
      %21 = arith.andi %18, %20 : vector<8x1xi1>
      %cst_14 = arith.constant 0.000000e+00 : f32
      %22 = vector.shape_cast %21 : vector<8x1xi1> to vector<8x1xi1>
      %23 = vector.broadcast %22 : vector<8x1xi1> to vector<8x256xi1>
      %24 = vector.broadcast %cst_14 : f32 to vector<8x256xf32>
      %25 = arith.select %23, %15, %24 : vector<8x256xi1>, vector<8x256xf32>
      %cst_15 = arith.constant dense<0.000000e+00> : vector<256xf32>
      %26 = vector.multi_reduction <add>, %25, %cst_15 [0] : vector<8x256xf32> to vector<256xf32>
      %27 = vector.shape_cast %26 : vector<256xf32> to vector<1x256xf32>
      %cst_16 = arith.constant 2.500000e-01 : f32
      %28 = vector.broadcast %cst_16 : f32 to vector<1x256xf32>
      %29 = arith.mulf %27, %28 : vector<1x256xf32>
      %30 = vector.broadcast %29 : vector<1x256xf32> to vector<8x256xf32>
      %31 = arith.subf %15, %30 : vector<8x256xf32>
      %32 = arith.mulf %31, %31 : vector<8x256xf32>
      %cst_17 = arith.constant 0.000000e+00 : f32
      %33 = vector.shape_cast %21 : vector<8x1xi1> to vector<8x1xi1>
      %34 = vector.broadcast %33 : vector<8x1xi1> to vector<8x256xi1>
      %35 = vector.broadcast %cst_17 : f32 to vector<8x256xf32>
      %36 = arith.select %34, %32, %35 : vector<8x256xi1>, vector<8x256xf32>
      %cst_18 = arith.constant dense<0.000000e+00> : vector<256xf32>
      %37 = vector.multi_reduction <add>, %36, %cst_18 [0] : vector<8x256xf32> to vector<256xf32>
      %38 = vector.shape_cast %37 : vector<256xf32> to vector<1x256xf32>
      %cst_19 = arith.constant 2.500000e-01 : f32
      %39 = vector.broadcast %cst_19 : f32 to vector<1x256xf32>
      %40 = arith.mulf %38, %39 : vector<1x256xf32>
      %cst_20 = arith.constant 9.99999974E-6 : f32
      %41 = vector.broadcast %cst_20 : f32 to vector<1x256xf32>
      %42 = arith.addf %40, %41 : vector<1x256xf32>
      %43 = math.rsqrt %42 : vector<1x256xf32>
      %44 = vector.broadcast %43 : vector<1x256xf32> to vector<8x256xf32>
      %45 = arith.mulf %31, %44 : vector<8x256xf32>
      %46 = vector.shape_cast %21 : vector<8x1xi1> to vector<8x1xi1>
      %47 = vector.broadcast %46 : vector<8x1xi1> to vector<8x256xi1>
      %48 = arith.select %47, %45, %15 : vector<8x256xi1>, vector<8x256xf32>
      %c4_i32_21 = arith.constant 4 : i32
      %49 = vector.broadcast %c4_i32_21 : i32 to vector<8x1xi32>
      %50 = arith.cmpi sge, %16, %49 : vector<8x1xi32>
      %c8_i32 = arith.constant 8 : i32
      %51 = vector.broadcast %c8_i32 : i32 to vector<8x1xi32>
      %52 = arith.cmpi slt, %16, %51 : vector<8x1xi32>
      %53 = arith.andi %50, %52 : vector<8x1xi1>
      %cst_22 = arith.constant 0.000000e+00 : f32
      %54 = vector.shape_cast %53 : vector<8x1xi1> to vector<8x1xi1>
      %55 = vector.broadcast %54 : vector<8x1xi1> to vector<8x256xi1>
      %56 = vector.broadcast %cst_22 : f32 to vector<8x256xf32>
      %57 = arith.select %55, %48, %56 : vector<8x256xi1>, vector<8x256xf32>
      %cst_23 = arith.constant dense<0.000000e+00> : vector<256xf32>
      %58 = vector.multi_reduction <add>, %57, %cst_23 [0] : vector<8x256xf32> to vector<256xf32>
      %59 = vector.shape_cast %58 : vector<256xf32> to vector<1x256xf32>
      %cst_24 = arith.constant 2.500000e-01 : f32
      %60 = vector.broadcast %cst_24 : f32 to vector<1x256xf32>
      %61 = arith.mulf %59, %60 : vector<1x256xf32>
      %62 = vector.broadcast %61 : vector<1x256xf32> to vector<8x256xf32>
      %63 = arith.subf %48, %62 : vector<8x256xf32>
      %64 = arith.mulf %63, %63 : vector<8x256xf32>
      %cst_25 = arith.constant 0.000000e+00 : f32
      %65 = vector.shape_cast %53 : vector<8x1xi1> to vector<8x1xi1>
      %66 = vector.broadcast %65 : vector<8x1xi1> to vector<8x256xi1>
      %67 = vector.broadcast %cst_25 : f32 to vector<8x256xf32>
      %68 = arith.select %66, %64, %67 : vector<8x256xi1>, vector<8x256xf32>
      %cst_26 = arith.constant dense<0.000000e+00> : vector<256xf32>
      %69 = vector.multi_reduction <add>, %68, %cst_26 [0] : vector<8x256xf32> to vector<256xf32>
      %70 = vector.shape_cast %69 : vector<256xf32> to vector<1x256xf32>
      %cst_27 = arith.constant 2.500000e-01 : f32
      %71 = vector.broadcast %cst_27 : f32 to vector<1x256xf32>
      %72 = arith.mulf %70, %71 : vector<1x256xf32>
      %cst_28 = arith.constant 9.99999974E-6 : f32
      %73 = vector.broadcast %cst_28 : f32 to vector<1x256xf32>
      %74 = arith.addf %72, %73 : vector<1x256xf32>
      %75 = math.rsqrt %74 : vector<1x256xf32>
      %76 = vector.broadcast %75 : vector<1x256xf32> to vector<8x256xf32>
      %77 = arith.mulf %63, %76 : vector<8x256xf32>
      %78 = vector.shape_cast %53 : vector<8x1xi1> to vector<8x1xi1>
      %79 = vector.broadcast %78 : vector<8x1xi1> to vector<8x256xi1>
      %80 = arith.select %79, %77, %48 : vector<8x256xi1>, vector<8x256xf32>
      %cst_29 = arith.constant 0.000000e+00 : f32
      %81 = vector.broadcast %cst_29 : f32 to vector<8x256xf32>
      %82 = arith.cmpf ogt, %80, %81 : vector<8x256xf32>
      %cst_30 = arith.constant 2.000000e-01 : f32
      %83 = vector.broadcast %cst_30 : f32 to vector<8x256xf32>
      %84 = arith.mulf %83, %80 : vector<8x256xf32>
      %85 = arith.select %82, %80, %84 : vector<8x256xi1>, vector<8x256xf32>
      %c0_31 = arith.constant 0 : index
      %c0_32 = arith.constant 0 : index
      %86 = vector.load %arg5[%c0_31, %c0_32] : memref<8x256xf32, #tpu.memory_space<vmem>>, vector<8x256xf32>
      tpu.vector_store %arg5[%c0_31, %c0_32], %85 {strides = array<i32>} : memref<8x256xf32, #tpu.memory_space<vmem>>, vector<8x256xf32>,
    } else {
    }
    return
  }
  func.func @transform_0(%arg0: i32, %arg1: i32) -> (i32, i32) {
    %c0_i32 = arith.constant 0 : i32
    %c0_i32_0 = arith.constant 0 : i32
    return %c0_i32, %arg1 : i32, i32
  }
  func.func @transform_1(%arg0: i32, %arg1: i32) -> (i32, i32) {
    %c0_i32 = arith.constant 0 : i32
    return %arg1, %arg0 : i32, i32
  }
  func.func @transform_2(%arg0: i32, %arg1: i32) -> (i32, i32) {
    %c0_i32 = arith.constant 0 : i32
    %c0_i32_0 = arith.constant 0 : i32
    return %c0_i32, %arg0 : i32, i32
  }
  func.func @transform_3(%arg0: i32, %arg1: i32) -> (i32, i32) {
    %c0_i32 = arith.constant 0 : i32
    %c0_i32_0 = arith.constant 0 : i32
    return %c0_i32, %arg0 : i32, i32
  }
}

module attributes {stable_mosaic.version = 11 : i64} {
  func.func @kernel(%arg0: i32, %arg1: i32, %arg2: memref<8x2048xbf16, #tpu.memory_space<vmem>>, %arg3: memref<2048x128xbf16, #tpu.memory_space<vmem>>, %arg4: memref<1x128xf32, #tpu.memory_space<vmem>>, %arg5: memref<8x128xf32, #tpu.memory_space<vmem>>, %arg6: memref<8x128xf32, #tpu.memory_space<vmem>>) attributes {dimension_semantics = [#tpu.dimension_semantics<parallel>, #tpu.dimension_semantics<arbitrary>], iteration_bounds = array<i64: 1, 4>, scalar_prefetch = 0 : i64, scratch_operands = 1 : i64, tpu.core_type = #tpu.core_type<tc>, window_params = [{transform_indices = @transform_0, window_bounds = array<i64: 8, 2048>}, {transform_indices = @transform_1, window_bounds = array<i64: 2048, 128>}, {transform_indices = @transform_2, window_bounds = array<i64: 1, 128>}, {transform_indices = @transform_3, window_bounds = array<i64: 8, 128>}]} {
    %c0_i32 = arith.constant 0 : i32
    %0 = arith.cmpi eq, %arg1, %c0_i32 : i32
    %1 = arith.extui %0 : i1 to i32
    %c0_i32_0 = arith.constant 0 : i32
    %2 = arith.cmpi ne, %1, %c0_i32_0 : i32
    scf.if %2 {
      %cst_9 = arith.constant 0.000000e+00 : f32
      %12 = vector.broadcast %cst_9 : f32 to vector<8x128xf32>
      %c0_10 = arith.constant 0 : index
      %c0_11 = arith.constant 0 : index
      %13 = vector.load %arg6[%c0_10, %c0_11] : memref<8x128xf32, #tpu.memory_space<vmem>>, vector<8x128xf32>
      tpu.vector_store %arg6[%c0_10, %c0_11], %12 {strides = array<i32>} : memref<8x128xf32, #tpu.memory_space<vmem>>, vector<8x128xf32>,
    } else {
    }
    %c0 = arith.constant 0 : index
    %c0_1 = arith.constant 0 : index
    %3 = vector.load %arg6[%c0, %c0_1] : memref<8x128xf32, #tpu.memory_space<vmem>>, vector<8x128xf32>
    %c0_2 = arith.constant 0 : index
    %c0_3 = arith.constant 0 : index
    %4 = vector.load %arg2[%c0_2, %c0_3] : memref<8x2048xbf16, #tpu.memory_space<vmem>>, vector<8x2048xbf16>
    %c0_4 = arith.constant 0 : index
    %c0_5 = arith.constant 0 : index
    %5 = vector.load %arg3[%c0_4, %c0_5] : memref<2048x128xbf16, #tpu.memory_space<vmem>>, vector<2048x128xbf16>
    %cst = arith.constant dense<0.000000e+00> : vector<8x128xf32>
    %6 = tpu.matmul %4, %5, %cst {dimension_numbers = #tpu.dot_dimension_numbers<[1], [0], [0], [1], [0, 0, 1, 1], [], []>} : vector<8x2048xbf16>, vector<2048x128xbf16>, vector<8x128xf32> -> vector<8x128xf32>
    %7 = arith.addf %3, %6 : vector<8x128xf32>
    %c0_6 = arith.constant 0 : index
    %c0_7 = arith.constant 0 : index
    %8 = vector.load %arg6[%c0_6, %c0_7] : memref<8x128xf32, #tpu.memory_space<vmem>>, vector<8x128xf32>
    tpu.vector_store %arg6[%c0_6, %c0_7], %7 {strides = array<i32>} : memref<8x128xf32, #tpu.memory_space<vmem>>, vector<8x128xf32>,
    %c3_i32 = arith.constant 3 : i32
    %9 = arith.cmpi eq, %arg1, %c3_i32 : i32
    %10 = arith.extui %9 : i1 to i32
    %c0_i32_8 = arith.constant 0 : i32
    %11 = arith.cmpi ne, %10, %c0_i32_8 : i32
    scf.if %11 {
      %c0_9 = arith.constant 0 : index
      %c0_10 = arith.constant 0 : index
      %12 = vector.load %arg6[%c0_9, %c0_10] : memref<8x128xf32, #tpu.memory_space<vmem>>, vector<8x128xf32>
      %c0_11 = arith.constant 0 : index
      %c0_12 = arith.constant 0 : index
      %13 = vector.load %arg4[%c0_11, %c0_12] : memref<1x128xf32, #tpu.memory_space<vmem>>, vector<1x128xf32>
      %14 = vector.broadcast %13 : vector<1x128xf32> to vector<8x128xf32>
      %15 = arith.addf %12, %14 : vector<8x128xf32>
      %c0_13 = arith.constant 0 : index
      %c0_14 = arith.constant 0 : index
      %16 = vector.load %arg5[%c0_13, %c0_14] : memref<8x128xf32, #tpu.memory_space<vmem>>, vector<8x128xf32>
      tpu.vector_store %arg5[%c0_13, %c0_14], %15 {strides = array<i32>} : memref<8x128xf32, #tpu.memory_space<vmem>>, vector<8x128xf32>,
    } else {
    }
    return
  }
  func.func @transform_0(%arg0: i32, %arg1: i32) -> (i32, i32) {
    %c0_i32 = arith.constant 0 : i32
    %c0_i32_0 = arith.constant 0 : i32
    return %c0_i32, %arg1 : i32, i32
  }
  func.func @transform_1(%arg0: i32, %arg1: i32) -> (i32, i32) {
    %c0_i32 = arith.constant 0 : i32
    return %arg1, %arg0 : i32, i32
  }
  func.func @transform_2(%arg0: i32, %arg1: i32) -> (i32, i32) {
    %c0_i32 = arith.constant 0 : i32
    %c0_i32_0 = arith.constant 0 : i32
    return %c0_i32, %arg0 : i32, i32
  }
  func.func @transform_3(%arg0: i32, %arg1: i32) -> (i32, i32) {
    %c0_i32 = arith.constant 0 : i32
    %c0_i32_0 = arith.constant 0 : i32
    return %c0_i32, %arg0 : i32, i32
  }
}

</mosaic_0001>

<bundles_post_ra>
// kernel: _lambda_.5
= control target key start
LH: loop header
LB: loop body
LE: loop exit
PB: predicated region body
PF: predicated region fallthrough
CT: control target
= control target key end

     0   :  { %8 = vsyncpa [#allocation3], 0  ;;  %s1529_s0 = inlined_call_operand.vmem [shape: bf16[512,128], index: 0, kind: input, shape index: {}]   ;;  %s1530_s1 = inlined_call_operand.hbm [shape: bf16[128,64], index: 1, kind: input, shape index: {}]   ;;  %s1531_s2 = inlined_call_operand.hbm [shape: f32[1,64], index: 2, kind: input, shape index: {}]   ;;  %s1532_s3 = inlined_call_operand.vmem [shape: f32[512,64], index: 3, kind: output, shape index: {}]  }
   0x1   :  { %s16_s14 = sshll.u32 %s1530_s1, 4  ;;  %s17_s14 = int_to_ptr.hbm [resolvable:$true] %s16_s14 }
   0x2   :  { %9 = vsyncpa [#allocation5], 0  ;;  %s1081_s15 = smov [#allocation2]   ;;  %s30_s19 = sshll.u32 %s1531_s2, 4  ;;  %s31_s19 = int_to_ptr.hbm [resolvable:$true] %s30_s19 }
   0x3   :  { %s18_s16 = sshll.u32 %s1081_s15, 4  ;;  %s1082_s20 = smov 64   ;;  %s19_s16 = int_to_ptr.vmem [resolvable:$true] %s18_s16 }
   0x4   :  { %s1083_s21 = smov 4   ;;  %s1084_s22 = smov [#allocation4]  }
   0x5   :  { %24 = dma.hbm_to_vmem [thread:$0]  %s17_s14, 1024, %s19_s16, [#allocation3], %s1082_s20, %s1082_s20, %s1083_s21  }
   0x6   :  { %s32_s23 = sshll.u32 %s1084_s22, 4  ;;  %s33_s23 = int_to_ptr.vmem [resolvable:$true] %s32_s23 }
   0x7   :  { %35 = dma.hbm_to_vmem [thread:$0]  %s31_s19, 16, %s33_s23, [#allocation5]  }
   0x8   :  { %1077 = dma.done.wait [#allocation3], 1024  }
   0x9   :  { %1078 = vsyncadd [#allocation3], 4294966272 }
   0xa   :  { %1079 = dma.done.wait [#allocation5], 16  }
   0xb   :  { %1080 = vsyncadd [#allocation5], 4294967280  ;;  %v999_v0 = vld [vmem:[#allocation2 + $0x38] sm:$0xff]  ;;  %v998_v1 = vld [vmem:[#allocation2 + $0x30] sm:$0xff]  ;;  %vm729_vm0 = vcmask 523264  }
   0xc   :  { %368 = vmatpush.bf16.msra.mxu0 %v999_v0  ;;  %1000 = vmatpush.bf16.msra.mxu1 %v999_v0  ;;  %v997_v2 = vld [vmem:[#allocation2 + $0x28] sm:$0xff]  ;;  %v996_v3 = vld [vmem:[#allocation2 + $0x20] sm:$0xff]  ;;  %v995_v4 = vld [vmem:[#allocation2 + $0x18] sm:$0xff] }
   0xd   :  { %1001 = vmatpush.bf16.msra.mxu2 %v999_v0  ;;  %1002 = vmatpush.bf16.msra.mxu3 %v999_v0  ;;  %v994_v5 = vld [vmem:[#allocation2 + $0x10] sm:$0xff]  ;;  %v993_v6 = vld [vmem:[#allocation2 + $0x8] sm:$0xff]  ;;  %v992_v7 = vld [vmem:[#allocation2] sm:$0xff] }
   0xe   :  { %v960_v8 = vld [vmem:[%s1529_s0] sm:$0xff]  ;;  %v961_v12 = vld [vmem:[%s1529_s0 + $0x8] sm:$0xff]  ;;  %v962_v16 = vld [vmem:[%s1529_s0 + $0x10] sm:$0xff] }
   0xf   :  { %v968_v9 = vld [vmem:[%s1529_s0 + $0x40] sm:$0xff]  ;;  %v969_v13 = vld [vmem:[%s1529_s0 + $0x48] sm:$0xff]  ;;  %v970_v17 = vld [vmem:[%s1529_s0 + $0x50] sm:$0xff] }
  0x10   :  { %369 = vmatpush.bf16.msra.mxu0 %v998_v1  ;;  %1003 = vmatpush.bf16.msra.mxu1 %v998_v1  ;;  %v976_v10 = vld [vmem:[%s1529_s0 + $0x80] sm:$0xff]  ;;  %v977_v14 = vld [vmem:[%s1529_s0 + $0x88] sm:$0xff]  ;;  %v978_v18 = vld [vmem:[%s1529_s0 + $0x90] sm:$0xff] }
  0x11   :  { %1004 = vmatpush.bf16.msra.mxu2 %v998_v1  ;;  %1005 = vmatpush.bf16.msra.mxu3 %v998_v1  ;;  %v984_v11 = vld [vmem:[%s1529_s0 + $0xc0] sm:$0xff]  ;;  %v985_v15 = vld [vmem:[%s1529_s0 + $0xc8] sm:$0xff]  ;;  %v986_v19 = vld [vmem:[%s1529_s0 + $0xd0] sm:$0xff] }
  0x12   :  { %v963_v20 = vld [vmem:[%s1529_s0 + $0x18] sm:$0xff]  ;;  %v964_v24 = vld [vmem:[%s1529_s0 + $0x20] sm:$0xff]  ;;  %v965_v28 = vld [vmem:[%s1529_s0 + $0x28] sm:$0xff] }
  0x13   :  { %v971_v21 = vld [vmem:[%s1529_s0 + $0x58] sm:$0xff]  ;;  %v972_v25 = vld [vmem:[%s1529_s0 + $0x60] sm:$0xff]  ;;  %v973_v29 = vld [vmem:[%s1529_s0 + $0x68] sm:$0xff] }
  0x14   :  { %370 = vmatpush.bf16.msra.mxu0 %v997_v2  ;;  %1006 = vmatpush.bf16.msra.mxu1 %v997_v2  ;;  %v979_v22 = vld [vmem:[%s1529_s0 + $0x98] sm:$0xff]  ;;  %v980_v26 = vld [vmem:[%s1529_s0 + $0xa0] sm:$0xff]  ;;  %v981_v30 = vld [vmem:[%s1529_s0 + $0xa8] sm:$0xff] }
  0x15   :  { %1007 = vmatpush.bf16.msra.mxu2 %v997_v2  ;;  %1008 = vmatpush.bf16.msra.mxu3 %v997_v2  ;;  %v987_v23 = vld [vmem:[%s1529_s0 + $0xd8] sm:$0xff]  ;;  %v988_v27 = vld [vmem:[%s1529_s0 + $0xe0] sm:$0xff]  ;;  %v989_v31 = vld [vmem:[%s1529_s0 + $0xe8] sm:$0xff] }
  0x16   :  { %v966_v32 = vld [vmem:[%s1529_s0 + $0x30] sm:$0xff]  ;;  %v967_v36 = vld [vmem:[%s1529_s0 + $0x38] sm:$0xff]  ;;  %v1207_v40 = vld [vmem:[#allocation4] ss:$0 sm:$0xff] }
  0x17   :  { %v974_v33 = vld [vmem:[%s1529_s0 + $0x70] sm:$0xff]  ;;  %v975_v37 = vld [vmem:[%s1529_s0 + $0x78] sm:$0xff] }
  0x18   :  { %371 = vmatpush.bf16.msra.mxu0 %v996_v3  ;;  %1009 = vmatpush.bf16.msra.mxu1 %v996_v3  ;;  %v982_v34 = vld [vmem:[%s1529_s0 + $0xb0] sm:$0xff]  ;;  %v983_v38 = vld [vmem:[%s1529_s0 + $0xb8] sm:$0xff] }
  0x19   :  { %1010 = vmatpush.bf16.msra.mxu2 %v996_v3  ;;  %1011 = vmatpush.bf16.msra.mxu3 %v996_v3  ;;  %v990_v35 = vld [vmem:[%s1529_s0 + $0xf0] sm:$0xff]  ;;  %v991_v39 = vld [vmem:[%s1529_s0 + $0xf8] sm:$0xff] }
  0x1c   :  { %372 = vmatpush.bf16.msra.mxu0 %v995_v4  ;;  %1012 = vmatpush.bf16.msra.mxu1 %v995_v4 }
  0x1d   :  { %1013 = vmatpush.bf16.msra.mxu2 %v995_v4  ;;  %1014 = vmatpush.bf16.msra.mxu3 %v995_v4 }
  0x20   :  { %373 = vmatpush.bf16.msra.mxu0 %v994_v5  ;;  %1015 = vmatpush.bf16.msra.mxu1 %v994_v5 }
  0x21   :  { %1016 = vmatpush.bf16.msra.mxu2 %v994_v5  ;;  %1017 = vmatpush.bf16.msra.mxu3 %v994_v5 }
  0x24   :  { %374 = vmatpush.bf16.msra.mxu0 %v993_v6  ;;  %1018 = vmatpush.bf16.msra.mxu1 %v993_v6 }
  0x25   :  { %1019 = vmatpush.bf16.msra.mxu2 %v993_v6  ;;  %1020 = vmatpush.bf16.msra.mxu3 %v993_v6 }
  0x28   :  { %375 = vmatpush.bf16.msra.mxu0 %v992_v7  ;;  %1021 = vmatpush.bf16.msra.mxu1 %v992_v7 }
  0x29   :  { %1022 = vmatpush.bf16.msra.mxu2 %v992_v7  ;;  %1023 = vmatpush.bf16.msra.mxu3 %v992_v7 }
  0x2b   :  { %376 = vmatmul.bf16.vlgmr.msra.gmra.mxu0 %v960_v8  ;;  %416 = vmatmul.bf16.vlgmr.msra.gmra.mxu1 %v968_v9 }
  0x2c   :  { %456 = vmatmul.bf16.vlgmr.msra.gmra.mxu2 %v976_v10  ;;  %496 = vmatmul.bf16.vlgmr.msra.gmra.mxu3 %v984_v11 }
  0x3b   :  { %381 = vmatmul.bf16.gmra.mxu0 %v961_v12  ;;  %421 = vmatmul.bf16.gmra.mxu1 %v969_v13 }
  0x3c   :  { %461 = vmatmul.bf16.gmra.mxu2 %v977_v14  ;;  %501 = vmatmul.bf16.gmra.mxu3 %v985_v15 }
  0x4b   :  { %386 = vmatmul.bf16.gmra.mxu0 %v962_v16  ;;  %426 = vmatmul.bf16.gmra.mxu1 %v970_v17 }
  0x4c   :  { %466 = vmatmul.bf16.gmra.mxu2 %v978_v18  ;;  %506 = vmatmul.bf16.gmra.mxu3 %v986_v19 }
  0x5b   :  { %391 = vmatmul.bf16.gmra.mxu0 %v963_v20  ;;  %431 = vmatmul.bf16.gmra.mxu1 %v971_v21 }
  0x5c   :  { %471 = vmatmul.bf16.gmra.mxu2 %v979_v22  ;;  %511 = vmatmul.bf16.gmra.mxu3 %v987_v23 }
  0x6b   :  { %396 = vmatmul.bf16.gmra.mxu0 %v964_v24  ;;  %436 = vmatmul.bf16.gmra.mxu1 %v972_v25 }
  0x6c   :  { %476 = vmatmul.bf16.gmra.mxu2 %v980_v26  ;;  %516 = vmatmul.bf16.gmra.mxu3 %v988_v27 }
  0x7b   :  { %401 = vmatmul.bf16.gmra.mxu0 %v965_v28  ;;  %441 = vmatmul.bf16.gmra.mxu1 %v973_v29 }
  0x7c   :  { %481 = vmatmul.bf16.gmra.mxu2 %v981_v30  ;;  %521 = vmatmul.bf16.gmra.mxu3 %v989_v31 }
  0x8b   :  { %406 = vmatmul.bf16.gmra.mxu0 %v966_v32  ;;  %446 = vmatmul.bf16.gmra.mxu1 %v974_v33 }
  0x8c   :  { %486 = vmatmul.bf16.gmra.mxu2 %v982_v34  ;;  %526 = vmatmul.bf16.gmra.mxu3 %v990_v35 }
  0x9b   :  { %411 = vmatmul.bf16.gmra.mxu0 %v967_v36  ;;  %451 = vmatmul.bf16.gmra.mxu1 %v975_v37 }
  0x9c   :  { %491 = vmatmul.bf16.gmra.mxu2 %v983_v38  ;;  %531 = vmatmul.bf16.gmra.mxu3 %v991_v39 }
  0xa8   :  { %v377_v41 = vpop.f32.mrf.mxu0  ;;  %v417_v42 = vpop.f32.mrf.mxu1 }
  0xa9   :  { %v378_v43 = vadd.f32 %v1207_v40, %v377_v41  ;;  %v418_v44 = vadd.f32 %v1207_v40, %v417_v42 }
  0xab   :  { %vm537_vm1 = vcmp.gt.f32.partialorder %v378_v43, 0.0  ;;  %v601_v45 = vmul.f32 0.2, %v378_v43  ;;  %vm553_vm2 = vcmp.gt.f32.partialorder %v418_v44, 0.0  ;;  %v617_v46 = vmul.f32 0.2, %v418_v44 }
  0xad   :  { %v665_v47 = vsel %vm537_vm1, %v378_v43, %v601_v45  ;;  %v681_v48 = vsel %vm553_vm2, %v418_v44, %v617_v46 }
  0xae   :  { %730 = vst.msk [vmem:[%s1532_s3] sm:$0xff] %vm729_vm0, %v665_v47 }
  0xaf   :  { %746 = vst.msk [vmem:[%s1532_s3 + $0x80] sm:$0xff] %vm729_vm0, %v681_v48  ;;  %v457_v49 = vpop.f32.mrf.mxu2  ;;  %v497_v50 = vpop.f32.mrf.mxu3 }
  0xb0   :  { %v458_v51 = vadd.f32 %v1207_v40, %v457_v49  ;;  %v498_v52 = vadd.f32 %v1207_v40, %v497_v50  ;;  %v379_v53 = vpop.f32.mrf.mxu0  ;;  %v419_v54 = vpop.f32.mrf.mxu1 }
  0xb1   :  { %v380_v55 = vadd.f32 %v1207_v40, %v379_v53  ;;  %v420_v56 = vadd.f32 %v1207_v40, %v419_v54 }
  0xb2   :  { %vm569_vm3 = vcmp.gt.f32.partialorder %v458_v51, 0.0  ;;  %v633_v57 = vmul.f32 0.2, %v458_v51  ;;  %vm585_vm4 = vcmp.gt.f32.partialorder %v498_v52, 0.0  ;;  %v649_v58 = vmul.f32 0.2, %v498_v52 }
  0xb3   :  { %vm538_vm5 = vcmp.gt.f32.partialorder %v380_v55, 0.0  ;;  %v602_v59 = vmul.f32 0.2, %v380_v55  ;;  %vm554_vm6 = vcmp.gt.f32.partialorder %v420_v56, 0.0  ;;  %v618_v60 = vmul.f32 0.2, %v420_v56 }
  0xb4   :  { %v697_v61 = vsel %vm569_vm3, %v458_v51, %v633_v57  ;;  %v713_v62 = vsel %vm585_vm4, %v498_v52, %v649_v58 }
  0xb5   :  { %762 = vst.msk [vmem:[%s1532_s3 + $0x100] sm:$0xff] %vm729_vm0, %v697_v61  ;;  %v666_v63 = vsel %vm538_vm5, %v380_v55, %v602_v59  ;;  %v682_v0 = vsel %vm554_vm6, %v420_v56, %v618_v60 }
  0xb6   :  { %778 = vst.msk [vmem:[%s1532_s3 + $0x180] sm:$0xff] %vm729_vm0, %v713_v62 }
  0xb7   :  { %731 = vst.msk [vmem:[%s1532_s3 + $0x8] sm:$0xff] %vm729_vm0, %v666_v63  ;;  %v459_v1 = vpop.f32.mrf.mxu2  ;;  %v499_v2 = vpop.f32.mrf.mxu3 }
  0xb8   :  { %747 = vst.msk [vmem:[%s1532_s3 + $0x88] sm:$0xff] %vm729_vm0, %v682_v0  ;;  %v460_v3 = vadd.f32 %v1207_v40, %v459_v1  ;;  %v500_v4 = vadd.f32 %v1207_v40, %v499_v2  ;;  %v382_v5 = vpop.f32.mrf.mxu0  ;;  %v422_v6 = vpop.f32.mrf.mxu1 }
  0xb9   :  { %v383_v7 = vadd.f32 %v1207_v40, %v382_v5  ;;  %v423_v8 = vadd.f32 %v1207_v40, %v422_v6 }
  0xba   :  { %vm570_vm7 = vcmp.gt.f32.partialorder %v460_v3, 0.0  ;;  %v634_v9 = vmul.f32 0.2, %v460_v3  ;;  %vm586_vm8 = vcmp.gt.f32.partialorder %v500_v4, 0.0  ;;  %v650_v10 = vmul.f32 0.2, %v500_v4 }
  0xbb   :  { %vm539_vm9 = vcmp.gt.f32.partialorder %v383_v7, 0.0  ;;  %v603_v11 = vmul.f32 0.2, %v383_v7  ;;  %vm555_vm10 = vcmp.gt.f32.partialorder %v423_v8, 0.0  ;;  %v619_v12 = vmul.f32 0.2, %v423_v8 }
  0xbc   :  { %v698_v13 = vsel %vm570_vm7, %v460_v3, %v634_v9  ;;  %v714_v14 = vsel %vm586_vm8, %v500_v4, %v650_v10 }
  0xbd   :  { %763 = vst.msk [vmem:[%s1532_s3 + $0x108] sm:$0xff] %vm729_vm0, %v698_v13  ;;  %v667_v15 = vsel %vm539_vm9, %v383_v7, %v603_v11  ;;  %v683_v16 = vsel %vm555_vm10, %v423_v8, %v619_v12 }
  0xbe   :  { %779 = vst.msk [vmem:[%s1532_s3 + $0x188] sm:$0xff] %vm729_vm0, %v714_v14 }
  0xbf   :  { %732 = vst.msk [vmem:[%s1532_s3 + $0x10] sm:$0xff] %vm729_vm0, %v667_v15  ;;  %v462_v17 = vpop.f32.mrf.mxu2  ;;  %v502_v18 = vpop.f32.mrf.mxu3 }
  0xc0   :  { %748 = vst.msk [vmem:[%s1532_s3 + $0x90] sm:$0xff] %vm729_vm0, %v683_v16  ;;  %v463_v19 = vadd.f32 %v1207_v40, %v462_v17  ;;  %v503_v20 = vadd.f32 %v1207_v40, %v502_v18  ;;  %v384_v21 = vpop.f32.mrf.mxu0  ;;  %v424_v22 = vpop.f32.mrf.mxu1 }
  0xc1   :  { %v385_v23 = vadd.f32 %v1207_v40, %v384_v21  ;;  %v425_v24 = vadd.f32 %v1207_v40, %v424_v22 }
  0xc2   :  { %vm571_vm11 = vcmp.gt.f32.partialorder %v463_v19, 0.0  ;;  %v635_v25 = vmul.f32 0.2, %v463_v19  ;;  %vm587_vm12 = vcmp.gt.f32.partialorder %v503_v20, 0.0  ;;  %v651_v26 = vmul.f32 0.2, %v503_v20 }
  0xc3   :  { %vm540_vm13 = vcmp.gt.f32.partialorder %v385_v23, 0.0  ;;  %v604_v27 = vmul.f32 0.2, %v385_v23  ;;  %vm556_vm14 = vcmp.gt.f32.partialorder %v425_v24, 0.0  ;;  %v620_v28 = vmul.f32 0.2, %v425_v24 }
  0xc4   :  { %v699_v29 = vsel %vm571_vm11, %v463_v19, %v635_v25  ;;  %v715_v30 = vsel %vm587_vm12, %v503_v20, %v651_v26 }
  0xc5   :  { %764 = vst.msk [vmem:[%s1532_s3 + $0x110] sm:$0xff] %vm729_vm0, %v699_v29  ;;  %v668_v31 = vsel %vm540_vm13, %v385_v23, %v604_v27  ;;  %v684_v32 = vsel %vm556_vm14, %v425_v24, %v620_v28 }
  0xc6   :  { %780 = vst.msk [vmem:[%s1532_s3 + $0x190] sm:$0xff] %vm729_vm0, %v715_v30 }
  0xc7   :  { %733 = vst.msk [vmem:[%s1532_s3 + $0x18] sm:$0xff] %vm729_vm0, %v668_v31  ;;  %v464_v33 = vpop.f32.mrf.mxu2  ;;  %v504_v34 = vpop.f32.mrf.mxu3 }
  0xc8   :  { %749 = vst.msk [vmem:[%s1532_s3 + $0x98] sm:$0xff] %vm729_vm0, %v684_v32  ;;  %v465_v35 = vadd.f32 %v1207_v40, %v464_v33  ;;  %v505_v36 = vadd.f32 %v1207_v40, %v504_v34  ;;  %v387_v37 = vpop.f32.mrf.mxu0  ;;  %v427_v38 = vpop.f32.mrf.mxu1 }
  0xc9   :  { %v388_v39 = vadd.f32 %v1207_v40, %v387_v37  ;;  %v428_v41 = vadd.f32 %v1207_v40, %v427_v38 }
  0xca   :  { %vm572_vm15 = vcmp.gt.f32.partialorder %v465_v35, 0.0  ;;  %v636_v42 = vmul.f32 0.2, %v465_v35  ;;  %vm588_vm1 = vcmp.gt.f32.partialorder %v505_v36, 0.0  ;;  %v652_v43 = vmul.f32 0.2, %v505_v36 }
  0xcb   :  { %vm541_vm2 = vcmp.gt.f32.partialorder %v388_v39, 0.0  ;;  %v605_v44 = vmul.f32 0.2, %v388_v39  ;;  %vm557_vm3 = vcmp.gt.f32.partialorder %v428_v41, 0.0  ;;  %v621_v45 = vmul.f32 0.2, %v428_v41 }
  0xcc   :  { %v700_v46 = vsel %vm572_vm15, %v465_v35, %v636_v42  ;;  %v716_v47 = vsel %vm588_vm1, %v505_v36, %v652_v43 }
  0xcd   :  { %765 = vst.msk [vmem:[%s1532_s3 + $0x118] sm:$0xff] %vm729_vm0, %v700_v46  ;;  %v669_v48 = vsel %vm541_vm2, %v388_v39, %v605_v44  ;;  %v685_v49 = vsel %vm557_vm3, %v428_v41, %v621_v45 }
  0xce   :  { %781 = vst.msk [vmem:[%s1532_s3 + $0x198] sm:$0xff] %vm729_vm0, %v716_v47 }
  0xcf   :  { %734 = vst.msk [vmem:[%s1532_s3 + $0x20] sm:$0xff] %vm729_vm0, %v669_v48  ;;  %v467_v50 = vpop.f32.mrf.mxu2  ;;  %v507_v51 = vpop.f32.mrf.mxu3 }
  0xd0   :  { %750 = vst.msk [vmem:[%s1532_s3 + $0xa0] sm:$0xff] %vm729_vm0, %v685_v49  ;;  %v468_v52 = vadd.f32 %v1207_v40, %v467_v50  ;;  %v508_v53 = vadd.f32 %v1207_v40, %v507_v51  ;;  %v389_v54 = vpop.f32.mrf.mxu0  ;;  %v429_v55 = vpop.f32.mrf.mxu1 }
  0xd1   :  { %v390_v56 = vadd.f32 %v1207_v40, %v389_v54  ;;  %v430_v57 = vadd.f32 %v1207_v40, %v429_v55 }
  0xd2   :  { %vm573_vm4 = vcmp.gt.f32.partialorder %v468_v52, 0.0  ;;  %v637_v58 = vmul.f32 0.2, %v468_v52  ;;  %vm589_vm5 = vcmp.gt.f32.partialorder %v508_v53, 0.0  ;;  %v653_v59 = vmul.f32 0.2, %v508_v53 }
  0xd3   :  { %vm542_vm6 = vcmp.gt.f32.partialorder %v390_v56, 0.0  ;;  %v606_v60 = vmul.f32 0.2, %v390_v56  ;;  %vm558_vm7 = vcmp.gt.f32.partialorder %v430_v57, 0.0  ;;  %v622_v61 = vmul.f32 0.2, %v430_v57 }
  0xd4   :  { %v701_v62 = vsel %vm573_vm4, %v468_v52, %v637_v58  ;;  %v717_v63 = vsel %vm589_vm5, %v508_v53, %v653_v59 }
  0xd5   :  { %766 = vst.msk [vmem:[%s1532_s3 + $0x120] sm:$0xff] %vm729_vm0, %v701_v62  ;;  %v670_v0 = vsel %vm542_vm6, %v390_v56, %v606_v60  ;;  %v686_v1 = vsel %vm558_vm7, %v430_v57, %v622_v61 }
  0xd6   :  { %782 = vst.msk [vmem:[%s1532_s3 + $0x1a0] sm:$0xff] %vm729_vm0, %v717_v63 }
  0xd7   :  { %735 = vst.msk [vmem:[%s1532_s3 + $0x28] sm:$0xff] %vm729_vm0, %v670_v0  ;;  %v469_v2 = vpop.f32.mrf.mxu2  ;;  %v509_v3 = vpop.f32.mrf.mxu3 }
  0xd8   :  { %751 = vst.msk [vmem:[%s1532_s3 + $0xa8] sm:$0xff] %vm729_vm0, %v686_v1  ;;  %v470_v4 = vadd.f32 %v1207_v40, %v469_v2  ;;  %v510_v5 = vadd.f32 %v1207_v40, %v509_v3  ;;  %v392_v6 = vpop.f32.mrf.mxu0  ;;  %v432_v7 = vpop.f32.mrf.mxu1 }
  0xd9   :  { %v393_v8 = vadd.f32 %v1207_v40, %v392_v6  ;;  %v433_v9 = vadd.f32 %v1207_v40, %v432_v7 }
  0xda   :  { %vm574_vm8 = vcmp.gt.f32.partialorder %v470_v4, 0.0  ;;  %v638_v10 = vmul.f32 0.2, %v470_v4  ;;  %vm590_vm9 = vcmp.gt.f32.partialorder %v510_v5, 0.0  ;;  %v654_v11 = vmul.f32 0.2, %v510_v5 }
  0xdb   :  { %vm543_vm10 = vcmp.gt.f32.partialorder %v393_v8, 0.0  ;;  %v607_v12 = vmul.f32 0.2, %v393_v8  ;;  %vm559_vm11 = vcmp.gt.f32.partialorder %v433_v9, 0.0  ;;  %v623_v13 = vmul.f32 0.2, %v433_v9 }
  0xdc   :  { %v702_v14 = vsel %vm574_vm8, %v470_v4, %v638_v10  ;;  %v718_v15 = vsel %vm590_vm9, %v510_v5, %v654_v11 }
  0xdd   :  { %767 = vst.msk [vmem:[%s1532_s3 + $0x128] sm:$0xff] %vm729_vm0, %v702_v14  ;;  %v671_v16 = vsel %vm543_vm10, %v393_v8, %v607_v12  ;;  %v687_v17 = vsel %vm559_vm11, %v433_v9, %v623_v13 }
  0xde   :  { %783 = vst.msk [vmem:[%s1532_s3 + $0x1a8] sm:$0xff] %vm729_vm0, %v718_v15 }
  0xdf   :  { %736 = vst.msk [vmem:[%s1532_s3 + $0x30] sm:$0xff] %vm729_vm0, %v671_v16  ;;  %v472_v18 = vpop.f32.mrf.mxu2  ;;  %v512_v19 = vpop.f32.mrf.mxu3 }
  0xe0   :  { %752 = vst.msk [vmem:[%s1532_s3 + $0xb0] sm:$0xff] %vm729_vm0, %v687_v17  ;;  %v473_v20 = vadd.f32 %v1207_v40, %v472_v18  ;;  %v513_v21 = vadd.f32 %v1207_v40, %v512_v19  ;;  %v394_v22 = vpop.f32.mrf.mxu0  ;;  %v434_v23 = vpop.f32.mrf.mxu1 }
  0xe1   :  { %v395_v24 = vadd.f32 %v1207_v40, %v394_v22  ;;  %v435_v25 = vadd.f32 %v1207_v40, %v434_v23 }
  0xe2   :  { %vm575_vm12 = vcmp.gt.f32.partialorder %v473_v20, 0.0  ;;  %v639_v26 = vmul.f32 0.2, %v473_v20  ;;  %vm591_vm13 = vcmp.gt.f32.partialorder %v513_v21, 0.0  ;;  %v655_v27 = vmul.f32 0.2, %v513_v21 }
  0xe3   :  { %vm544_vm14 = vcmp.gt.f32.partialorder %v395_v24, 0.0  ;;  %v608_v28 = vmul.f32 0.2, %v395_v24  ;;  %vm560_vm15 = vcmp.gt.f32.partialorder %v435_v25, 0.0  ;;  %v624_v29 = vmul.f32 0.2, %v435_v25 }
  0xe4   :  { %v703_v30 = vsel %vm575_vm12, %v473_v20, %v639_v26  ;;  %v719_v31 = vsel %vm591_vm13, %v513_v21, %v655_v27 }
  0xe5   :  { %768 = vst.msk [vmem:[%s1532_s3 + $0x130] sm:$0xff] %vm729_vm0, %v703_v30  ;;  %v672_v32 = vsel %vm544_vm14, %v395_v24, %v608_v28  ;;  %v688_v33 = vsel %vm560_vm15, %v435_v25, %v624_v29 }
  0xe6   :  { %784 = vst.msk [vmem:[%s1532_s3 + $0x1b0] sm:$0xff] %vm729_vm0, %v719_v31 }
  0xe7   :  { %737 = vst.msk [vmem:[%s1532_s3 + $0x38] sm:$0xff] %vm729_vm0, %v672_v32  ;;  %v474_v34 = vpop.f32.mrf.mxu2  ;;  %v514_v35 = vpop.f32.mrf.mxu3 }
  0xe8   :  { %753 = vst.msk [vmem:[%s1532_s3 + $0xb8] sm:$0xff] %vm729_vm0, %v688_v33  ;;  %v475_v36 = vadd.f32 %v1207_v40, %v474_v34  ;;  %v515_v37 = vadd.f32 %v1207_v40, %v514_v35  ;;  %v397_v38 = vpop.f32.mrf.mxu0  ;;  %v437_v39 = vpop.f32.mrf.mxu1 }
  0xe9   :  { %v398_v41 = vadd.f32 %v1207_v40, %v397_v38  ;;  %v438_v42 = vadd.f32 %v1207_v40, %v437_v39 }
  0xea   :  { %vm576_vm1 = vcmp.gt.f32.partialorder %v475_v36, 0.0  ;;  %v640_v43 = vmul.f32 0.2, %v475_v36  ;;  %vm592_vm2 = vcmp.gt.f32.partialorder %v515_v37, 0.0  ;;  %v656_v44 = vmul.f32 0.2, %v515_v37 }
  0xeb   :  { %vm545_vm3 = vcmp.gt.f32.partialorder %v398_v41, 0.0  ;;  %v609_v45 = vmul.f32 0.2, %v398_v41  ;;  %vm561_vm4 = vcmp.gt.f32.partialorder %v438_v42, 0.0  ;;  %v625_v46 = vmul.f32 0.2, %v438_v42 }
  0xec   :  { %v704_v47 = vsel %vm576_vm1, %v475_v36, %v640_v43  ;;  %v720_v48 = vsel %vm592_vm2, %v515_v37, %v656_v44 }
  0xed   :  { %769 = vst.msk [vmem:[%s1532_s3 + $0x138] sm:$0xff] %vm729_vm0, %v704_v47  ;;  %v673_v49 = vsel %vm545_vm3, %v398_v41, %v609_v45  ;;  %v689_v50 = vsel %vm561_vm4, %v438_v42, %v625_v46 }
  0xee   :  { %785 = vst.msk [vmem:[%s1532_s3 + $0x1b8] sm:$0xff] %vm729_vm0, %v720_v48 }
  0xef   :  { %738 = vst.msk [vmem:[%s1532_s3 + $0x40] sm:$0xff] %vm729_vm0, %v673_v49  ;;  %v477_v51 = vpop.f32.mrf.mxu2  ;;  %v517_v52 = vpop.f32.mrf.mxu3 }
  0xf0   :  { %754 = vst.msk [vmem:[%s1532_s3 + $0xc0] sm:$0xff] %vm729_vm0, %v689_v50  ;;  %v478_v53 = vadd.f32 %v1207_v40, %v477_v51  ;;  %v518_v54 = vadd.f32 %v1207_v40, %v517_v52  ;;  %v399_v55 = vpop.f32.mrf.mxu0  ;;  %v439_v56 = vpop.f32.mrf.mxu1 }
  0xf1   :  { %v400_v57 = vadd.f32 %v1207_v40, %v399_v55  ;;  %v440_v58 = vadd.f32 %v1207_v40, %v439_v56 }
  0xf2   :  { %vm577_vm5 = vcmp.gt.f32.partialorder %v478_v53, 0.0  ;;  %v641_v59 = vmul.f32 0.2, %v478_v53  ;;  %vm593_vm6 = vcmp.gt.f32.partialorder %v518_v54, 0.0  ;;  %v657_v60 = vmul.f32 0.2, %v518_v54 }
  0xf3   :  { %vm546_vm7 = vcmp.gt.f32.partialorder %v400_v57, 0.0  ;;  %v610_v61 = vmul.f32 0.2, %v400_v57  ;;  %vm562_vm8 = vcmp.gt.f32.partialorder %v440_v58, 0.0  ;;  %v626_v62 = vmul.f32 0.2, %v440_v58 }
  0xf4   :  { %v705_v63 = vsel %vm577_vm5, %v478_v53, %v641_v59  ;;  %v721_v0 = vsel %vm593_vm6, %v518_v54, %v657_v60 }
  0xf5   :  { %770 = vst.msk [vmem:[%s1532_s3 + $0x140] sm:$0xff] %vm729_vm0, %v705_v63  ;;  %v674_v1 = vsel %vm546_vm7, %v400_v57, %v610_v61  ;;  %v690_v2 = vsel %vm562_vm8, %v440_v58, %v626_v62 }
  0xf6   :  { %786 = vst.msk [vmem:[%s1532_s3 + $0x1c0] sm:$0xff] %vm729_vm0, %v721_v0 }
  0xf7   :  { %739 = vst.msk [vmem:[%s1532_s3 + $0x48] sm:$0xff] %vm729_vm0, %v674_v1  ;;  %v479_v3 = vpop.f32.mrf.mxu2  ;;  %v519_v4 = vpop.f32.mrf.mxu3 }
  0xf8   :  { %755 = vst.msk [vmem:[%s1532_s3 + $0xc8] sm:$0xff] %vm729_vm0, %v690_v2  ;;  %v480_v5 = vadd.f32 %v1207_v40, %v479_v3  ;;  %v520_v6 = vadd.f32 %v1207_v40, %v519_v4  ;;  %v402_v7 = vpop.f32.mrf.mxu0  ;;  %v442_v8 = vpop.f32.mrf.mxu1 }
  0xf9   :  { %v403_v9 = vadd.f32 %v1207_v40, %v402_v7  ;;  %v443_v10 = vadd.f32 %v1207_v40, %v442_v8 }
  0xfa   :  { %vm578_vm9 = vcmp.gt.f32.partialorder %v480_v5, 0.0  ;;  %v642_v11 = vmul.f32 0.2, %v480_v5  ;;  %vm594_vm10 = vcmp.gt.f32.partialorder %v520_v6, 0.0  ;;  %v658_v12 = vmul.f32 0.2, %v520_v6 }
  0xfb   :  { %vm547_vm11 = vcmp.gt.f32.partialorder %v403_v9, 0.0  ;;  %v611_v13 = vmul.f32 0.2, %v403_v9  ;;  %vm563_vm12 = vcmp.gt.f32.partialorder %v443_v10, 0.0  ;;  %v627_v14 = vmul.f32 0.2, %v443_v10 }
  0xfc   :  { %v706_v15 = vsel %vm578_vm9, %v480_v5, %v642_v11  ;;  %v722_v16 = vsel %vm594_vm10, %v520_v6, %v658_v12 }
  0xfd   :  { %771 = vst.msk [vmem:[%s1532_s3 + $0x148] sm:$0xff] %vm729_vm0, %v706_v15  ;;  %v675_v17 = vsel %vm547_vm11, %v403_v9, %v611_v13  ;;  %v691_v18 = vsel %vm563_vm12, %v443_v10, %v627_v14 }
  0xfe   :  { %787 = vst.msk [vmem:[%s1532_s3 + $0x1c8] sm:$0xff] %vm729_vm0, %v722_v16 }
  0xff   :  { %740 = vst.msk [vmem:[%s1532_s3 + $0x50] sm:$0xff] %vm729_vm0, %v675_v17  ;;  %v482_v19 = vpop.f32.mrf.mxu2  ;;  %v522_v20 = vpop.f32.mrf.mxu3 }
 0x100   :  { %756 = vst.msk [vmem:[%s1532_s3 + $0xd0] sm:$0xff] %vm729_vm0, %v691_v18  ;;  %v483_v21 = vadd.f32 %v1207_v40, %v482_v19  ;;  %v523_v22 = vadd.f32 %v1207_v40, %v522_v20  ;;  %v404_v23 = vpop.f32.mrf.mxu0  ;;  %v444_v24 = vpop.f32.mrf.mxu1 }
 0x101   :  { %v405_v25 = vadd.f32 %v1207_v40, %v404_v23  ;;  %v445_v26 = vadd.f32 %v1207_v40, %v444_v24 }
 0x102   :  { %vm579_vm13 = vcmp.gt.f32.partialorder %v483_v21, 0.0  ;;  %v643_v27 = vmul.f32 0.2, %v483_v21  ;;  %vm595_vm14 = vcmp.gt.f32.partialorder %v523_v22, 0.0  ;;  %v659_v28 = vmul.f32 0.2, %v523_v22 }
 0x103   :  { %vm548_vm15 = vcmp.gt.f32.partialorder %v405_v25, 0.0  ;;  %v612_v29 = vmul.f32 0.2, %v405_v25  ;;  %vm564_vm1 = vcmp.gt.f32.partialorder %v445_v26, 0.0  ;;  %v628_v30 = vmul.f32 0.2, %v445_v26 }
 0x104   :  { %v707_v31 = vsel %vm579_vm13, %v483_v21, %v643_v27  ;;  %v723_v32 = vsel %vm595_vm14, %v523_v22, %v659_v28 }
 0x105   :  { %772 = vst.msk [vmem:[%s1532_s3 + $0x150] sm:$0xff] %vm729_vm0, %v707_v31  ;;  %v676_v33 = vsel %vm548_vm15, %v405_v25, %v612_v29  ;;  %v692_v34 = vsel %vm564_vm1, %v445_v26, %v628_v30 }
 0x106   :  { %788 = vst.msk [vmem:[%s1532_s3 + $0x1d0] sm:$0xff] %vm729_vm0, %v723_v32 }
 0x107   :  { %741 = vst.msk [vmem:[%s1532_s3 + $0x58] sm:$0xff] %vm729_vm0, %v676_v33  ;;  %v484_v35 = vpop.f32.mrf.mxu2  ;;  %v524_v36 = vpop.f32.mrf.mxu3 }
 0x108   :  { %757 = vst.msk [vmem:[%s1532_s3 + $0xd8] sm:$0xff] %vm729_vm0, %v692_v34  ;;  %v485_v37 = vadd.f32 %v1207_v40, %v484_v35  ;;  %v525_v38 = vadd.f32 %v1207_v40, %v524_v36  ;;  %v407_v39 = vpop.f32.mrf.mxu0  ;;  %v447_v41 = vpop.f32.mrf.mxu1 }
 0x109   :  { %v408_v42 = vadd.f32 %v1207_v40, %v407_v39  ;;  %v448_v43 = vadd.f32 %v1207_v40, %v447_v41 }
 0x10a   :  { %vm580_vm2 = vcmp.gt.f32.partialorder %v485_v37, 0.0  ;;  %v644_v44 = vmul.f32 0.2, %v485_v37  ;;  %vm596_vm3 = vcmp.gt.f32.partialorder %v525_v38, 0.0  ;;  %v660_v45 = vmul.f32 0.2, %v525_v38 }
 0x10b   :  { %vm549_vm4 = vcmp.gt.f32.partialorder %v408_v42, 0.0  ;;  %v613_v46 = vmul.f32 0.2, %v408_v42  ;;  %vm565_vm5 = vcmp.gt.f32.partialorder %v448_v43, 0.0  ;;  %v629_v47 = vmul.f32 0.2, %v448_v43 }
 0x10c   :  { %v708_v48 = vsel %vm580_vm2, %v485_v37, %v644_v44  ;;  %v724_v49 = vsel %vm596_vm3, %v525_v38, %v660_v45 }
 0x10d   :  { %773 = vst.msk [vmem:[%s1532_s3 + $0x158] sm:$0xff] %vm729_vm0, %v708_v48  ;;  %v677_v50 = vsel %vm549_vm4, %v408_v42, %v613_v46  ;;  %v693_v51 = vsel %vm565_vm5, %v448_v43, %v629_v47 }
 0x10e   :  { %789 = vst.msk [vmem:[%s1532_s3 + $0x1d8] sm:$0xff] %vm729_vm0, %v724_v49 }
 0x10f   :  { %742 = vst.msk [vmem:[%s1532_s3 + $0x60] sm:$0xff] %vm729_vm0, %v677_v50  ;;  %v487_v52 = vpop.f32.mrf.mxu2  ;;  %v527_v53 = vpop.f32.mrf.mxu3 }
 0x110   :  { %758 = vst.msk [vmem:[%s1532_s3 + $0xe0] sm:$0xff] %vm729_vm0, %v693_v51  ;;  %v488_v54 = vadd.f32 %v1207_v40, %v487_v52  ;;  %v528_v55 = vadd.f32 %v1207_v40, %v527_v53  ;;  %v409_v56 = vpop.f32.mrf.mxu0  ;;  %v449_v57 = vpop.f32.mrf.mxu1 }
 0x111   :  { %v410_v58 = vadd.f32 %v1207_v40, %v409_v56  ;;  %v450_v59 = vadd.f32 %v1207_v40, %v449_v57 }
 0x112   :  { %vm581_vm6 = vcmp.gt.f32.partialorder %v488_v54, 0.0  ;;  %v645_v60 = vmul.f32 0.2, %v488_v54  ;;  %vm597_vm7 = vcmp.gt.f32.partialorder %v528_v55, 0.0  ;;  %v661_v61 = vmul.f32 0.2, %v528_v55 }
 0x113   :  { %vm550_vm8 = vcmp.gt.f32.partialorder %v410_v58, 0.0  ;;  %v614_v62 = vmul.f32 0.2, %v410_v58  ;;  %vm566_vm9 = vcmp.gt.f32.partialorder %v450_v59, 0.0  ;;  %v630_v63 = vmul.f32 0.2, %v450_v59 }
 0x114   :  { %v709_v0 = vsel %vm581_vm6, %v488_v54, %v645_v60  ;;  %v725_v1 = vsel %vm597_vm7, %v528_v55, %v661_v61 }
 0x115   :  { %774 = vst.msk [vmem:[%s1532_s3 + $0x160] sm:$0xff] %vm729_vm0, %v709_v0  ;;  %v678_v2 = vsel %vm550_vm8, %v410_v58, %v614_v62  ;;  %v694_v3 = vsel %vm566_vm9, %v450_v59, %v630_v63 }
 0x116   :  { %790 = vst.msk [vmem:[%s1532_s3 + $0x1e0] sm:$0xff] %vm729_vm0, %v725_v1 }
 0x117   :  { %743 = vst.msk [vmem:[%s1532_s3 + $0x68] sm:$0xff] %vm729_vm0, %v678_v2  ;;  %v489_v4 = vpop.f32.mrf.mxu2  ;;  %v529_v5 = vpop.f32.mrf.mxu3 }
 0x118   :  { %759 = vst.msk [vmem:[%s1532_s3 + $0xe8] sm:$0xff] %vm729_vm0, %v694_v3  ;;  %v490_v6 = vadd.f32 %v1207_v40, %v489_v4  ;;  %v530_v7 = vadd.f32 %v1207_v40, %v529_v5  ;;  %v412_v8 = vpop.f32.mrf.mxu0  ;;  %v452_v9 = vpop.f32.mrf.mxu1 }
 0x119   :  { %v413_v10 = vadd.f32 %v1207_v40, %v412_v8  ;;  %v453_v11 = vadd.f32 %v1207_v40, %v452_v9 }
 0x11a   :  { %vm582_vm10 = vcmp.gt.f32.partialorder %v490_v6, 0.0  ;;  %v646_v12 = vmul.f32 0.2, %v490_v6  ;;  %vm598_vm11 = vcmp.gt.f32.partialorder %v530_v7, 0.0  ;;  %v662_v13 = vmul.f32 0.2, %v530_v7 }
 0x11b   :  { %vm551_vm12 = vcmp.gt.f32.partialorder %v413_v10, 0.0  ;;  %v615_v14 = vmul.f32 0.2, %v413_v10  ;;  %vm567_vm13 = vcmp.gt.f32.partialorder %v453_v11, 0.0  ;;  %v631_v15 = vmul.f32 0.2, %v453_v11 }
 0x11c   :  { %v710_v16 = vsel %vm582_vm10, %v490_v6, %v646_v12  ;;  %v726_v17 = vsel %vm598_vm11, %v530_v7, %v662_v13 }
 0x11d   :  { %775 = vst.msk [vmem:[%s1532_s3 + $0x168] sm:$0xff] %vm729_vm0, %v710_v16  ;;  %v679_v18 = vsel %vm551_vm12, %v413_v10, %v615_v14  ;;  %v695_v19 = vsel %vm567_vm13, %v453_v11, %v631_v15 }
 0x11e   :  { %791 = vst.msk [vmem:[%s1532_s3 + $0x1e8] sm:$0xff] %vm729_vm0, %v726_v17 }
 0x11f   :  { %744 = vst.msk [vmem:[%s1532_s3 + $0x70] sm:$0xff] %vm729_vm0, %v679_v18  ;;  %v492_v20 = vpop.f32.mrf.mxu2  ;;  %v532_v21 = vpop.f32.mrf.mxu3 }
 0x120   :  { %760 = vst.msk [vmem:[%s1532_s3 + $0xf0] sm:$0xff] %vm729_vm0, %v695_v19  ;;  %v493_v22 = vadd.f32 %v1207_v40, %v492_v20  ;;  %v533_v23 = vadd.f32 %v1207_v40, %v532_v21  ;;  %v414_v24 = vpop.f32.mrf.mxu0  ;;  %v454_v25 = vpop.f32.mrf.mxu1 }
 0x121   :  { %v415_v26 = vadd.f32 %v1207_v40, %v414_v24  ;;  %v455_v27 = vadd.f32 %v1207_v40, %v454_v25 }
 0x122   :  { %vm583_vm14 = vcmp.gt.f32.partialorder %v493_v22, 0.0  ;;  %v647_v28 = vmul.f32 0.2, %v493_v22  ;;  %vm599_vm15 = vcmp.gt.f32.partialorder %v533_v23, 0.0  ;;  %v663_v29 = vmul.f32 0.2, %v533_v23 }
 0x123   :  { %vm552_vm1 = vcmp.gt.f32.partialorder %v415_v26, 0.0  ;;  %v616_v30 = vmul.f32 0.2, %v415_v26  ;;  %vm568_vm2 = vcmp.gt.f32.partialorder %v455_v27, 0.0  ;;  %v632_v31 = vmul.f32 0.2, %v455_v27 }
 0x124   :  { %v711_v32 = vsel %vm583_vm14, %v493_v22, %v647_v28  ;;  %v727_v33 = vsel %vm599_vm15, %v533_v23, %v663_v29 }
 0x125   :  { %776 = vst.msk [vmem:[%s1532_s3 + $0x170] sm:$0xff] %vm729_vm0, %v711_v32  ;;  %v680_v34 = vsel %vm552_vm1, %v415_v26, %v616_v30  ;;  %v696_v35 = vsel %vm568_vm2, %v455_v27, %v632_v31 }
 0x126   :  { %792 = vst.msk [vmem:[%s1532_s3 + $0x1f0] sm:$0xff] %vm729_vm0, %v727_v33 }
 0x127   :  { %745 = vst.msk [vmem:[%s1532_s3 + $0x78] sm:$0xff] %vm729_vm0, %v680_v34  ;;  %v494_v36 = vpop.f32.mrf.mxu2  ;;  %v534_v37 = vpop.f32.mrf.mxu3 }
 0x128   :  { %761 = vst.msk [vmem:[%s1532_s3 + $0xf8] sm:$0xff] %vm729_vm0, %v696_v35  ;;  %v495_v38 = vadd.f32 %v1207_v40, %v494_v36  ;;  %v535_v39 = vadd.f32 %v1207_v40, %v534_v37 }
 0x12a   :  { %vm584_vm3 = vcmp.gt.f32.partialorder %v495_v38, 0.0  ;;  %v648_v41 = vmul.f32 0.2, %v495_v38  ;;  %vm600_vm4 = vcmp.gt.f32.partialorder %v535_v39, 0.0  ;;  %v664_v42 = vmul.f32 0.2, %v535_v39 }
 0x12c   :  { %v712_v43 = vsel %vm584_vm3, %v495_v38, %v648_v41  ;;  %v728_v44 = vsel %vm600_vm4, %v535_v39, %v664_v42 }
 0x12d   :  { %777 = vst.msk [vmem:[%s1532_s3 + $0x178] sm:$0xff] %vm729_vm0, %v712_v43 }
 0x12e   :  { %793 = vst.msk [vmem:[%s1532_s3 + $0x1f8] sm:$0xff] %vm729_vm0, %v728_v44 }
 0x12f   :  { %798 = vsyncpa [#allocation3], 1 }
 0x130   :  { %799 = vsyncpa [#allocation5], 1 }

// kernel: _lambda_.6
= control target key start
LH: loop header
LB: loop body
LE: loop exit
PB: predicated region body
PF: predicated region fallthrough
CT: control target
= control target key end

     0   :  { %s3303_s1 = inlined_call_operand.vmem [shape: bf16[1024,128], index: 1, kind: input, shape index: {}]   ;;  %s3304_s2 = inlined_call_operand.vmem [shape: f32[1,128], index: 2, kind: input, shape index: {}]   ;;  %s3305_s0 = inlined_call_operand.vmem [shape: bf16[128,1024], index: 0, kind: input, shape index: {}]   ;;  %s3306_s3 = inlined_call_operand.vmem [shape: f32[128,128], index: 3, kind: output, shape index: {}]  }
   0x1   :  { %v2436_v0 = vld [vmem:[%s3303_s1 + $0x38] sm:$0xff]  ;;  %v2435_v4 = vld [vmem:[%s3303_s1 + $0x30] sm:$0xff]  ;;  %v2434_v8 = vld [vmem:[%s3303_s1 + $0x28] sm:$0xff] }
   0x2   :  { %v2444_v1 = vld [vmem:[%s3303_s1 + $0x78] sm:$0xff]  ;;  %914 = vmatpush.bf16.msra.mxu0 %v2436_v0  ;;  %v2443_v5 = vld [vmem:[%s3303_s1 + $0x70] sm:$0xff]  ;;  %v2442_v9 = vld [vmem:[%s3303_s1 + $0x68] sm:$0xff] }
   0x3   :  { %v2452_v2 = vld [vmem:[%s3303_s1 + $0xb8] sm:$0xff]  ;;  %963 = vmatpush.bf16.msra.mxu1 %v2444_v1  ;;  %v2451_v6 = vld [vmem:[%s3303_s1 + $0xb0] sm:$0xff]  ;;  %v2450_v10 = vld [vmem:[%s3303_s1 + $0xa8] sm:$0xff] }
   0x4   :  { %v2460_v3 = vld [vmem:[%s3303_s1 + $0xf8] sm:$0xff]  ;;  %1012 = vmatpush.bf16.msra.mxu2 %v2452_v2  ;;  %v2459_v7 = vld [vmem:[%s3303_s1 + $0xf0] sm:$0xff]  ;;  %v2458_v11 = vld [vmem:[%s3303_s1 + $0xe8] sm:$0xff] }
   0x5   :  { %1061 = vmatpush.bf16.msra.mxu3 %v2460_v3  ;;  %v2433_v12 = vld [vmem:[%s3303_s1 + $0x20] sm:$0xff]  ;;  %v2432_v16 = vld [vmem:[%s3303_s1 + $0x18] sm:$0xff]  ;;  %v2431_v20 = vld [vmem:[%s3303_s1 + $0x10] sm:$0xff] }
   0x6   :  { %915 = vmatpush.bf16.msra.mxu0 %v2435_v4  ;;  %v2441_v13 = vld [vmem:[%s3303_s1 + $0x60] sm:$0xff]  ;;  %v2440_v17 = vld [vmem:[%s3303_s1 + $0x58] sm:$0xff]  ;;  %v2439_v21 = vld [vmem:[%s3303_s1 + $0x50] sm:$0xff] }
   0x7   :  { %964 = vmatpush.bf16.msra.mxu1 %v2443_v5  ;;  %v2449_v14 = vld [vmem:[%s3303_s1 + $0xa0] sm:$0xff]  ;;  %v2448_v18 = vld [vmem:[%s3303_s1 + $0x98] sm:$0xff]  ;;  %v2447_v22 = vld [vmem:[%s3303_s1 + $0x90] sm:$0xff] }
   0x8   :  { %1013 = vmatpush.bf16.msra.mxu2 %v2451_v6  ;;  %v2457_v15 = vld [vmem:[%s3303_s1 + $0xe0] sm:$0xff]  ;;  %v2456_v19 = vld [vmem:[%s3303_s1 + $0xd8] sm:$0xff]  ;;  %v2455_v23 = vld [vmem:[%s3303_s1 + $0xd0] sm:$0xff] }
   0x9   :  { %1062 = vmatpush.bf16.msra.mxu3 %v2459_v7  ;;  %v2430_v24 = vld [vmem:[%s3303_s1 + $0x8] sm:$0xff]  ;;  %v2429_v28 = vld [vmem:[%s3303_s1] sm:$0xff]  ;;  %v2484_v40 = vld [vmem:[%s3303_s1 + $0x1b8] sm:$0xff] }
   0xa   :  { %916 = vmatpush.bf16.msra.mxu0 %v2434_v8  ;;  %v2438_v25 = vld [vmem:[%s3303_s1 + $0x48] sm:$0xff]  ;;  %v2437_v29 = vld [vmem:[%s3303_s1 + $0x40] sm:$0xff]  ;;  %v2468_v41 = vld [vmem:[%s3303_s1 + $0x138] sm:$0xff] }
   0xb   :  { %965 = vmatpush.bf16.msra.mxu1 %v2442_v9  ;;  %v2446_v26 = vld [vmem:[%s3303_s1 + $0x88] sm:$0xff]  ;;  %v2445_v30 = vld [vmem:[%s3303_s1 + $0x80] sm:$0xff]  ;;  %v2492_v46 = vld [vmem:[%s3303_s1 + $0x1f8] sm:$0xff] }
   0xc   :  { %1014 = vmatpush.bf16.msra.mxu2 %v2450_v10  ;;  %v2454_v27 = vld [vmem:[%s3303_s1 + $0xc8] sm:$0xff]  ;;  %v2453_v31 = vld [vmem:[%s3303_s1 + $0xc0] sm:$0xff]  ;;  %v2476_v47 = vld [vmem:[%s3303_s1 + $0x178] sm:$0xff] }
   0xd   :  { %1063 = vmatpush.bf16.msra.mxu3 %v2458_v11  ;;  %v1855_v32 = vld [vmem:[%s3305_s0] sm:$0xf]  ;;  %v2365_v34 = vld [vmem:[%s3305_s0 + $0x4] sm:$0xf]  ;;  %v1863_v36 = vld [vmem:[%s3305_s0 + $0x8] sm:$0xf] }
   0xe   :  { %917 = vmatpush.bf16.msra.mxu0 %v2433_v12  ;;  %v2369_v33 = vld [vmem:[%s3305_s0 + $0x1c] sm:$0xf0]  ;;  %v1857_v35 = vld [vmem:[%s3305_s0 + $0x20] sm:$0xf0]  ;;  %v2370_v37 = vld [vmem:[%s3305_s0 + $0x24] sm:$0xf0] }
   0xf   :  { %966 = vmatpush.bf16.msra.mxu1 %v2441_v13  ;;  %v2366_v38 = vld [vmem:[%s3305_s0 + $0xc] sm:$0xf]  ;;  %v1856_v42 = vor.u32 %v2369_v33, %v1855_v32  ;;  %v1860_v43 = vor.u32 %v2365_v34, %v1857_v35  ;;  %v1864_v44 = vor.u32 %v2370_v37, %v1863_v36  ;;  %v2483_v48 = vld [vmem:[%s3303_s1 + $0x1b0] sm:$0xff]  ;;  %v1887_v56 = vld [vmem:[%s3305_s0 + $0x40] sm:$0xf] }
  0x10   :  { %1015 = vmatpush.bf16.msra.mxu2 %v2449_v14  ;;  %v1865_v39 = vld [vmem:[%s3305_s0 + $0x28] sm:$0xf0]  ;;  %v2467_v49 = vld [vmem:[%s3303_s1 + $0x130] sm:$0xff]  ;;  %v2377_v57 = vld [vmem:[%s3305_s0 + $0x5c] sm:$0xf0] }
  0x11   :  { %1064 = vmatpush.bf16.msra.mxu3 %v2457_v15  ;;  %v1868_v45 = vor.u32 %v2366_v38, %v1865_v39  ;;  %v2491_v50 = vld [vmem:[%s3303_s1 + $0x1f0] sm:$0xff]  ;;  %v2482_v52 = vld [vmem:[%s3303_s1 + $0x1a8] sm:$0xff]  ;;  %v2373_v58 = vld [vmem:[%s3305_s0 + $0x44] sm:$0xf]  ;;  %v1888_v0 = vor.u32 %v2377_v57, %v1887_v56 }
  0x12   :  { %918 = vmatpush.bf16.msra.mxu0 %v2432_v16  ;;  %v2475_v51 = vld [vmem:[%s3303_s1 + $0x170] sm:$0xff]  ;;  %v2466_v53 = vld [vmem:[%s3303_s1 + $0x128] sm:$0xff]  ;;  %v1889_v59 = vld [vmem:[%s3305_s0 + $0x60] sm:$0xf0] }
  0x13   :  { %967 = vmatpush.bf16.msra.mxu1 %v2440_v17  ;;  %v2490_v54 = vld [vmem:[%s3303_s1 + $0x1e8] sm:$0xff]  ;;  %v1892_v1 = vor.u32 %v2373_v58, %v1889_v59  ;;  %v2481_v4 = vld [vmem:[%s3303_s1 + $0x1a0] sm:$0xff]  ;;  %v2479_v36 = vld [vmem:[%s3303_s1 + $0x190] sm:$0xff] }
  0x14   :  { %1016 = vmatpush.bf16.msra.mxu2 %v2448_v18  ;;  %v2474_v55 = vld [vmem:[%s3303_s1 + $0x168] sm:$0xff]  ;;  %v2465_v5 = vld [vmem:[%s3303_s1 + $0x120] sm:$0xff]  ;;  %v2463_v37 = vld [vmem:[%s3303_s1 + $0x110] sm:$0xff] }
  0x15   :  { %1065 = vmatpush.bf16.msra.mxu3 %v2456_v19  ;;  %v1895_v60 = vld [vmem:[%s3305_s0 + $0x48] sm:$0xf]  ;;  %v2374_v62 = vld [vmem:[%s3305_s0 + $0x4c] sm:$0xf]  ;;  %v2489_v6 = vld [vmem:[%s3303_s1 + $0x1e0] sm:$0xff] }
  0x16   :  { %919 = vmatpush.bf16.msra.mxu0 %v2431_v20  ;;  %v2378_v61 = vld [vmem:[%s3305_s0 + $0x64] sm:$0xf0]  ;;  %v1897_v63 = vld [vmem:[%s3305_s0 + $0x68] sm:$0xf0]  ;;  %v2473_v7 = vld [vmem:[%s3303_s1 + $0x160] sm:$0xff] }
  0x17   :  { %968 = vmatpush.bf16.msra.mxu1 %v2439_v21  ;;  %v1896_v2 = vor.u32 %v2378_v61, %v1895_v60  ;;  %v1900_v3 = vor.u32 %v2374_v62, %v1897_v63  ;;  %v1919_v8 = vld [vmem:[%s3305_s0 + $0x80] sm:$0xf]  ;;  %v2381_v10 = vld [vmem:[%s3305_s0 + $0x84] sm:$0xf]  ;;  %v1927_v12 = vld [vmem:[%s3305_s0 + $0x88] sm:$0xf] }
  0x18   :  { %1017 = vmatpush.bf16.msra.mxu2 %v2447_v22  ;;  %v2385_v9 = vld [vmem:[%s3305_s0 + $0x9c] sm:$0xf0]  ;;  %v1921_v11 = vld [vmem:[%s3305_s0 + $0xa0] sm:$0xf0]  ;;  %v2386_v13 = vld [vmem:[%s3305_s0 + $0xa4] sm:$0xf0] }
  0x19   :  { %1066 = vmatpush.bf16.msra.mxu3 %v2455_v23  ;;  %v2382_v14 = vld [vmem:[%s3305_s0 + $0x8c] sm:$0xf]  ;;  %v1920_v16 = vor.u32 %v2385_v9, %v1919_v8  ;;  %v1924_v17 = vor.u32 %v2381_v10, %v1921_v11  ;;  %v1928_v18 = vor.u32 %v2386_v13, %v1927_v12  ;;  %v2480_v20 = vld [vmem:[%s3303_s1 + $0x198] sm:$0xff]  ;;  %v2487_v38 = vld [vmem:[%s3303_s1 + $0x1d0] sm:$0xff] }
  0x1a   :  { %920 = vmatpush.bf16.msra.mxu0 %v2430_v24  ;;  %v1929_v15 = vld [vmem:[%s3305_s0 + $0xa8] sm:$0xf0]  ;;  %v2464_v21 = vld [vmem:[%s3303_s1 + $0x118] sm:$0xff]  ;;  %v1951_v24 = vld [vmem:[%s3305_s0 + $0xc0] sm:$0xf] }
  0x1b   :  { %969 = vmatpush.bf16.msra.mxu1 %v2438_v25  ;;  %v1932_v19 = vor.u32 %v2382_v14, %v1929_v15  ;;  %v2488_v22 = vld [vmem:[%s3303_s1 + $0x1d8] sm:$0xff]  ;;  %v2393_v25 = vld [vmem:[%s3305_s0 + $0xdc] sm:$0xf0]  ;;  %v2471_v39 = vld [vmem:[%s3303_s1 + $0x150] sm:$0xff] }
  0x1c   :  { %1018 = vmatpush.bf16.msra.mxu2 %v2446_v26  ;;  %v2472_v23 = vld [vmem:[%s3303_s1 + $0x158] sm:$0xff]  ;;  %v2389_v26 = vld [vmem:[%s3305_s0 + $0xc4] sm:$0xf]  ;;  %v1952_v32 = vor.u32 %v2393_v25, %v1951_v24  ;;  %v2015_v56 = vld [vmem:[%s3305_s0 + $0x140] sm:$0xf] }
  0x1d   :  { %1067 = vmatpush.bf16.msra.mxu3 %v2454_v27  ;;  %v1953_v27 = vld [vmem:[%s3305_s0 + $0xe0] sm:$0xf0]  ;;  %v2409_v57 = vld [vmem:[%s3305_s0 + $0x15c] sm:$0xf0]  ;;  %v2023_v60 = vld [vmem:[%s3305_s0 + $0x148] sm:$0xf] }
  0x1e   :  { %921 = vmatpush.bf16.msra.mxu0 %v2429_v28  ;;  %v1959_v28 = vld [vmem:[%s3305_s0 + $0xc8] sm:$0xf]  ;;  %v1956_v33 = vor.u32 %v2389_v26, %v1953_v27  ;;  %v2405_v58 = vld [vmem:[%s3305_s0 + $0x144] sm:$0xf]  ;;  %v2406_v62 = vld [vmem:[%s3305_s0 + $0x14c] sm:$0xf] }
  0x1f   :  { %970 = vmatpush.bf16.msra.mxu1 %v2437_v29  ;;  %v2394_v29 = vld [vmem:[%s3305_s0 + $0xe4] sm:$0xf0]  ;;  %v2017_v59 = vld [vmem:[%s3305_s0 + $0x160] sm:$0xf0]  ;;  %v2025_v63 = vld [vmem:[%s3305_s0 + $0x168] sm:$0xf0] }
  0x20   :  { %1019 = vmatpush.bf16.msra.mxu2 %v2445_v30  ;;  %v2390_v30 = vld [vmem:[%s3305_s0 + $0xcc] sm:$0xf]  ;;  %v1960_v34 = vor.u32 %v2394_v29, %v1959_v28  ;;  %v2410_v61 = vld [vmem:[%s3305_s0 + $0x164] sm:$0xf0]  ;;  %v2047_v8 = vld [vmem:[%s3305_s0 + $0x180] sm:$0xf] }
  0x21   :  { %1068 = vmatpush.bf16.msra.mxu3 %v2453_v31  ;;  %922 = vmatmul.bf16.vlgmr.msra.gmra.mxu0 %v1856_v42  ;;  %v1961_v31 = vld [vmem:[%s3305_s0 + $0xe8] sm:$0xf0]  ;;  %v2397_v42 = vld [vmem:[%s3305_s0 + $0x104] sm:$0xf]  ;;  %v2417_v9 = vld [vmem:[%s3305_s0 + $0x19c] sm:$0xf0] }
  0x22   :  { %1110 = vmatpush.bf16.msrb.mxu0 %v2468_v41  ;;  %971 = vmatmul.bf16.vlgmr.msra.gmra.mxu1 %v1860_v43  ;;  %v1964_v35 = vor.u32 %v2390_v30, %v1961_v31  ;;  %v2401_v41 = vld [vmem:[%s3305_s0 + $0x11c] sm:$0xf0]  ;;  %v1985_v43 = vld [vmem:[%s3305_s0 + $0x120] sm:$0xf0]  ;;  %v2055_v12 = vld [vmem:[%s3305_s0 + $0x188] sm:$0xf] }
  0x23   :  { %1020 = vmatmul.bf16.vlgmr.msra.gmra.mxu2 %v1864_v44  ;;  %1159 = vmatpush.bf16.msrb.mxu1 %v2476_v47  ;;  %v1991_v44 = vld [vmem:[%s3305_s0 + $0x108] sm:$0xf]  ;;  %v1993_v47 = vld [vmem:[%s3305_s0 + $0x128] sm:$0xf0]  ;;  %v2413_v10 = vld [vmem:[%s3305_s0 + $0x184] sm:$0xf] }
  0x24   :  { %1208 = vmatpush.bf16.msrb.mxu2 %v2484_v40  ;;  %1069 = vmatmul.bf16.vlgmr.msra.gmra.mxu3 %v1868_v45  ;;  %v1983_v40 = vld [vmem:[%s3305_s0 + $0x100] sm:$0xf]  ;;  %v2402_v45 = vld [vmem:[%s3305_s0 + $0x124] sm:$0xf0]  ;;  %v2049_v11 = vld [vmem:[%s3305_s0 + $0x1a0] sm:$0xf0] }
  0x25   :  { %1257 = vmatpush.bf16.msrb.mxu3 %v2492_v46  ;;  %v2398_v46 = vld [vmem:[%s3305_s0 + $0x10c] sm:$0xf]  ;;  %v2418_v13 = vld [vmem:[%s3305_s0 + $0x1a4] sm:$0xf0] }
  0x26   :  { %1111 = vmatpush.bf16.msrb.mxu0 %v2467_v49  ;;  %v1988_v49 = vor.u32 %v2397_v42, %v1985_v43  ;;  %v2414_v14 = vld [vmem:[%s3305_s0 + $0x18c] sm:$0xf]  ;;  %v2087_v24 = vld [vmem:[%s3305_s0 + $0x1c8] sm:$0xf] }
  0x27   :  { %1160 = vmatpush.bf16.msrb.mxu1 %v2475_v51  ;;  %v1996_v51 = vor.u32 %v2398_v46, %v1993_v47  ;;  %v2057_v15 = vld [vmem:[%s3305_s0 + $0x1a8] sm:$0xf0]  ;;  %v2426_v25 = vld [vmem:[%s3305_s0 + $0x1e4] sm:$0xf0] }
  0x28   :  { %1209 = vmatpush.bf16.msrb.mxu2 %v2483_v48  ;;  %v1984_v48 = vor.u32 %v2401_v41, %v1983_v40  ;;  %v2422_v26 = vld [vmem:[%s3305_s0 + $0x1cc] sm:$0xf]  ;;  %v2088_v30 = vor.u32 %v2426_v25, %v2087_v24  ;;  %v1881_v40 = vld [vmem:[%s3305_s0 + $0x38] sm:$0xf0]  ;;  %v1937_v24 = vld [vmem:[%s3305_s0 + $0xb0] sm:$0xf0] }
  0x29   :  { %1258 = vmatpush.bf16.msrb.mxu3 %v2491_v50  ;;  %v1992_v50 = vor.u32 %v2402_v45, %v1991_v44  ;;  %v2089_v27 = vld [vmem:[%s3305_s0 + $0x1e8] sm:$0xf0]  ;;  %v1943_v25 = vld [vmem:[%s3305_s0 + $0x98] sm:$0xf] }
  0x2a   :  { %1112 = vmatpush.bf16.msrb.mxu0 %v2466_v53  ;;  %v2462_v53 = vld [vmem:[%s3303_s1 + $0x108] sm:$0xff]  ;;  %v2092_v31 = vor.u32 %v2422_v26, %v2089_v27  ;;  %v2388_v26 = vld [vmem:[%s3305_s0 + $0xb4] sm:$0xf0]  ;;  %v2384_v27 = vld [vmem:[%s3305_s0 + $0x9c] sm:$0xf] }
  0x2b   :  { %1161 = vmatpush.bf16.msrb.mxu1 %v2474_v55  ;;  %v2470_v55 = vld [vmem:[%s3303_s1 + $0x148] sm:$0xff] }
  0x2c   :  { %1210 = vmatpush.bf16.msrb.mxu2 %v2482_v52  ;;  %v2478_v52 = vld [vmem:[%s3303_s1 + $0x188] sm:$0xff] }
  0x2d   :  { %1259 = vmatpush.bf16.msrb.mxu3 %v2490_v54  ;;  %v2486_v54 = vld [vmem:[%s3303_s1 + $0x1c8] sm:$0xff] }
  0x2e   :  { %1113 = vmatpush.bf16.msrb.mxu0 %v2465_v5  ;;  %v2461_v5 = vld [vmem:[%s3303_s1 + $0x100] sm:$0xff] }
  0x2f   :  { %1162 = vmatpush.bf16.msrb.mxu1 %v2473_v7  ;;  %v2469_v7 = vld [vmem:[%s3303_s1 + $0x140] sm:$0xff] }
  0x30   :  { %1211 = vmatpush.bf16.msrb.mxu2 %v2481_v4  ;;  %v2477_v4 = vld [vmem:[%s3303_s1 + $0x180] sm:$0xff] }
  0x31   :  { %927 = vmatmul.bf16.gmra.mxu0 %v1888_v0  ;;  %1260 = vmatpush.bf16.msrb.mxu3 %v2489_v6  ;;  %v2016_v0 = vor.u32 %v2409_v57, %v2015_v56  ;;  %v2485_v6 = vld [vmem:[%s3303_s1 + $0x1c0] sm:$0xff]  ;;  %v1903_v57 = vld [vmem:[%s3305_s0 + $0x50] sm:$0xf] }
  0x32   :  { %976 = vmatmul.bf16.gmra.mxu1 %v1892_v1  ;;  %1114 = vmatpush.bf16.msrb.mxu0 %v2464_v21  ;;  %v2020_v1 = vor.u32 %v2405_v58, %v2017_v59  ;;  %v2425_v21 = vld [vmem:[%s3305_s0 + $0x1dc] sm:$0xf0]  ;;  %v2379_v58 = vld [vmem:[%s3305_s0 + $0x6c] sm:$0xf0]  ;;  %v2375_v59 = vld [vmem:[%s3305_s0 + $0x54] sm:$0xf] }
  0x33   :  { %1025 = vmatmul.bf16.gmra.mxu2 %v1896_v2  ;;  %1163 = vmatpush.bf16.msrb.mxu1 %v2472_v23  ;;  %v2024_v2 = vor.u32 %v2410_v61, %v2023_v60  ;;  %v2081_v23 = vld [vmem:[%s3305_s0 + $0x1e0] sm:$0xf0]  ;;  %v1905_v60 = vld [vmem:[%s3305_s0 + $0x70] sm:$0xf0]  ;;  %v1911_v61 = vld [vmem:[%s3305_s0 + $0x58] sm:$0xf] }
  0x34   :  { %1074 = vmatmul.bf16.gmra.mxu3 %v1900_v3  ;;  %1212 = vmatpush.bf16.msrb.mxu2 %v2480_v20  ;;  %v2028_v3 = vor.u32 %v2406_v62, %v2025_v63  ;;  %v2079_v20 = vld [vmem:[%s3305_s0 + $0x1c0] sm:$0xf]  ;;  %v2380_v62 = vld [vmem:[%s3305_s0 + $0x74] sm:$0xf0]  ;;  %v2376_v63 = vld [vmem:[%s3305_s0 + $0x5c] sm:$0xf] }
  0x35   :  { %1261 = vmatpush.bf16.msrb.mxu3 %v2488_v22  ;;  %v2421_v22 = vld [vmem:[%s3305_s0 + $0x1c4] sm:$0xf]  ;;  %v2080_v28 = vor.u32 %v2425_v21, %v2079_v20  ;;  %v1935_v21 = vld [vmem:[%s3305_s0 + $0x90] sm:$0xf] }
  0x36   :  { %1115 = vmatpush.bf16.msrb.mxu0 %v2463_v37  ;;  %v2084_v29 = vor.u32 %v2421_v22, %v2081_v23  ;;  %v1879_v37 = vld [vmem:[%s3305_s0 + $0x18] sm:$0xf]  ;;  %v2387_v22 = vld [vmem:[%s3305_s0 + $0xac] sm:$0xf0]  ;;  %v2383_v23 = vld [vmem:[%s3305_s0 + $0x94] sm:$0xf] }
  0x37   :  { %1164 = vmatpush.bf16.msrb.mxu1 %v2471_v39  ;;  %v2368_v39 = vld [vmem:[%s3305_s0 + $0x1c] sm:$0xf] }
  0x38   :  { %1213 = vmatpush.bf16.msrb.mxu2 %v2479_v36  ;;  %v1873_v36 = vld [vmem:[%s3305_s0 + $0x30] sm:$0xf0]  ;;  %v1884_v46 = vor.u32 %v2368_v39, %v1881_v40 }
  0x39   :  { %1262 = vmatpush.bf16.msrb.mxu3 %v2487_v38  ;;  %v2372_v38 = vld [vmem:[%s3305_s0 + $0x34] sm:$0xf0] }
  0x3a   :  { %1116 = vmatpush.bf16.msrb.mxu0 %v2462_v53  ;;  %v1880_v45 = vor.u32 %v2372_v38, %v1879_v37  ;;  %v1944_v37 = vor.u32 %v2388_v26, %v1943_v25 }
  0x3b   :  { %1165 = vmatpush.bf16.msrb.mxu1 %v2470_v55 }
  0x3c   :  { %1214 = vmatpush.bf16.msrb.mxu2 %v2478_v52 }
  0x3d   :  { %1263 = vmatpush.bf16.msrb.mxu3 %v2486_v54 }
  0x3e   :  { %1117 = vmatpush.bf16.msrb.mxu0 %v2461_v5 }
  0x3f   :  { %1166 = vmatpush.bf16.msrb.mxu1 %v2469_v7 }
  0x40   :  { %1215 = vmatpush.bf16.msrb.mxu2 %v2477_v4  ;;  %v1908_v4 = vor.u32 %v2375_v59, %v1905_v60 }
  0x41   :  { %932 = vmatmul.bf16.gmra.mxu0 %v1920_v16  ;;  %1264 = vmatpush.bf16.msrb.mxu3 %v2485_v6  ;;  %v2048_v16 = vor.u32 %v2417_v9, %v2047_v8  ;;  %v1912_v8 = vor.u32 %v2380_v62, %v1911_v61 }
  0x42   :  { %981 = vmatmul.bf16.gmra.mxu1 %v1924_v17  ;;  %v2052_v17 = vor.u32 %v2413_v10, %v2049_v11 }
  0x43   :  { %1030 = vmatmul.bf16.gmra.mxu2 %v1928_v18  ;;  %v2056_v18 = vor.u32 %v2418_v13, %v2055_v12 }
  0x44   :  { %1079 = vmatmul.bf16.gmra.mxu3 %v1932_v19  ;;  %v2060_v19 = vor.u32 %v2414_v14, %v2057_v15 }
  0x51   :  { %937 = vmatmul.bf16.gmra.mxu0 %v1952_v32  ;;  %v2905_v32 = vld [vmem:[%s3304_s2] ss:$0 sm:$0xff] }
  0x52   :  { %986 = vmatmul.bf16.gmra.mxu1 %v1956_v33  ;;  %v1871_v33 = vld [vmem:[%s3305_s0 + $0x10] sm:$0xf] }
  0x53   :  { %1035 = vmatmul.bf16.gmra.mxu2 %v1960_v34  ;;  %v2371_v34 = vld [vmem:[%s3305_s0 + $0x2c] sm:$0xf0] }
  0x54   :  { %1084 = vmatmul.bf16.gmra.mxu3 %v1964_v35  ;;  %v2367_v35 = vld [vmem:[%s3305_s0 + $0x14] sm:$0xf]  ;;  %v1872_v41 = vor.u32 %v2371_v34, %v1871_v33  ;;  %v1940_v33 = vor.u32 %v2383_v23, %v1937_v24  ;;  %v2400_v23 = vld [vmem:[%s3305_s0 + $0x11c] sm:$0xf] }
  0x55   :  { %v1876_v42 = vor.u32 %v2367_v35, %v1873_v36  ;;  %v2009_v24 = vld [vmem:[%s3305_s0 + $0x138] sm:$0xf0] }
  0x61   :  { %942 = vmatmul.bf16.gmra.mxu0 %v1984_v48 }
  0x62   :  { %991 = vmatmul.bf16.gmra.mxu1 %v1988_v49 }
  0x63   :  { %1040 = vmatmul.bf16.gmra.mxu2 %v1992_v50 }
  0x64   :  { %1089 = vmatmul.bf16.gmra.mxu3 %v1996_v51 }
  0x71   :  { %947 = vmatmul.bf16.gmra.mxu0 %v2016_v0  ;;  %v1913_v0 = vld [vmem:[%s3305_s0 + $0x78] sm:$0xf0] }
  0x72   :  { %996 = vmatmul.bf16.gmra.mxu1 %v2020_v1  ;;  %v1916_v9 = vor.u32 %v2376_v63, %v1913_v0 }
  0x73   :  { %1045 = vmatmul.bf16.gmra.mxu2 %v2024_v2 }
  0x74   :  { %1094 = vmatmul.bf16.gmra.mxu3 %v2028_v3  ;;  %v1904_v3 = vor.u32 %v2379_v58, %v1903_v57  ;;  %v2392_v57 = vld [vmem:[%s3305_s0 + $0xdc] sm:$0xf] }
  0x75   :  { %v1977_v58 = vld [vmem:[%s3305_s0 + $0xf8] sm:$0xf0] }
  0x81   :  { %952 = vmatmul.bf16.gmra.mxu0 %v2048_v16 }
  0x82   :  { %1001 = vmatmul.bf16.gmra.mxu1 %v2052_v17 }
  0x83   :  { %1050 = vmatmul.bf16.gmra.mxu2 %v2056_v18 }
  0x84   :  { %1099 = vmatmul.bf16.gmra.mxu3 %v2060_v19 }
  0x91   :  { %957 = vmatmul.bf16.gmra.mxu0 %v2080_v28  ;;  %v1945_v28 = vld [vmem:[%s3305_s0 + $0xb8] sm:$0xf0] }
  0x92   :  { %1006 = vmatmul.bf16.gmra.mxu1 %v2084_v29  ;;  %v1948_v38 = vor.u32 %v2384_v27, %v1945_v28 }
  0x93   :  { %1055 = vmatmul.bf16.gmra.mxu2 %v2088_v30 }
  0x94   :  { %1104 = vmatmul.bf16.gmra.mxu3 %v2092_v31  ;;  %v1936_v31 = vor.u32 %v2387_v22, %v1935_v21  ;;  %v2007_v21 = vld [vmem:[%s3305_s0 + $0x118] sm:$0xf] }
  0x95   :  { %v2404_v22 = vld [vmem:[%s3305_s0 + $0x134] sm:$0xf0] }
  0x9e   :  { %v923_v43 = vpop.f32.mrf.mxu0 }
  0x9f   :  { %v972_v44 = vpop.f32.mrf.mxu1  ;;  %v924_v47 = vadd.f32 %v2905_v32, %v923_v43 }
  0xa1   :  { %v973_v48 = vadd.f32 %v972_v44, %v924_v47  ;;  %1118 = vmatmul.bf16.vlgmr.msrb.gmra.mxu0 %v1872_v41 }
  0xa2   :  { %1167 = vmatmul.bf16.vlgmr.msrb.gmra.mxu1 %v1876_v42 }
  0xa3   :  { %1216 = vmatmul.bf16.vlgmr.msrb.gmra.mxu2 %v1880_v45 }
  0xa4   :  { %1265 = vmatmul.bf16.vlgmr.msrb.gmra.mxu3 %v1884_v46 }
  0xa6   :  { %v1021_v49 = vpop.f32.mrf.mxu2  ;;  %v925_v52 = vpop.f32.mrf.mxu0 }
  0xa7   :  { %v1070_v50 = vpop.f32.mrf.mxu3  ;;  %v1022_v51 = vadd.f32 %v1021_v49, %v973_v48  ;;  %v974_v53 = vpop.f32.mrf.mxu1  ;;  %v926_v54 = vadd.f32 %v2905_v32, %v925_v52  ;;  %v2391_v52 = vld [vmem:[%s3305_s0 + $0xd4] sm:$0xf] }
  0xa9   :  { %v2933_v55 = vadd.f32 %v1070_v50, %v1022_v51  ;;  %v975_v56 = vadd.f32 %v974_v53, %v926_v54  ;;  %v1967_v50 = vld [vmem:[%s3305_s0 + $0xd0] sm:$0xf]  ;;  %v1969_v53 = vld [vmem:[%s3305_s0 + $0xf0] sm:$0xf0]  ;;  %v1975_v54 = vld [vmem:[%s3305_s0 + $0xd8] sm:$0xf] }
  0xaa   :  { %v2395_v51 = vld [vmem:[%s3305_s0 + $0xec] sm:$0xf0]  ;;  %v1972_v62 = vor.u32 %v2391_v52, %v1969_v53  ;;  %v2039_v52 = vld [vmem:[%s3305_s0 + $0x158] sm:$0xf] }
  0xab   :  { %v1968_v61 = vor.u32 %v2395_v51, %v1967_v50  ;;  %v2407_v50 = vld [vmem:[%s3305_s0 + $0x154] sm:$0xf]  ;;  %v2412_v53 = vld [vmem:[%s3305_s0 + $0x174] sm:$0xf0] }
  0xac   :  { %v2033_v51 = vld [vmem:[%s3305_s0 + $0x170] sm:$0xf0] }
  0xae   :  { %v1023_v1 = vpop.f32.mrf.mxu2  ;;  %v928_v6 = vpop.f32.mrf.mxu0 }
  0xaf   :  { %v1072_v2 = vpop.f32.mrf.mxu3  ;;  %v1024_v5 = vadd.f32 %v1023_v1, %v975_v56  ;;  %v977_v7 = vpop.f32.mrf.mxu1  ;;  %v929_v10 = vadd.f32 %v2905_v32, %v928_v6  ;;  %v2396_v56 = vld [vmem:[%s3305_s0 + $0xf4] sm:$0xf0] }
  0xb1   :  { %v2960_v11 = vadd.f32 %v1072_v2, %v1024_v5  ;;  %v978_v12 = vadd.f32 %v977_v7, %v929_v10  ;;  %1123 = vmatmul.bf16.gmra.mxu0 %v1904_v3  ;;  %v1976_v2 = vor.u32 %v2396_v56, %v1975_v54  ;;  %v1980_v3 = vor.u32 %v2392_v57, %v1977_v58  ;;  %v2408_v54 = vld [vmem:[%s3305_s0 + $0x15c] sm:$0xf] }
  0xb2   :  { %1172 = vmatmul.bf16.gmra.mxu1 %v1908_v4  ;;  %v2041_v56 = vld [vmem:[%s3305_s0 + $0x178] sm:$0xf0] }
  0xb3   :  { %1221 = vmatmul.bf16.gmra.mxu2 %v1912_v8 }
  0xb4   :  { %1270 = vmatmul.bf16.gmra.mxu3 %v1916_v9 }
  0xb6   :  { %v1026_v13 = vpop.f32.mrf.mxu2  ;;  %v930_v16 = vpop.f32.mrf.mxu0 }
  0xb7   :  { %v1075_v14 = vpop.f32.mrf.mxu3  ;;  %v1027_v15 = vadd.f32 %v1026_v13, %v978_v12  ;;  %v979_v17 = vpop.f32.mrf.mxu1  ;;  %v931_v18 = vadd.f32 %v2905_v32, %v930_v16  ;;  %v1999_v16 = vld [vmem:[%s3305_s0 + $0x110] sm:$0xf] }
  0xb9   :  { %v2963_v19 = vadd.f32 %v1075_v14, %v1027_v15  ;;  %v980_v20 = vadd.f32 %v979_v17, %v931_v18  ;;  %v2403_v17 = vld [vmem:[%s3305_s0 + $0x12c] sm:$0xf0]  ;;  %v2399_v18 = vld [vmem:[%s3305_s0 + $0x114] sm:$0xf] }
  0xba   :  { %v2000_v27 = vor.u32 %v2403_v17, %v1999_v16  ;;  %v2063_v16 = vld [vmem:[%s3305_s0 + $0x190] sm:$0xf] }
  0xbb   :  { %v2419_v17 = vld [vmem:[%s3305_s0 + $0x1ac] sm:$0xf0] }
  0xbe   :  { %v1028_v29 = vpop.f32.mrf.mxu2  ;;  %v933_v35 = vpop.f32.mrf.mxu0 }
  0xbf   :  { %v1077_v30 = vpop.f32.mrf.mxu3  ;;  %v1029_v34 = vadd.f32 %v1028_v29, %v980_v20  ;;  %v982_v36 = vpop.f32.mrf.mxu1  ;;  %v934_v39 = vadd.f32 %v2905_v32, %v933_v35  ;;  %v2001_v20 = vld [vmem:[%s3305_s0 + $0x130] sm:$0xf0] }
  0xc0   :  { %v2004_v28 = vor.u32 %v2399_v18, %v2001_v20  ;;  %v2415_v18 = vld [vmem:[%s3305_s0 + $0x194] sm:$0xf] }
  0xc1   :  { %v2990_v40 = vadd.f32 %v1077_v30, %v1029_v34  ;;  %v983_v41 = vadd.f32 %v982_v36, %v934_v39  ;;  %1128 = vmatmul.bf16.gmra.mxu0 %v1936_v31  ;;  %v2012_v34 = vor.u32 %v2400_v23, %v2009_v24  ;;  %v2065_v20 = vld [vmem:[%s3305_s0 + $0x1b0] sm:$0xf0]  ;;  %v2416_v23 = vld [vmem:[%s3305_s0 + $0x19c] sm:$0xf] }
  0xc2   :  { %1177 = vmatmul.bf16.gmra.mxu1 %v1940_v33  ;;  %v2008_v33 = vor.u32 %v2404_v22, %v2007_v21  ;;  %v2071_v21 = vld [vmem:[%s3305_s0 + $0x198] sm:$0xf]  ;;  %v2073_v24 = vld [vmem:[%s3305_s0 + $0x1b8] sm:$0xf0] }
  0xc3   :  { %1226 = vmatmul.bf16.gmra.mxu2 %v1944_v37  ;;  %v2420_v22 = vld [vmem:[%s3305_s0 + $0x1b4] sm:$0xf0] }
  0xc4   :  { %1275 = vmatmul.bf16.gmra.mxu3 %v1948_v38 }
  0xc6   :  { %v1031_v42 = vpop.f32.mrf.mxu2  ;;  %v935_v45 = vpop.f32.mrf.mxu0 }
  0xc7   :  { %v1080_v43 = vpop.f32.mrf.mxu3  ;;  %v1032_v44 = vadd.f32 %v1031_v42, %v983_v41  ;;  %v984_v46 = vpop.f32.mrf.mxu1  ;;  %v936_v47 = vadd.f32 %v2905_v32, %v935_v45 }
  0xc9   :  { %v2993_v48 = vadd.f32 %v1080_v43, %v1032_v44  ;;  %v985_v49 = vadd.f32 %v984_v46, %v936_v47  ;;  %v2031_v47 = vld [vmem:[%s3305_s0 + $0x150] sm:$0xf] }
  0xce   :  { %v1033_v59 = vpop.f32.mrf.mxu2  ;;  %v938_v0 = vpop.f32.mrf.mxu0 }
  0xcf   :  { %v1082_v60 = vpop.f32.mrf.mxu3  ;;  %v1034_v63 = vadd.f32 %v1033_v59, %v985_v49  ;;  %v987_v1 = vpop.f32.mrf.mxu1  ;;  %v939_v4 = vadd.f32 %v2905_v32, %v938_v0  ;;  %v2411_v49 = vld [vmem:[%s3305_s0 + $0x16c] sm:$0xf0]  ;;  %v2040_v0 = vor.u32 %v2412_v53, %v2039_v52  ;;  %v2423_v52 = vld [vmem:[%s3305_s0 + $0x1d4] sm:$0xf] }
  0xd0   :  { %v2032_v59 = vor.u32 %v2411_v49, %v2031_v47  ;;  %v2097_v53 = vld [vmem:[%s3305_s0 + $0x1f0] sm:$0xf0] }
  0xd1   :  { %v3020_v5 = vadd.f32 %v1082_v60, %v1034_v63  ;;  %v988_v6 = vadd.f32 %v987_v1, %v939_v4  ;;  %1133 = vmatmul.bf16.gmra.mxu0 %v1968_v61  ;;  %v2036_v60 = vor.u32 %v2407_v50, %v2033_v51  ;;  %v2044_v1 = vor.u32 %v2408_v54, %v2041_v56  ;;  %v2095_v50 = vld [vmem:[%s3305_s0 + $0x1d0] sm:$0xf]  ;;  %v2103_v54 = vld [vmem:[%s3305_s0 + $0x1d8] sm:$0xf] }
  0xd2   :  { %1182 = vmatmul.bf16.gmra.mxu1 %v1972_v62  ;;  %v2427_v51 = vld [vmem:[%s3305_s0 + $0x1ec] sm:$0xf0]  ;;  %v2428_v56 = vld [vmem:[%s3305_s0 + $0x1f4] sm:$0xf0] }
  0xd3   :  { %1231 = vmatmul.bf16.gmra.mxu2 %v1976_v2 }
  0xd4   :  { %1280 = vmatmul.bf16.gmra.mxu3 %v1980_v3 }
  0xd6   :  { %v1036_v7 = vpop.f32.mrf.mxu2  ;;  %v940_v10 = vpop.f32.mrf.mxu0 }
  0xd7   :  { %v1085_v8 = vpop.f32.mrf.mxu3  ;;  %v1037_v9 = vadd.f32 %v1036_v7, %v988_v6  ;;  %v989_v12 = vpop.f32.mrf.mxu1  ;;  %v941_v13 = vadd.f32 %v2905_v32, %v940_v10 }
  0xd9   :  { %v3023_v14 = vadd.f32 %v1085_v8, %v1037_v9  ;;  %v990_v15 = vadd.f32 %v989_v12, %v941_v13 }
  0xde   :  { %v1038_v25 = vpop.f32.mrf.mxu2  ;;  %v943_v30 = vpop.f32.mrf.mxu0 }
  0xdf   :  { %v1087_v26 = vpop.f32.mrf.mxu3  ;;  %v1039_v29 = vadd.f32 %v1038_v25, %v990_v15  ;;  %v992_v31 = vpop.f32.mrf.mxu1  ;;  %v944_v35 = vadd.f32 %v2905_v32, %v943_v30 }
  0xe1   :  { %v3050_v36 = vadd.f32 %v1087_v26, %v1039_v29  ;;  %v993_v37 = vadd.f32 %v992_v31, %v944_v35  ;;  %1138 = vmatmul.bf16.gmra.mxu0 %v2000_v27  ;;  %v2064_v27 = vor.u32 %v2419_v17, %v2063_v16 }
  0xe2   :  { %1187 = vmatmul.bf16.gmra.mxu1 %v2004_v28  ;;  %v2068_v28 = vor.u32 %v2415_v18, %v2065_v20 }
  0xe3   :  { %1236 = vmatmul.bf16.gmra.mxu2 %v2008_v33  ;;  %v2072_v33 = vor.u32 %v2420_v22, %v2071_v21 }
  0xe4   :  { %1285 = vmatmul.bf16.gmra.mxu3 %v2012_v34  ;;  %v2076_v34 = vor.u32 %v2416_v23, %v2073_v24 }
  0xe6   :  { %v1041_v38 = vpop.f32.mrf.mxu2  ;;  %v945_v42 = vpop.f32.mrf.mxu0 }
  0xe7   :  { %v1090_v39 = vpop.f32.mrf.mxu3  ;;  %v1042_v41 = vadd.f32 %v1041_v38, %v993_v37  ;;  %v994_v43 = vpop.f32.mrf.mxu1  ;;  %v946_v44 = vadd.f32 %v2905_v32, %v945_v42 }
  0xe9   :  { %v3053_v45 = vadd.f32 %v1090_v39, %v1042_v41  ;;  %v995_v46 = vadd.f32 %v994_v43, %v946_v44 }
  0xee   :  { %v1043_v57 = vpop.f32.mrf.mxu2  ;;  %v948_v62 = vpop.f32.mrf.mxu0 }
  0xef   :  { %v1092_v58 = vpop.f32.mrf.mxu3  ;;  %v1044_v61 = vadd.f32 %v1043_v57, %v995_v46  ;;  %v997_v63 = vpop.f32.mrf.mxu1  ;;  %v949_v2 = vadd.f32 %v2905_v32, %v948_v62  ;;  %v2424_v57 = vld [vmem:[%s3305_s0 + $0x1dc] sm:$0xf]  ;;  %v2100_v62 = vor.u32 %v2423_v52, %v2097_v53 }
  0xf1   :  { %v3080_v3 = vadd.f32 %v1092_v58, %v1044_v61  ;;  %v998_v4 = vadd.f32 %v997_v63, %v949_v2  ;;  %1143 = vmatmul.bf16.gmra.mxu0 %v2032_v59  ;;  %v2105_v58 = vld [vmem:[%s3305_s0 + $0x1f8] sm:$0xf0]  ;;  %v2096_v61 = vor.u32 %v2427_v51, %v2095_v50  ;;  %v2104_v2 = vor.u32 %v2428_v56, %v2103_v54 }
  0xf2   :  { %1192 = vmatmul.bf16.gmra.mxu1 %v2036_v60 }
  0xf3   :  { %1241 = vmatmul.bf16.gmra.mxu2 %v2040_v0 }
  0xf4   :  { %1290 = vmatmul.bf16.gmra.mxu3 %v2044_v1 }
  0xf6   :  { %v1046_v6 = vpop.f32.mrf.mxu2  ;;  %v950_v9 = vpop.f32.mrf.mxu0 }
  0xf7   :  { %v1095_v7 = vpop.f32.mrf.mxu3  ;;  %v1047_v8 = vadd.f32 %v1046_v6, %v998_v4  ;;  %v999_v10 = vpop.f32.mrf.mxu1  ;;  %v951_v12 = vadd.f32 %v2905_v32, %v950_v9  ;;  %v2108_v4 = vor.u32 %v2424_v57, %v2105_v58 }
  0xf9   :  { %v3083_v13 = vadd.f32 %v1095_v7, %v1047_v8  ;;  %v1000_v15 = vadd.f32 %v999_v10, %v951_v12 }
  0xfe   :  { %v1048_v25 = vpop.f32.mrf.mxu2  ;;  %v953_v30 = vpop.f32.mrf.mxu0 }
  0xff   :  { %v1097_v26 = vpop.f32.mrf.mxu3  ;;  %v1049_v29 = vadd.f32 %v1048_v25, %v1000_v15  ;;  %v1002_v31 = vpop.f32.mrf.mxu1  ;;  %v954_v35 = vadd.f32 %v2905_v32, %v953_v30 }
 0x101   :  { %v3110_v37 = vadd.f32 %v1097_v26, %v1049_v29  ;;  %v1003_v38 = vadd.f32 %v1002_v31, %v954_v35  ;;  %1148 = vmatmul.bf16.gmra.mxu0 %v2064_v27 }
 0x102   :  { %1197 = vmatmul.bf16.gmra.mxu1 %v2068_v28 }
 0x103   :  { %1246 = vmatmul.bf16.gmra.mxu2 %v2072_v33 }
 0x104   :  { %1295 = vmatmul.bf16.gmra.mxu3 %v2076_v34 }
 0x106   :  { %v1051_v39 = vpop.f32.mrf.mxu2  ;;  %v955_v43 = vpop.f32.mrf.mxu0 }
 0x107   :  { %v1100_v41 = vpop.f32.mrf.mxu3  ;;  %v1052_v42 = vadd.f32 %v1051_v39, %v1003_v38  ;;  %v1004_v44 = vpop.f32.mrf.mxu1  ;;  %v956_v46 = vadd.f32 %v2905_v32, %v955_v43 }
 0x109   :  { %v3113_v47 = vadd.f32 %v1100_v41, %v1052_v42  ;;  %v1005_v49 = vadd.f32 %v1004_v44, %v956_v46 }
 0x10e   :  { %v1053_v59 = vpop.f32.mrf.mxu2  ;;  %v958_v0 = vpop.f32.mrf.mxu0 }
 0x10f   :  { %v1102_v60 = vpop.f32.mrf.mxu3  ;;  %v1054_v63 = vadd.f32 %v1053_v59, %v1005_v49  ;;  %v1007_v1 = vpop.f32.mrf.mxu1  ;;  %v959_v6 = vadd.f32 %v2905_v32, %v958_v0 }
 0x111   :  { %v3140_v7 = vadd.f32 %v1102_v60, %v1054_v63  ;;  %v1008_v8 = vadd.f32 %v1007_v1, %v959_v6  ;;  %1153 = vmatmul.bf16.gmra.mxu0 %v2096_v61 }
 0x112   :  { %1202 = vmatmul.bf16.gmra.mxu1 %v2100_v62 }
 0x113   :  { %1251 = vmatmul.bf16.gmra.mxu2 %v2104_v2 }
 0x114   :  { %1300 = vmatmul.bf16.gmra.mxu3 %v2108_v4 }
 0x116   :  { %v1056_v9 = vpop.f32.mrf.mxu2  ;;  %v960_v15 = vpop.f32.mrf.mxu0 }
 0x117   :  { %v1105_v10 = vpop.f32.mrf.mxu3  ;;  %v1057_v12 = vadd.f32 %v1056_v9, %v1008_v8  ;;  %v1009_v16 = vpop.f32.mrf.mxu1  ;;  %v961_v17 = vadd.f32 %v2905_v32, %v960_v15 }
 0x119   :  { %v3143_v18 = vadd.f32 %v1105_v10, %v1057_v12  ;;  %v1010_v20 = vadd.f32 %v1009_v16, %v961_v17 }
 0x11e   :  { %v1058_v21 = vpop.f32.mrf.mxu2  ;;  %v1119_v24 = vpop.f32.mrf.mxu0 }
 0x11f   :  { %v1107_v22 = vpop.f32.mrf.mxu3  ;;  %v1059_v23 = vadd.f32 %v1058_v21, %v1010_v20  ;;  %v1168_v25 = vpop.f32.mrf.mxu1  ;;  %v1120_v29 = vadd.f32 %v1119_v24, %v2933_v55 }
 0x121   :  { %v3145_v26 = vadd.f32 %v1107_v22, %v1059_v23  ;;  %v1169_v34 = vadd.f32 %v1168_v25, %v1120_v29 }
 0x126   :  { %v1217_v27 = vpop.f32.mrf.mxu2  ;;  %v1121_v30 = vpop.f32.mrf.mxu0 }
 0x127   :  { %v1266_v28 = vpop.f32.mrf.mxu3  ;;  %v1170_v31 = vpop.f32.mrf.mxu1  ;;  %v1122_v33 = vadd.f32 %v1121_v30, %v2960_v11  ;;  %v1218_v32 = vadd.f32 %v1217_v27, %v1169_v34 }
 0x129   :  { %v1171_v35 = vadd.f32 %v1170_v31, %v1122_v33  ;;  %v3149_v44 = vadd.f32 %v1266_v28, %v1218_v32 }
 0x12e   :  { %v1219_v38 = vpop.f32.mrf.mxu2  ;;  %v1124_v42 = vpop.f32.mrf.mxu0 }
 0x12f   :  { %v1268_v39 = vpop.f32.mrf.mxu3  ;;  %v1220_v41 = vadd.f32 %v1219_v38, %v1171_v35  ;;  %v1173_v43 = vpop.f32.mrf.mxu1  ;;  %v1125_v49 = vadd.f32 %v1124_v42, %v2963_v19 }
 0x131   :  { %v3151_v46 = vadd.f32 %v1268_v39, %v1220_v41  ;;  %v1174_v50 = vadd.f32 %v1173_v43, %v1125_v49 }
 0x133   :  { %v1419_v55 = vadd.f32 %v3151_v46, %v3149_v44 }
 0x136   :  { %v1222_v51 = vpop.f32.mrf.mxu2  ;;  %v1126_v53 = vpop.f32.mrf.mxu0 }
 0x137   :  { %v1271_v11 = vpop.f32.mrf.mxu3  ;;  %v1223_v52 = vadd.f32 %v1222_v51, %v1174_v50  ;;  %v1175_v54 = vpop.f32.mrf.mxu1  ;;  %v1127_v57 = vadd.f32 %v1126_v53, %v2990_v40 }
 0x139   :  { %v3156_v56 = vadd.f32 %v1271_v11, %v1223_v52  ;;  %v1176_v59 = vadd.f32 %v1175_v54, %v1127_v57 }
 0x13b   :  { %v1420_v58 = vadd.f32 %v1419_v55, %v3156_v56 }
 0x13e   :  { %v1224_v60 = vpop.f32.mrf.mxu2  ;;  %v1129_v19 = vpop.f32.mrf.mxu0 }
 0x13f   :  { %v1273_v61 = vpop.f32.mrf.mxu3  ;;  %v1225_v62 = vadd.f32 %v1224_v60, %v1176_v59  ;;  %v1178_v63 = vpop.f32.mrf.mxu1  ;;  %v1130_v1 = vadd.f32 %v1129_v19, %v2993_v48 }
 0x141   :  { %v3160_v0 = vadd.f32 %v1273_v61, %v1225_v62  ;;  %v1179_v4 = vadd.f32 %v1178_v63, %v1130_v1 }
 0x143   :  { %v1421_v2 = vadd.f32 %v1420_v58, %v3160_v0 }
 0x146   :  { %v1227_v6 = vpop.f32.mrf.mxu2  ;;  %v1131_v10 = vpop.f32.mrf.mxu0 }
 0x147   :  { %v1276_v8 = vpop.f32.mrf.mxu3  ;;  %v1228_v9 = vadd.f32 %v1227_v6, %v1179_v4  ;;  %v1180_v40 = vpop.f32.mrf.mxu1  ;;  %v1132_v15 = vadd.f32 %v1131_v10, %v3020_v5 }
 0x149   :  { %v1277_v12 = vadd.f32 %v1276_v8, %v1228_v9  ;;  %v1181_v17 = vadd.f32 %v1180_v40, %v1132_v15 }
 0x14b   :  { %v1422_v16 = vadd.f32 %v1421_v2, %v1277_v12 }
 0x14e   :  { %v1229_v20 = vpop.f32.mrf.mxu2  ;;  %v1134_v23 = vpop.f32.mrf.mxu0 }
 0x14f   :  { %v1278_v21 = vpop.f32.mrf.mxu3  ;;  %v1230_v22 = vadd.f32 %v1229_v20, %v1181_v17  ;;  %v1183_v24 = vpop.f32.mrf.mxu1  ;;  %v1135_v48 = vadd.f32 %v1134_v23, %v3023_v14 }
 0x151   :  { %v1279_v25 = vadd.f32 %v1278_v21, %v1230_v22  ;;  %v1184_v28 = vadd.f32 %v1183_v24, %v1135_v48 }
 0x153   :  { %v1423_v27 = vadd.f32 %v1422_v16, %v1279_v25 }
 0x156   :  { %v1232_v29 = vpop.f32.mrf.mxu2  ;;  %v1136_v33 = vpop.f32.mrf.mxu0 }
 0x157   :  { %v1281_v30 = vpop.f32.mrf.mxu3  ;;  %v1233_v31 = vadd.f32 %v1232_v29, %v1184_v28  ;;  %v1185_v34 = vpop.f32.mrf.mxu1  ;;  %v1137_v5 = vadd.f32 %v1136_v33, %v3050_v36 }
 0x159   :  { %v1282_v32 = vadd.f32 %v1281_v30, %v1233_v31  ;;  %v1186_v38 = vadd.f32 %v1185_v34, %v1137_v5 }
 0x15b   :  { %v1424_v35 = vadd.f32 %v1423_v27, %v1282_v32 }
 0x15e   :  { %v1234_v39 = vpop.f32.mrf.mxu2  ;;  %v1139_v43 = vpop.f32.mrf.mxu0 }
 0x15f   :  { %v1283_v41 = vpop.f32.mrf.mxu3  ;;  %v1235_v42 = vadd.f32 %v1234_v39, %v1186_v38  ;;  %v1188_v49 = vpop.f32.mrf.mxu1  ;;  %v1140_v36 = vadd.f32 %v1139_v43, %v3053_v45 }
 0x161   :  { %v1284_v55 = vadd.f32 %v1283_v41, %v1235_v42  ;;  %v1189_v1 = vadd.f32 %v1188_v49, %v1140_v36 }
 0x163   :  { %v1425_v50 = vadd.f32 %v1424_v35, %v1284_v55 }
 0x165   :  { %v1434_v14 = vrot.slane %v1425_v50, 4 }
 0x166   :  { %v1237_v51 = vpop.f32.mrf.mxu2  ;;  %v1141_v53 = vpop.f32.mrf.mxu0 }
 0x167   :  { %v1286_v11 = vpop.f32.mrf.mxu3  ;;  %v1435_v52 = vadd.f32 %v1434_v14, %v1425_v50  ;;  %v1190_v54 = vpop.f32.mrf.mxu1  ;;  %v1142_v58 = vadd.f32 %v1141_v53, %v3080_v3  ;;  %v1238_v9 = vadd.f32 %v1237_v51, %v1189_v1 }
 0x169   :  { %v1436_v57 = vrot.slane %v1435_v52, 2  ;;  %v1191_v61 = vadd.f32 %v1190_v54, %v1142_v58  ;;  %v3196_v22 = vadd.f32 %v1286_v11, %v1238_v9 }
 0x16b   :  { %v1437_v59 = vadd.f32 %v1436_v57, %v1435_v52 }
 0x16d   :  { %v1438_v60 = vrot.slane %v1437_v59, 1 }
 0x16e   :  { %v1239_v62 = vpop.f32.mrf.mxu2  ;;  %v1144_v4 = vpop.f32.mrf.mxu0 }
 0x16f   :  { %v1288_v19 = vpop.f32.mrf.mxu3  ;;  %v1439_v63 = vadd.f32 %v1438_v60, %v1437_v59  ;;  %v1240_v2 = vadd.f32 %v1239_v62, %v1191_v61  ;;  %v1193_v6 = vpop.f32.mrf.mxu1  ;;  %v1145_v10 = vadd.f32 %v1144_v4, %v3083_v13 }
 0x171   :  { %v1440_v8 = vmul.f32 0.015625, %v1439_v63  ;;  %v3170_v40 = vadd.f32 %v1288_v19, %v1240_v2 }
 0x173   :  { %v3173_v3 = vsub.f32 %v3149_v44, %v1440_v8  ;;  %v3176_v45 = vsub.f32 %v3151_v46, %v1440_v8  ;;  %v3179_v15 = vsub.f32 %v3156_v56, %v1440_v8  ;;  %v3182_v16 = vsub.f32 %v3160_v0, %v1440_v8 }
 0x174   :  { %v3184_v17 = vsub.f32 %v1277_v12, %v1440_v8  ;;  %v3186_v20 = vsub.f32 %v1279_v25, %v1440_v8  ;;  %v3188_v21 = vsub.f32 %v1282_v32, %v1440_v8  ;;  %v3190_v13 = vsub.f32 %v1284_v55, %v1440_v8 }
 0x175   :  { %v1457_v44 = vmul.f32 %v3173_v3, %v3173_v3  ;;  %v1458_v46 = vmul.f32 %v3176_v45, %v3176_v45  ;;  %v1194_v56 = vadd.f32 %v1193_v6, %v1145_v10  ;;  %v1459_v12 = vmul.f32 %v3179_v15, %v3179_v15 }
 0x176   :  { %v1242_v23 = vpop.f32.mrf.mxu2  ;;  %v1658_v25 = vadd.f32 %v3170_v40, %v3196_v22  ;;  %v1146_v27 = vpop.f32.mrf.mxu0  ;;  %v1460_v29 = vmul.f32 %v3182_v16, %v3182_v16  ;;  %v1461_v34 = vmul.f32 %v3184_v17, %v3184_v17  ;;  %v1462_v35 = vmul.f32 %v3186_v20, %v3186_v20 }
 0x177   :  { %v1291_v0 = vpop.f32.mrf.mxu3  ;;  %v1489_v24 = vadd.f32 %v1458_v46, %v1457_v44  ;;  %v1243_v48 = vadd.f32 %v1242_v23, %v1194_v56  ;;  %v1195_v28 = vpop.f32.mrf.mxu1  ;;  %v1147_v33 = vadd.f32 %v1146_v27, %v3110_v37  ;;  %v1463_v43 = vmul.f32 %v3188_v21, %v3188_v21 }
 0x178   :  { %v1464_v14 = vmul.f32 %v3190_v13, %v3190_v13 }
 0x179   :  { %v1490_v30 = vadd.f32 %v1489_v24, %v1459_v12  ;;  %v3204_v31 = vadd.f32 %v1291_v0, %v1243_v48  ;;  %v1196_v39 = vadd.f32 %v1195_v28, %v1147_v33 }
 0x17b   :  { %v1491_v32 = vadd.f32 %v1490_v30, %v1460_v29  ;;  %v1659_v5 = vadd.f32 %v1658_v25, %v3204_v31 }
 0x17d   :  { %v1492_v38 = vadd.f32 %v1491_v32, %v1461_v34 }
 0x17e   :  { %v1244_v41 = vpop.f32.mrf.mxu2  ;;  %v1149_v50 = vpop.f32.mrf.mxu0 }
 0x17f   :  { %v1293_v42 = vpop.f32.mrf.mxu3  ;;  %v1493_v49 = vadd.f32 %v1492_v38, %v1462_v35  ;;  %v1245_v55 = vadd.f32 %v1244_v41, %v1196_v39  ;;  %v1198_v37 = vpop.f32.mrf.mxu1  ;;  %v1150_v52 = vadd.f32 %v1149_v50, %v3113_v47 }
 0x181   :  { %v1494_v51 = vadd.f32 %v1493_v49, %v1463_v43  ;;  %v3216_v11 = vadd.f32 %v1293_v42, %v1245_v55  ;;  %v1199_v58 = vadd.f32 %v1198_v37, %v1150_v52 }
 0x183   :  { %v1495_v53 = vadd.f32 %v1494_v51, %v1464_v14  ;;  %v1660_v54 = vadd.f32 %v1659_v5, %v3216_v11 }
 0x185   :  { %v1504_v57 = vrot.slane %v1495_v53, 4 }
 0x186   :  { %v1247_v59 = vpop.f32.mrf.mxu2  ;;  %v1151_v62 = vpop.f32.mrf.mxu0 }
 0x187   :  { %v1296_v36 = vpop.f32.mrf.mxu3  ;;  %v1505_v60 = vadd.f32 %v1504_v57, %v1495_v53  ;;  %v1248_v61 = vadd.f32 %v1247_v59, %v1199_v58  ;;  %v1200_v19 = vpop.f32.mrf.mxu1  ;;  %v1152_v2 = vadd.f32 %v1151_v62, %v3140_v7 }
 0x189   :  { %v1506_v63 = vrot.slane %v1505_v60, 2  ;;  %v3220_v1 = vadd.f32 %v1296_v36, %v1248_v61  ;;  %v1201_v8 = vadd.f32 %v1200_v19, %v1152_v2 }
 0x18b   :  { %v1507_v4 = vadd.f32 %v1506_v63, %v1505_v60  ;;  %v1661_v6 = vadd.f32 %v1660_v54, %v3220_v1 }
 0x18d   :  { %v1508_v47 = vrot.slane %v1507_v4, 1 }
 0x18e   :  { %v1249_v9 = vpop.f32.mrf.mxu2  ;;  %v1154_v56 = vpop.f32.mrf.mxu0 }
 0x18f   :  { %v1298_v10 = vpop.f32.mrf.mxu3  ;;  %v1509_v44 = vadd.f32 %v1508_v47, %v1507_v4  ;;  %v1250_v46 = vadd.f32 %v1249_v9, %v1201_v8  ;;  %v1155_v12 = vadd.f32 %v1154_v56, %v3143_v18  ;;  %v1203_v24 = vpop.f32.mrf.mxu1 }
 0x191   :  { %v1510_v23 = vmul.f32 0.015625, %v1509_v44  ;;  %v3224_v0 = vadd.f32 %v1298_v10, %v1250_v46  ;;  %v1204_v7 = vadd.f32 %v1203_v24, %v1155_v12 }
 0x193   :  { %v1511_v25 = vadd.f32 1e-05, %v1510_v23  ;;  %v1662_v48 = vadd.f32 %v1661_v6, %v3224_v0 }
 0x195   :  { %2494 = vrsqrt.f32 %v1511_v25  ;;  %vm1518_vm1 = vweird.f32 %v1511_v25 }
 0x196   :  { %v1252_v27 = vpop.f32.mrf.mxu2  ;;  %v1156_v30 = vpop.f32.mrf.mxu0 }
 0x197   :  { %v1301_v28 = vpop.f32.mrf.mxu3  ;;  %v1253_v29 = vadd.f32 %v1252_v27, %v1204_v7  ;;  %v1157_v34 = vadd.f32 %v1156_v30, %v3145_v26  ;;  %v1205_v38 = vpop.f32.mrf.mxu1 }
 0x199   :  { %v3228_v33 = vadd.f32 %v1301_v28, %v1253_v29  ;;  %v1206_v18 = vadd.f32 %v1205_v38, %v1157_v34 }
 0x19b   :  { %v2495_v32 = vpop.eup %2494  ;;  %v1663_v5 = vadd.f32 %v1662_v48, %v3228_v33 }
 0x19c   :  { %v1513_v35 = vmul.f32 %v2495_v32, %v1511_v25  ;;  %vm1519_vm0 = vweird.f32 %v2495_v32 }
 0x19d   :  { %vm1520_vm2 = vmor %vm1518_vm1, %vm1519_vm0 }
 0x19e   :  { %v1514_v39 = vmul.f32 %v2495_v32, %v1513_v35  ;;  %v1254_v41 = vpop.f32.mrf.mxu2 }
 0x19f   :  { %v1255_v42 = vadd.f32 %v1254_v41, %v1206_v18  ;;  %v1303_v49 = vpop.f32.mrf.mxu3 }
 0x1a0   :  { %v1515_v43 = vmul.f32 0.5, %v1514_v39 }
 0x1a1   :  { %v3232_v55 = vadd.f32 %v1303_v49, %v1255_v42 }
 0x1a2   :  { %v1516_v50 = vsub.f32 1.5, %v1515_v43 }
 0x1a3   :  { %v1664_v37 = vadd.f32 %v1663_v5, %v3232_v55 }
 0x1a4   :  { %v1517_v14 = vmul.f32 %v2495_v32, %v1516_v50 }
 0x1a5   :  { %v1665_v51 = vrot.slane %v1664_v37, 4 }
 0x1a6   :  { %v1521_v26 = vsel %vm1520_vm2, %v2495_v32, %v1517_v14 }
 0x1a7   :  { %v1522_v52 = vmul.f32 %v1521_v26, %v3173_v3  ;;  %v1523_v53 = vmul.f32 %v1521_v26, %v3176_v45  ;;  %v1524_v54 = vmul.f32 %v1521_v26, %v3179_v15  ;;  %v1525_v57 = vmul.f32 %v1521_v26, %v3182_v16 }
 0x1a8   :  { %v1526_v58 = vmul.f32 %v1521_v26, %v3184_v17  ;;  %v1527_v59 = vmul.f32 %v1521_v26, %v3186_v20  ;;  %v1528_v36 = vmul.f32 %v1521_v26, %v3188_v21  ;;  %v1529_v60 = vmul.f32 %v1521_v26, %v3190_v13 }
 0x1a9   :  { %vm1785_vm3 = vcmp.gt.f32.partialorder %v1522_v52, 0.0  ;;  %vm1786_vm4 = vcmp.gt.f32.partialorder %v1523_v53, 0.0  ;;  %vm1787_vm5 = vcmp.gt.f32.partialorder %v1524_v54, 0.0  ;;  %vm1788_vm6 = vcmp.gt.f32.partialorder %v1525_v57, 0.0 }
 0x1aa   :  { %vm1789_vm7 = vcmp.gt.f32.partialorder %v1526_v58, 0.0  ;;  %v1801_v3 = vmul.f32 0.2, %v1522_v52  ;;  %v1802_v61 = vmul.f32 0.2, %v1523_v53  ;;  %v1666_v62 = vadd.f32 %v1665_v51, %v1664_v37 }
 0x1ab   :  { %v1803_v45 = vmul.f32 0.2, %v1524_v54  ;;  %v1804_v15 = vmul.f32 0.2, %v1525_v57  ;;  %v1805_v19 = vmul.f32 0.2, %v1526_v58 }
 0x1ac   :  { %v1806_v16 = vmul.f32 0.2, %v1527_v59  ;;  %vm1790_vm8 = vcmp.gt.f32.partialorder %v1527_v59, 0.0  ;;  %v1807_v17 = vmul.f32 0.2, %v1528_v36  ;;  %v1817_v63 = vsel %vm1785_vm3, %v1522_v52, %v1801_v3 }
 0x1ad   :  { %v1818_v20 = vsel %vm1786_vm4, %v1523_v53, %v1802_v61  ;;  %vm1791_vm9 = vcmp.gt.f32.partialorder %v1528_v36, 0.0  ;;  %v1808_v21 = vmul.f32 0.2, %v1529_v60  ;;  %v1819_v13 = vsel %vm1787_vm5, %v1524_v54, %v1803_v45  ;;  %1833 = vst [vmem:[%s3306_s3] sm:$0xff] %v1817_v63 }
 0x1ae   :  { %v1820_v2 = vsel %vm1788_vm6, %v1525_v57, %v1804_v15  ;;  %vm1792_vm10 = vcmp.gt.f32.partialorder %v1529_v60, 0.0  ;;  %v1821_v4 = vsel %vm1789_vm7, %v1526_v58, %v1805_v19  ;;  %1834 = vst [vmem:[%s3306_s3 + $0x8] sm:$0xff] %v1818_v20  ;;  %v1667_v6 = vrot.slane %v1666_v62, 2 }
 0x1af   :  { %v1822_v47 = vsel %vm1790_vm8, %v1527_v59, %v1806_v16  ;;  %1835 = vst [vmem:[%s3306_s3 + $0x10] sm:$0xff] %v1819_v13  ;;  %v1823_v8 = vsel %vm1791_vm9, %v1528_v36, %v1807_v17  ;;  %v1824_v10 = vsel %vm1792_vm10, %v1529_v60, %v1808_v21 }
 0x1b0   :  { %1836 = vst [vmem:[%s3306_s3 + $0x18] sm:$0xff] %v1820_v2  ;;  %v1668_v9 = vadd.f32 %v1667_v6, %v1666_v62 }
 0x1b1   :  { %1837 = vst [vmem:[%s3306_s3 + $0x20] sm:$0xff] %v1821_v4 }
 0x1b2   :  { %1838 = vst [vmem:[%s3306_s3 + $0x28] sm:$0xff] %v1822_v47  ;;  %v1669_v44 = vrot.slane %v1668_v9, 1 }
 0x1b3   :  { %1839 = vst [vmem:[%s3306_s3 + $0x30] sm:$0xff] %v1823_v8 }
 0x1b4   :  { %1840 = vst [vmem:[%s3306_s3 + $0x38] sm:$0xff] %v1824_v10  ;;  %v1670_v46 = vadd.f32 %v1669_v44, %v1668_v9 }
 0x1b6   :  { %v1671_v56 = vmul.f32 0.015625, %v1670_v46 }
 0x1b8   :  { %v1680_v23 = vsub.f32 %v3196_v22, %v1671_v56  ;;  %v1681_v12 = vsub.f32 %v3170_v40, %v1671_v56  ;;  %v1682_v24 = vsub.f32 %v3204_v31, %v1671_v56  ;;  %v1683_v25 = vsub.f32 %v3216_v11, %v1671_v56 }
 0x1b9   :  { %v1684_v48 = vsub.f32 %v3220_v1, %v1671_v56  ;;  %v1685_v7 = vsub.f32 %v3224_v0, %v1671_v56  ;;  %v1686_v27 = vsub.f32 %v3228_v33, %v1671_v56  ;;  %v1687_v28 = vsub.f32 %v3232_v55, %v1671_v56 }
 0x1ba   :  { %v1696_v29 = vmul.f32 %v1680_v23, %v1680_v23  ;;  %v1697_v30 = vmul.f32 %v1681_v12, %v1681_v12  ;;  %v1698_v34 = vmul.f32 %v1682_v24, %v1682_v24  ;;  %v1699_v5 = vmul.f32 %v1683_v25, %v1683_v25 }
 0x1bb   :  { %v1700_v35 = vmul.f32 %v1684_v48, %v1684_v48  ;;  %v1701_v38 = vmul.f32 %v1685_v7, %v1685_v7  ;;  %v1702_v18 = vmul.f32 %v1686_v27, %v1686_v27  ;;  %v1703_v39 = vmul.f32 %v1687_v28, %v1687_v28 }
 0x1bc   :  { %v1728_v32 = vadd.f32 %v1697_v30, %v1696_v29 }
 0x1be   :  { %v1729_v22 = vadd.f32 %v1728_v32, %v1698_v34 }
 0x1c0   :  { %v1730_v40 = vadd.f32 %v1729_v22, %v1699_v5 }
 0x1c2   :  { %v1731_v31 = vadd.f32 %v1730_v40, %v1700_v35 }
 0x1c4   :  { %v1732_v11 = vadd.f32 %v1731_v31, %v1701_v38 }
 0x1c6   :  { %v1733_v1 = vadd.f32 %v1732_v11, %v1702_v18 }
 0x1c8   :  { %v1734_v41 = vadd.f32 %v1733_v1, %v1703_v39 }
 0x1ca   :  { %v1735_v0 = vrot.slane %v1734_v41, 4 }
 0x1cc   :  { %v1736_v42 = vadd.f32 %v1735_v0, %v1734_v41 }
 0x1ce   :  { %v1737_v33 = vrot.slane %v1736_v42, 2 }
 0x1d0   :  { %v1738_v43 = vadd.f32 %v1737_v33, %v1736_v42 }
 0x1d2   :  { %v1739_v49 = vrot.slane %v1738_v43, 1 }
 0x1d4   :  { %v1740_v55 = vadd.f32 %v1739_v49, %v1738_v43 }
 0x1d6   :  { %v1741_v50 = vmul.f32 0.015625, %v1740_v55 }
 0x1d8   :  { %v1742_v37 = vadd.f32 1e-05, %v1741_v50 }
 0x1da   :  { %2496 = vrsqrt.f32 %v1742_v37  ;;  %vm1749_vm12 = vweird.f32 %v1742_v37 }
 0x1e0   :  { %v2497_v14 = vpop.eup %2496 }
 0x1e1   :  { %v1744_v26 = vmul.f32 %v2497_v14, %v1742_v37  ;;  %vm1750_vm11 = vweird.f32 %v2497_v14 }
 0x1e2   :  { %vm1751_vm13 = vmor %vm1749_vm12, %vm1750_vm11 }
 0x1e3   :  { %v1745_v51 = vmul.f32 %v2497_v14, %v1744_v26 }
 0x1e5   :  { %v1746_v52 = vmul.f32 0.5, %v1745_v51 }
 0x1e7   :  { %v1747_v53 = vsub.f32 1.5, %v1746_v52 }
 0x1e9   :  { %v1748_v54 = vmul.f32 %v2497_v14, %v1747_v53 }
 0x1eb   :  { %v1752_v57 = vsel %vm1751_vm13, %v2497_v14, %v1748_v54 }
 0x1ec   :  { %v1761_v58 = vmul.f32 %v1752_v57, %v1680_v23  ;;  %v1762_v59 = vmul.f32 %v1752_v57, %v1681_v12  ;;  %v1763_v36 = vmul.f32 %v1752_v57, %v1682_v24  ;;  %v1764_v60 = vmul.f32 %v1752_v57, %v1683_v25 }
 0x1ed   :  { %v1765_v3 = vmul.f32 %v1752_v57, %v1684_v48  ;;  %v1766_v61 = vmul.f32 %v1752_v57, %v1685_v7  ;;  %v1767_v45 = vmul.f32 %v1752_v57, %v1686_v27  ;;  %v1768_v62 = vmul.f32 %v1752_v57, %v1687_v28 }
 0x1ee   :  { %vm1793_vm14 = vcmp.gt.f32.partialorder %v1761_v58, 0.0  ;;  %vm1794_vm15 = vcmp.gt.f32.partialorder %v1762_v59, 0.0  ;;  %vm1795_vm0 = vcmp.gt.f32.partialorder %v1763_v36, 0.0  ;;  %vm1796_vm1 = vcmp.gt.f32.partialorder %v1764_v60, 0.0 }
 0x1ef   :  { %vm1797_vm2 = vcmp.gt.f32.partialorder %v1765_v3, 0.0  ;;  %v1809_v15 = vmul.f32 0.2, %v1761_v58  ;;  %v1810_v19 = vmul.f32 0.2, %v1762_v59  ;;  %vm1798_vm3 = vcmp.gt.f32.partialorder %v1766_v61, 0.0 }
 0x1f0   :  { %v1811_v16 = vmul.f32 0.2, %v1763_v36  ;;  %v1812_v17 = vmul.f32 0.2, %v1764_v60  ;;  %v1813_v63 = vmul.f32 0.2, %v1765_v3 }
 0x1f1   :  { %v1814_v20 = vmul.f32 0.2, %v1766_v61  ;;  %v1815_v21 = vmul.f32 0.2, %v1767_v45  ;;  %v1825_v13 = vsel %vm1793_vm14, %v1761_v58, %v1809_v15  ;;  %v1826_v2 = vsel %vm1794_vm15, %v1762_v59, %v1810_v19 }
 0x1f2   :  { %vm1799_vm4 = vcmp.gt.f32.partialorder %v1767_v45, 0.0  ;;  %v1816_v4 = vmul.f32 0.2, %v1768_v62  ;;  %v1827_v6 = vsel %vm1795_vm0, %v1763_v36, %v1811_v16  ;;  %v1828_v47 = vsel %vm1796_vm1, %v1764_v60, %v1812_v17  ;;  %1841 = vst [vmem:[%s3306_s3 + $0x40] sm:$0xff] %v1825_v13 }
 0x1f3   :  { %vm1800_vm5 = vcmp.gt.f32.partialorder %v1768_v62, 0.0  ;;  %v1829_v8 = vsel %vm1797_vm2, %v1765_v3, %v1813_v63  ;;  %1842 = vst [vmem:[%s3306_s3 + $0x48] sm:$0xff] %v1826_v2  ;;  %v1830_v9 = vsel %vm1798_vm3, %v1766_v61, %v1814_v20  ;;  %v1831_v10 = vsel %vm1799_vm4, %v1767_v45, %v1815_v21 }
 0x1f4   :  { %1843 = vst [vmem:[%s3306_s3 + $0x50] sm:$0xff] %v1827_v6  ;;  %v1832_v44 = vsel %vm1800_vm5, %v1768_v62, %v1816_v4 }
 0x1f5   :  { %1844 = vst [vmem:[%s3306_s3 + $0x58] sm:$0xff] %v1828_v47 }
 0x1f6   :  { %1845 = vst [vmem:[%s3306_s3 + $0x60] sm:$0xff] %v1829_v8 }
 0x1f7   :  { %1846 = vst [vmem:[%s3306_s3 + $0x68] sm:$0xff] %v1830_v9 }
 0x1f8   :  { %1847 = vst [vmem:[%s3306_s3 + $0x70] sm:$0xff] %v1831_v10 }
 0x1f9   :  { %1848 = vst [vmem:[%s3306_s3 + $0x78] sm:$0xff] %v1832_v44 }

// kernel: _lambda_.7
= control target key start
LH: loop header
LB: loop body
LE: loop exit
PB: predicated region body
PF: predicated region fallthrough
CT: control target
= control target key end

     0   :  { %s5099_s12 = smov 0   ;;  %s5101_s13 = smov 0   ;;  %s6026_s0 = inlined_call_operand.vmem [shape: bf16[32,2048], index: 0, kind: input, shape index: {}]   ;;  %s6027_s1 = inlined_call_operand.vmem [shape: bf16[2048,256], index: 1, kind: input, shape index: {}]   ;;  %s6028_s2 = inlined_call_operand.vmem [shape: f32[1,256], index: 2, kind: input, shape index: {}]   ;;  %s6029_s3 = inlined_call_operand.vmem [shape: f32[32,256], index: 3, kind: output, shape index: {}]  }
   0x1   :  { %s5103_s14 = smov 0   ;;  %s5105_s15 = smov 0  }
   0x2   :  { %s5107_s16 = smov 0  }
   0x3 LB: > { %s25_s17 = sadd.s32 1, %s5073_s15  ;;  %s4180_s18 = sadd.s32 4294967295, %s5077_s16   ;;  %s5077_s16 = sphi %s5107_s16, %s13_s16   ;;  %s5073_s15 = sphi %s5105_s15, %s6034_s15   ;;  %s5069_s14 = sphi %s5103_s14, %s6033_s14   ;;  %s5065_s13 = sphi %s5101_s13, %s6032_s13   ;;  %s5061_s12 = sphi %s5099_s12, %s6031_s12  }
   0x4   : > { %p27_p0 = scmp.ge.s32.totalorder %s25_s17, 2  ;;  %p67_p1 = scmp.ne.s32.totalorder %s5065_s13, %s5061_s12 }
   0x5   : > { %p68_p2 = scmp.eq.s32.totalorder %s5077_s16, 0  ;;  %p123_p4 = scmp.eq.s32.totalorder %s4180_s18, 1 }
   0x6   : > { %s6036_s17 = smov (%p27_p0, %s25_s17), 0  ;;  %s60_s20 = sadd.s32 1, %s5065_s13 }
   0x7   : > { %p69_p3 = por %p68_p2, %p67_p1  ;;  %s56_s19 = ssub.s32 %s5073_s15, %s6036_s17 }
   0x8   : > { %p58_p5 = scmp.eq.s32.totalorder %s56_s19, 0  ;;  %p5134_p6 = por %p123_p4, %p67_p1 }
   0x9   : > { %p4184_p7 = scmp.ge.s32.totalorder %s5077_s16, 2 }
   0xa   : > { %s5139_s22 = scalar_select %p58_p5, %s5065_s13, %s60_s20  }
   0xb   : > { %154 = sbr.rel (%p4184_p7) target bundleno = 276 (0x114), region = 20 }
  0x10   : > { %157 = sbr.rel (!%p69_p3) target bundleno = 276 (0x114), region = 24  ;;  %s159_s23 = sand.u32 (%p69_p3), 1, %s5065_s13  }
  0x11   : > { %s4186_s24 = sshll.u32 (%p69_p3), %s5073_s15, 2  ;;  %s4185_s25 = sshll.u32 (%p69_p3), %s159_s23, 10 }
  0x12   : > { %s5147_s28 = scalar_lea.vmem (%p69_p3), %s6027_s1, %s4186_s24  ;;  %s5151_s29 = scalar_lea.vmem (%p69_p3), [#allocation2], %s4185_s25 }
  0x13   : > { %v183_v0 = vld [vmem:[%s5147_s28] sm:$0xf] (%p69_p3)  ;;  %v185_v1 = vld [vmem:[%s5147_s28 + $0x8] sm:$0xf] (%p69_p3)  ;;  %v187_v2 = vld [vmem:[%s5147_s28 + $0x10] sm:$0xf] (%p69_p3) }
  0x14   : > { %184 = vst [vmem:[%s5151_s29] sm:$0xf] (%p69_p3), %v183_v0  ;;  %v189_v3 = vld [vmem:[%s5147_s28 + $0x18] sm:$0xf] (%p69_p3)  ;;  %v191_v4 = vld [vmem:[%s5147_s28 + $0x20] sm:$0xf] (%p69_p3) }
  0x15   : > { %186 = vst [vmem:[%s5151_s29 + $0x4] sm:$0xf] %v185_v1  ;;  %v193_v5 = vld [vmem:[%s5147_s28 + $0x28] sm:$0xf]  ;;  %v195_v6 = vld [vmem:[%s5147_s28 + $0x30] sm:$0xf] }
  0x16   : > { %188 = vst [vmem:[%s5151_s29 + $0x8] sm:$0xf] %v187_v2  ;;  %v197_v7 = vld [vmem:[%s5147_s28 + $0x38] sm:$0xf]  ;;  %v199_v8 = vld [vmem:[%s5147_s28 + $0x40] sm:$0xf] }
  0x17   : > { %190 = vst [vmem:[%s5151_s29 + $0xc] sm:$0xf] %v189_v3  ;;  %v201_v9 = vld [vmem:[%s5147_s28 + $0x48] sm:$0xf]  ;;  %v203_v10 = vld [vmem:[%s5147_s28 + $0x50] sm:$0xf] }
  0x18   : > { %192 = vst [vmem:[%s5151_s29 + $0x10] sm:$0xf] %v191_v4  ;;  %v205_v11 = vld [vmem:[%s5147_s28 + $0x58] sm:$0xf]  ;;  %v207_v12 = vld [vmem:[%s5147_s28 + $0x60] sm:$0xf] }
  0x19   : > { %194 = vst [vmem:[%s5151_s29 + $0x14] sm:$0xf] %v193_v5  ;;  %v209_v13 = vld [vmem:[%s5147_s28 + $0x68] sm:$0xf]  ;;  %v211_v14 = vld [vmem:[%s5147_s28 + $0x70] sm:$0xf] }
  0x1a   : > { %196 = vst [vmem:[%s5151_s29 + $0x18] sm:$0xf] %v195_v6  ;;  %v213_v15 = vld [vmem:[%s5147_s28 + $0x78] sm:$0xf]  ;;  %v215_v16 = vld [vmem:[%s5147_s28 + $0x80] sm:$0xf] }
  0x1b   : > { %198 = vst [vmem:[%s5151_s29 + $0x1c] sm:$0xf] %v197_v7  ;;  %v217_v17 = vld [vmem:[%s5147_s28 + $0x88] sm:$0xf]  ;;  %v219_v18 = vld [vmem:[%s5147_s28 + $0x90] sm:$0xf] }
  0x1c   : > { %200 = vst [vmem:[%s5151_s29 + $0x20] sm:$0xf] %v199_v8  ;;  %v221_v19 = vld [vmem:[%s5147_s28 + $0x98] sm:$0xf]  ;;  %v223_v20 = vld [vmem:[%s5147_s28 + $0xa0] sm:$0xf] }
  0x1d   : > { %202 = vst [vmem:[%s5151_s29 + $0x24] sm:$0xf] %v201_v9  ;;  %v225_v21 = vld [vmem:[%s5147_s28 + $0xa8] sm:$0xf]  ;;  %v227_v22 = vld [vmem:[%s5147_s28 + $0xb0] sm:$0xf] }
  0x1e   : > { %204 = vst [vmem:[%s5151_s29 + $0x28] sm:$0xf] %v203_v10  ;;  %v229_v23 = vld [vmem:[%s5147_s28 + $0xb8] sm:$0xf]  ;;  %v231_v24 = vld [vmem:[%s5147_s28 + $0xc0] sm:$0xf] }
  0x1f   : > { %206 = vst [vmem:[%s5151_s29 + $0x2c] sm:$0xf] %v205_v11  ;;  %v233_v25 = vld [vmem:[%s5147_s28 + $0xc8] sm:$0xf]  ;;  %v235_v26 = vld [vmem:[%s5147_s28 + $0xd0] sm:$0xf] }
  0x20   : > { %208 = vst [vmem:[%s5151_s29 + $0x30] sm:$0xf] %v207_v12  ;;  %v237_v27 = vld [vmem:[%s5147_s28 + $0xd8] sm:$0xf]  ;;  %v239_v28 = vld [vmem:[%s5147_s28 + $0xe0] sm:$0xf] }
  0x21   : > { %210 = vst [vmem:[%s5151_s29 + $0x34] sm:$0xf] %v209_v13  ;;  %v241_v29 = vld [vmem:[%s5147_s28 + $0xe8] sm:$0xf]  ;;  %v243_v30 = vld [vmem:[%s5147_s28 + $0xf0] sm:$0xf] }
  0x22   : > { %212 = vst [vmem:[%s5151_s29 + $0x38] sm:$0xf] %v211_v14  ;;  %v245_v31 = vld [vmem:[%s5147_s28 + $0xf8] sm:$0xf]  ;;  %v247_v32 = vld [vmem:[%s5147_s28 + $0x100] sm:$0xf] }
  0x23   : > { %214 = vst [vmem:[%s5151_s29 + $0x3c] sm:$0xf] %v213_v15  ;;  %v249_v33 = vld [vmem:[%s5147_s28 + $0x108] sm:$0xf]  ;;  %v251_v34 = vld [vmem:[%s5147_s28 + $0x110] sm:$0xf] }
  0x24   : > { %216 = vst [vmem:[%s5151_s29 + $0x40] sm:$0xf] %v215_v16  ;;  %v253_v35 = vld [vmem:[%s5147_s28 + $0x118] sm:$0xf]  ;;  %v255_v36 = vld [vmem:[%s5147_s28 + $0x120] sm:$0xf] }
  0x25   : > { %218 = vst [vmem:[%s5151_s29 + $0x44] sm:$0xf] %v217_v17  ;;  %v257_v37 = vld [vmem:[%s5147_s28 + $0x128] sm:$0xf]  ;;  %v259_v38 = vld [vmem:[%s5147_s28 + $0x130] sm:$0xf] }
  0x26   : > { %220 = vst [vmem:[%s5151_s29 + $0x48] sm:$0xf] %v219_v18  ;;  %v261_v39 = vld [vmem:[%s5147_s28 + $0x138] sm:$0xf]  ;;  %v263_v40 = vld [vmem:[%s5147_s28 + $0x140] sm:$0xf] }
  0x27   : > { %222 = vst [vmem:[%s5151_s29 + $0x4c] sm:$0xf] %v221_v19  ;;  %v265_v41 = vld [vmem:[%s5147_s28 + $0x148] sm:$0xf]  ;;  %v267_v42 = vld [vmem:[%s5147_s28 + $0x150] sm:$0xf] }
  0x28   : > { %224 = vst [vmem:[%s5151_s29 + $0x50] sm:$0xf] %v223_v20  ;;  %v269_v43 = vld [vmem:[%s5147_s28 + $0x158] sm:$0xf]  ;;  %v271_v44 = vld [vmem:[%s5147_s28 + $0x160] sm:$0xf] }
  0x29   : > { %226 = vst [vmem:[%s5151_s29 + $0x54] sm:$0xf] %v225_v21  ;;  %v273_v45 = vld [vmem:[%s5147_s28 + $0x168] sm:$0xf]  ;;  %v275_v46 = vld [vmem:[%s5147_s28 + $0x170] sm:$0xf] }
  0x2a   : > { %228 = vst [vmem:[%s5151_s29 + $0x58] sm:$0xf] %v227_v22  ;;  %v277_v47 = vld [vmem:[%s5147_s28 + $0x178] sm:$0xf]  ;;  %v279_v48 = vld [vmem:[%s5147_s28 + $0x180] sm:$0xf] }
  0x2b   : > { %230 = vst [vmem:[%s5151_s29 + $0x5c] sm:$0xf] %v229_v23  ;;  %v281_v49 = vld [vmem:[%s5147_s28 + $0x188] sm:$0xf]  ;;  %v283_v50 = vld [vmem:[%s5147_s28 + $0x190] sm:$0xf] }
  0x2c   : > { %232 = vst [vmem:[%s5151_s29 + $0x60] sm:$0xf] %v231_v24  ;;  %v285_v51 = vld [vmem:[%s5147_s28 + $0x198] sm:$0xf]  ;;  %v287_v52 = vld [vmem:[%s5147_s28 + $0x1a0] sm:$0xf] }
  0x2d   : > { %234 = vst [vmem:[%s5151_s29 + $0x64] sm:$0xf] %v233_v25  ;;  %v289_v53 = vld [vmem:[%s5147_s28 + $0x1a8] sm:$0xf]  ;;  %v291_v54 = vld [vmem:[%s5147_s28 + $0x1b0] sm:$0xf] }
  0x2e   : > { %236 = vst [vmem:[%s5151_s29 + $0x68] sm:$0xf] %v235_v26  ;;  %v293_v55 = vld [vmem:[%s5147_s28 + $0x1b8] sm:$0xf]  ;;  %v295_v56 = vld [vmem:[%s5147_s28 + $0x1c0] sm:$0xf] }
  0x2f   : > { %238 = vst [vmem:[%s5151_s29 + $0x6c] sm:$0xf] %v237_v27  ;;  %v297_v57 = vld [vmem:[%s5147_s28 + $0x1c8] sm:$0xf]  ;;  %v299_v58 = vld [vmem:[%s5147_s28 + $0x1d0] sm:$0xf] }
  0x30   : > { %240 = vst [vmem:[%s5151_s29 + $0x70] sm:$0xf] %v239_v28  ;;  %v301_v59 = vld [vmem:[%s5147_s28 + $0x1d8] sm:$0xf]  ;;  %v303_v60 = vld [vmem:[%s5147_s28 + $0x1e0] sm:$0xf] }
  0x31   : > { %242 = vst [vmem:[%s5151_s29 + $0x74] sm:$0xf] %v241_v29  ;;  %v305_v61 = vld [vmem:[%s5147_s28 + $0x1e8] sm:$0xf]  ;;  %v307_v62 = vld [vmem:[%s5147_s28 + $0x1f0] sm:$0xf] }
  0x32   : > { %244 = vst [vmem:[%s5151_s29 + $0x78] sm:$0xf] %v243_v30  ;;  %v309_v63 = vld [vmem:[%s5147_s28 + $0x1f8] sm:$0xf]  ;;  %v311_v0 = vld [vmem:[%s5147_s28 + $0x200] sm:$0xf] }
  0x33   : > { %246 = vst [vmem:[%s5151_s29 + $0x7c] sm:$0xf] %v245_v31  ;;  %v313_v1 = vld [vmem:[%s5147_s28 + $0x208] sm:$0xf]  ;;  %v315_v2 = vld [vmem:[%s5147_s28 + $0x210] sm:$0xf] }
  0x34   : > { %248 = vst [vmem:[%s5151_s29 + $0x80] sm:$0xf] %v247_v32  ;;  %v317_v3 = vld [vmem:[%s5147_s28 + $0x218] sm:$0xf]  ;;  %v319_v4 = vld [vmem:[%s5147_s28 + $0x220] sm:$0xf] }
  0x35   : > { %250 = vst [vmem:[%s5151_s29 + $0x84] sm:$0xf] %v249_v33  ;;  %v321_v5 = vld [vmem:[%s5147_s28 + $0x228] sm:$0xf]  ;;  %v323_v6 = vld [vmem:[%s5147_s28 + $0x230] sm:$0xf] }
  0x36   : > { %252 = vst [vmem:[%s5151_s29 + $0x88] sm:$0xf] %v251_v34  ;;  %v325_v7 = vld [vmem:[%s5147_s28 + $0x238] sm:$0xf]  ;;  %v327_v8 = vld [vmem:[%s5147_s28 + $0x240] sm:$0xf] }
  0x37   : > { %254 = vst [vmem:[%s5151_s29 + $0x8c] sm:$0xf] %v253_v35  ;;  %v329_v9 = vld [vmem:[%s5147_s28 + $0x248] sm:$0xf]  ;;  %v331_v10 = vld [vmem:[%s5147_s28 + $0x250] sm:$0xf] }
  0x38   : > { %256 = vst [vmem:[%s5151_s29 + $0x90] sm:$0xf] %v255_v36  ;;  %v333_v11 = vld [vmem:[%s5147_s28 + $0x258] sm:$0xf]  ;;  %v335_v12 = vld [vmem:[%s5147_s28 + $0x260] sm:$0xf] }
  0x39   : > { %258 = vst [vmem:[%s5151_s29 + $0x94] sm:$0xf] %v257_v37  ;;  %v337_v13 = vld [vmem:[%s5147_s28 + $0x268] sm:$0xf]  ;;  %v339_v14 = vld [vmem:[%s5147_s28 + $0x270] sm:$0xf] }
  0x3a   : > { %260 = vst [vmem:[%s5151_s29 + $0x98] sm:$0xf] %v259_v38  ;;  %v341_v15 = vld [vmem:[%s5147_s28 + $0x278] sm:$0xf]  ;;  %v343_v16 = vld [vmem:[%s5147_s28 + $0x280] sm:$0xf] }
  0x3b   : > { %262 = vst [vmem:[%s5151_s29 + $0x9c] sm:$0xf] %v261_v39  ;;  %v345_v17 = vld [vmem:[%s5147_s28 + $0x288] sm:$0xf]  ;;  %v347_v18 = vld [vmem:[%s5147_s28 + $0x290] sm:$0xf] }
  0x3c   : > { %264 = vst [vmem:[%s5151_s29 + $0xa0] sm:$0xf] %v263_v40  ;;  %v349_v19 = vld [vmem:[%s5147_s28 + $0x298] sm:$0xf]  ;;  %v351_v20 = vld [vmem:[%s5147_s28 + $0x2a0] sm:$0xf] }
  0x3d   : > { %266 = vst [vmem:[%s5151_s29 + $0xa4] sm:$0xf] %v265_v41  ;;  %v353_v21 = vld [vmem:[%s5147_s28 + $0x2a8] sm:$0xf]  ;;  %v355_v22 = vld [vmem:[%s5147_s28 + $0x2b0] sm:$0xf] }
  0x3e   : > { %268 = vst [vmem:[%s5151_s29 + $0xa8] sm:$0xf] %v267_v42  ;;  %v357_v23 = vld [vmem:[%s5147_s28 + $0x2b8] sm:$0xf]  ;;  %v359_v24 = vld [vmem:[%s5147_s28 + $0x2c0] sm:$0xf] }
  0x3f   : > { %270 = vst [vmem:[%s5151_s29 + $0xac] sm:$0xf] %v269_v43  ;;  %v361_v25 = vld [vmem:[%s5147_s28 + $0x2c8] sm:$0xf]  ;;  %v363_v26 = vld [vmem:[%s5147_s28 + $0x2d0] sm:$0xf] }
  0x40   : > { %272 = vst [vmem:[%s5151_s29 + $0xb0] sm:$0xf] %v271_v44  ;;  %v365_v27 = vld [vmem:[%s5147_s28 + $0x2d8] sm:$0xf]  ;;  %v367_v28 = vld [vmem:[%s5147_s28 + $0x2e0] sm:$0xf] }
  0x41   : > { %274 = vst [vmem:[%s5151_s29 + $0xb4] sm:$0xf] %v273_v45  ;;  %v369_v29 = vld [vmem:[%s5147_s28 + $0x2e8] sm:$0xf]  ;;  %v371_v30 = vld [vmem:[%s5147_s28 + $0x2f0] sm:$0xf] }
  0x42   : > { %276 = vst [vmem:[%s5151_s29 + $0xb8] sm:$0xf] %v275_v46  ;;  %v373_v31 = vld [vmem:[%s5147_s28 + $0x2f8] sm:$0xf]  ;;  %v375_v32 = vld [vmem:[%s5147_s28 + $0x300] sm:$0xf] }
  0x43   : > { %278 = vst [vmem:[%s5151_s29 + $0xbc] sm:$0xf] %v277_v47  ;;  %v377_v33 = vld [vmem:[%s5147_s28 + $0x308] sm:$0xf]  ;;  %v379_v34 = vld [vmem:[%s5147_s28 + $0x310] sm:$0xf] }
  0x44   : > { %280 = vst [vmem:[%s5151_s29 + $0xc0] sm:$0xf] %v279_v48  ;;  %v381_v35 = vld [vmem:[%s5147_s28 + $0x318] sm:$0xf]  ;;  %v383_v36 = vld [vmem:[%s5147_s28 + $0x320] sm:$0xf] }
  0x45   : > { %282 = vst [vmem:[%s5151_s29 + $0xc4] sm:$0xf] %v281_v49  ;;  %v385_v37 = vld [vmem:[%s5147_s28 + $0x328] sm:$0xf]  ;;  %v387_v38 = vld [vmem:[%s5147_s28 + $0x330] sm:$0xf] }
  0x46   : > { %284 = vst [vmem:[%s5151_s29 + $0xc8] sm:$0xf] %v283_v50  ;;  %v389_v39 = vld [vmem:[%s5147_s28 + $0x338] sm:$0xf]  ;;  %v391_v40 = vld [vmem:[%s5147_s28 + $0x340] sm:$0xf] }
  0x47   : > { %286 = vst [vmem:[%s5151_s29 + $0xcc] sm:$0xf] %v285_v51  ;;  %v393_v41 = vld [vmem:[%s5147_s28 + $0x348] sm:$0xf]  ;;  %v395_v42 = vld [vmem:[%s5147_s28 + $0x350] sm:$0xf] }
  0x48   : > { %288 = vst [vmem:[%s5151_s29 + $0xd0] sm:$0xf] %v287_v52  ;;  %v397_v43 = vld [vmem:[%s5147_s28 + $0x358] sm:$0xf]  ;;  %v399_v44 = vld [vmem:[%s5147_s28 + $0x360] sm:$0xf] }
  0x49   : > { %290 = vst [vmem:[%s5151_s29 + $0xd4] sm:$0xf] %v289_v53  ;;  %v401_v45 = vld [vmem:[%s5147_s28 + $0x368] sm:$0xf]  ;;  %v403_v46 = vld [vmem:[%s5147_s28 + $0x370] sm:$0xf] }
  0x4a   : > { %292 = vst [vmem:[%s5151_s29 + $0xd8] sm:$0xf] %v291_v54  ;;  %v405_v47 = vld [vmem:[%s5147_s28 + $0x378] sm:$0xf]  ;;  %v407_v48 = vld [vmem:[%s5147_s28 + $0x380] sm:$0xf] }
  0x4b   : > { %294 = vst [vmem:[%s5151_s29 + $0xdc] sm:$0xf] %v293_v55  ;;  %v409_v49 = vld [vmem:[%s5147_s28 + $0x388] sm:$0xf]  ;;  %v411_v50 = vld [vmem:[%s5147_s28 + $0x390] sm:$0xf] }
  0x4c   : > { %296 = vst [vmem:[%s5151_s29 + $0xe0] sm:$0xf] %v295_v56  ;;  %v413_v51 = vld [vmem:[%s5147_s28 + $0x398] sm:$0xf]  ;;  %v415_v52 = vld [vmem:[%s5147_s28 + $0x3a0] sm:$0xf] }
  0x4d   : > { %298 = vst [vmem:[%s5151_s29 + $0xe4] sm:$0xf] %v297_v57  ;;  %v417_v53 = vld [vmem:[%s5147_s28 + $0x3a8] sm:$0xf]  ;;  %v419_v54 = vld [vmem:[%s5147_s28 + $0x3b0] sm:$0xf] }
  0x4e   : > { %300 = vst [vmem:[%s5151_s29 + $0xe8] sm:$0xf] %v299_v58  ;;  %v421_v55 = vld [vmem:[%s5147_s28 + $0x3b8] sm:$0xf]  ;;  %v423_v56 = vld [vmem:[%s5147_s28 + $0x3c0] sm:$0xf] }
  0x4f   : > { %302 = vst [vmem:[%s5151_s29 + $0xec] sm:$0xf] %v301_v59  ;;  %v425_v57 = vld [vmem:[%s5147_s28 + $0x3c8] sm:$0xf]  ;;  %v427_v58 = vld [vmem:[%s5147_s28 + $0x3d0] sm:$0xf] }
  0x50   : > { %304 = vst [vmem:[%s5151_s29 + $0xf0] sm:$0xf] %v303_v60  ;;  %v429_v59 = vld [vmem:[%s5147_s28 + $0x3d8] sm:$0xf]  ;;  %v431_v60 = vld [vmem:[%s5147_s28 + $0x3e0] sm:$0xf] }
  0x51   : > { %306 = vst [vmem:[%s5151_s29 + $0xf4] sm:$0xf] %v305_v61  ;;  %v433_v61 = vld [vmem:[%s5147_s28 + $0x3e8] sm:$0xf] }
  0x52   : > { %308 = vst [vmem:[%s5151_s29 + $0xf8] sm:$0xf] %v307_v62  ;;  %v435_v62 = vld [vmem:[%s5147_s28 + $0x3f0] sm:$0xf] }
  0x53   : > { %310 = vst [vmem:[%s5151_s29 + $0xfc] sm:$0xf] %v309_v63  ;;  %v437_v63 = vld [vmem:[%s5147_s28 + $0x3f8] sm:$0xf] }
  0x54   : > { %312 = vst [vmem:[%s5151_s29 + $0x100] sm:$0xf] %v311_v0  ;;  %v439_v0 = vld [vmem:[%s5147_s28 + $0x400] sm:$0xf] }
  0x55   : > { %314 = vst [vmem:[%s5151_s29 + $0x104] sm:$0xf] %v313_v1  ;;  %v441_v1 = vld [vmem:[%s5147_s28 + $0x408] sm:$0xf] }
  0x56   : > { %316 = vst [vmem:[%s5151_s29 + $0x108] sm:$0xf] %v315_v2  ;;  %v443_v2 = vld [vmem:[%s5147_s28 + $0x410] sm:$0xf] }
  0x57   : > { %318 = vst [vmem:[%s5151_s29 + $0x10c] sm:$0xf] %v317_v3  ;;  %v445_v3 = vld [vmem:[%s5147_s28 + $0x418] sm:$0xf] }
  0x58   : > { %320 = vst [vmem:[%s5151_s29 + $0x110] sm:$0xf] %v319_v4  ;;  %v447_v4 = vld [vmem:[%s5147_s28 + $0x420] sm:$0xf] }
  0x59   : > { %322 = vst [vmem:[%s5151_s29 + $0x114] sm:$0xf] %v321_v5  ;;  %v449_v5 = vld [vmem:[%s5147_s28 + $0x428] sm:$0xf] }
  0x5a   : > { %324 = vst [vmem:[%s5151_s29 + $0x118] sm:$0xf] %v323_v6  ;;  %v451_v6 = vld [vmem:[%s5147_s28 + $0x430] sm:$0xf] }
  0x5b   : > { %326 = vst [vmem:[%s5151_s29 + $0x11c] sm:$0xf] %v325_v7  ;;  %v453_v7 = vld [vmem:[%s5147_s28 + $0x438] sm:$0xf] }
  0x5c   : > { %328 = vst [vmem:[%s5151_s29 + $0x120] sm:$0xf] %v327_v8  ;;  %v455_v8 = vld [vmem:[%s5147_s28 + $0x440] sm:$0xf] }
  0x5d   : > { %330 = vst [vmem:[%s5151_s29 + $0x124] sm:$0xf] %v329_v9  ;;  %v457_v9 = vld [vmem:[%s5147_s28 + $0x448] sm:$0xf] }
  0x5e   : > { %332 = vst [vmem:[%s5151_s29 + $0x128] sm:$0xf] %v331_v10  ;;  %v459_v10 = vld [vmem:[%s5147_s28 + $0x450] sm:$0xf] }
  0x5f   : > { %334 = vst [vmem:[%s5151_s29 + $0x12c] sm:$0xf] %v333_v11  ;;  %v461_v11 = vld [vmem:[%s5147_s28 + $0x458] sm:$0xf] }
  0x60   : > { %336 = vst [vmem:[%s5151_s29 + $0x130] sm:$0xf] %v335_v12  ;;  %v463_v12 = vld [vmem:[%s5147_s28 + $0x460] sm:$0xf] }
  0x61   : > { %338 = vst [vmem:[%s5151_s29 + $0x134] sm:$0xf] %v337_v13  ;;  %v465_v13 = vld [vmem:[%s5147_s28 + $0x468] sm:$0xf] }
  0x62   : > { %340 = vst [vmem:[%s5151_s29 + $0x138] sm:$0xf] %v339_v14  ;;  %v467_v14 = vld [vmem:[%s5147_s28 + $0x470] sm:$0xf] }
  0x63   : > { %342 = vst [vmem:[%s5151_s29 + $0x13c] sm:$0xf] %v341_v15  ;;  %v469_v15 = vld [vmem:[%s5147_s28 + $0x478] sm:$0xf] }
  0x64   : > { %344 = vst [vmem:[%s5151_s29 + $0x140] sm:$0xf] %v343_v16  ;;  %v471_v16 = vld [vmem:[%s5147_s28 + $0x480] sm:$0xf] }
  0x65   : > { %346 = vst [vmem:[%s5151_s29 + $0x144] sm:$0xf] %v345_v17  ;;  %v473_v17 = vld [vmem:[%s5147_s28 + $0x488] sm:$0xf] }
  0x66   : > { %348 = vst [vmem:[%s5151_s29 + $0x148] sm:$0xf] %v347_v18  ;;  %v475_v18 = vld [vmem:[%s5147_s28 + $0x490] sm:$0xf] }
  0x67   : > { %350 = vst [vmem:[%s5151_s29 + $0x14c] sm:$0xf] %v349_v19  ;;  %v477_v19 = vld [vmem:[%s5147_s28 + $0x498] sm:$0xf] }
  0x68   : > { %352 = vst [vmem:[%s5151_s29 + $0x150] sm:$0xf] %v351_v20  ;;  %v479_v20 = vld [vmem:[%s5147_s28 + $0x4a0] sm:$0xf] }
  0x69   : > { %354 = vst [vmem:[%s5151_s29 + $0x154] sm:$0xf] %v353_v21  ;;  %v481_v21 = vld [vmem:[%s5147_s28 + $0x4a8] sm:$0xf] }
  0x6a   : > { %356 = vst [vmem:[%s5151_s29 + $0x158] sm:$0xf] %v355_v22  ;;  %v483_v22 = vld [vmem:[%s5147_s28 + $0x4b0] sm:$0xf] }
  0x6b   : > { %358 = vst [vmem:[%s5151_s29 + $0x15c] sm:$0xf] %v357_v23  ;;  %v485_v23 = vld [vmem:[%s5147_s28 + $0x4b8] sm:$0xf] }
  0x6c   : > { %360 = vst [vmem:[%s5151_s29 + $0x160] sm:$0xf] %v359_v24  ;;  %v487_v24 = vld [vmem:[%s5147_s28 + $0x4c0] sm:$0xf] }
  0x6d   : > { %362 = vst [vmem:[%s5151_s29 + $0x164] sm:$0xf] %v361_v25  ;;  %v489_v25 = vld [vmem:[%s5147_s28 + $0x4c8] sm:$0xf] }
  0x6e   : > { %364 = vst [vmem:[%s5151_s29 + $0x168] sm:$0xf] %v363_v26  ;;  %v491_v26 = vld [vmem:[%s5147_s28 + $0x4d0] sm:$0xf] }
  0x6f   : > { %366 = vst [vmem:[%s5151_s29 + $0x16c] sm:$0xf] %v365_v27  ;;  %v493_v27 = vld [vmem:[%s5147_s28 + $0x4d8] sm:$0xf] }
  0x70   : > { %368 = vst [vmem:[%s5151_s29 + $0x170] sm:$0xf] %v367_v28  ;;  %v495_v28 = vld [vmem:[%s5147_s28 + $0x4e0] sm:$0xf] }
  0x71   : > { %370 = vst [vmem:[%s5151_s29 + $0x174] sm:$0xf] %v369_v29  ;;  %v497_v29 = vld [vmem:[%s5147_s28 + $0x4e8] sm:$0xf] }
  0x72   : > { %372 = vst [vmem:[%s5151_s29 + $0x178] sm:$0xf] %v371_v30  ;;  %v499_v30 = vld [vmem:[%s5147_s28 + $0x4f0] sm:$0xf] }
  0x73   : > { %374 = vst [vmem:[%s5151_s29 + $0x17c] sm:$0xf] %v373_v31  ;;  %v501_v31 = vld [vmem:[%s5147_s28 + $0x4f8] sm:$0xf] }
  0x74   : > { %376 = vst [vmem:[%s5151_s29 + $0x180] sm:$0xf] %v375_v32  ;;  %v503_v32 = vld [vmem:[%s5147_s28 + $0x500] sm:$0xf] }
  0x75   : > { %378 = vst [vmem:[%s5151_s29 + $0x184] sm:$0xf] %v377_v33  ;;  %v505_v33 = vld [vmem:[%s5147_s28 + $0x508] sm:$0xf] }
  0x76   : > { %380 = vst [vmem:[%s5151_s29 + $0x188] sm:$0xf] %v379_v34  ;;  %v507_v34 = vld [vmem:[%s5147_s28 + $0x510] sm:$0xf] }
  0x77   : > { %382 = vst [vmem:[%s5151_s29 + $0x18c] sm:$0xf] %v381_v35  ;;  %v509_v35 = vld [vmem:[%s5147_s28 + $0x518] sm:$0xf] }
  0x78   : > { %384 = vst [vmem:[%s5151_s29 + $0x190] sm:$0xf] %v383_v36  ;;  %v511_v36 = vld [vmem:[%s5147_s28 + $0x520] sm:$0xf] }
  0x79   : > { %386 = vst [vmem:[%s5151_s29 + $0x194] sm:$0xf] %v385_v37  ;;  %v513_v37 = vld [vmem:[%s5147_s28 + $0x528] sm:$0xf] }
  0x7a   : > { %388 = vst [vmem:[%s5151_s29 + $0x198] sm:$0xf] %v387_v38  ;;  %v515_v38 = vld [vmem:[%s5147_s28 + $0x530] sm:$0xf] }
  0x7b   : > { %390 = vst [vmem:[%s5151_s29 + $0x19c] sm:$0xf] %v389_v39  ;;  %v517_v39 = vld [vmem:[%s5147_s28 + $0x538] sm:$0xf] }
  0x7c   : > { %392 = vst [vmem:[%s5151_s29 + $0x1a0] sm:$0xf] %v391_v40  ;;  %v519_v40 = vld [vmem:[%s5147_s28 + $0x540] sm:$0xf] }
  0x7d   : > { %394 = vst [vmem:[%s5151_s29 + $0x1a4] sm:$0xf] %v393_v41  ;;  %v521_v41 = vld [vmem:[%s5147_s28 + $0x548] sm:$0xf] }
  0x7e   : > { %396 = vst [vmem:[%s5151_s29 + $0x1a8] sm:$0xf] %v395_v42  ;;  %v523_v42 = vld [vmem:[%s5147_s28 + $0x550] sm:$0xf] }
  0x7f   : > { %398 = vst [vmem:[%s5151_s29 + $0x1ac] sm:$0xf] %v397_v43  ;;  %v525_v43 = vld [vmem:[%s5147_s28 + $0x558] sm:$0xf] }
  0x80   : > { %400 = vst [vmem:[%s5151_s29 + $0x1b0] sm:$0xf] %v399_v44  ;;  %v527_v44 = vld [vmem:[%s5147_s28 + $0x560] sm:$0xf] }
  0x81   : > { %402 = vst [vmem:[%s5151_s29 + $0x1b4] sm:$0xf] %v401_v45  ;;  %v529_v45 = vld [vmem:[%s5147_s28 + $0x568] sm:$0xf] }
  0x82   : > { %404 = vst [vmem:[%s5151_s29 + $0x1b8] sm:$0xf] %v403_v46  ;;  %v531_v46 = vld [vmem:[%s5147_s28 + $0x570] sm:$0xf] }
  0x83   : > { %406 = vst [vmem:[%s5151_s29 + $0x1bc] sm:$0xf] %v405_v47  ;;  %v533_v47 = vld [vmem:[%s5147_s28 + $0x578] sm:$0xf] }
  0x84   : > { %408 = vst [vmem:[%s5151_s29 + $0x1c0] sm:$0xf] %v407_v48  ;;  %v535_v48 = vld [vmem:[%s5147_s28 + $0x580] sm:$0xf] }
  0x85   : > { %410 = vst [vmem:[%s5151_s29 + $0x1c4] sm:$0xf] %v409_v49  ;;  %v537_v49 = vld [vmem:[%s5147_s28 + $0x588] sm:$0xf] }
  0x86   : > { %412 = vst [vmem:[%s5151_s29 + $0x1c8] sm:$0xf] %v411_v50  ;;  %v539_v50 = vld [vmem:[%s5147_s28 + $0x590] sm:$0xf] }
  0x87   : > { %414 = vst [vmem:[%s5151_s29 + $0x1cc] sm:$0xf] %v413_v51  ;;  %v541_v51 = vld [vmem:[%s5147_s28 + $0x598] sm:$0xf] }
  0x88   : > { %416 = vst [vmem:[%s5151_s29 + $0x1d0] sm:$0xf] %v415_v52  ;;  %v543_v52 = vld [vmem:[%s5147_s28 + $0x5a0] sm:$0xf] }
  0x89   : > { %418 = vst [vmem:[%s5151_s29 + $0x1d4] sm:$0xf] %v417_v53  ;;  %v545_v53 = vld [vmem:[%s5147_s28 + $0x5a8] sm:$0xf] }
  0x8a   : > { %420 = vst [vmem:[%s5151_s29 + $0x1d8] sm:$0xf] %v419_v54  ;;  %v547_v54 = vld [vmem:[%s5147_s28 + $0x5b0] sm:$0xf] }
  0x8b   : > { %422 = vst [vmem:[%s5151_s29 + $0x1dc] sm:$0xf] %v421_v55  ;;  %v549_v55 = vld [vmem:[%s5147_s28 + $0x5b8] sm:$0xf] }
  0x8c   : > { %424 = vst [vmem:[%s5151_s29 + $0x1e0] sm:$0xf] %v423_v56  ;;  %v551_v56 = vld [vmem:[%s5147_s28 + $0x5c0] sm:$0xf] }
  0x8d   : > { %426 = vst [vmem:[%s5151_s29 + $0x1e4] sm:$0xf] %v425_v57  ;;  %v553_v57 = vld [vmem:[%s5147_s28 + $0x5c8] sm:$0xf] }
  0x8e   : > { %428 = vst [vmem:[%s5151_s29 + $0x1e8] sm:$0xf] %v427_v58  ;;  %v555_v58 = vld [vmem:[%s5147_s28 + $0x5d0] sm:$0xf] }
  0x8f   : > { %430 = vst [vmem:[%s5151_s29 + $0x1ec] sm:$0xf] %v429_v59  ;;  %v557_v59 = vld [vmem:[%s5147_s28 + $0x5d8] sm:$0xf] }
  0x90   : > { %432 = vst [vmem:[%s5151_s29 + $0x1f0] sm:$0xf] %v431_v60  ;;  %v559_v60 = vld [vmem:[%s5147_s28 + $0x5e0] sm:$0xf] }
  0x91   : > { %434 = vst [vmem:[%s5151_s29 + $0x1f4] sm:$0xf] %v433_v61  ;;  %v561_v61 = vld [vmem:[%s5147_s28 + $0x5e8] sm:$0xf] }
  0x92   : > { %436 = vst [vmem:[%s5151_s29 + $0x1f8] sm:$0xf] %v435_v62  ;;  %v563_v62 = vld [vmem:[%s5147_s28 + $0x5f0] sm:$0xf] }
  0x93   : > { %438 = vst [vmem:[%s5151_s29 + $0x1fc] sm:$0xf] %v437_v63  ;;  %v565_v63 = vld [vmem:[%s5147_s28 + $0x5f8] sm:$0xf] }
  0x94   : > { %440 = vst [vmem:[%s5151_s29 + $0x200] sm:$0xf] %v439_v0  ;;  %v567_v0 = vld [vmem:[%s5147_s28 + $0x600] sm:$0xf] }
  0x95   : > { %442 = vst [vmem:[%s5151_s29 + $0x204] sm:$0xf] %v441_v1  ;;  %v569_v1 = vld [vmem:[%s5147_s28 + $0x608] sm:$0xf] }
  0x96   : > { %444 = vst [vmem:[%s5151_s29 + $0x208] sm:$0xf] %v443_v2  ;;  %v571_v2 = vld [vmem:[%s5147_s28 + $0x610] sm:$0xf] }
  0x97   : > { %446 = vst [vmem:[%s5151_s29 + $0x20c] sm:$0xf] %v445_v3  ;;  %v573_v3 = vld [vmem:[%s5147_s28 + $0x618] sm:$0xf] }
  0x98   : > { %448 = vst [vmem:[%s5151_s29 + $0x210] sm:$0xf] %v447_v4  ;;  %v575_v4 = vld [vmem:[%s5147_s28 + $0x620] sm:$0xf] }
  0x99   : > { %450 = vst [vmem:[%s5151_s29 + $0x214] sm:$0xf] %v449_v5  ;;  %v577_v5 = vld [vmem:[%s5147_s28 + $0x628] sm:$0xf] }
  0x9a   : > { %452 = vst [vmem:[%s5151_s29 + $0x218] sm:$0xf] %v451_v6  ;;  %v579_v6 = vld [vmem:[%s5147_s28 + $0x630] sm:$0xf] }
  0x9b   : > { %454 = vst [vmem:[%s5151_s29 + $0x21c] sm:$0xf] %v453_v7  ;;  %v581_v7 = vld [vmem:[%s5147_s28 + $0x638] sm:$0xf] }
  0x9c   : > { %456 = vst [vmem:[%s5151_s29 + $0x220] sm:$0xf] %v455_v8  ;;  %v583_v8 = vld [vmem:[%s5147_s28 + $0x640] sm:$0xf] }
  0x9d   : > { %458 = vst [vmem:[%s5151_s29 + $0x224] sm:$0xf] %v457_v9  ;;  %v585_v9 = vld [vmem:[%s5147_s28 + $0x648] sm:$0xf] }
  0x9e   : > { %460 = vst [vmem:[%s5151_s29 + $0x228] sm:$0xf] %v459_v10  ;;  %v587_v10 = vld [vmem:[%s5147_s28 + $0x650] sm:$0xf] }
  0x9f   : > { %462 = vst [vmem:[%s5151_s29 + $0x22c] sm:$0xf] %v461_v11  ;;  %v589_v11 = vld [vmem:[%s5147_s28 + $0x658] sm:$0xf] }
  0xa0   : > { %464 = vst [vmem:[%s5151_s29 + $0x230] sm:$0xf] %v463_v12  ;;  %v591_v12 = vld [vmem:[%s5147_s28 + $0x660] sm:$0xf] }
  0xa1   : > { %466 = vst [vmem:[%s5151_s29 + $0x234] sm:$0xf] %v465_v13  ;;  %v593_v13 = vld [vmem:[%s5147_s28 + $0x668] sm:$0xf] }
  0xa2   : > { %468 = vst [vmem:[%s5151_s29 + $0x238] sm:$0xf] %v467_v14  ;;  %v595_v14 = vld [vmem:[%s5147_s28 + $0x670] sm:$0xf] }
  0xa3   : > { %470 = vst [vmem:[%s5151_s29 + $0x23c] sm:$0xf] %v469_v15  ;;  %v597_v15 = vld [vmem:[%s5147_s28 + $0x678] sm:$0xf] }
  0xa4   : > { %472 = vst [vmem:[%s5151_s29 + $0x240] sm:$0xf] %v471_v16  ;;  %v599_v16 = vld [vmem:[%s5147_s28 + $0x680] sm:$0xf] }
  0xa5   : > { %474 = vst [vmem:[%s5151_s29 + $0x244] sm:$0xf] %v473_v17  ;;  %v601_v17 = vld [vmem:[%s5147_s28 + $0x688] sm:$0xf] }
  0xa6   : > { %476 = vst [vmem:[%s5151_s29 + $0x248] sm:$0xf] %v475_v18  ;;  %v603_v18 = vld [vmem:[%s5147_s28 + $0x690] sm:$0xf] }
  0xa7   : > { %478 = vst [vmem:[%s5151_s29 + $0x24c] sm:$0xf] %v477_v19  ;;  %v605_v19 = vld [vmem:[%s5147_s28 + $0x698] sm:$0xf] }
  0xa8   : > { %480 = vst [vmem:[%s5151_s29 + $0x250] sm:$0xf] %v479_v20  ;;  %v607_v20 = vld [vmem:[%s5147_s28 + $0x6a0] sm:$0xf] }
  0xa9   : > { %482 = vst [vmem:[%s5151_s29 + $0x254] sm:$0xf] %v481_v21  ;;  %v609_v21 = vld [vmem:[%s5147_s28 + $0x6a8] sm:$0xf] }
  0xaa   : > { %484 = vst [vmem:[%s5151_s29 + $0x258] sm:$0xf] %v483_v22  ;;  %v611_v22 = vld [vmem:[%s5147_s28 + $0x6b0] sm:$0xf] }
  0xab   : > { %486 = vst [vmem:[%s5151_s29 + $0x25c] sm:$0xf] %v485_v23  ;;  %v613_v23 = vld [vmem:[%s5147_s28 + $0x6b8] sm:$0xf] }
  0xac   : > { %488 = vst [vmem:[%s5151_s29 + $0x260] sm:$0xf] %v487_v24  ;;  %v615_v24 = vld [vmem:[%s5147_s28 + $0x6c0] sm:$0xf] }
  0xad   : > { %490 = vst [vmem:[%s5151_s29 + $0x264] sm:$0xf] %v489_v25  ;;  %v617_v25 = vld [vmem:[%s5147_s28 + $0x6c8] sm:$0xf] }
  0xae   : > { %492 = vst [vmem:[%s5151_s29 + $0x268] sm:$0xf] %v491_v26  ;;  %v619_v26 = vld [vmem:[%s5147_s28 + $0x6d0] sm:$0xf] }
  0xaf   : > { %494 = vst [vmem:[%s5151_s29 + $0x26c] sm:$0xf] %v493_v27  ;;  %v621_v27 = vld [vmem:[%s5147_s28 + $0x6d8] sm:$0xf] }
  0xb0   : > { %496 = vst [vmem:[%s5151_s29 + $0x270] sm:$0xf] %v495_v28  ;;  %v623_v28 = vld [vmem:[%s5147_s28 + $0x6e0] sm:$0xf] }
  0xb1   : > { %498 = vst [vmem:[%s5151_s29 + $0x274] sm:$0xf] %v497_v29  ;;  %v625_v29 = vld [vmem:[%s5147_s28 + $0x6e8] sm:$0xf] }
  0xb2   : > { %500 = vst [vmem:[%s5151_s29 + $0x278] sm:$0xf] %v499_v30  ;;  %v627_v30 = vld [vmem:[%s5147_s28 + $0x6f0] sm:$0xf] }
  0xb3   : > { %502 = vst [vmem:[%s5151_s29 + $0x27c] sm:$0xf] %v501_v31  ;;  %v629_v31 = vld [vmem:[%s5147_s28 + $0x6f8] sm:$0xf] }
  0xb4   : > { %504 = vst [vmem:[%s5151_s29 + $0x280] sm:$0xf] %v503_v32  ;;  %v631_v32 = vld [vmem:[%s5147_s28 + $0x700] sm:$0xf] }
  0xb5   : > { %506 = vst [vmem:[%s5151_s29 + $0x284] sm:$0xf] %v505_v33  ;;  %v633_v33 = vld [vmem:[%s5147_s28 + $0x708] sm:$0xf] }
  0xb6   : > { %508 = vst [vmem:[%s5151_s29 + $0x288] sm:$0xf] %v507_v34  ;;  %v635_v34 = vld [vmem:[%s5147_s28 + $0x710] sm:$0xf] }
  0xb7   : > { %510 = vst [vmem:[%s5151_s29 + $0x28c] sm:$0xf] %v509_v35  ;;  %v637_v35 = vld [vmem:[%s5147_s28 + $0x718] sm:$0xf] }
  0xb8   : > { %512 = vst [vmem:[%s5151_s29 + $0x290] sm:$0xf] %v511_v36  ;;  %v639_v36 = vld [vmem:[%s5147_s28 + $0x720] sm:$0xf] }
  0xb9   : > { %514 = vst [vmem:[%s5151_s29 + $0x294] sm:$0xf] %v513_v37  ;;  %v641_v37 = vld [vmem:[%s5147_s28 + $0x728] sm:$0xf] }
  0xba   : > { %516 = vst [vmem:[%s5151_s29 + $0x298] sm:$0xf] %v515_v38  ;;  %v643_v38 = vld [vmem:[%s5147_s28 + $0x730] sm:$0xf] }
  0xbb   : > { %518 = vst [vmem:[%s5151_s29 + $0x29c] sm:$0xf] %v517_v39  ;;  %v645_v39 = vld [vmem:[%s5147_s28 + $0x738] sm:$0xf] }
  0xbc   : > { %520 = vst [vmem:[%s5151_s29 + $0x2a0] sm:$0xf] %v519_v40  ;;  %v647_v40 = vld [vmem:[%s5147_s28 + $0x740] sm:$0xf] }
  0xbd   : > { %522 = vst [vmem:[%s5151_s29 + $0x2a4] sm:$0xf] %v521_v41  ;;  %v649_v41 = vld [vmem:[%s5147_s28 + $0x748] sm:$0xf] }
  0xbe   : > { %524 = vst [vmem:[%s5151_s29 + $0x2a8] sm:$0xf] %v523_v42  ;;  %v651_v42 = vld [vmem:[%s5147_s28 + $0x750] sm:$0xf] }
  0xbf   : > { %526 = vst [vmem:[%s5151_s29 + $0x2ac] sm:$0xf] %v525_v43  ;;  %v653_v43 = vld [vmem:[%s5147_s28 + $0x758] sm:$0xf] }
  0xc0   : > { %528 = vst [vmem:[%s5151_s29 + $0x2b0] sm:$0xf] %v527_v44  ;;  %v655_v44 = vld [vmem:[%s5147_s28 + $0x760] sm:$0xf] }
  0xc1   : > { %530 = vst [vmem:[%s5151_s29 + $0x2b4] sm:$0xf] %v529_v45  ;;  %v657_v45 = vld [vmem:[%s5147_s28 + $0x768] sm:$0xf] }
  0xc2   : > { %532 = vst [vmem:[%s5151_s29 + $0x2b8] sm:$0xf] %v531_v46  ;;  %v659_v46 = vld [vmem:[%s5147_s28 + $0x770] sm:$0xf] }
  0xc3   : > { %534 = vst [vmem:[%s5151_s29 + $0x2bc] sm:$0xf] %v533_v47  ;;  %v661_v47 = vld [vmem:[%s5147_s28 + $0x778] sm:$0xf] }
  0xc4   : > { %536 = vst [vmem:[%s5151_s29 + $0x2c0] sm:$0xf] %v535_v48  ;;  %v663_v48 = vld [vmem:[%s5147_s28 + $0x780] sm:$0xf] }
  0xc5   : > { %538 = vst [vmem:[%s5151_s29 + $0x2c4] sm:$0xf] %v537_v49  ;;  %v665_v49 = vld [vmem:[%s5147_s28 + $0x788] sm:$0xf] }
  0xc6   : > { %540 = vst [vmem:[%s5151_s29 + $0x2c8] sm:$0xf] %v539_v50  ;;  %v667_v50 = vld [vmem:[%s5147_s28 + $0x790] sm:$0xf] }
  0xc7   : > { %542 = vst [vmem:[%s5151_s29 + $0x2cc] sm:$0xf] %v541_v51  ;;  %v669_v51 = vld [vmem:[%s5147_s28 + $0x798] sm:$0xf] }
  0xc8   : > { %544 = vst [vmem:[%s5151_s29 + $0x2d0] sm:$0xf] %v543_v52  ;;  %v671_v52 = vld [vmem:[%s5147_s28 + $0x7a0] sm:$0xf] }
  0xc9   : > { %546 = vst [vmem:[%s5151_s29 + $0x2d4] sm:$0xf] %v545_v53  ;;  %v673_v53 = vld [vmem:[%s5147_s28 + $0x7a8] sm:$0xf] }
  0xca   : > { %548 = vst [vmem:[%s5151_s29 + $0x2d8] sm:$0xf] %v547_v54  ;;  %v675_v54 = vld [vmem:[%s5147_s28 + $0x7b0] sm:$0xf] }
  0xcb   : > { %550 = vst [vmem:[%s5151_s29 + $0x2dc] sm:$0xf] %v549_v55  ;;  %v677_v55 = vld [vmem:[%s5147_s28 + $0x7b8] sm:$0xf] }
  0xcc   : > { %552 = vst [vmem:[%s5151_s29 + $0x2e0] sm:$0xf] %v551_v56  ;;  %v679_v56 = vld [vmem:[%s5147_s28 + $0x7c0] sm:$0xf] }
  0xcd   : > { %554 = vst [vmem:[%s5151_s29 + $0x2e4] sm:$0xf] %v553_v57  ;;  %v681_v57 = vld [vmem:[%s5147_s28 + $0x7c8] sm:$0xf] }
  0xce   : > { %556 = vst [vmem:[%s5151_s29 + $0x2e8] sm:$0xf] %v555_v58  ;;  %v683_v58 = vld [vmem:[%s5147_s28 + $0x7d0] sm:$0xf] }
  0xcf   : > { %558 = vst [vmem:[%s5151_s29 + $0x2ec] sm:$0xf] %v557_v59  ;;  %v685_v59 = vld [vmem:[%s5147_s28 + $0x7d8] sm:$0xf] }
  0xd0   : > { %560 = vst [vmem:[%s5151_s29 + $0x2f0] sm:$0xf] %v559_v60  ;;  %v687_v60 = vld [vmem:[%s5147_s28 + $0x7e0] sm:$0xf] }
  0xd1   : > { %562 = vst [vmem:[%s5151_s29 + $0x2f4] sm:$0xf] %v561_v61  ;;  %v689_v61 = vld [vmem:[%s5147_s28 + $0x7e8] sm:$0xf] }
  0xd2   : > { %564 = vst [vmem:[%s5151_s29 + $0x2f8] sm:$0xf] %v563_v62  ;;  %v691_v62 = vld [vmem:[%s5147_s28 + $0x7f0] sm:$0xf] }
  0xd3   : > { %566 = vst [vmem:[%s5151_s29 + $0x2fc] sm:$0xf] %v565_v63  ;;  %v693_v63 = vld [vmem:[%s5147_s28 + $0x7f8] sm:$0xf] }
  0xd4   : > { %568 = vst [vmem:[%s5151_s29 + $0x300] sm:$0xf] %v567_v0 }
  0xd5   : > { %570 = vst [vmem:[%s5151_s29 + $0x304] sm:$0xf] %v569_v1 }
  0xd6   : > { %572 = vst [vmem:[%s5151_s29 + $0x308] sm:$0xf] %v571_v2 }
  0xd7   : > { %574 = vst [vmem:[%s5151_s29 + $0x30c] sm:$0xf] %v573_v3 }
  0xd8   : > { %576 = vst [vmem:[%s5151_s29 + $0x310] sm:$0xf] %v575_v4 }
  0xd9   : > { %578 = vst [vmem:[%s5151_s29 + $0x314] sm:$0xf] %v577_v5 }
  0xda   : > { %580 = vst [vmem:[%s5151_s29 + $0x318] sm:$0xf] %v579_v6 }
  0xdb   : > { %582 = vst [vmem:[%s5151_s29 + $0x31c] sm:$0xf] %v581_v7 }
  0xdc   : > { %584 = vst [vmem:[%s5151_s29 + $0x320] sm:$0xf] %v583_v8 }
  0xdd   : > { %586 = vst [vmem:[%s5151_s29 + $0x324] sm:$0xf] %v585_v9 }
  0xde   : > { %588 = vst [vmem:[%s5151_s29 + $0x328] sm:$0xf] %v587_v10 }
  0xdf   : > { %590 = vst [vmem:[%s5151_s29 + $0x32c] sm:$0xf] %v589_v11 }
  0xe0   : > { %592 = vst [vmem:[%s5151_s29 + $0x330] sm:$0xf] %v591_v12 }
  0xe1   : > { %594 = vst [vmem:[%s5151_s29 + $0x334] sm:$0xf] %v593_v13 }
  0xe2   : > { %596 = vst [vmem:[%s5151_s29 + $0x338] sm:$0xf] %v595_v14 }
  0xe3   : > { %598 = vst [vmem:[%s5151_s29 + $0x33c] sm:$0xf] %v597_v15 }
  0xe4   : > { %600 = vst [vmem:[%s5151_s29 + $0x340] sm:$0xf] %v599_v16 }
  0xe5   : > { %602 = vst [vmem:[%s5151_s29 + $0x344] sm:$0xf] %v601_v17 }
  0xe6   : > { %604 = vst [vmem:[%s5151_s29 + $0x348] sm:$0xf] %v603_v18 }
  0xe7   : > { %606 = vst [vmem:[%s5151_s29 + $0x34c] sm:$0xf] %v605_v19 }
  0xe8   : > { %608 = vst [vmem:[%s5151_s29 + $0x350] sm:$0xf] %v607_v20 }
  0xe9   : > { %610 = vst [vmem:[%s5151_s29 + $0x354] sm:$0xf] %v609_v21 }
  0xea   : > { %612 = vst [vmem:[%s5151_s29 + $0x358] sm:$0xf] %v611_v22 }
  0xeb   : > { %614 = vst [vmem:[%s5151_s29 + $0x35c] sm:$0xf] %v613_v23 }
  0xec   : > { %616 = vst [vmem:[%s5151_s29 + $0x360] sm:$0xf] %v615_v24 }
  0xed   : > { %618 = vst [vmem:[%s5151_s29 + $0x364] sm:$0xf] %v617_v25 }
  0xee   : > { %620 = vst [vmem:[%s5151_s29 + $0x368] sm:$0xf] %v619_v26 }
  0xef   : > { %622 = vst [vmem:[%s5151_s29 + $0x36c] sm:$0xf] %v621_v27 }
  0xf0   : > { %624 = vst [vmem:[%s5151_s29 + $0x370] sm:$0xf] %v623_v28 }
  0xf1   : > { %626 = vst [vmem:[%s5151_s29 + $0x374] sm:$0xf] %v625_v29 }
  0xf2   : > { %628 = vst [vmem:[%s5151_s29 + $0x378] sm:$0xf] %v627_v30 }
  0xf3   : > { %630 = vst [vmem:[%s5151_s29 + $0x37c] sm:$0xf] %v629_v31 }
  0xf4   : > { %632 = vst [vmem:[%s5151_s29 + $0x380] sm:$0xf] %v631_v32 }
  0xf5   : > { %634 = vst [vmem:[%s5151_s29 + $0x384] sm:$0xf] %v633_v33 }
  0xf6   : > { %636 = vst [vmem:[%s5151_s29 + $0x388] sm:$0xf] %v635_v34 }
  0xf7   : > { %638 = vst [vmem:[%s5151_s29 + $0x38c] sm:$0xf] %v637_v35 }
  0xf8   : > { %640 = vst [vmem:[%s5151_s29 + $0x390] sm:$0xf] %v639_v36 }
  0xf9   : > { %642 = vst [vmem:[%s5151_s29 + $0x394] sm:$0xf] %v641_v37 }
  0xfa   : > { %644 = vst [vmem:[%s5151_s29 + $0x398] sm:$0xf] %v643_v38 }
  0xfb   : > { %646 = vst [vmem:[%s5151_s29 + $0x39c] sm:$0xf] %v645_v39 }
  0xfc   : > { %648 = vst [vmem:[%s5151_s29 + $0x3a0] sm:$0xf] %v647_v40 }
  0xfd   : > { %650 = vst [vmem:[%s5151_s29 + $0x3a4] sm:$0xf] %v649_v41 }
  0xfe   : > { %652 = vst [vmem:[%s5151_s29 + $0x3a8] sm:$0xf] %v651_v42 }
  0xff   : > { %654 = vst [vmem:[%s5151_s29 + $0x3ac] sm:$0xf] %v653_v43 }
 0x100   : > { %656 = vst [vmem:[%s5151_s29 + $0x3b0] sm:$0xf] %v655_v44 }
 0x101   : > { %658 = vst [vmem:[%s5151_s29 + $0x3b4] sm:$0xf] %v657_v45 }
 0x102   : > { %660 = vst [vmem:[%s5151_s29 + $0x3b8] sm:$0xf] %v659_v46 }
 0x103   : > { %662 = vst [vmem:[%s5151_s29 + $0x3bc] sm:$0xf] %v661_v47 }
 0x104   : > { %664 = vst [vmem:[%s5151_s29 + $0x3c0] sm:$0xf] %v663_v48 }
 0x105   : > { %666 = vst [vmem:[%s5151_s29 + $0x3c4] sm:$0xf] %v665_v49 }
 0x106   : > { %668 = vst [vmem:[%s5151_s29 + $0x3c8] sm:$0xf] %v667_v50 }
 0x107   : > { %670 = vst [vmem:[%s5151_s29 + $0x3cc] sm:$0xf] %v669_v51 }
 0x108   : > { %672 = vst [vmem:[%s5151_s29 + $0x3d0] sm:$0xf] %v671_v52 }
 0x109   : > { %674 = vst [vmem:[%s5151_s29 + $0x3d4] sm:$0xf] %v673_v53 }
 0x10a   : > { %676 = vst [vmem:[%s5151_s29 + $0x3d8] sm:$0xf] %v675_v54 }
 0x10b   : > { %678 = vst [vmem:[%s5151_s29 + $0x3dc] sm:$0xf] %v677_v55 }
 0x10c   : > { %680 = vst [vmem:[%s5151_s29 + $0x3e0] sm:$0xf] %v679_v56 }
 0x10d   : > { %682 = vst [vmem:[%s5151_s29 + $0x3e4] sm:$0xf] %v681_v57 }
 0x10e   : > { %684 = vst [vmem:[%s5151_s29 + $0x3e8] sm:$0xf] %v683_v58 }
 0x10f   : > { %686 = vst [vmem:[%s5151_s29 + $0x3ec] sm:$0xf] %v685_v59 }
 0x110   : > { %688 = vst [vmem:[%s5151_s29 + $0x3f0] sm:$0xf] %v687_v60 }
 0x111   : > { %690 = vst [vmem:[%s5151_s29 + $0x3f4] sm:$0xf] %v689_v61 }
 0x112   : > { %692 = vst [vmem:[%s5151_s29 + $0x3f8] sm:$0xf] %v691_v62 }
 0x113   : > { %694 = vst [vmem:[%s5151_s29 + $0x3fc] sm:$0xf] %v693_v63 }
 0x114 PF: > { %p4187_p8 = scmp.ge.s32.totalorder %s5077_s16, 1  ;;  %p2285_p9 = scmp.lt.s32.totalorder %s5077_s16, 3 }
 0x116   : > { %p2286_p10 = pnand %p4187_p8, %p2285_p9 }
 0x117   : > { %s2292_s30 = sand.u32 (!%p2286_p10), 1, %s5061_s12   ;;  %p2329_p11 = scmp.lt.s32.totalorder (!%p2286_p10), %s5069_s14, 1 }
 0x118   : > { %2289 = sbr.rel (%p2286_p10) target bundleno = 646 (0x286), region = 80  ;;  %s4188_s4 = sshll.u32 (!%p2286_p10), %s2292_s30, 10 }
 0x119   : > { %s5668_s5 = scalar_lea.vmem (!%p2286_p10), [#allocation2], %s4188_s4 }
 0x11d   : > { %v4873_v0 = vld [vmem:[%s5668_s5 + $0x38] sm:$0xff]  ;;  %v4872_v4 = vld [vmem:[%s5668_s5 + $0x30] sm:$0xff]  ;;  %v4871_v8 = vld [vmem:[%s5668_s5 + $0x28] sm:$0xff]  ;;  %s5698_s6 = scalar_select %p2329_p11, %s5069_s14, 1 }
 0x11e   : > { %v4881_v1 = vld [vmem:[%s5668_s5 + $0x78] sm:$0xff]  ;;  %3552 = vmatpush.bf16.msra.mxu0 %v4873_v0  ;;  %v4880_v5 = vld [vmem:[%s5668_s5 + $0x70] sm:$0xff]  ;;  %v4879_v9 = vld [vmem:[%s5668_s5 + $0x68] sm:$0xff]  ;;  %s4831_s12 = sshll.u32 (%p5134_p6), %s5069_s14, 3 }
 0x11f   : > { %v4889_v2 = vld [vmem:[%s5668_s5 + $0xb8] sm:$0xff]  ;;  %3571 = vmatpush.bf16.msra.mxu1 %v4881_v1  ;;  %v4888_v6 = vld [vmem:[%s5668_s5 + $0xb0] sm:$0xff]  ;;  %v4887_v10 = vld [vmem:[%s5668_s5 + $0xa8] sm:$0xff]  ;;  %s2331_s19 = scalar_lea.vmem %s6028_s2, %s5698_s6  ;;  %s4189_s6 = sshll.u32 %s2292_s30, 5 }
 0x120   : > { %v4897_v3 = vld [vmem:[%s5668_s5 + $0xf8] sm:$0xff]  ;;  %3590 = vmatpush.bf16.msra.mxu2 %v4889_v2  ;;  %v4896_v7 = vld [vmem:[%s5668_s5 + $0xf0] sm:$0xff]  ;;  %v4895_v11 = vld [vmem:[%s5668_s5 + $0xe8] sm:$0xff]  ;;  %s4035_s27 = scalar_lea.vmem (%p5134_p6), %s6029_s3, %s4831_s12 }
 0x121   : > { %3609 = vmatpush.bf16.msra.mxu3 %v4897_v3  ;;  %v4870_v12 = vld [vmem:[%s5668_s5 + $0x20] sm:$0xff]  ;;  %v4869_v16 = vld [vmem:[%s5668_s5 + $0x18] sm:$0xff]  ;;  %v4868_v20 = vld [vmem:[%s5668_s5 + $0x10] sm:$0xff] }
 0x122   : > { %3553 = vmatpush.bf16.msra.mxu0 %v4872_v4  ;;  %v4878_v13 = vld [vmem:[%s5668_s5 + $0x60] sm:$0xff]  ;;  %v4877_v17 = vld [vmem:[%s5668_s5 + $0x58] sm:$0xff]  ;;  %v4876_v21 = vld [vmem:[%s5668_s5 + $0x50] sm:$0xff] }
 0x123   : > { %3572 = vmatpush.bf16.msra.mxu1 %v4880_v5  ;;  %v4886_v14 = vld [vmem:[%s5668_s5 + $0xa0] sm:$0xff]  ;;  %v4885_v18 = vld [vmem:[%s5668_s5 + $0x98] sm:$0xff]  ;;  %v4884_v22 = vld [vmem:[%s5668_s5 + $0x90] sm:$0xff] }
 0x124   : > { %3591 = vmatpush.bf16.msra.mxu2 %v4888_v6  ;;  %v4894_v15 = vld [vmem:[%s5668_s5 + $0xe0] sm:$0xff]  ;;  %v4893_v19 = vld [vmem:[%s5668_s5 + $0xd8] sm:$0xff]  ;;  %v4892_v23 = vld [vmem:[%s5668_s5 + $0xd0] sm:$0xff] }
 0x125   : > { %3610 = vmatpush.bf16.msra.mxu3 %v4896_v7  ;;  %v4867_v24 = vld [vmem:[%s5668_s5 + $0x8] sm:$0xff]  ;;  %v4866_v28 = vld [vmem:[%s5668_s5] sm:$0xff]  ;;  %v4921_v40 = vld [vmem:[%s5668_s5 + $0x1b8] sm:$0xff] }
 0x126   : > { %3554 = vmatpush.bf16.msra.mxu0 %v4871_v8  ;;  %v4875_v25 = vld [vmem:[%s5668_s5 + $0x48] sm:$0xff]  ;;  %v4874_v29 = vld [vmem:[%s5668_s5 + $0x40] sm:$0xff]  ;;  %v4905_v41 = vld [vmem:[%s5668_s5 + $0x138] sm:$0xff] }
 0x127   : > { %3573 = vmatpush.bf16.msra.mxu1 %v4879_v9  ;;  %v4883_v26 = vld [vmem:[%s5668_s5 + $0x88] sm:$0xff]  ;;  %v4192_v30 = vld [vmem:[%s6026_s0] sm:$0xf]  ;;  %v4834_v34 = vld [vmem:[%s6026_s0 + $0x4] sm:$0xf] }
 0x128   : > { %3592 = vmatpush.bf16.msra.mxu2 %v4887_v10  ;;  %v4891_v27 = vld [vmem:[%s5668_s5 + $0xc8] sm:$0xff]  ;;  %v4842_v31 = vld [vmem:[%s6026_s0 + $0x3c] sm:$0xf0]  ;;  %v4194_v35 = vld [vmem:[%s6026_s0 + $0x40] sm:$0xf0] }
 0x129   : > { %3611 = vmatpush.bf16.msra.mxu3 %v4895_v11  ;;  %v4882_v32 = vld [vmem:[%s5668_s5 + $0x80] sm:$0xff]  ;;  %v4200_v36 = vld [vmem:[%s6026_s0 + $0x8] sm:$0xf]  ;;  %v4835_v38 = vld [vmem:[%s6026_s0 + $0xc] sm:$0xf]  ;;  %v4193_v42 = vor.u32 %v4842_v31, %v4192_v30  ;;  %v4197_v43 = vor.u32 %v4834_v34, %v4194_v35 }
 0x12a   : > { %3555 = vmatpush.bf16.msra.mxu0 %v4870_v12  ;;  %v4890_v33 = vld [vmem:[%s5668_s5 + $0xc0] sm:$0xff]  ;;  %v4843_v37 = vld [vmem:[%s6026_s0 + $0x44] sm:$0xf0]  ;;  %v4202_v39 = vld [vmem:[%s6026_s0 + $0x48] sm:$0xf0] }
 0x12b   : > { %3574 = vmatpush.bf16.msra.mxu1 %v4878_v13  ;;  %v4201_v44 = vor.u32 %v4843_v37, %v4200_v36  ;;  %v4205_v45 = vor.u32 %v4835_v38, %v4202_v39  ;;  %v4913_v46 = vld [vmem:[%s5668_s5 + $0x178] sm:$0xff]  ;;  %v4920_v48 = vld [vmem:[%s5668_s5 + $0x1b0] sm:$0xff]  ;;  %v4919_v52 = vld [vmem:[%s5668_s5 + $0x1a8] sm:$0xff] }
 0x12c   : > { %3593 = vmatpush.bf16.msra.mxu2 %v4886_v14  ;;  %v4929_v47 = vld [vmem:[%s5668_s5 + $0x1f8] sm:$0xff]  ;;  %v4904_v49 = vld [vmem:[%s5668_s5 + $0x130] sm:$0xff]  ;;  %v4903_v53 = vld [vmem:[%s5668_s5 + $0x128] sm:$0xff] }
 0x12d   : > { %3612 = vmatpush.bf16.msra.mxu3 %v4894_v15  ;;  %v4912_v50 = vld [vmem:[%s5668_s5 + $0x170] sm:$0xff]  ;;  %v4911_v54 = vld [vmem:[%s5668_s5 + $0x168] sm:$0xff]  ;;  %v4918_v56 = vld [vmem:[%s5668_s5 + $0x1a0] sm:$0xff] }
 0x12e   : > { %3556 = vmatpush.bf16.msra.mxu0 %v4869_v16  ;;  %v4928_v51 = vld [vmem:[%s5668_s5 + $0x1f0] sm:$0xff]  ;;  %v4927_v55 = vld [vmem:[%s5668_s5 + $0x1e8] sm:$0xff]  ;;  %v4902_v57 = vld [vmem:[%s5668_s5 + $0x120] sm:$0xff] }
 0x12f   : > { %3575 = vmatpush.bf16.msra.mxu1 %v4877_v17  ;;  %v4910_v58 = vld [vmem:[%s5668_s5 + $0x160] sm:$0xff]  ;;  %v4264_v0 = vld [vmem:[%s6026_s0 + $0x88] sm:$0xf]  ;;  %v4851_v2 = vld [vmem:[%s6026_s0 + $0x8c] sm:$0xf] }
 0x130   : > { %3594 = vmatpush.bf16.msra.mxu2 %v4885_v18  ;;  %v4926_v59 = vld [vmem:[%s5668_s5 + $0x1e0] sm:$0xff]  ;;  %v4859_v1 = vld [vmem:[%s6026_s0 + $0xc4] sm:$0xf0]  ;;  %v4266_v3 = vld [vmem:[%s6026_s0 + $0xc8] sm:$0xf0] }
 0x131   : > { %3613 = vmatpush.bf16.msra.mxu3 %v4893_v19  ;;  %v4256_v60 = vld [vmem:[%s6026_s0 + $0x80] sm:$0xf]  ;;  %v4850_v62 = vld [vmem:[%s6026_s0 + $0x84] sm:$0xf]  ;;  %v4917_v4 = vld [vmem:[%s5668_s5 + $0x198] sm:$0xff]  ;;  %v4265_v8 = vor.u32 %v4859_v1, %v4264_v0  ;;  %v4269_v9 = vor.u32 %v4851_v2, %v4266_v3 }
 0x132   : > { %3557 = vmatpush.bf16.msra.mxu0 %v4868_v20  ;;  %v4858_v61 = vld [vmem:[%s6026_s0 + $0xbc] sm:$0xf0]  ;;  %v4258_v63 = vld [vmem:[%s6026_s0 + $0xc0] sm:$0xf0]  ;;  %v4901_v5 = vld [vmem:[%s5668_s5 + $0x118] sm:$0xff] }
 0x133   : > { %3576 = vmatpush.bf16.msra.mxu1 %v4876_v21  ;;  %v4257_v6 = vor.u32 %v4858_v61, %v4256_v60  ;;  %v4261_v7 = vor.u32 %v4850_v62, %v4258_v63  ;;  %v4909_v10 = vld [vmem:[%s5668_s5 + $0x158] sm:$0xff]  ;;  %v4916_v12 = vld [vmem:[%s5668_s5 + $0x190] sm:$0xff]  ;;  %v4915_v16 = vld [vmem:[%s5668_s5 + $0x188] sm:$0xff] }
 0x134   : > { %3595 = vmatpush.bf16.msra.mxu2 %v4884_v22  ;;  %v4925_v11 = vld [vmem:[%s5668_s5 + $0x1d8] sm:$0xff]  ;;  %v4900_v13 = vld [vmem:[%s5668_s5 + $0x110] sm:$0xff]  ;;  %v4899_v17 = vld [vmem:[%s5668_s5 + $0x108] sm:$0xff] }
 0x135   : > { %3614 = vmatpush.bf16.msra.mxu3 %v4892_v23  ;;  %v4908_v14 = vld [vmem:[%s5668_s5 + $0x150] sm:$0xff]  ;;  %v4907_v18 = vld [vmem:[%s5668_s5 + $0x148] sm:$0xff]  ;;  %v4914_v20 = vld [vmem:[%s5668_s5 + $0x180] sm:$0xff] }
 0x136   : > { %3558 = vmatpush.bf16.msra.mxu0 %v4867_v24  ;;  %v4924_v15 = vld [vmem:[%s5668_s5 + $0x1d0] sm:$0xff]  ;;  %v4923_v19 = vld [vmem:[%s5668_s5 + $0x1c8] sm:$0xff]  ;;  %v4898_v21 = vld [vmem:[%s5668_s5 + $0x100] sm:$0xff] }
 0x137   : > { %3577 = vmatpush.bf16.msra.mxu1 %v4875_v25  ;;  %v4906_v22 = vld [vmem:[%s5668_s5 + $0x140] sm:$0xff]  ;;  %v4208_v24 = vld [vmem:[%s6026_s0 + $0x10] sm:$0xf]  ;;  %v4953_v25 = vld [vmem:[%s5668_s5 + $0x2b8] sm:$0xff] }
 0x138   : > { %3596 = vmatpush.bf16.msra.mxu2 %v4883_v26  ;;  %v4922_v23 = vld [vmem:[%s5668_s5 + $0x1c0] sm:$0xff]  ;;  %v4937_v26 = vld [vmem:[%s5668_s5 + $0x238] sm:$0xff]  ;;  %v4952_v37 = vld [vmem:[%s5668_s5 + $0x2b0] sm:$0xff] }
 0x139   : > { %3615 = vmatpush.bf16.msra.mxu3 %v4891_v27  ;;  %v4844_v27 = vld [vmem:[%s6026_s0 + $0x4c] sm:$0xf0]  ;;  %v4216_v30 = vld [vmem:[%s6026_s0 + $0x18] sm:$0xf]  ;;  %v4282_v61 = vld [vmem:[%s6026_s0 + $0xd8] sm:$0xf0] }
 0x13a   : > { %3559 = vmatpush.bf16.msra.mxu0 %v4866_v28  ;;  %v4836_v28 = vld [vmem:[%s6026_s0 + $0x14] sm:$0xf]  ;;  %v4845_v31 = vld [vmem:[%s6026_s0 + $0x54] sm:$0xf0]  ;;  %v4209_v36 = vor.u32 %v4844_v27, %v4208_v24  ;;  %v4226_v24 = vld [vmem:[%s6026_s0 + $0x60] sm:$0xf0] }
 0x13b   : > { %3578 = vmatpush.bf16.msra.mxu1 %v4874_v29  ;;  %v4210_v29 = vld [vmem:[%s6026_s0 + $0x50] sm:$0xf0]  ;;  %v4945_v34 = vld [vmem:[%s5668_s5 + $0x278] sm:$0xff]  ;;  %v4217_v39 = vor.u32 %v4845_v31, %v4216_v30  ;;  %v4839_v27 = vld [vmem:[%s6026_s0 + $0x2c] sm:$0xf] }
 0x13c   : > { %3597 = vmatpush.bf16.msra.mxu2 %v4882_v32  ;;  %v4837_v32 = vld [vmem:[%s6026_s0 + $0x1c] sm:$0xf]  ;;  %v4213_v38 = vor.u32 %v4836_v28, %v4210_v29  ;;  %v4948_v1 = vld [vmem:[%s5668_s5 + $0x290] sm:$0xff]  ;;  %v4234_v28 = vld [vmem:[%s6026_s0 + $0x68] sm:$0xf0] }
 0x13d   : > { %3616 = vmatpush.bf16.msra.mxu3 %v4890_v33  ;;  %3560 = vmatmul.bf16.vlgmr.msra.gmra.mxu0 %v4193_v42  ;;  %v4218_v33 = vld [vmem:[%s6026_s0 + $0x58] sm:$0xf0]  ;;  %v4944_v42 = vld [vmem:[%s5668_s5 + $0x270] sm:$0xff] }
 0x13e   : > { %3628 = vmatpush.bf16.msrb.mxu0 %v4905_v41  ;;  %3579 = vmatmul.bf16.vlgmr.msra.gmra.mxu1 %v4197_v43  ;;  %v4961_v35 = vld [vmem:[%s5668_s5 + $0x2f8] sm:$0xff]  ;;  %v4936_v41 = vld [vmem:[%s5668_s5 + $0x230] sm:$0xff] }
 0x13f   : > { %3598 = vmatmul.bf16.vlgmr.msra.gmra.mxu2 %v4201_v44  ;;  %3647 = vmatpush.bf16.msrb.mxu1 %v4913_v46  ;;  %v4960_v43 = vld [vmem:[%s5668_s5 + $0x2f0] sm:$0xff]  ;;  %v4951_v44 = vld [vmem:[%s5668_s5 + $0x2a8] sm:$0xff]  ;;  %v4933_v60 = vld [vmem:[%s5668_s5 + $0x218] sm:$0xff] }
 0x140   : > { %3666 = vmatpush.bf16.msrb.mxu2 %v4921_v40  ;;  %3617 = vmatmul.bf16.vlgmr.msra.gmra.mxu3 %v4205_v45  ;;  %v4221_v40 = vor.u32 %v4837_v32, %v4218_v33  ;;  %v4935_v45 = vld [vmem:[%s5668_s5 + $0x228] sm:$0xff]  ;;  %v4941_v62 = vld [vmem:[%s5668_s5 + $0x258] sm:$0xff]  ;;  %v4976_v30 = vld [vmem:[%s5668_s5 + $0x370] sm:$0xff]  ;;  %v4237_v33 = vor.u32 %v4839_v27, %v4234_v28 }
 0x141   : > { %3685 = vmatpush.bf16.msrb.mxu3 %v4929_v47  ;;  %v4943_v46 = vld [vmem:[%s5668_s5 + $0x268] sm:$0xff]  ;;  %v4957_v63 = vld [vmem:[%s5668_s5 + $0x2d8] sm:$0xff] }
 0x142   : > { %3629 = vmatpush.bf16.msrb.mxu0 %v4904_v49  ;;  %v4959_v47 = vld [vmem:[%s5668_s5 + $0x2e8] sm:$0xff]  ;;  %v4934_v49 = vld [vmem:[%s5668_s5 + $0x220] sm:$0xff]  ;;  %v4314_v27 = vld [vmem:[%s6026_s0 + $0xf8] sm:$0xf0] }
 0x143   : > { %3648 = vmatpush.bf16.msrb.mxu1 %v4912_v50  ;;  %v4942_v50 = vld [vmem:[%s5668_s5 + $0x260] sm:$0xff] }
 0x144   : > { %3667 = vmatpush.bf16.msrb.mxu2 %v4920_v48  ;;  %v4950_v48 = vld [vmem:[%s5668_s5 + $0x2a0] sm:$0xff] }
 0x145   : > { %3686 = vmatpush.bf16.msrb.mxu3 %v4928_v51  ;;  %v4958_v51 = vld [vmem:[%s5668_s5 + $0x2e0] sm:$0xff] }
 0x146   : > { %3630 = vmatpush.bf16.msrb.mxu0 %v4903_v53  ;;  %v4860_v53 = vld [vmem:[%s6026_s0 + $0xcc] sm:$0xf0] }
 0x147   : > { %3649 = vmatpush.bf16.msrb.mxu1 %v4911_v54  ;;  %v4949_v54 = vld [vmem:[%s5668_s5 + $0x298] sm:$0xff] }
 0x148   : > { %3668 = vmatpush.bf16.msrb.mxu2 %v4919_v52  ;;  %v4272_v52 = vld [vmem:[%s6026_s0 + $0x90] sm:$0xf] }
 0x149   : > { %3687 = vmatpush.bf16.msrb.mxu3 %v4927_v55  ;;  %v4852_v55 = vld [vmem:[%s6026_s0 + $0x94] sm:$0xf]  ;;  %v4273_v0 = vor.u32 %v4860_v53, %v4272_v52  ;;  %v4855_v52 = vld [vmem:[%s6026_s0 + $0xac] sm:$0xf]  ;;  %v4965_v53 = vld [vmem:[%s5668_s5 + $0x318] sm:$0xff] }
 0x14a   : > { %3631 = vmatpush.bf16.msrb.mxu0 %v4902_v57  ;;  %v4280_v57 = vld [vmem:[%s6026_s0 + $0x98] sm:$0xf] }
 0x14b   : > { %3650 = vmatpush.bf16.msrb.mxu1 %v4910_v58  ;;  %v4861_v58 = vld [vmem:[%s6026_s0 + $0xd4] sm:$0xf0] }
 0x14c   : > { %3669 = vmatpush.bf16.msrb.mxu2 %v4918_v56  ;;  %v4274_v56 = vld [vmem:[%s6026_s0 + $0xd0] sm:$0xf0]  ;;  %v4281_v3 = vor.u32 %v4861_v58, %v4280_v57 }
 0x14d   : > { %3688 = vmatpush.bf16.msrb.mxu3 %v4926_v59  ;;  %3565 = vmatmul.bf16.gmra.mxu0 %v4257_v6  ;;  %v4853_v59 = vld [vmem:[%s6026_s0 + $0x9c] sm:$0xf]  ;;  %v4277_v2 = vor.u32 %v4852_v55, %v4274_v56  ;;  %v4940_v6 = vld [vmem:[%s5668_s5 + $0x250] sm:$0xff] }
 0x14e   : > { %3632 = vmatpush.bf16.msrb.mxu0 %v4901_v5  ;;  %3584 = vmatmul.bf16.gmra.mxu1 %v4261_v7  ;;  %v4932_v5 = vld [vmem:[%s5668_s5 + $0x210] sm:$0xff]  ;;  %v4989_v55 = vld [vmem:[%s5668_s5 + $0x3d8] sm:$0xff] }
 0x14f   : > { %3603 = vmatmul.bf16.gmra.mxu2 %v4265_v8  ;;  %3651 = vmatpush.bf16.msrb.mxu1 %v4909_v10  ;;  %v4956_v7 = vld [vmem:[%s5668_s5 + $0x2d0] sm:$0xff]  ;;  %v4947_v8 = vld [vmem:[%s5668_s5 + $0x288] sm:$0xff] }
 0x150   : > { %3670 = vmatpush.bf16.msrb.mxu2 %v4917_v4  ;;  %3622 = vmatmul.bf16.gmra.mxu3 %v4269_v9  ;;  %v4285_v4 = vor.u32 %v4853_v59, %v4282_v61  ;;  %v4931_v9 = vld [vmem:[%s5668_s5 + $0x208] sm:$0xff]  ;;  %v4980_v56 = vld [vmem:[%s5668_s5 + $0x390] sm:$0xff] }
 0x151   : > { %3689 = vmatpush.bf16.msrb.mxu3 %v4925_v11  ;;  %v4939_v10 = vld [vmem:[%s5668_s5 + $0x248] sm:$0xff]  ;;  %v4972_v58 = vld [vmem:[%s5668_s5 + $0x350] sm:$0xff] }
 0x152   : > { %3633 = vmatpush.bf16.msrb.mxu0 %v4900_v13  ;;  %v4955_v11 = vld [vmem:[%s5668_s5 + $0x2c8] sm:$0xff]  ;;  %v4985_v13 = vld [vmem:[%s5668_s5 + $0x3b8] sm:$0xff] }
 0x153   : > { %3652 = vmatpush.bf16.msrb.mxu1 %v4908_v14  ;;  %v4930_v14 = vld [vmem:[%s5668_s5 + $0x200] sm:$0xff] }
 0x154   : > { %3671 = vmatpush.bf16.msrb.mxu2 %v4916_v12  ;;  %v4946_v12 = vld [vmem:[%s5668_s5 + $0x280] sm:$0xff] }
 0x155   : > { %3690 = vmatpush.bf16.msrb.mxu3 %v4924_v15  ;;  %v4938_v15 = vld [vmem:[%s5668_s5 + $0x240] sm:$0xff] }
 0x156   : > { %3634 = vmatpush.bf16.msrb.mxu0 %v4899_v17  ;;  %v4224_v17 = vld [vmem:[%s6026_s0 + $0x20] sm:$0xf] }
 0x157   : > { %3653 = vmatpush.bf16.msrb.mxu1 %v4907_v18  ;;  %v4846_v18 = vld [vmem:[%s6026_s0 + $0x5c] sm:$0xf0] }
 0x158   : > { %3672 = vmatpush.bf16.msrb.mxu2 %v4915_v16  ;;  %v4954_v16 = vld [vmem:[%s5668_s5 + $0x2c0] sm:$0xff]  ;;  %v4225_v29 = vor.u32 %v4846_v18, %v4224_v17 }
 0x159   : > { %3691 = vmatpush.bf16.msrb.mxu3 %v4923_v19  ;;  %v4969_v19 = vld [vmem:[%s5668_s5 + $0x338] sm:$0xff] }
 0x15a   : > { %3635 = vmatpush.bf16.msrb.mxu0 %v4898_v21  ;;  %v4838_v21 = vld [vmem:[%s6026_s0 + $0x24] sm:$0xf] }
 0x15b   : > { %3654 = vmatpush.bf16.msrb.mxu1 %v4906_v22  ;;  %v4993_v22 = vld [vmem:[%s5668_s5 + $0x3f8] sm:$0xff]  ;;  %v4229_v31 = vor.u32 %v4838_v21, %v4226_v24  ;;  %v4864_v21 = vld [vmem:[%s6026_s0 + $0xec] sm:$0xf0] }
 0x15c   : > { %3673 = vmatpush.bf16.msrb.mxu2 %v4914_v20  ;;  %v4977_v20 = vld [vmem:[%s5668_s5 + $0x378] sm:$0xff] }
 0x15d   : > { %3692 = vmatpush.bf16.msrb.mxu3 %v4922_v23  ;;  %3636 = vmatmul.bf16.vlgmr.msrb.gmra.mxu0 %v4209_v36  ;;  %v4984_v23 = vld [vmem:[%s5668_s5 + $0x3b0] sm:$0xff]  ;;  %v4983_v36 = vld [vmem:[%s5668_s5 + $0x3a8] sm:$0xff]  ;;  %v4312_v24 = vld [vmem:[%s6026_s0 + $0xb8] sm:$0xf] }
 0x15e   : > { %3704 = vmatpush.bf16.msra.mxu0 %v4937_v26  ;;  %3655 = vmatmul.bf16.vlgmr.msrb.gmra.mxu1 %v4213_v38  ;;  %v4847_v26 = vld [vmem:[%s6026_s0 + $0x64] sm:$0xf0] }
 0x15f   : > { %3723 = vmatpush.bf16.msra.mxu1 %v4945_v34  ;;  %3674 = vmatmul.bf16.vlgmr.msrb.gmra.mxu2 %v4217_v39  ;;  %v4968_v34 = vld [vmem:[%s5668_s5 + $0x330] sm:$0xff]  ;;  %v4967_v38 = vld [vmem:[%s5668_s5 + $0x328] sm:$0xff] }
 0x160   : > { %3742 = vmatpush.bf16.msra.mxu2 %v4953_v25  ;;  %3693 = vmatmul.bf16.vlgmr.msrb.gmra.mxu3 %v4221_v40  ;;  %v4232_v25 = vld [vmem:[%s6026_s0 + $0x28] sm:$0xf]  ;;  %v4982_v40 = vld [vmem:[%s5668_s5 + $0x3a0] sm:$0xff] }
 0x161   : > { %3761 = vmatpush.bf16.msra.mxu3 %v4961_v35  ;;  %v4233_v32 = vor.u32 %v4847_v26, %v4232_v25  ;;  %v4992_v35 = vld [vmem:[%s5668_s5 + $0x3f0] sm:$0xff]  ;;  %v4991_v39 = vld [vmem:[%s5668_s5 + $0x3e8] sm:$0xff]  ;;  %v4865_v25 = vld [vmem:[%s6026_s0 + $0xf4] sm:$0xf0] }
 0x162   : > { %3705 = vmatpush.bf16.msra.mxu0 %v4936_v41  ;;  %v4974_v41 = vld [vmem:[%s5668_s5 + $0x360] sm:$0xff]  ;;  %v4857_v26 = vld [vmem:[%s6026_s0 + $0xbc] sm:$0xf] }
 0x163   : > { %3724 = vmatpush.bf16.msra.mxu1 %v4944_v42  ;;  %v4966_v42 = vld [vmem:[%s5668_s5 + $0x320] sm:$0xff] }
 0x164   : > { %3743 = vmatpush.bf16.msra.mxu2 %v4952_v37  ;;  %v4975_v37 = vld [vmem:[%s5668_s5 + $0x368] sm:$0xff] }
 0x165   : > { %3762 = vmatpush.bf16.msra.mxu3 %v4960_v43  ;;  %v4990_v43 = vld [vmem:[%s5668_s5 + $0x3e0] sm:$0xff] }
 0x166   : > { %3706 = vmatpush.bf16.msra.mxu0 %v4935_v45  ;;  %v4288_v45 = vld [vmem:[%s6026_s0 + $0xa0] sm:$0xf] }
 0x167   : > { %3725 = vmatpush.bf16.msra.mxu1 %v4943_v46  ;;  %v4862_v46 = vld [vmem:[%s6026_s0 + $0xdc] sm:$0xf0] }
 0x168   : > { %3744 = vmatpush.bf16.msra.mxu2 %v4951_v44  ;;  %v4981_v44 = vld [vmem:[%s5668_s5 + $0x398] sm:$0xff]  ;;  %v4289_v57 = vor.u32 %v4862_v46, %v4288_v45 }
 0x169   : > { %3763 = vmatpush.bf16.msra.mxu3 %v4959_v47  ;;  %v4973_v47 = vld [vmem:[%s5668_s5 + $0x358] sm:$0xff] }
 0x16a   : > { %3707 = vmatpush.bf16.msra.mxu0 %v4934_v49  ;;  %v4290_v49 = vld [vmem:[%s6026_s0 + $0xe0] sm:$0xf0] }
 0x16b   : > { %3726 = vmatpush.bf16.msra.mxu1 %v4942_v50  ;;  %v4296_v50 = vld [vmem:[%s6026_s0 + $0xa8] sm:$0xf] }
 0x16c   : > { %3745 = vmatpush.bf16.msra.mxu2 %v4950_v48  ;;  %v4854_v48 = vld [vmem:[%s6026_s0 + $0xa4] sm:$0xf] }
 0x16d   : > { %3764 = vmatpush.bf16.msra.mxu3 %v4958_v51  ;;  %3641 = vmatmul.bf16.gmra.mxu0 %v4273_v0  ;;  %v4863_v51 = vld [vmem:[%s6026_s0 + $0xe4] sm:$0xf0]  ;;  %v4293_v59 = vor.u32 %v4854_v48, %v4290_v49 }
 0x16e   : > { %3708 = vmatpush.bf16.msra.mxu0 %v4933_v60  ;;  %3660 = vmatmul.bf16.gmra.mxu1 %v4277_v2  ;;  %v4297_v60 = vor.u32 %v4863_v51, %v4296_v50  ;;  %v4979_v0 = vld [vmem:[%s5668_s5 + $0x388] sm:$0xff] }
 0x16f   : > { %3727 = vmatpush.bf16.msra.mxu1 %v4941_v62  ;;  %3679 = vmatmul.bf16.gmra.mxu2 %v4281_v3  ;;  %v4964_v62 = vld [vmem:[%s5668_s5 + $0x310] sm:$0xff]  ;;  %v4963_v2 = vld [vmem:[%s5668_s5 + $0x308] sm:$0xff] }
 0x170   : > { %3746 = vmatpush.bf16.msra.mxu2 %v4949_v54  ;;  %3698 = vmatmul.bf16.gmra.mxu3 %v4285_v4  ;;  %v4298_v54 = vld [vmem:[%s6026_s0 + $0xe8] sm:$0xf0]  ;;  %v4978_v4 = vld [vmem:[%s5668_s5 + $0x380] sm:$0xff] }
 0x171   : > { %3765 = vmatpush.bf16.msra.mxu3 %v4957_v63  ;;  %v4301_v61 = vor.u32 %v4855_v52, %v4298_v54  ;;  %v4988_v63 = vld [vmem:[%s5668_s5 + $0x3d0] sm:$0xff]  ;;  %v4987_v3 = vld [vmem:[%s5668_s5 + $0x3c8] sm:$0xff] }
 0x172   : > { %3709 = vmatpush.bf16.msra.mxu0 %v4932_v5  ;;  %v4970_v5 = vld [vmem:[%s5668_s5 + $0x340] sm:$0xff] }
 0x173   : > { %3728 = vmatpush.bf16.msra.mxu1 %v4940_v6  ;;  %v4962_v6 = vld [vmem:[%s5668_s5 + $0x300] sm:$0xff] }
 0x174   : > { %3747 = vmatpush.bf16.msra.mxu2 %v4948_v1  ;;  %v4971_v1 = vld [vmem:[%s5668_s5 + $0x348] sm:$0xff] }
 0x175   : > { %3766 = vmatpush.bf16.msra.mxu3 %v4956_v7  ;;  %v4986_v7 = vld [vmem:[%s5668_s5 + $0x3c0] sm:$0xff] }
 0x176   : > { %3710 = vmatpush.bf16.msra.mxu0 %v4931_v9  ;;  %v4848_v9 = vld [vmem:[%s6026_s0 + $0x6c] sm:$0xf0] }
 0x177   : > { %3729 = vmatpush.bf16.msra.mxu1 %v4939_v10  ;;  %v4840_v10 = vld [vmem:[%s6026_s0 + $0x34] sm:$0xf] }
 0x178   : > { %3748 = vmatpush.bf16.msra.mxu2 %v4947_v8  ;;  %v4240_v8 = vld [vmem:[%s6026_s0 + $0x30] sm:$0xf] }
 0x179   : > { %3767 = vmatpush.bf16.msra.mxu3 %v4955_v11  ;;  %v4242_v11 = vld [vmem:[%s6026_s0 + $0x70] sm:$0xf0] }
 0x17a   : > { %3711 = vmatpush.bf16.msra.mxu0 %v4930_v14  ;;  %v4841_v14 = vld [vmem:[%s6026_s0 + $0x3c] sm:$0xf]  ;;  %v4245_v17 = vor.u32 %v4840_v10, %v4242_v11 }
 0x17b   : > { %3730 = vmatpush.bf16.msra.mxu1 %v4938_v15  ;;  %v4250_v15 = vld [vmem:[%s6026_s0 + $0x78] sm:$0xf0] }
 0x17c   : > { %3749 = vmatpush.bf16.msra.mxu2 %v4946_v12  ;;  %v4248_v12 = vld [vmem:[%s6026_s0 + $0x38] sm:$0xf] }
 0x17d   : > { %3768 = vmatpush.bf16.msra.mxu3 %v4954_v16  ;;  %3712 = vmatmul.bf16.vlgmr.msra.gmra.mxu0 %v4225_v29  ;;  %v4241_v16 = vor.u32 %v4848_v9, %v4240_v8 }
 0x17e   : > { %3780 = vmatpush.bf16.msrb.mxu0 %v4969_v19  ;;  %3731 = vmatmul.bf16.vlgmr.msra.gmra.mxu1 %v4229_v31  ;;  %v4253_v19 = vor.u32 %v4841_v14, %v4250_v15  ;;  %v4317_v31 = vor.u32 %v4857_v26, %v4314_v27 }
 0x17f   : > { %3799 = vmatpush.bf16.msrb.mxu1 %v4977_v20  ;;  %3750 = vmatmul.bf16.vlgmr.msra.gmra.mxu2 %v4233_v32  ;;  %v4304_v20 = vld [vmem:[%s6026_s0 + $0xb0] sm:$0xf]  ;;  %v5034_v32 = vld [vmem:[%s2331_s19] ss:$0 sm:$0xff]  ;;  %s2321_s19 = scalar_lea.vmem [#allocation3], %s4189_s6 }
 0x180   : > { %3818 = vmatpush.bf16.msrb.mxu2 %v4985_v13  ;;  %3769 = vmatmul.bf16.vlgmr.msra.gmra.mxu3 %v4237_v33  ;;  %v4849_v13 = vld [vmem:[%s6026_s0 + $0x74] sm:$0xf0]  ;;  %v4305_v28 = vor.u32 %v4864_v21, %v4304_v20 }
 0x181   : > { %3837 = vmatpush.bf16.msrb.mxu3 %v4993_v22  ;;  %v4249_v18 = vor.u32 %v4849_v13, %v4248_v12  ;;  %v4856_v22 = vld [vmem:[%s6026_s0 + $0xb4] sm:$0xf] }
 0x182   : > { %3781 = vmatpush.bf16.msrb.mxu0 %v4968_v34 }
 0x183   : > { %3800 = vmatpush.bf16.msrb.mxu1 %v4976_v30  ;;  %v4313_v30 = vor.u32 %v4865_v25, %v4312_v24 }
 0x184   : > { %3819 = vmatpush.bf16.msrb.mxu2 %v4984_v23  ;;  %v4306_v23 = vld [vmem:[%s6026_s0 + $0xf0] sm:$0xf0] }
 0x185   : > { %3838 = vmatpush.bf16.msrb.mxu3 %v4992_v35  ;;  %v4309_v29 = vor.u32 %v4856_v22, %v4306_v23 }
 0x186   : > { %3782 = vmatpush.bf16.msrb.mxu0 %v4967_v38 }
 0x187   : > { %3801 = vmatpush.bf16.msrb.mxu1 %v4975_v37 }
 0x188   : > { %3820 = vmatpush.bf16.msrb.mxu2 %v4983_v36 }
 0x189   : > { %3839 = vmatpush.bf16.msrb.mxu3 %v4991_v39 }
 0x18a   : > { %3783 = vmatpush.bf16.msrb.mxu0 %v4966_v42 }
 0x18b   : > { %3802 = vmatpush.bf16.msrb.mxu1 %v4974_v41 }
 0x18c   : > { %3821 = vmatpush.bf16.msrb.mxu2 %v4982_v40 }
 0x18d   : > { %3840 = vmatpush.bf16.msrb.mxu3 %v4990_v43  ;;  %3717 = vmatmul.bf16.gmra.mxu0 %v4289_v57 }
 0x18e   : > { %3784 = vmatpush.bf16.msrb.mxu0 %v4965_v53  ;;  %3736 = vmatmul.bf16.gmra.mxu1 %v4293_v59 }
 0x18f   : > { %3803 = vmatpush.bf16.msrb.mxu1 %v4973_v47  ;;  %3755 = vmatmul.bf16.gmra.mxu2 %v4297_v60 }
 0x190   : > { %3822 = vmatpush.bf16.msrb.mxu2 %v4981_v44  ;;  %3774 = vmatmul.bf16.gmra.mxu3 %v4301_v61 }
 0x191   : > { %3841 = vmatpush.bf16.msrb.mxu3 %v4989_v55 }
 0x192   : > { %3785 = vmatpush.bf16.msrb.mxu0 %v4964_v62 }
 0x193   : > { %3804 = vmatpush.bf16.msrb.mxu1 %v4972_v58 }
 0x194   : > { %3823 = vmatpush.bf16.msrb.mxu2 %v4980_v56 }
 0x195   : > { %3842 = vmatpush.bf16.msrb.mxu3 %v4988_v63 }
 0x196   : > { %3786 = vmatpush.bf16.msrb.mxu0 %v4963_v2 }
 0x197   : > { %3805 = vmatpush.bf16.msrb.mxu1 %v4971_v1 }
 0x198   : > { %3824 = vmatpush.bf16.msrb.mxu2 %v4979_v0 }
 0x199   : > { %3843 = vmatpush.bf16.msrb.mxu3 %v4987_v3 }
 0x19a   : > { %3787 = vmatpush.bf16.msrb.mxu0 %v4962_v6 }
 0x19b   : > { %3806 = vmatpush.bf16.msrb.mxu1 %v4970_v5 }
 0x19c   : > { %3825 = vmatpush.bf16.msrb.mxu2 %v4978_v4 }
 0x19d   : > { %3844 = vmatpush.bf16.msrb.mxu3 %v4986_v7  ;;  %3788 = vmatmul.bf16.vlgmr.msrb.gmra.mxu0 %v4241_v16 }
 0x19e   : > { %3807 = vmatmul.bf16.vlgmr.msrb.gmra.mxu1 %v4245_v17 }
 0x19f   : > { %3826 = vmatmul.bf16.vlgmr.msrb.gmra.mxu2 %v4249_v18 }
 0x1a0   : > { %3845 = vmatmul.bf16.vlgmr.msrb.gmra.mxu3 %v4253_v19 }
 0x1ad   : > { %3793 = vmatmul.bf16.gmra.mxu0 %v4305_v28 }
 0x1ae   : > { %3812 = vmatmul.bf16.gmra.mxu1 %v4309_v29 }
 0x1af   : > { %3831 = vmatmul.bf16.gmra.mxu2 %v4313_v30 }
 0x1b0   : > { %3850 = vmatmul.bf16.gmra.mxu3 %v4317_v31 }
 0x1ba   : > { %v3561_v33 = vpop.f32.mrf.mxu0 }
 0x1bb   : > { %v3580_v34 = vpop.f32.mrf.mxu1  ;;  %v3562_v35 = vadd.f32 %v5034_v32, %v3561_v33 }
 0x1bd   : > { %v3581_v36 = vadd.f32 %v3580_v34, %v3562_v35 }
 0x1c2   : > { %v3599_v37 = vpop.f32.mrf.mxu2  ;;  %v3563_v40 = vpop.f32.mrf.mxu0 }
 0x1c3   : > { %v3618_v38 = vpop.f32.mrf.mxu3  ;;  %v3600_v39 = vadd.f32 %v3599_v37, %v3581_v36  ;;  %v3582_v41 = vpop.f32.mrf.mxu1  ;;  %v3564_v42 = vadd.f32 %v5034_v32, %v3563_v40 }
 0x1c5   : > { %v3619_v43 = vadd.f32 %v3618_v38, %v3600_v39  ;;  %v3583_v44 = vadd.f32 %v3582_v41, %v3564_v42 }
 0x1ca   : > { %v3601_v45 = vpop.f32.mrf.mxu2  ;;  %v3566_v48 = vpop.f32.mrf.mxu0 }
 0x1cb   : > { %v3620_v46 = vpop.f32.mrf.mxu3  ;;  %v3602_v47 = vadd.f32 %v3601_v45, %v3583_v44  ;;  %v3585_v49 = vpop.f32.mrf.mxu1  ;;  %v3567_v50 = vadd.f32 %v5034_v32, %v3566_v48 }
 0x1cd   : > { %v3621_v51 = vadd.f32 %v3620_v46, %v3602_v47  ;;  %v3586_v52 = vadd.f32 %v3585_v49, %v3567_v50 }
 0x1d2   : > { %v3604_v53 = vpop.f32.mrf.mxu2  ;;  %v3568_v56 = vpop.f32.mrf.mxu0 }
 0x1d3   : > { %v3623_v54 = vpop.f32.mrf.mxu3  ;;  %v3605_v55 = vadd.f32 %v3604_v53, %v3586_v52  ;;  %v3587_v57 = vpop.f32.mrf.mxu1  ;;  %v3569_v58 = vadd.f32 %v5034_v32, %v3568_v56 }
 0x1d5   : > { %v3624_v59 = vadd.f32 %v3623_v54, %v3605_v55  ;;  %v3588_v60 = vadd.f32 %v3587_v57, %v3569_v58 }
 0x1da   : > { %v3606_v61 = vpop.f32.mrf.mxu2  ;;  %v3637_v0 = vpop.f32.mrf.mxu0 }
 0x1db   : > { %v3625_v62 = vpop.f32.mrf.mxu3  ;;  %v3607_v63 = vadd.f32 %v3606_v61, %v3588_v60  ;;  %v3656_v1 = vpop.f32.mrf.mxu1  ;;  %v3638_v24 = vadd.f32 %v3637_v0, %v3619_v43 }
 0x1dd   : > { %v3626_v2 = vadd.f32 %v3625_v62, %v3607_v63  ;;  %v3657_v29 = vadd.f32 %v3656_v1, %v3638_v24 }
 0x1e2   : > { %v3675_v3 = vpop.f32.mrf.mxu2  ;;  %v3639_v5 = vpop.f32.mrf.mxu0 }
 0x1e3   : > { %v3694_v4 = vpop.f32.mrf.mxu3  ;;  %v3658_v6 = vpop.f32.mrf.mxu1  ;;  %v3640_v28 = vadd.f32 %v3639_v5, %v3621_v51  ;;  %v3676_v30 = vadd.f32 %v3675_v3, %v3657_v29 }
 0x1e5   : > { %v3659_v31 = vadd.f32 %v3658_v6, %v3640_v28  ;;  %v3695_v37 = vadd.f32 %v3694_v4, %v3676_v30 }
 0x1ea   : > { %v3677_v7 = vpop.f32.mrf.mxu2  ;;  %v3642_v9 = vpop.f32.mrf.mxu0 }
 0x1eb   : > { %v3696_v8 = vpop.f32.mrf.mxu3  ;;  %v3661_v10 = vpop.f32.mrf.mxu1  ;;  %v3678_v33 = vadd.f32 %v3677_v7, %v3659_v31  ;;  %v3643_v42 = vadd.f32 %v3642_v9, %v3624_v59 }
 0x1ed   : > { %v3697_v38 = vadd.f32 %v3696_v8, %v3678_v33  ;;  %v3662_v50 = vadd.f32 %v3661_v10, %v3643_v42 }
 0x1f2   : > { %v3680_v11 = vpop.f32.mrf.mxu2  ;;  %v3644_v13 = vpop.f32.mrf.mxu0 }
 0x1f3   : > { %v3699_v12 = vpop.f32.mrf.mxu3  ;;  %v3663_v14 = vpop.f32.mrf.mxu1  ;;  %v3645_v47 = vadd.f32 %v3644_v13, %v3626_v2  ;;  %v3681_v52 = vadd.f32 %v3680_v11, %v3662_v50 }
 0x1f5   : > { %v3664_v53 = vadd.f32 %v3663_v14, %v3645_v47  ;;  %v3700_v59 = vadd.f32 %v3699_v12, %v3681_v52 }
 0x1fa   : > { %v3682_v15 = vpop.f32.mrf.mxu2  ;;  %v3713_v17 = vpop.f32.mrf.mxu0 }
 0x1fb   : > { %v3701_v16 = vpop.f32.mrf.mxu3  ;;  %v3732_v18 = vpop.f32.mrf.mxu1  ;;  %v3714_v39 = vadd.f32 %v3713_v17, %v3695_v37  ;;  %v3683_v56 = vadd.f32 %v3682_v15, %v3664_v53 }
 0x1fd   : > { %v3733_v44 = vadd.f32 %v3732_v18, %v3714_v39  ;;  %v3702_v0 = vadd.f32 %v3701_v16, %v3683_v56 }
 0x202   : > { %v3751_v19 = vpop.f32.mrf.mxu2  ;;  %v3715_v21 = vpop.f32.mrf.mxu0 }
 0x203   : > { %v3770_v20 = vpop.f32.mrf.mxu3  ;;  %v3734_v22 = vpop.f32.mrf.mxu1  ;;  %v3716_v40 = vadd.f32 %v3715_v21, %v3697_v38  ;;  %v3752_v48 = vadd.f32 %v3751_v19, %v3733_v44 }
 0x205   : > { %v3735_v49 = vadd.f32 %v3734_v22, %v3716_v40  ;;  %v3771_v54 = vadd.f32 %v3770_v20, %v3752_v48 }
 0x20a   : > { %v3753_v23 = vpop.f32.mrf.mxu2  ;;  %v3718_v26 = vpop.f32.mrf.mxu0 }
 0x20b   : > { %v3772_v25 = vpop.f32.mrf.mxu3  ;;  %v3737_v27 = vpop.f32.mrf.mxu1  ;;  %v3754_v51 = vadd.f32 %v3753_v23, %v3735_v49  ;;  %v3719_v1 = vadd.f32 %v3718_v26, %v3700_v59 }
 0x20d   : > { %v3773_v57 = vadd.f32 %v3772_v25, %v3754_v51  ;;  %v3738_v7 = vadd.f32 %v3737_v27, %v3719_v1 }
 0x212   : > { %v3756_v32 = vpop.f32.mrf.mxu2  ;;  %v3720_v35 = vpop.f32.mrf.mxu0 }
 0x213   : > { %v3775_v34 = vpop.f32.mrf.mxu3  ;;  %v3739_v36 = vpop.f32.mrf.mxu1  ;;  %v3721_v2 = vadd.f32 %v3720_v35, %v3702_v0  ;;  %v3757_v11 = vadd.f32 %v3756_v32, %v3738_v7 }
 0x215   : > { %v3740_v13 = vadd.f32 %v3739_v36, %v3721_v2  ;;  %v3776_v12 = vadd.f32 %v3775_v34, %v3757_v11 }
 0x21a   : > { %v3758_v41 = vpop.f32.mrf.mxu2  ;;  %v3789_v45 = vpop.f32.mrf.mxu0 }
 0x21b   : > { %v3777_v43 = vpop.f32.mrf.mxu3  ;;  %v3808_v46 = vpop.f32.mrf.mxu1  ;;  %v3790_v58 = vadd.f32 %v3789_v45, %v3771_v54  ;;  %v3759_v18 = vadd.f32 %v3758_v41, %v3740_v13 }
 0x21d   : > { %v3809_v3 = vadd.f32 %v3808_v46, %v3790_v58  ;;  %v3778_v21 = vadd.f32 %v3777_v43, %v3759_v18 }
 0x222   : > { %v3827_v55 = vpop.f32.mrf.mxu2  ;;  %v3791_v61 = vpop.f32.mrf.mxu0 }
 0x223   : > { %v3846_v60 = vpop.f32.mrf.mxu3  ;;  %v3810_v62 = vpop.f32.mrf.mxu1  ;;  %v3792_v63 = vadd.f32 %v3791_v61, %v3773_v57  ;;  %v3828_v4 = vadd.f32 %v3827_v55, %v3809_v3 }
 0x225   : > { %v3811_v5 = vadd.f32 %v3810_v62, %v3792_v63  ;;  %v3847_v14 = vadd.f32 %v3846_v60, %v3828_v4 }
 0x22a   : > { %v3829_v6 = vpop.f32.mrf.mxu2  ;;  %v3794_v10 = vpop.f32.mrf.mxu0 }
 0x22b   : > { %v3830_v8 = vadd.f32 %v3829_v6, %v3811_v5  ;;  %v3848_v9 = vpop.f32.mrf.mxu3  ;;  %v3813_v17 = vpop.f32.mrf.mxu1  ;;  %v3795_v23 = vadd.f32 %v3794_v10, %v3776_v12 }
 0x22d   : > { %v3849_v15 = vadd.f32 %v3848_v9, %v3830_v8  ;;  %v3814_v29 = vadd.f32 %v3813_v17, %v3795_v23 }
 0x22f   : > { %v3885_v19 = vadd.f32 %v3849_v15, %v3847_v14 }
 0x231   : > { %v3888_v20 = vrot.slane %v3885_v19, 4 }
 0x232   : > { %v3832_v16 = vpop.f32.mrf.mxu2  ;;  %v3796_v25 = vpop.f32.mrf.mxu0 }
 0x233   : > { %v3889_v22 = vadd.f32 %v3888_v20, %v3885_v19  ;;  %v3851_v24 = vpop.f32.mrf.mxu3  ;;  %v3797_v27 = vadd.f32 %v3796_v25, %v3778_v21  ;;  %v3815_v30 = vpop.f32.mrf.mxu1  ;;  %v3833_v32 = vadd.f32 %v3832_v16, %v3814_v29 }
 0x235   : > { %v3890_v26 = vrot.slane %v3889_v22, 2  ;;  %v3816_v33 = vadd.f32 %v3815_v30, %v3797_v27  ;;  %v3852_v39 = vadd.f32 %v3851_v24, %v3833_v32 }
 0x237   : > { %v3891_v28 = vadd.f32 %v3890_v26, %v3889_v22 }
 0x239   : > { %v3892_v31 = vrot.slane %v3891_v28, 1 }
 0x23a   : > { %v3834_v35 = vpop.f32.mrf.mxu2 }
 0x23b   : > { %v3893_v36 = vadd.f32 %v3892_v31, %v3891_v28  ;;  %v3835_v37 = vadd.f32 %v3834_v35, %v3816_v33  ;;  %v3853_v38 = vpop.f32.mrf.mxu3 }
 0x23d   : > { %v3894_v34 = vmul.f32 0.0625, %v3893_v36  ;;  %v3854_v40 = vadd.f32 %v3853_v38, %v3835_v37 }
 0x23f   : > { %v3895_v41 = vsub.f32 %v3847_v14, %v3894_v34  ;;  %v3896_v42 = vsub.f32 %v3849_v15, %v3894_v34  ;;  %v3962_v44 = vadd.f32 %v3854_v40, %v3852_v39 }
 0x241   : > { %v3899_v43 = vmul.f32 %v3895_v41, %v3895_v41  ;;  %v3900_v45 = vmul.f32 %v3896_v42, %v3896_v42  ;;  %v3963_v46 = vrot.slane %v3962_v44, 4 }
 0x243   : > { %v3907_v47 = vadd.f32 %v3900_v45, %v3899_v43  ;;  %v3964_v48 = vadd.f32 %v3963_v46, %v3962_v44 }
 0x245   : > { %v3910_v49 = vrot.slane %v3907_v47, 4  ;;  %v3965_v50 = vrot.slane %v3964_v48, 2 }
 0x247   : > { %v3911_v51 = vadd.f32 %v3910_v49, %v3907_v47  ;;  %v3966_v52 = vadd.f32 %v3965_v50, %v3964_v48 }
 0x249   : > { %v3912_v53 = vrot.slane %v3911_v51, 2  ;;  %v3967_v54 = vrot.slane %v3966_v52, 1 }
 0x24b   : > { %v3913_v55 = vadd.f32 %v3912_v53, %v3911_v51  ;;  %v3968_v56 = vadd.f32 %v3967_v54, %v3966_v52 }
 0x24d   : > { %v3914_v57 = vrot.slane %v3913_v55, 1  ;;  %v3969_v58 = vmul.f32 0.0625, %v3968_v56 }
 0x24f   : > { %v3915_v60 = vadd.f32 %v3914_v57, %v3913_v55  ;;  %v3972_v61 = vsub.f32 %v3852_v39, %v3969_v58  ;;  %v3973_v62 = vsub.f32 %v3854_v40, %v3969_v58 }
 0x251   : > { %v3916_v59 = vmul.f32 0.0625, %v3915_v60  ;;  %v3976_v63 = vmul.f32 %v3972_v61, %v3972_v61  ;;  %v3977_v0 = vmul.f32 %v3973_v62, %v3973_v62 }
 0x253   : > { %v3917_v1 = vadd.f32 1e-05, %v3916_v59  ;;  %v3984_v3 = vadd.f32 %v3977_v0, %v3976_v63 }
 0x255   : > { %5035 = vrsqrt.f32 %v3917_v1  ;;  %v3985_v2 = vrot.slane %v3984_v3, 4  ;;  %vm3924_vm1 = vweird.f32 %v3917_v1 }
 0x257   : > { %v3986_v4 = vadd.f32 %v3985_v2, %v3984_v3 }
 0x259   : > { %v3987_v5 = vrot.slane %v3986_v4, 2 }
 0x25b   : > { %v5036_v6 = vpop.eup %5035  ;;  %v3988_v7 = vadd.f32 %v3987_v5, %v3986_v4 }
 0x25c   : > { %v3919_v8 = vmul.f32 %v5036_v6, %v3917_v1  ;;  %vm3925_vm0 = vweird.f32 %v5036_v6 }
 0x25d   : > { %v3989_v9 = vrot.slane %v3988_v7, 1  ;;  %vm3926_vm2 = vmor %vm3924_vm1, %vm3925_vm0 }
 0x25e   : > { %v3920_v10 = vmul.f32 %v5036_v6, %v3919_v8 }
 0x25f   : > { %v3990_v11 = vadd.f32 %v3989_v9, %v3988_v7 }
 0x260   : > { %v3921_v13 = vmul.f32 0.5, %v3920_v10 }
 0x261   : > { %v3991_v14 = vmul.f32 0.0625, %v3990_v11 }
 0x262   : > { %v3922_v15 = vsub.f32 1.5, %v3921_v13 }
 0x263   : > { %v3992_v17 = vadd.f32 1e-05, %v3991_v14 }
 0x264   : > { %v3923_v18 = vmul.f32 %v5036_v6, %v3922_v15 }
 0x265   : > { %5037 = vrsqrt.f32 %v3992_v17  ;;  %vm3999_vm6 = vweird.f32 %v3992_v17 }
 0x266   : > { %v3927_v19 = vsel %vm3926_vm2, %v5036_v6, %v3923_v18 }
 0x267   : > { %v3928_v12 = vmul.f32 %v3927_v19, %v3895_v41  ;;  %v3929_v20 = vmul.f32 %v3927_v19, %v3896_v42 }
 0x269   : > { %vm4011_vm3 = vcmp.gt.f32.partialorder %v3928_v12, 0.0  ;;  %vm4012_vm4 = vcmp.gt.f32.partialorder %v3929_v20, 0.0  ;;  %v4015_v16 = vmul.f32 0.2, %v3928_v12  ;;  %v4016_v21 = vmul.f32 0.2, %v3929_v20 }
 0x26b   : > { %v5038_v22 = vpop.eup %5037  ;;  %v4019_v23 = vsel %vm4011_vm3, %v3928_v12, %v4015_v16  ;;  %v4020_v24 = vsel %vm4012_vm4, %v3929_v20, %v4016_v21 }
 0x26c   : > { %4023 = vst [vmem:[%s2321_s19] sm:$0xff] %v4019_v23  ;;  %v3994_v25 = vmul.f32 %v5038_v22, %v3992_v17  ;;  %vm4000_vm5 = vweird.f32 %v5038_v22 }
 0x26d   : > { %4024 = vst [vmem:[%s2321_s19 + $0x8] sm:$0xff] %v4020_v24  ;;  %vm4001_vm7 = vmor %vm3999_vm6, %vm4000_vm5 }
 0x26e   : > { %v3995_v26 = vmul.f32 %v5038_v22, %v3994_v25 }
 0x270   : > { %v3996_v27 = vmul.f32 0.5, %v3995_v26 }
 0x272   : > { %v3997_v28 = vsub.f32 1.5, %v3996_v27 }
 0x273   : > { %v4070_v38 = vld [vmem:[%s2321_s19] sm:$0xff] (%p5134_p6) }
 0x274   : > { %v3998_v29 = vmul.f32 %v5038_v22, %v3997_v28  ;;  %v4072_v34 = vld [vmem:[%s2321_s19 + $0x8] sm:$0xff] (%p5134_p6)  ;;  %4071 = vst [vmem:[%s4035_s27] sm:$0xff] (%p5134_p6), %v4070_v38 }
 0x275   : > { %4073 = vst [vmem:[%s4035_s27 + $0x10] sm:$0xff] (%p5134_p6), %v4072_v34 }
 0x276   : > { %v4002_v30 = vsel %vm4001_vm7, %v5038_v22, %v3998_v29 }
 0x277   : > { %v4005_v31 = vmul.f32 %v4002_v30, %v3972_v61  ;;  %v4006_v32 = vmul.f32 %v4002_v30, %v3973_v62 }
 0x279   : > { %vm4013_vm8 = vcmp.gt.f32.partialorder %v4005_v31, 0.0  ;;  %vm4014_vm9 = vcmp.gt.f32.partialorder %v4006_v32, 0.0  ;;  %v4017_v33 = vmul.f32 0.2, %v4005_v31  ;;  %v4018_v35 = vmul.f32 0.2, %v4006_v32 }
 0x27a   : > { %4033 = sbr.rel (!%p5134_p6) target bundleno = 646 (0x286), region = 88 }
 0x27b   : > { %v4021_v36 = vsel %vm4013_vm8, %v4005_v31, %v4017_v33  ;;  %v4022_v37 = vsel %vm4014_vm9, %v4006_v32, %v4018_v35 }
 0x27c   : > { %4025 = vst [vmem:[%s2321_s19 + $0x10] sm:$0xff] %v4021_v36 }
 0x27d   : > { %4026 = vst [vmem:[%s2321_s19 + $0x18] sm:$0xff] %v4022_v37 }
 0x283   : > { %v4074_v39 = vld [vmem:[%s2321_s19 + $0x10] sm:$0xff] }
 0x284   : > { %v4076_v40 = vld [vmem:[%s2321_s19 + $0x18] sm:$0xff]  ;;  %4075 = vst [vmem:[%s4035_s27 + $0x20] sm:$0xff] %v4074_v39 }
 0x285   : > { %4077 = vst [vmem:[%s4035_s27 + $0x30] sm:$0xff] %v4076_v40 }
 0x286 PF: > { %s13_s16 = sadd.s32 1, %s5077_s16   ;;  %s6031_s12 = smov %s5065_s13 }
 0x287   : > { %p10_p12 = scmp.ge.s32.totalorder %s13_s16, 4   ;;  %s6032_s13 = smov %s5139_s22 }
 0x288   : > { %s6033_s14 = smov %s5073_s15  ;;  %s6034_s15 = smov %s6036_s17 }
 0x289   :  { %12 = sbr.rel (!%p10_p12) target bundleno = 3 (0x3), region = 167 }

// kernel: _lambda_.8
= control target key start
LH: loop header
LB: loop body
LE: loop exit
PB: predicated region body
PF: predicated region fallthrough
CT: control target
= control target key end

     0   :  { %s6084_s12 = smov 0   ;;  %s6086_s13 = smov 0   ;;  %s7379_s0 = inlined_call_operand.vmem [shape: bf16[8,4096], index: 0, kind: input, shape index: {}]   ;;  %s7380_s1 = inlined_call_operand.vmem [shape: bf16[4096,512], index: 1, kind: input, shape index: {}]   ;;  %s7381_s2 = inlined_call_operand.vmem [shape: f32[1,512], index: 2, kind: input, shape index: {}]   ;;  %s7382_s3 = inlined_call_operand.vmem [shape: f32[8,512], index: 3, kind: output, shape index: {}]  }
   0x1   :  { %s6088_s14 = smov 0   ;;  %s6090_s15 = smov 0  }
   0x2   :  { %s6092_s16 = smov 0   ;;  %s6094_s17 = smov 0  }
   0x3   :  { %s6096_s18 = smov 0  }
   0x4 LB: > { %s22_s19 = sadd.s32 1, %s6053_s16  ;;  %s25_s20 = sadd.s32 1, %s6057_s17  ;;  %s6061_s18 = sphi %s6096_s18, %s13_s18   ;;  %s6057_s17 = sphi %s6094_s17, %s7388_s17   ;;  %s6053_s16 = sphi %s6092_s16, %s7387_s16   ;;  %s6049_s15 = sphi %s6090_s15, %s7386_s15   ;;  %s6045_s14 = sphi %s6088_s14, %s7385_s14   ;;  %s6041_s13 = sphi %s6086_s13, %s7384_s13   ;;  %s6037_s12 = sphi %s6084_s12, %s7383_s12  }
   0x5   : > { %p23_p0 = scmp.ge.s32.totalorder %s22_s19, 2  ;;  %p67_p1 = scmp.ne.s32.totalorder %s6041_s13, %s6037_s12 }
   0x6   : > { %p68_p2 = scmp.eq.s32.totalorder %s6061_s18, 0  ;;  %s60_s24 = sadd.s32 1, %s6041_s13 }
   0x7   : > { %s7390_s19 = smov (%p23_p0, %s22_s19), 0  ;;  %s7392_s20 = smov (!%p23_p0, %s25_s20), %s6057_s17 }
   0x8   : > { %p69_p3 = por %p68_p2, %p67_p1  ;;  %p27_p4 = scmp.ge.s32.totalorder %s7392_s20, 2 }
   0x9   : > { %s55_s21 = ssub.s32 %s6053_s16, %s7390_s19  ;;  %p4644_p6 = scmp.ge.s32.totalorder %s6061_s18, 4 }
   0xa   : > { %s7394_s20 = smov (%p27_p4, %s7392_s20), 0 }
   0xb   : > { %s56_s22 = ssub.s32 %s6057_s17, %s7394_s20  ;;  %145 = sbr.rel (%p4644_p6) target bundleno = 279 (0x117), region = 16 }
   0xc   : > { %s57_s23 = sor.u32 %s56_s22, %s55_s21 }
   0xd   : > { %p58_p5 = scmp.eq.s32.totalorder %s57_s23, 0 }
   0xf   : > { %s6135_s25 = scalar_select %p58_p5, %s6041_s13, %s60_s24  }
  0x10   : > { %157 = sbr.rel (!%p69_p3) target bundleno = 279 (0x117), region = 24  ;;  %s159_s26 = sand.u32 (%p69_p3), 1, %s6041_s13  }
  0x11   : > { %s4647_s27 = sshll.u32 (%p69_p3), %s6057_s17, 1  ;;  %s4645_s28 = sshll.u32 (%p69_p3), %s159_s26, 11 }
  0x12   : > { %s5685_s29 = sshll.u32 (%p69_p3), %s6053_s16, 10  ;;  %s6149_s8 = scalar_lea.vmem (%p69_p3), [#allocation3], %s4645_s28 }
  0x13   : > { %s165_s30 = sadd.s32 (%p69_p3), %s5685_s29, %s4647_s27 }
  0x14   : > { %s4649_s4 = sshll.u32 (%p69_p3), %s165_s30, 2 }
  0x15   : > { %s6144_s7 = scalar_lea.vmem %s7380_s1, %s4649_s4 }
  0x16   : > { %v707_v0 = vld [vmem:[%s6144_s7] sm:$0xff]  ;;  %v709_v1 = vld [vmem:[%s6144_s7 + $0x10] sm:$0xff] }
  0x17   : > { %v711_v2 = vld [vmem:[%s6144_s7 + $0x20] sm:$0xff]  ;;  %708 = vst [vmem:[%s6149_s8] sm:$0xff] %v707_v0  ;;  %v713_v3 = vld [vmem:[%s6144_s7 + $0x30] sm:$0xff] }
  0x18   : > { %710 = vst [vmem:[%s6149_s8 + $0x8] sm:$0xff] %v709_v1  ;;  %v715_v4 = vld [vmem:[%s6144_s7 + $0x40] sm:$0xff]  ;;  %v717_v5 = vld [vmem:[%s6144_s7 + $0x50] sm:$0xff] }
  0x19   : > { %712 = vst [vmem:[%s6149_s8 + $0x10] sm:$0xff] %v711_v2  ;;  %v719_v6 = vld [vmem:[%s6144_s7 + $0x60] sm:$0xff]  ;;  %v721_v7 = vld [vmem:[%s6144_s7 + $0x70] sm:$0xff] }
  0x1a   : > { %714 = vst [vmem:[%s6149_s8 + $0x18] sm:$0xff] %v713_v3  ;;  %v723_v8 = vld [vmem:[%s6144_s7 + $0x80] sm:$0xff]  ;;  %v725_v9 = vld [vmem:[%s6144_s7 + $0x90] sm:$0xff] }
  0x1b   : > { %716 = vst [vmem:[%s6149_s8 + $0x20] sm:$0xff] %v715_v4  ;;  %v727_v10 = vld [vmem:[%s6144_s7 + $0xa0] sm:$0xff]  ;;  %v729_v11 = vld [vmem:[%s6144_s7 + $0xb0] sm:$0xff] }
  0x1c   : > { %718 = vst [vmem:[%s6149_s8 + $0x28] sm:$0xff] %v717_v5  ;;  %v731_v12 = vld [vmem:[%s6144_s7 + $0xc0] sm:$0xff]  ;;  %v733_v13 = vld [vmem:[%s6144_s7 + $0xd0] sm:$0xff] }
  0x1d   : > { %720 = vst [vmem:[%s6149_s8 + $0x30] sm:$0xff] %v719_v6  ;;  %v735_v14 = vld [vmem:[%s6144_s7 + $0xe0] sm:$0xff]  ;;  %v737_v15 = vld [vmem:[%s6144_s7 + $0xf0] sm:$0xff] }
  0x1e   : > { %722 = vst [vmem:[%s6149_s8 + $0x38] sm:$0xff] %v721_v7  ;;  %v739_v16 = vld [vmem:[%s6144_s7 + $0x100] sm:$0xff]  ;;  %v741_v17 = vld [vmem:[%s6144_s7 + $0x110] sm:$0xff] }
  0x1f   : > { %724 = vst [vmem:[%s6149_s8 + $0x40] sm:$0xff] %v723_v8  ;;  %v743_v18 = vld [vmem:[%s6144_s7 + $0x120] sm:$0xff]  ;;  %v745_v19 = vld [vmem:[%s6144_s7 + $0x130] sm:$0xff] }
  0x20   : > { %726 = vst [vmem:[%s6149_s8 + $0x48] sm:$0xff] %v725_v9  ;;  %v747_v20 = vld [vmem:[%s6144_s7 + $0x140] sm:$0xff]  ;;  %v749_v21 = vld [vmem:[%s6144_s7 + $0x150] sm:$0xff] }
  0x21   : > { %728 = vst [vmem:[%s6149_s8 + $0x50] sm:$0xff] %v727_v10  ;;  %v751_v22 = vld [vmem:[%s6144_s7 + $0x160] sm:$0xff]  ;;  %v753_v23 = vld [vmem:[%s6144_s7 + $0x170] sm:$0xff] }
  0x22   : > { %730 = vst [vmem:[%s6149_s8 + $0x58] sm:$0xff] %v729_v11  ;;  %v755_v24 = vld [vmem:[%s6144_s7 + $0x180] sm:$0xff]  ;;  %v757_v25 = vld [vmem:[%s6144_s7 + $0x190] sm:$0xff] }
  0x23   : > { %732 = vst [vmem:[%s6149_s8 + $0x60] sm:$0xff] %v731_v12  ;;  %v759_v26 = vld [vmem:[%s6144_s7 + $0x1a0] sm:$0xff]  ;;  %v761_v27 = vld [vmem:[%s6144_s7 + $0x1b0] sm:$0xff] }
  0x24   : > { %734 = vst [vmem:[%s6149_s8 + $0x68] sm:$0xff] %v733_v13  ;;  %v763_v28 = vld [vmem:[%s6144_s7 + $0x1c0] sm:$0xff]  ;;  %v765_v29 = vld [vmem:[%s6144_s7 + $0x1d0] sm:$0xff] }
  0x25   : > { %736 = vst [vmem:[%s6149_s8 + $0x70] sm:$0xff] %v735_v14  ;;  %v767_v30 = vld [vmem:[%s6144_s7 + $0x1e0] sm:$0xff]  ;;  %v769_v31 = vld [vmem:[%s6144_s7 + $0x1f0] sm:$0xff] }
  0x26   : > { %738 = vst [vmem:[%s6149_s8 + $0x78] sm:$0xff] %v737_v15  ;;  %v771_v32 = vld [vmem:[%s6144_s7 + $0x200] sm:$0xff]  ;;  %v773_v33 = vld [vmem:[%s6144_s7 + $0x210] sm:$0xff] }
  0x27   : > { %740 = vst [vmem:[%s6149_s8 + $0x80] sm:$0xff] %v739_v16  ;;  %v775_v34 = vld [vmem:[%s6144_s7 + $0x220] sm:$0xff]  ;;  %v777_v35 = vld [vmem:[%s6144_s7 + $0x230] sm:$0xff] }
  0x28   : > { %742 = vst [vmem:[%s6149_s8 + $0x88] sm:$0xff] %v741_v17  ;;  %v779_v36 = vld [vmem:[%s6144_s7 + $0x240] sm:$0xff]  ;;  %v781_v37 = vld [vmem:[%s6144_s7 + $0x250] sm:$0xff] }
  0x29   : > { %744 = vst [vmem:[%s6149_s8 + $0x90] sm:$0xff] %v743_v18  ;;  %v783_v38 = vld [vmem:[%s6144_s7 + $0x260] sm:$0xff]  ;;  %v785_v39 = vld [vmem:[%s6144_s7 + $0x270] sm:$0xff] }
  0x2a   : > { %746 = vst [vmem:[%s6149_s8 + $0x98] sm:$0xff] %v745_v19  ;;  %v787_v40 = vld [vmem:[%s6144_s7 + $0x280] sm:$0xff]  ;;  %v789_v41 = vld [vmem:[%s6144_s7 + $0x290] sm:$0xff] }
  0x2b   : > { %748 = vst [vmem:[%s6149_s8 + $0xa0] sm:$0xff] %v747_v20  ;;  %v791_v42 = vld [vmem:[%s6144_s7 + $0x2a0] sm:$0xff]  ;;  %v793_v43 = vld [vmem:[%s6144_s7 + $0x2b0] sm:$0xff] }
  0x2c   : > { %750 = vst [vmem:[%s6149_s8 + $0xa8] sm:$0xff] %v749_v21  ;;  %v795_v44 = vld [vmem:[%s6144_s7 + $0x2c0] sm:$0xff]  ;;  %v797_v45 = vld [vmem:[%s6144_s7 + $0x2d0] sm:$0xff] }
  0x2d   : > { %752 = vst [vmem:[%s6149_s8 + $0xb0] sm:$0xff] %v751_v22  ;;  %v799_v46 = vld [vmem:[%s6144_s7 + $0x2e0] sm:$0xff]  ;;  %v801_v47 = vld [vmem:[%s6144_s7 + $0x2f0] sm:$0xff] }
  0x2e   : > { %754 = vst [vmem:[%s6149_s8 + $0xb8] sm:$0xff] %v753_v23  ;;  %v803_v48 = vld [vmem:[%s6144_s7 + $0x300] sm:$0xff]  ;;  %v805_v49 = vld [vmem:[%s6144_s7 + $0x310] sm:$0xff] }
  0x2f   : > { %756 = vst [vmem:[%s6149_s8 + $0xc0] sm:$0xff] %v755_v24  ;;  %v807_v50 = vld [vmem:[%s6144_s7 + $0x320] sm:$0xff]  ;;  %v809_v51 = vld [vmem:[%s6144_s7 + $0x330] sm:$0xff] }
  0x30   : > { %758 = vst [vmem:[%s6149_s8 + $0xc8] sm:$0xff] %v757_v25  ;;  %v811_v52 = vld [vmem:[%s6144_s7 + $0x340] sm:$0xff]  ;;  %v813_v53 = vld [vmem:[%s6144_s7 + $0x350] sm:$0xff] }
  0x31   : > { %760 = vst [vmem:[%s6149_s8 + $0xd0] sm:$0xff] %v759_v26  ;;  %v815_v54 = vld [vmem:[%s6144_s7 + $0x360] sm:$0xff]  ;;  %v817_v55 = vld [vmem:[%s6144_s7 + $0x370] sm:$0xff] }
  0x32   : > { %762 = vst [vmem:[%s6149_s8 + $0xd8] sm:$0xff] %v761_v27  ;;  %v819_v56 = vld [vmem:[%s6144_s7 + $0x380] sm:$0xff]  ;;  %v821_v57 = vld [vmem:[%s6144_s7 + $0x390] sm:$0xff] }
  0x33   : > { %764 = vst [vmem:[%s6149_s8 + $0xe0] sm:$0xff] %v763_v28  ;;  %v823_v58 = vld [vmem:[%s6144_s7 + $0x3a0] sm:$0xff]  ;;  %v825_v59 = vld [vmem:[%s6144_s7 + $0x3b0] sm:$0xff] }
  0x34   : > { %766 = vst [vmem:[%s6149_s8 + $0xe8] sm:$0xff] %v765_v29  ;;  %v827_v60 = vld [vmem:[%s6144_s7 + $0x3c0] sm:$0xff]  ;;  %v829_v61 = vld [vmem:[%s6144_s7 + $0x3d0] sm:$0xff] }
  0x35   : > { %768 = vst [vmem:[%s6149_s8 + $0xf0] sm:$0xff] %v767_v30  ;;  %v831_v62 = vld [vmem:[%s6144_s7 + $0x3e0] sm:$0xff]  ;;  %v833_v63 = vld [vmem:[%s6144_s7 + $0x3f0] sm:$0xff] }
  0x36   : > { %770 = vst [vmem:[%s6149_s8 + $0xf8] sm:$0xff] %v769_v31  ;;  %v835_v0 = vld [vmem:[%s6144_s7 + $0x400] sm:$0xff]  ;;  %v837_v1 = vld [vmem:[%s6144_s7 + $0x410] sm:$0xff] }
  0x37   : > { %772 = vst [vmem:[%s6149_s8 + $0x100] sm:$0xff] %v771_v32  ;;  %v839_v2 = vld [vmem:[%s6144_s7 + $0x420] sm:$0xff]  ;;  %v841_v3 = vld [vmem:[%s6144_s7 + $0x430] sm:$0xff] }
  0x38   : > { %774 = vst [vmem:[%s6149_s8 + $0x108] sm:$0xff] %v773_v33  ;;  %v843_v4 = vld [vmem:[%s6144_s7 + $0x440] sm:$0xff]  ;;  %v845_v5 = vld [vmem:[%s6144_s7 + $0x450] sm:$0xff] }
  0x39   : > { %776 = vst [vmem:[%s6149_s8 + $0x110] sm:$0xff] %v775_v34  ;;  %v847_v6 = vld [vmem:[%s6144_s7 + $0x460] sm:$0xff]  ;;  %v849_v7 = vld [vmem:[%s6144_s7 + $0x470] sm:$0xff] }
  0x3a   : > { %778 = vst [vmem:[%s6149_s8 + $0x118] sm:$0xff] %v777_v35  ;;  %v851_v8 = vld [vmem:[%s6144_s7 + $0x480] sm:$0xff]  ;;  %v853_v9 = vld [vmem:[%s6144_s7 + $0x490] sm:$0xff] }
  0x3b   : > { %780 = vst [vmem:[%s6149_s8 + $0x120] sm:$0xff] %v779_v36  ;;  %v855_v10 = vld [vmem:[%s6144_s7 + $0x4a0] sm:$0xff]  ;;  %v857_v11 = vld [vmem:[%s6144_s7 + $0x4b0] sm:$0xff] }
  0x3c   : > { %782 = vst [vmem:[%s6149_s8 + $0x128] sm:$0xff] %v781_v37  ;;  %v859_v12 = vld [vmem:[%s6144_s7 + $0x4c0] sm:$0xff]  ;;  %v861_v13 = vld [vmem:[%s6144_s7 + $0x4d0] sm:$0xff] }
  0x3d   : > { %784 = vst [vmem:[%s6149_s8 + $0x130] sm:$0xff] %v783_v38  ;;  %v863_v14 = vld [vmem:[%s6144_s7 + $0x4e0] sm:$0xff]  ;;  %v865_v15 = vld [vmem:[%s6144_s7 + $0x4f0] sm:$0xff] }
  0x3e   : > { %786 = vst [vmem:[%s6149_s8 + $0x138] sm:$0xff] %v785_v39  ;;  %v867_v16 = vld [vmem:[%s6144_s7 + $0x500] sm:$0xff]  ;;  %v869_v17 = vld [vmem:[%s6144_s7 + $0x510] sm:$0xff] }
  0x3f   : > { %788 = vst [vmem:[%s6149_s8 + $0x140] sm:$0xff] %v787_v40  ;;  %v871_v18 = vld [vmem:[%s6144_s7 + $0x520] sm:$0xff]  ;;  %v873_v19 = vld [vmem:[%s6144_s7 + $0x530] sm:$0xff] }
  0x40   : > { %790 = vst [vmem:[%s6149_s8 + $0x148] sm:$0xff] %v789_v41  ;;  %v875_v20 = vld [vmem:[%s6144_s7 + $0x540] sm:$0xff]  ;;  %v877_v21 = vld [vmem:[%s6144_s7 + $0x550] sm:$0xff] }
  0x41   : > { %792 = vst [vmem:[%s6149_s8 + $0x150] sm:$0xff] %v791_v42  ;;  %v879_v22 = vld [vmem:[%s6144_s7 + $0x560] sm:$0xff]  ;;  %v881_v23 = vld [vmem:[%s6144_s7 + $0x570] sm:$0xff] }
  0x42   : > { %794 = vst [vmem:[%s6149_s8 + $0x158] sm:$0xff] %v793_v43  ;;  %v883_v24 = vld [vmem:[%s6144_s7 + $0x580] sm:$0xff]  ;;  %v885_v25 = vld [vmem:[%s6144_s7 + $0x590] sm:$0xff] }
  0x43   : > { %796 = vst [vmem:[%s6149_s8 + $0x160] sm:$0xff] %v795_v44  ;;  %v887_v26 = vld [vmem:[%s6144_s7 + $0x5a0] sm:$0xff]  ;;  %v889_v27 = vld [vmem:[%s6144_s7 + $0x5b0] sm:$0xff] }
  0x44   : > { %798 = vst [vmem:[%s6149_s8 + $0x168] sm:$0xff] %v797_v45  ;;  %v891_v28 = vld [vmem:[%s6144_s7 + $0x5c0] sm:$0xff]  ;;  %v893_v29 = vld [vmem:[%s6144_s7 + $0x5d0] sm:$0xff] }
  0x45   : > { %800 = vst [vmem:[%s6149_s8 + $0x170] sm:$0xff] %v799_v46  ;;  %v895_v30 = vld [vmem:[%s6144_s7 + $0x5e0] sm:$0xff]  ;;  %v897_v31 = vld [vmem:[%s6144_s7 + $0x5f0] sm:$0xff] }
  0x46   : > { %802 = vst [vmem:[%s6149_s8 + $0x178] sm:$0xff] %v801_v47  ;;  %v899_v32 = vld [vmem:[%s6144_s7 + $0x600] sm:$0xff]  ;;  %v901_v33 = vld [vmem:[%s6144_s7 + $0x610] sm:$0xff] }
  0x47   : > { %804 = vst [vmem:[%s6149_s8 + $0x180] sm:$0xff] %v803_v48  ;;  %v903_v34 = vld [vmem:[%s6144_s7 + $0x620] sm:$0xff]  ;;  %v905_v35 = vld [vmem:[%s6144_s7 + $0x630] sm:$0xff] }
  0x48   : > { %806 = vst [vmem:[%s6149_s8 + $0x188] sm:$0xff] %v805_v49  ;;  %v907_v36 = vld [vmem:[%s6144_s7 + $0x640] sm:$0xff]  ;;  %v909_v37 = vld [vmem:[%s6144_s7 + $0x650] sm:$0xff] }
  0x49   : > { %808 = vst [vmem:[%s6149_s8 + $0x190] sm:$0xff] %v807_v50  ;;  %v911_v38 = vld [vmem:[%s6144_s7 + $0x660] sm:$0xff]  ;;  %v913_v39 = vld [vmem:[%s6144_s7 + $0x670] sm:$0xff] }
  0x4a   : > { %810 = vst [vmem:[%s6149_s8 + $0x198] sm:$0xff] %v809_v51  ;;  %v915_v40 = vld [vmem:[%s6144_s7 + $0x680] sm:$0xff]  ;;  %v917_v41 = vld [vmem:[%s6144_s7 + $0x690] sm:$0xff] }
  0x4b   : > { %812 = vst [vmem:[%s6149_s8 + $0x1a0] sm:$0xff] %v811_v52  ;;  %v919_v42 = vld [vmem:[%s6144_s7 + $0x6a0] sm:$0xff]  ;;  %v921_v43 = vld [vmem:[%s6144_s7 + $0x6b0] sm:$0xff] }
  0x4c   : > { %814 = vst [vmem:[%s6149_s8 + $0x1a8] sm:$0xff] %v813_v53  ;;  %v923_v44 = vld [vmem:[%s6144_s7 + $0x6c0] sm:$0xff]  ;;  %v925_v45 = vld [vmem:[%s6144_s7 + $0x6d0] sm:$0xff] }
  0x4d   : > { %816 = vst [vmem:[%s6149_s8 + $0x1b0] sm:$0xff] %v815_v54  ;;  %v927_v46 = vld [vmem:[%s6144_s7 + $0x6e0] sm:$0xff]  ;;  %v929_v47 = vld [vmem:[%s6144_s7 + $0x6f0] sm:$0xff] }
  0x4e   : > { %818 = vst [vmem:[%s6149_s8 + $0x1b8] sm:$0xff] %v817_v55  ;;  %v931_v48 = vld [vmem:[%s6144_s7 + $0x700] sm:$0xff]  ;;  %v933_v49 = vld [vmem:[%s6144_s7 + $0x710] sm:$0xff] }
  0x4f   : > { %820 = vst [vmem:[%s6149_s8 + $0x1c0] sm:$0xff] %v819_v56  ;;  %v935_v50 = vld [vmem:[%s6144_s7 + $0x720] sm:$0xff]  ;;  %v937_v51 = vld [vmem:[%s6144_s7 + $0x730] sm:$0xff] }
  0x50   : > { %822 = vst [vmem:[%s6149_s8 + $0x1c8] sm:$0xff] %v821_v57  ;;  %v939_v52 = vld [vmem:[%s6144_s7 + $0x740] sm:$0xff]  ;;  %v941_v53 = vld [vmem:[%s6144_s7 + $0x750] sm:$0xff] }
  0x51   : > { %824 = vst [vmem:[%s6149_s8 + $0x1d0] sm:$0xff] %v823_v58  ;;  %v943_v54 = vld [vmem:[%s6144_s7 + $0x760] sm:$0xff]  ;;  %v945_v55 = vld [vmem:[%s6144_s7 + $0x770] sm:$0xff] }
  0x52   : > { %826 = vst [vmem:[%s6149_s8 + $0x1d8] sm:$0xff] %v825_v59  ;;  %v947_v56 = vld [vmem:[%s6144_s7 + $0x780] sm:$0xff]  ;;  %v949_v57 = vld [vmem:[%s6144_s7 + $0x790] sm:$0xff] }
  0x53   : > { %828 = vst [vmem:[%s6149_s8 + $0x1e0] sm:$0xff] %v827_v60  ;;  %v951_v58 = vld [vmem:[%s6144_s7 + $0x7a0] sm:$0xff]  ;;  %v953_v59 = vld [vmem:[%s6144_s7 + $0x7b0] sm:$0xff] }
  0x54   : > { %830 = vst [vmem:[%s6149_s8 + $0x1e8] sm:$0xff] %v829_v61  ;;  %v955_v60 = vld [vmem:[%s6144_s7 + $0x7c0] sm:$0xff]  ;;  %v957_v61 = vld [vmem:[%s6144_s7 + $0x7d0] sm:$0xff] }
  0x55   : > { %832 = vst [vmem:[%s6149_s8 + $0x1f0] sm:$0xff] %v831_v62  ;;  %v959_v62 = vld [vmem:[%s6144_s7 + $0x7e0] sm:$0xff] }
  0x56   : > { %834 = vst [vmem:[%s6149_s8 + $0x1f8] sm:$0xff] %v833_v63  ;;  %v961_v63 = vld [vmem:[%s6144_s7 + $0x7f0] sm:$0xff] }
  0x57   : > { %836 = vst [vmem:[%s6149_s8 + $0x200] sm:$0xff] %v835_v0  ;;  %v963_v0 = vld [vmem:[%s6144_s7 + $0x800] sm:$0xff] }
  0x58   : > { %838 = vst [vmem:[%s6149_s8 + $0x208] sm:$0xff] %v837_v1  ;;  %v965_v1 = vld [vmem:[%s6144_s7 + $0x810] sm:$0xff] }
  0x59   : > { %840 = vst [vmem:[%s6149_s8 + $0x210] sm:$0xff] %v839_v2  ;;  %v967_v2 = vld [vmem:[%s6144_s7 + $0x820] sm:$0xff] }
  0x5a   : > { %842 = vst [vmem:[%s6149_s8 + $0x218] sm:$0xff] %v841_v3  ;;  %v969_v3 = vld [vmem:[%s6144_s7 + $0x830] sm:$0xff] }
  0x5b   : > { %844 = vst [vmem:[%s6149_s8 + $0x220] sm:$0xff] %v843_v4  ;;  %v971_v4 = vld [vmem:[%s6144_s7 + $0x840] sm:$0xff] }
  0x5c   : > { %846 = vst [vmem:[%s6149_s8 + $0x228] sm:$0xff] %v845_v5  ;;  %v973_v5 = vld [vmem:[%s6144_s7 + $0x850] sm:$0xff] }
  0x5d   : > { %848 = vst [vmem:[%s6149_s8 + $0x230] sm:$0xff] %v847_v6  ;;  %v975_v6 = vld [vmem:[%s6144_s7 + $0x860] sm:$0xff] }
  0x5e   : > { %850 = vst [vmem:[%s6149_s8 + $0x238] sm:$0xff] %v849_v7  ;;  %v977_v7 = vld [vmem:[%s6144_s7 + $0x870] sm:$0xff] }
  0x5f   : > { %852 = vst [vmem:[%s6149_s8 + $0x240] sm:$0xff] %v851_v8  ;;  %v979_v8 = vld [vmem:[%s6144_s7 + $0x880] sm:$0xff] }
  0x60   : > { %854 = vst [vmem:[%s6149_s8 + $0x248] sm:$0xff] %v853_v9  ;;  %v981_v9 = vld [vmem:[%s6144_s7 + $0x890] sm:$0xff] }
  0x61   : > { %856 = vst [vmem:[%s6149_s8 + $0x250] sm:$0xff] %v855_v10  ;;  %v983_v10 = vld [vmem:[%s6144_s7 + $0x8a0] sm:$0xff] }
  0x62   : > { %858 = vst [vmem:[%s6149_s8 + $0x258] sm:$0xff] %v857_v11  ;;  %v985_v11 = vld [vmem:[%s6144_s7 + $0x8b0] sm:$0xff] }
  0x63   : > { %860 = vst [vmem:[%s6149_s8 + $0x260] sm:$0xff] %v859_v12  ;;  %v987_v12 = vld [vmem:[%s6144_s7 + $0x8c0] sm:$0xff] }
  0x64   : > { %862 = vst [vmem:[%s6149_s8 + $0x268] sm:$0xff] %v861_v13  ;;  %v989_v13 = vld [vmem:[%s6144_s7 + $0x8d0] sm:$0xff] }
  0x65   : > { %864 = vst [vmem:[%s6149_s8 + $0x270] sm:$0xff] %v863_v14  ;;  %v991_v14 = vld [vmem:[%s6144_s7 + $0x8e0] sm:$0xff] }
  0x66   : > { %866 = vst [vmem:[%s6149_s8 + $0x278] sm:$0xff] %v865_v15  ;;  %v993_v15 = vld [vmem:[%s6144_s7 + $0x8f0] sm:$0xff] }
  0x67   : > { %868 = vst [vmem:[%s6149_s8 + $0x280] sm:$0xff] %v867_v16  ;;  %v995_v16 = vld [vmem:[%s6144_s7 + $0x900] sm:$0xff] }
  0x68   : > { %870 = vst [vmem:[%s6149_s8 + $0x288] sm:$0xff] %v869_v17  ;;  %v997_v17 = vld [vmem:[%s6144_s7 + $0x910] sm:$0xff] }
  0x69   : > { %872 = vst [vmem:[%s6149_s8 + $0x290] sm:$0xff] %v871_v18  ;;  %v999_v18 = vld [vmem:[%s6144_s7 + $0x920] sm:$0xff] }
  0x6a   : > { %874 = vst [vmem:[%s6149_s8 + $0x298] sm:$0xff] %v873_v19  ;;  %v1001_v19 = vld [vmem:[%s6144_s7 + $0x930] sm:$0xff] }
  0x6b   : > { %876 = vst [vmem:[%s6149_s8 + $0x2a0] sm:$0xff] %v875_v20  ;;  %v1003_v20 = vld [vmem:[%s6144_s7 + $0x940] sm:$0xff] }
  0x6c   : > { %878 = vst [vmem:[%s6149_s8 + $0x2a8] sm:$0xff] %v877_v21  ;;  %v1005_v21 = vld [vmem:[%s6144_s7 + $0x950] sm:$0xff] }
  0x6d   : > { %880 = vst [vmem:[%s6149_s8 + $0x2b0] sm:$0xff] %v879_v22  ;;  %v1007_v22 = vld [vmem:[%s6144_s7 + $0x960] sm:$0xff] }
  0x6e   : > { %882 = vst [vmem:[%s6149_s8 + $0x2b8] sm:$0xff] %v881_v23  ;;  %v1009_v23 = vld [vmem:[%s6144_s7 + $0x970] sm:$0xff] }
  0x6f   : > { %884 = vst [vmem:[%s6149_s8 + $0x2c0] sm:$0xff] %v883_v24  ;;  %v1011_v24 = vld [vmem:[%s6144_s7 + $0x980] sm:$0xff] }
  0x70   : > { %886 = vst [vmem:[%s6149_s8 + $0x2c8] sm:$0xff] %v885_v25  ;;  %v1013_v25 = vld [vmem:[%s6144_s7 + $0x990] sm:$0xff] }
  0x71   : > { %888 = vst [vmem:[%s6149_s8 + $0x2d0] sm:$0xff] %v887_v26  ;;  %v1015_v26 = vld [vmem:[%s6144_s7 + $0x9a0] sm:$0xff] }
  0x72   : > { %890 = vst [vmem:[%s6149_s8 + $0x2d8] sm:$0xff] %v889_v27  ;;  %v1017_v27 = vld [vmem:[%s6144_s7 + $0x9b0] sm:$0xff] }
  0x73   : > { %892 = vst [vmem:[%s6149_s8 + $0x2e0] sm:$0xff] %v891_v28  ;;  %v1019_v28 = vld [vmem:[%s6144_s7 + $0x9c0] sm:$0xff] }
  0x74   : > { %894 = vst [vmem:[%s6149_s8 + $0x2e8] sm:$0xff] %v893_v29  ;;  %v1021_v29 = vld [vmem:[%s6144_s7 + $0x9d0] sm:$0xff] }
  0x75   : > { %896 = vst [vmem:[%s6149_s8 + $0x2f0] sm:$0xff] %v895_v30  ;;  %v1023_v30 = vld [vmem:[%s6144_s7 + $0x9e0] sm:$0xff] }
  0x76   : > { %898 = vst [vmem:[%s6149_s8 + $0x2f8] sm:$0xff] %v897_v31  ;;  %v1025_v31 = vld [vmem:[%s6144_s7 + $0x9f0] sm:$0xff] }
  0x77   : > { %900 = vst [vmem:[%s6149_s8 + $0x300] sm:$0xff] %v899_v32  ;;  %v1027_v32 = vld [vmem:[%s6144_s7 + $0xa00] sm:$0xff] }
  0x78   : > { %902 = vst [vmem:[%s6149_s8 + $0x308] sm:$0xff] %v901_v33  ;;  %v1029_v33 = vld [vmem:[%s6144_s7 + $0xa10] sm:$0xff] }
  0x79   : > { %904 = vst [vmem:[%s6149_s8 + $0x310] sm:$0xff] %v903_v34  ;;  %v1031_v34 = vld [vmem:[%s6144_s7 + $0xa20] sm:$0xff] }
  0x7a   : > { %906 = vst [vmem:[%s6149_s8 + $0x318] sm:$0xff] %v905_v35  ;;  %v1033_v35 = vld [vmem:[%s6144_s7 + $0xa30] sm:$0xff] }
  0x7b   : > { %908 = vst [vmem:[%s6149_s8 + $0x320] sm:$0xff] %v907_v36  ;;  %v1035_v36 = vld [vmem:[%s6144_s7 + $0xa40] sm:$0xff] }
  0x7c   : > { %910 = vst [vmem:[%s6149_s8 + $0x328] sm:$0xff] %v909_v37  ;;  %v1037_v37 = vld [vmem:[%s6144_s7 + $0xa50] sm:$0xff] }
  0x7d   : > { %912 = vst [vmem:[%s6149_s8 + $0x330] sm:$0xff] %v911_v38  ;;  %v1039_v38 = vld [vmem:[%s6144_s7 + $0xa60] sm:$0xff] }
  0x7e   : > { %914 = vst [vmem:[%s6149_s8 + $0x338] sm:$0xff] %v913_v39  ;;  %v1041_v39 = vld [vmem:[%s6144_s7 + $0xa70] sm:$0xff] }
  0x7f   : > { %916 = vst [vmem:[%s6149_s8 + $0x340] sm:$0xff] %v915_v40  ;;  %v1043_v40 = vld [vmem:[%s6144_s7 + $0xa80] sm:$0xff] }
  0x80   : > { %918 = vst [vmem:[%s6149_s8 + $0x348] sm:$0xff] %v917_v41  ;;  %v1045_v41 = vld [vmem:[%s6144_s7 + $0xa90] sm:$0xff] }
  0x81   : > { %920 = vst [vmem:[%s6149_s8 + $0x350] sm:$0xff] %v919_v42  ;;  %v1047_v42 = vld [vmem:[%s6144_s7 + $0xaa0] sm:$0xff] }
  0x82   : > { %922 = vst [vmem:[%s6149_s8 + $0x358] sm:$0xff] %v921_v43  ;;  %v1049_v43 = vld [vmem:[%s6144_s7 + $0xab0] sm:$0xff] }
  0x83   : > { %924 = vst [vmem:[%s6149_s8 + $0x360] sm:$0xff] %v923_v44  ;;  %v1051_v44 = vld [vmem:[%s6144_s7 + $0xac0] sm:$0xff] }
  0x84   : > { %926 = vst [vmem:[%s6149_s8 + $0x368] sm:$0xff] %v925_v45  ;;  %v1053_v45 = vld [vmem:[%s6144_s7 + $0xad0] sm:$0xff] }
  0x85   : > { %928 = vst [vmem:[%s6149_s8 + $0x370] sm:$0xff] %v927_v46  ;;  %v1055_v46 = vld [vmem:[%s6144_s7 + $0xae0] sm:$0xff] }
  0x86   : > { %930 = vst [vmem:[%s6149_s8 + $0x378] sm:$0xff] %v929_v47  ;;  %v1057_v47 = vld [vmem:[%s6144_s7 + $0xaf0] sm:$0xff] }
  0x87   : > { %932 = vst [vmem:[%s6149_s8 + $0x380] sm:$0xff] %v931_v48  ;;  %v1059_v48 = vld [vmem:[%s6144_s7 + $0xb00] sm:$0xff] }
  0x88   : > { %934 = vst [vmem:[%s6149_s8 + $0x388] sm:$0xff] %v933_v49  ;;  %v1061_v49 = vld [vmem:[%s6144_s7 + $0xb10] sm:$0xff] }
  0x89   : > { %936 = vst [vmem:[%s6149_s8 + $0x390] sm:$0xff] %v935_v50  ;;  %v1063_v50 = vld [vmem:[%s6144_s7 + $0xb20] sm:$0xff] }
  0x8a   : > { %938 = vst [vmem:[%s6149_s8 + $0x398] sm:$0xff] %v937_v51  ;;  %v1065_v51 = vld [vmem:[%s6144_s7 + $0xb30] sm:$0xff] }
  0x8b   : > { %940 = vst [vmem:[%s6149_s8 + $0x3a0] sm:$0xff] %v939_v52  ;;  %v1067_v52 = vld [vmem:[%s6144_s7 + $0xb40] sm:$0xff] }
  0x8c   : > { %942 = vst [vmem:[%s6149_s8 + $0x3a8] sm:$0xff] %v941_v53  ;;  %v1069_v53 = vld [vmem:[%s6144_s7 + $0xb50] sm:$0xff] }
  0x8d   : > { %944 = vst [vmem:[%s6149_s8 + $0x3b0] sm:$0xff] %v943_v54  ;;  %v1071_v54 = vld [vmem:[%s6144_s7 + $0xb60] sm:$0xff] }
  0x8e   : > { %946 = vst [vmem:[%s6149_s8 + $0x3b8] sm:$0xff] %v945_v55  ;;  %v1073_v55 = vld [vmem:[%s6144_s7 + $0xb70] sm:$0xff] }
  0x8f   : > { %948 = vst [vmem:[%s6149_s8 + $0x3c0] sm:$0xff] %v947_v56  ;;  %v1075_v56 = vld [vmem:[%s6144_s7 + $0xb80] sm:$0xff] }
  0x90   : > { %950 = vst [vmem:[%s6149_s8 + $0x3c8] sm:$0xff] %v949_v57  ;;  %v1077_v57 = vld [vmem:[%s6144_s7 + $0xb90] sm:$0xff] }
  0x91   : > { %952 = vst [vmem:[%s6149_s8 + $0x3d0] sm:$0xff] %v951_v58  ;;  %v1079_v58 = vld [vmem:[%s6144_s7 + $0xba0] sm:$0xff] }
  0x92   : > { %954 = vst [vmem:[%s6149_s8 + $0x3d8] sm:$0xff] %v953_v59  ;;  %v1081_v59 = vld [vmem:[%s6144_s7 + $0xbb0] sm:$0xff] }
  0x93   : > { %956 = vst [vmem:[%s6149_s8 + $0x3e0] sm:$0xff] %v955_v60  ;;  %v1083_v60 = vld [vmem:[%s6144_s7 + $0xbc0] sm:$0xff] }
  0x94   : > { %958 = vst [vmem:[%s6149_s8 + $0x3e8] sm:$0xff] %v957_v61  ;;  %v1085_v61 = vld [vmem:[%s6144_s7 + $0xbd0] sm:$0xff] }
  0x95   : > { %960 = vst [vmem:[%s6149_s8 + $0x3f0] sm:$0xff] %v959_v62  ;;  %v1087_v62 = vld [vmem:[%s6144_s7 + $0xbe0] sm:$0xff] }
  0x96   : > { %962 = vst [vmem:[%s6149_s8 + $0x3f8] sm:$0xff] %v961_v63  ;;  %v1089_v63 = vld [vmem:[%s6144_s7 + $0xbf0] sm:$0xff] }
  0x97   : > { %964 = vst [vmem:[%s6149_s8 + $0x400] sm:$0xff] %v963_v0  ;;  %v1091_v0 = vld [vmem:[%s6144_s7 + $0xc00] sm:$0xff] }
  0x98   : > { %966 = vst [vmem:[%s6149_s8 + $0x408] sm:$0xff] %v965_v1  ;;  %v1093_v1 = vld [vmem:[%s6144_s7 + $0xc10] sm:$0xff] }
  0x99   : > { %968 = vst [vmem:[%s6149_s8 + $0x410] sm:$0xff] %v967_v2  ;;  %v1095_v2 = vld [vmem:[%s6144_s7 + $0xc20] sm:$0xff] }
  0x9a   : > { %970 = vst [vmem:[%s6149_s8 + $0x418] sm:$0xff] %v969_v3  ;;  %v1097_v3 = vld [vmem:[%s6144_s7 + $0xc30] sm:$0xff] }
  0x9b   : > { %972 = vst [vmem:[%s6149_s8 + $0x420] sm:$0xff] %v971_v4  ;;  %v1099_v4 = vld [vmem:[%s6144_s7 + $0xc40] sm:$0xff] }
  0x9c   : > { %974 = vst [vmem:[%s6149_s8 + $0x428] sm:$0xff] %v973_v5  ;;  %v1101_v5 = vld [vmem:[%s6144_s7 + $0xc50] sm:$0xff] }
  0x9d   : > { %976 = vst [vmem:[%s6149_s8 + $0x430] sm:$0xff] %v975_v6  ;;  %v1103_v6 = vld [vmem:[%s6144_s7 + $0xc60] sm:$0xff] }
  0x9e   : > { %978 = vst [vmem:[%s6149_s8 + $0x438] sm:$0xff] %v977_v7  ;;  %v1105_v7 = vld [vmem:[%s6144_s7 + $0xc70] sm:$0xff] }
  0x9f   : > { %980 = vst [vmem:[%s6149_s8 + $0x440] sm:$0xff] %v979_v8  ;;  %v1107_v8 = vld [vmem:[%s6144_s7 + $0xc80] sm:$0xff] }
  0xa0   : > { %982 = vst [vmem:[%s6149_s8 + $0x448] sm:$0xff] %v981_v9  ;;  %v1109_v9 = vld [vmem:[%s6144_s7 + $0xc90] sm:$0xff] }
  0xa1   : > { %984 = vst [vmem:[%s6149_s8 + $0x450] sm:$0xff] %v983_v10  ;;  %v1111_v10 = vld [vmem:[%s6144_s7 + $0xca0] sm:$0xff] }
  0xa2   : > { %986 = vst [vmem:[%s6149_s8 + $0x458] sm:$0xff] %v985_v11  ;;  %v1113_v11 = vld [vmem:[%s6144_s7 + $0xcb0] sm:$0xff] }
  0xa3   : > { %988 = vst [vmem:[%s6149_s8 + $0x460] sm:$0xff] %v987_v12  ;;  %v1115_v12 = vld [vmem:[%s6144_s7 + $0xcc0] sm:$0xff] }
  0xa4   : > { %990 = vst [vmem:[%s6149_s8 + $0x468] sm:$0xff] %v989_v13  ;;  %v1117_v13 = vld [vmem:[%s6144_s7 + $0xcd0] sm:$0xff] }
  0xa5   : > { %992 = vst [vmem:[%s6149_s8 + $0x470] sm:$0xff] %v991_v14  ;;  %v1119_v14 = vld [vmem:[%s6144_s7 + $0xce0] sm:$0xff] }
  0xa6   : > { %994 = vst [vmem:[%s6149_s8 + $0x478] sm:$0xff] %v993_v15  ;;  %v1121_v15 = vld [vmem:[%s6144_s7 + $0xcf0] sm:$0xff] }
  0xa7   : > { %996 = vst [vmem:[%s6149_s8 + $0x480] sm:$0xff] %v995_v16  ;;  %v1123_v16 = vld [vmem:[%s6144_s7 + $0xd00] sm:$0xff] }
  0xa8   : > { %998 = vst [vmem:[%s6149_s8 + $0x488] sm:$0xff] %v997_v17  ;;  %v1125_v17 = vld [vmem:[%s6144_s7 + $0xd10] sm:$0xff] }
  0xa9   : > { %1000 = vst [vmem:[%s6149_s8 + $0x490] sm:$0xff] %v999_v18  ;;  %v1127_v18 = vld [vmem:[%s6144_s7 + $0xd20] sm:$0xff] }
  0xaa   : > { %1002 = vst [vmem:[%s6149_s8 + $0x498] sm:$0xff] %v1001_v19  ;;  %v1129_v19 = vld [vmem:[%s6144_s7 + $0xd30] sm:$0xff] }
  0xab   : > { %1004 = vst [vmem:[%s6149_s8 + $0x4a0] sm:$0xff] %v1003_v20  ;;  %v1131_v20 = vld [vmem:[%s6144_s7 + $0xd40] sm:$0xff] }
  0xac   : > { %1006 = vst [vmem:[%s6149_s8 + $0x4a8] sm:$0xff] %v1005_v21  ;;  %v1133_v21 = vld [vmem:[%s6144_s7 + $0xd50] sm:$0xff] }
  0xad   : > { %1008 = vst [vmem:[%s6149_s8 + $0x4b0] sm:$0xff] %v1007_v22  ;;  %v1135_v22 = vld [vmem:[%s6144_s7 + $0xd60] sm:$0xff] }
  0xae   : > { %1010 = vst [vmem:[%s6149_s8 + $0x4b8] sm:$0xff] %v1009_v23  ;;  %v1137_v23 = vld [vmem:[%s6144_s7 + $0xd70] sm:$0xff] }
  0xaf   : > { %1012 = vst [vmem:[%s6149_s8 + $0x4c0] sm:$0xff] %v1011_v24  ;;  %v1139_v24 = vld [vmem:[%s6144_s7 + $0xd80] sm:$0xff] }
  0xb0   : > { %1014 = vst [vmem:[%s6149_s8 + $0x4c8] sm:$0xff] %v1013_v25  ;;  %v1141_v25 = vld [vmem:[%s6144_s7 + $0xd90] sm:$0xff] }
  0xb1   : > { %1016 = vst [vmem:[%s6149_s8 + $0x4d0] sm:$0xff] %v1015_v26  ;;  %v1143_v26 = vld [vmem:[%s6144_s7 + $0xda0] sm:$0xff] }
  0xb2   : > { %1018 = vst [vmem:[%s6149_s8 + $0x4d8] sm:$0xff] %v1017_v27  ;;  %v1145_v27 = vld [vmem:[%s6144_s7 + $0xdb0] sm:$0xff] }
  0xb3   : > { %1020 = vst [vmem:[%s6149_s8 + $0x4e0] sm:$0xff] %v1019_v28  ;;  %v1147_v28 = vld [vmem:[%s6144_s7 + $0xdc0] sm:$0xff] }
  0xb4   : > { %1022 = vst [vmem:[%s6149_s8 + $0x4e8] sm:$0xff] %v1021_v29  ;;  %v1149_v29 = vld [vmem:[%s6144_s7 + $0xdd0] sm:$0xff] }
  0xb5   : > { %1024 = vst [vmem:[%s6149_s8 + $0x4f0] sm:$0xff] %v1023_v30  ;;  %v1151_v30 = vld [vmem:[%s6144_s7 + $0xde0] sm:$0xff] }
  0xb6   : > { %1026 = vst [vmem:[%s6149_s8 + $0x4f8] sm:$0xff] %v1025_v31  ;;  %v1153_v31 = vld [vmem:[%s6144_s7 + $0xdf0] sm:$0xff] }
  0xb7   : > { %1028 = vst [vmem:[%s6149_s8 + $0x500] sm:$0xff] %v1027_v32  ;;  %v1155_v32 = vld [vmem:[%s6144_s7 + $0xe00] sm:$0xff] }
  0xb8   : > { %1030 = vst [vmem:[%s6149_s8 + $0x508] sm:$0xff] %v1029_v33  ;;  %v1157_v33 = vld [vmem:[%s6144_s7 + $0xe10] sm:$0xff] }
  0xb9   : > { %1032 = vst [vmem:[%s6149_s8 + $0x510] sm:$0xff] %v1031_v34  ;;  %v1159_v34 = vld [vmem:[%s6144_s7 + $0xe20] sm:$0xff] }
  0xba   : > { %1034 = vst [vmem:[%s6149_s8 + $0x518] sm:$0xff] %v1033_v35  ;;  %v1161_v35 = vld [vmem:[%s6144_s7 + $0xe30] sm:$0xff] }
  0xbb   : > { %1036 = vst [vmem:[%s6149_s8 + $0x520] sm:$0xff] %v1035_v36  ;;  %v1163_v36 = vld [vmem:[%s6144_s7 + $0xe40] sm:$0xff] }
  0xbc   : > { %1038 = vst [vmem:[%s6149_s8 + $0x528] sm:$0xff] %v1037_v37  ;;  %v1165_v37 = vld [vmem:[%s6144_s7 + $0xe50] sm:$0xff] }
  0xbd   : > { %1040 = vst [vmem:[%s6149_s8 + $0x530] sm:$0xff] %v1039_v38  ;;  %v1167_v38 = vld [vmem:[%s6144_s7 + $0xe60] sm:$0xff] }
  0xbe   : > { %1042 = vst [vmem:[%s6149_s8 + $0x538] sm:$0xff] %v1041_v39  ;;  %v1169_v39 = vld [vmem:[%s6144_s7 + $0xe70] sm:$0xff] }
  0xbf   : > { %1044 = vst [vmem:[%s6149_s8 + $0x540] sm:$0xff] %v1043_v40  ;;  %v1171_v40 = vld [vmem:[%s6144_s7 + $0xe80] sm:$0xff] }
  0xc0   : > { %1046 = vst [vmem:[%s6149_s8 + $0x548] sm:$0xff] %v1045_v41  ;;  %v1173_v41 = vld [vmem:[%s6144_s7 + $0xe90] sm:$0xff] }
  0xc1   : > { %1048 = vst [vmem:[%s6149_s8 + $0x550] sm:$0xff] %v1047_v42  ;;  %v1175_v42 = vld [vmem:[%s6144_s7 + $0xea0] sm:$0xff] }
  0xc2   : > { %1050 = vst [vmem:[%s6149_s8 + $0x558] sm:$0xff] %v1049_v43  ;;  %v1177_v43 = vld [vmem:[%s6144_s7 + $0xeb0] sm:$0xff] }
  0xc3   : > { %1052 = vst [vmem:[%s6149_s8 + $0x560] sm:$0xff] %v1051_v44  ;;  %v1179_v44 = vld [vmem:[%s6144_s7 + $0xec0] sm:$0xff] }
  0xc4   : > { %1054 = vst [vmem:[%s6149_s8 + $0x568] sm:$0xff] %v1053_v45  ;;  %v1181_v45 = vld [vmem:[%s6144_s7 + $0xed0] sm:$0xff] }
  0xc5   : > { %1056 = vst [vmem:[%s6149_s8 + $0x570] sm:$0xff] %v1055_v46  ;;  %v1183_v46 = vld [vmem:[%s6144_s7 + $0xee0] sm:$0xff] }
  0xc6   : > { %1058 = vst [vmem:[%s6149_s8 + $0x578] sm:$0xff] %v1057_v47  ;;  %v1185_v47 = vld [vmem:[%s6144_s7 + $0xef0] sm:$0xff] }
  0xc7   : > { %1060 = vst [vmem:[%s6149_s8 + $0x580] sm:$0xff] %v1059_v48  ;;  %v1187_v48 = vld [vmem:[%s6144_s7 + $0xf00] sm:$0xff] }
  0xc8   : > { %1062 = vst [vmem:[%s6149_s8 + $0x588] sm:$0xff] %v1061_v49  ;;  %v1189_v49 = vld [vmem:[%s6144_s7 + $0xf10] sm:$0xff] }
  0xc9   : > { %1064 = vst [vmem:[%s6149_s8 + $0x590] sm:$0xff] %v1063_v50  ;;  %v1191_v50 = vld [vmem:[%s6144_s7 + $0xf20] sm:$0xff] }
  0xca   : > { %1066 = vst [vmem:[%s6149_s8 + $0x598] sm:$0xff] %v1065_v51  ;;  %v1193_v51 = vld [vmem:[%s6144_s7 + $0xf30] sm:$0xff] }
  0xcb   : > { %1068 = vst [vmem:[%s6149_s8 + $0x5a0] sm:$0xff] %v1067_v52  ;;  %v1195_v52 = vld [vmem:[%s6144_s7 + $0xf40] sm:$0xff] }
  0xcc   : > { %1070 = vst [vmem:[%s6149_s8 + $0x5a8] sm:$0xff] %v1069_v53  ;;  %v1197_v53 = vld [vmem:[%s6144_s7 + $0xf50] sm:$0xff] }
  0xcd   : > { %1072 = vst [vmem:[%s6149_s8 + $0x5b0] sm:$0xff] %v1071_v54  ;;  %v1199_v54 = vld [vmem:[%s6144_s7 + $0xf60] sm:$0xff] }
  0xce   : > { %1074 = vst [vmem:[%s6149_s8 + $0x5b8] sm:$0xff] %v1073_v55  ;;  %v1201_v55 = vld [vmem:[%s6144_s7 + $0xf70] sm:$0xff] }
  0xcf   : > { %1076 = vst [vmem:[%s6149_s8 + $0x5c0] sm:$0xff] %v1075_v56  ;;  %v1203_v56 = vld [vmem:[%s6144_s7 + $0xf80] sm:$0xff] }
  0xd0   : > { %1078 = vst [vmem:[%s6149_s8 + $0x5c8] sm:$0xff] %v1077_v57  ;;  %v1205_v57 = vld [vmem:[%s6144_s7 + $0xf90] sm:$0xff] }
  0xd1   : > { %1080 = vst [vmem:[%s6149_s8 + $0x5d0] sm:$0xff] %v1079_v58  ;;  %v1207_v58 = vld [vmem:[%s6144_s7 + $0xfa0] sm:$0xff] }
  0xd2   : > { %1082 = vst [vmem:[%s6149_s8 + $0x5d8] sm:$0xff] %v1081_v59  ;;  %v1209_v59 = vld [vmem:[%s6144_s7 + $0xfb0] sm:$0xff] }
  0xd3   : > { %1084 = vst [vmem:[%s6149_s8 + $0x5e0] sm:$0xff] %v1083_v60  ;;  %v1211_v60 = vld [vmem:[%s6144_s7 + $0xfc0] sm:$0xff] }
  0xd4   : > { %1086 = vst [vmem:[%s6149_s8 + $0x5e8] sm:$0xff] %v1085_v61  ;;  %v1213_v61 = vld [vmem:[%s6144_s7 + $0xfd0] sm:$0xff] }
  0xd5   : > { %1088 = vst [vmem:[%s6149_s8 + $0x5f0] sm:$0xff] %v1087_v62  ;;  %v1215_v62 = vld [vmem:[%s6144_s7 + $0xfe0] sm:$0xff] }
  0xd6   : > { %1090 = vst [vmem:[%s6149_s8 + $0x5f8] sm:$0xff] %v1089_v63  ;;  %v1217_v63 = vld [vmem:[%s6144_s7 + $0xff0] sm:$0xff] }
  0xd7   : > { %1092 = vst [vmem:[%s6149_s8 + $0x600] sm:$0xff] %v1091_v0 }
  0xd8   : > { %1094 = vst [vmem:[%s6149_s8 + $0x608] sm:$0xff] %v1093_v1 }
  0xd9   : > { %1096 = vst [vmem:[%s6149_s8 + $0x610] sm:$0xff] %v1095_v2 }
  0xda   : > { %1098 = vst [vmem:[%s6149_s8 + $0x618] sm:$0xff] %v1097_v3 }
  0xdb   : > { %1100 = vst [vmem:[%s6149_s8 + $0x620] sm:$0xff] %v1099_v4 }
  0xdc   : > { %1102 = vst [vmem:[%s6149_s8 + $0x628] sm:$0xff] %v1101_v5 }
  0xdd   : > { %1104 = vst [vmem:[%s6149_s8 + $0x630] sm:$0xff] %v1103_v6 }
  0xde   : > { %1106 = vst [vmem:[%s6149_s8 + $0x638] sm:$0xff] %v1105_v7 }
  0xdf   : > { %1108 = vst [vmem:[%s6149_s8 + $0x640] sm:$0xff] %v1107_v8 }
  0xe0   : > { %1110 = vst [vmem:[%s6149_s8 + $0x648] sm:$0xff] %v1109_v9 }
  0xe1   : > { %1112 = vst [vmem:[%s6149_s8 + $0x650] sm:$0xff] %v1111_v10 }
  0xe2   : > { %1114 = vst [vmem:[%s6149_s8 + $0x658] sm:$0xff] %v1113_v11 }
  0xe3   : > { %1116 = vst [vmem:[%s6149_s8 + $0x660] sm:$0xff] %v1115_v12 }
  0xe4   : > { %1118 = vst [vmem:[%s6149_s8 + $0x668] sm:$0xff] %v1117_v13 }
  0xe5   : > { %1120 = vst [vmem:[%s6149_s8 + $0x670] sm:$0xff] %v1119_v14 }
  0xe6   : > { %1122 = vst [vmem:[%s6149_s8 + $0x678] sm:$0xff] %v1121_v15 }
  0xe7   : > { %1124 = vst [vmem:[%s6149_s8 + $0x680] sm:$0xff] %v1123_v16 }
  0xe8   : > { %1126 = vst [vmem:[%s6149_s8 + $0x688] sm:$0xff] %v1125_v17 }
  0xe9   : > { %1128 = vst [vmem:[%s6149_s8 + $0x690] sm:$0xff] %v1127_v18 }
  0xea   : > { %1130 = vst [vmem:[%s6149_s8 + $0x698] sm:$0xff] %v1129_v19 }
  0xeb   : > { %1132 = vst [vmem:[%s6149_s8 + $0x6a0] sm:$0xff] %v1131_v20 }
  0xec   : > { %1134 = vst [vmem:[%s6149_s8 + $0x6a8] sm:$0xff] %v1133_v21 }
  0xed   : > { %1136 = vst [vmem:[%s6149_s8 + $0x6b0] sm:$0xff] %v1135_v22 }
  0xee   : > { %1138 = vst [vmem:[%s6149_s8 + $0x6b8] sm:$0xff] %v1137_v23 }
  0xef   : > { %1140 = vst [vmem:[%s6149_s8 + $0x6c0] sm:$0xff] %v1139_v24 }
  0xf0   : > { %1142 = vst [vmem:[%s6149_s8 + $0x6c8] sm:$0xff] %v1141_v25 }
  0xf1   : > { %1144 = vst [vmem:[%s6149_s8 + $0x6d0] sm:$0xff] %v1143_v26 }
  0xf2   : > { %1146 = vst [vmem:[%s6149_s8 + $0x6d8] sm:$0xff] %v1145_v27 }
  0xf3   : > { %1148 = vst [vmem:[%s6149_s8 + $0x6e0] sm:$0xff] %v1147_v28 }
  0xf4   : > { %1150 = vst [vmem:[%s6149_s8 + $0x6e8] sm:$0xff] %v1149_v29 }
  0xf5   : > { %1152 = vst [vmem:[%s6149_s8 + $0x6f0] sm:$0xff] %v1151_v30 }
  0xf6   : > { %1154 = vst [vmem:[%s6149_s8 + $0x6f8] sm:$0xff] %v1153_v31 }
  0xf7   : > { %1156 = vst [vmem:[%s6149_s8 + $0x700] sm:$0xff] %v1155_v32 }
  0xf8   : > { %1158 = vst [vmem:[%s6149_s8 + $0x708] sm:$0xff] %v1157_v33 }
  0xf9   : > { %1160 = vst [vmem:[%s6149_s8 + $0x710] sm:$0xff] %v1159_v34 }
  0xfa   : > { %1162 = vst [vmem:[%s6149_s8 + $0x718] sm:$0xff] %v1161_v35 }
  0xfb   : > { %1164 = vst [vmem:[%s6149_s8 + $0x720] sm:$0xff] %v1163_v36 }
  0xfc   : > { %1166 = vst [vmem:[%s6149_s8 + $0x728] sm:$0xff] %v1165_v37 }
  0xfd   : > { %1168 = vst [vmem:[%s6149_s8 + $0x730] sm:$0xff] %v1167_v38 }
  0xfe   : > { %1170 = vst [vmem:[%s6149_s8 + $0x738] sm:$0xff] %v1169_v39 }
  0xff   : > { %1172 = vst [vmem:[%s6149_s8 + $0x740] sm:$0xff] %v1171_v40 }
 0x100   : > { %1174 = vst [vmem:[%s6149_s8 + $0x748] sm:$0xff] %v1173_v41 }
 0x101   : > { %1176 = vst [vmem:[%s6149_s8 + $0x750] sm:$0xff] %v1175_v42 }
 0x102   : > { %1178 = vst [vmem:[%s6149_s8 + $0x758] sm:$0xff] %v1177_v43 }
 0x103   : > { %1180 = vst [vmem:[%s6149_s8 + $0x760] sm:$0xff] %v1179_v44 }
 0x104   : > { %1182 = vst [vmem:[%s6149_s8 + $0x768] sm:$0xff] %v1181_v45 }
 0x105   : > { %1184 = vst [vmem:[%s6149_s8 + $0x770] sm:$0xff] %v1183_v46 }
 0x106   : > { %1186 = vst [vmem:[%s6149_s8 + $0x778] sm:$0xff] %v1185_v47 }
 0x107   : > { %1188 = vst [vmem:[%s6149_s8 + $0x780] sm:$0xff] %v1187_v48 }
 0x108   : > { %1190 = vst [vmem:[%s6149_s8 + $0x788] sm:$0xff] %v1189_v49 }
 0x109   : > { %1192 = vst [vmem:[%s6149_s8 + $0x790] sm:$0xff] %v1191_v50 }
 0x10a   : > { %1194 = vst [vmem:[%s6149_s8 + $0x798] sm:$0xff] %v1193_v51 }
 0x10b   : > { %1196 = vst [vmem:[%s6149_s8 + $0x7a0] sm:$0xff] %v1195_v52 }
 0x10c   : > { %1198 = vst [vmem:[%s6149_s8 + $0x7a8] sm:$0xff] %v1197_v53 }
 0x10d   : > { %1200 = vst [vmem:[%s6149_s8 + $0x7b0] sm:$0xff] %v1199_v54 }
 0x10e   : > { %1202 = vst [vmem:[%s6149_s8 + $0x7b8] sm:$0xff] %v1201_v55 }
 0x10f   : > { %1204 = vst [vmem:[%s6149_s8 + $0x7c0] sm:$0xff] %v1203_v56 }
 0x110   : > { %1206 = vst [vmem:[%s6149_s8 + $0x7c8] sm:$0xff] %v1205_v57 }
 0x111   : > { %1208 = vst [vmem:[%s6149_s8 + $0x7d0] sm:$0xff] %v1207_v58 }
 0x112   : > { %1210 = vst [vmem:[%s6149_s8 + $0x7d8] sm:$0xff] %v1209_v59 }
 0x113   : > { %1212 = vst [vmem:[%s6149_s8 + $0x7e0] sm:$0xff] %v1211_v60 }
 0x114   : > { %1214 = vst [vmem:[%s6149_s8 + $0x7e8] sm:$0xff] %v1213_v61 }
 0x115   : > { %1216 = vst [vmem:[%s6149_s8 + $0x7f0] sm:$0xff] %v1215_v62 }
 0x116   : > { %1218 = vst [vmem:[%s6149_s8 + $0x7f8] sm:$0xff] %v1217_v63 }
 0x117 PF: > { %p4650_p7 = scmp.ge.s32.totalorder %s6061_s18, 1  ;;  %p2290_p8 = scmp.lt.s32.totalorder %s6061_s18, 5 }
 0x119   : > { %p2291_p9 = pnand %p4650_p7, %p2290_p8 }
 0x11a   : > { %s2297_s9 = sand.u32 (!%p2291_p9), 1, %s6037_s12   ;;  %s4652_s10 = sshll.u32 (!%p2291_p9), %s6045_s14, 4 }
 0x11b   : > { %2294 = sbr.rel (%p2291_p9) target bundleno = 825 (0x339), region = 80  ;;  %s4651_s11 = sshll.u32 (!%p2291_p9), %s2297_s9, 11 }
 0x11c   : > { %p2330_p10 = scmp.lt.s32.totalorder (!%p2291_p9), %s4652_s10, 31  ;;  %s4654_s21 = sshll.u32 (!%p2291_p9), %s6049_s15, 1 }
 0x11d   : > { %p2338_p11 = scmp.lt.s32.totalorder (!%p2291_p9), %s4654_s21, 3  ;;  %s6682_s5 = scalar_lea.vmem (!%p2291_p9), [#allocation3], %s4651_s11 }
 0x11e   : > { %p4657_p12 = scmp.ne.s32.totalorder (!%p2291_p9), %s6045_s14, 0 }
 0x120   : > { %s7396_s10 = smov (!%p2330_p10, %s4652_s10), 31  ;;  %s7398_s21 = smov (!%p2338_p11, %s4654_s21), 3 }
 0x121   : > { %s4653_s22 = sshll.u32 %s7396_s10, 2  ;;  %s2340_s12 = scalar_lea.vmem %s7381_s2, %s7398_s21 }
 0x122   : > { %s6668_s26 = scalar_lea.vmem %s7379_s0, %s4653_s22  ;;  %s4656_s29 = sshll.u32 %s7398_s21, 3 }
 0x123   : > { %s6680_s15 = scalar_lea.vmem %s7382_s3, %s4656_s29  ;;  %2351 = sbr.rel (%p4657_p12) target bundleno = 299 (0x12b), region = 88 }
 0x128   : > { %v6063_v0 = vmov 0.0  }
 0x129   : > { %2352 = vst [vmem:[#allocation2] sm:$0xff] %v6063_v0 }
 0x12a   : > { %2353 = vst [vmem:[#allocation2 + $0x8] sm:$0xff] %v6063_v0 }
 0x12b PF: > { %v4716_v1 = vld [vmem:[%s6682_s5 + $0x70] sm:$0xf]  ;;  %v5701_v2 = vld [vmem:[%s6682_s5 + $0x74] sm:$0xf0]  ;;  %v4708_v12 = vld [vmem:[%s6682_s5 + $0x60] sm:$0xf] }
 0x12c   : > { %v4780_v3 = vld [vmem:[%s6682_s5 + $0xf0] sm:$0xf]  ;;  %v4717_v4 = vor.u32 %v5701_v2, %v4716_v1  ;;  %v5717_v5 = vld [vmem:[%s6682_s5 + $0xf4] sm:$0xf0]  ;;  %v5699_v14 = vld [vmem:[%s6682_s5 + $0x64] sm:$0xf0] }
 0x12d   : > { %v4844_v6 = vld [vmem:[%s6682_s5 + $0x170] sm:$0xf]  ;;  %v5733_v7 = vld [vmem:[%s6682_s5 + $0x174] sm:$0xf0]  ;;  %v4781_v8 = vor.u32 %v5717_v5, %v4780_v3  ;;  %v4772_v15 = vld [vmem:[%s6682_s5 + $0xe0] sm:$0xf]  ;;  %v4709_v17 = vor.u32 %v5699_v14, %v4708_v12 }
 0x12e   : > { %v4845_v9 = vor.u32 %v5733_v7, %v4844_v6  ;;  %v4908_v10 = vld [vmem:[%s6682_s5 + $0x1f0] sm:$0xf]  ;;  %v5749_v11 = vld [vmem:[%s6682_s5 + $0x1f4] sm:$0xf0]  ;;  %3956 = vmatpush.bf16.msra.mxu0 %v4717_v4  ;;  %v5715_v16 = vld [vmem:[%s6682_s5 + $0xe4] sm:$0xf0] }
 0x12f   : > { %v4909_v13 = vor.u32 %v5749_v11, %v4908_v10  ;;  %3969 = vmatpush.bf16.msra.mxu1 %v4781_v8  ;;  %v4773_v18 = vor.u32 %v5715_v16, %v4772_v15  ;;  %v4836_v19 = vld [vmem:[%s6682_s5 + $0x160] sm:$0xf]  ;;  %v5731_v20 = vld [vmem:[%s6682_s5 + $0x164] sm:$0xf0]  ;;  %v4700_v24 = vld [vmem:[%s6682_s5 + $0x50] sm:$0xf] }
 0x130   : > { %3982 = vmatpush.bf16.msra.mxu2 %v4845_v9  ;;  %v4900_v21 = vld [vmem:[%s6682_s5 + $0x1e0] sm:$0xf]  ;;  %v4837_v22 = vor.u32 %v5731_v20, %v4836_v19  ;;  %v5747_v23 = vld [vmem:[%s6682_s5 + $0x1e4] sm:$0xf0]  ;;  %v5697_v25 = vld [vmem:[%s6682_s5 + $0x54] sm:$0xf0] }
 0x131   : > { %3995 = vmatpush.bf16.msra.mxu3 %v4909_v13  ;;  %v4901_v26 = vor.u32 %v5747_v23, %v4900_v21  ;;  %v4764_v27 = vld [vmem:[%s6682_s5 + $0xd0] sm:$0xf]  ;;  %v5713_v28 = vld [vmem:[%s6682_s5 + $0xd4] sm:$0xf0]  ;;  %v4701_v30 = vor.u32 %v5697_v25, %v4700_v24  ;;  %v4692_v36 = vld [vmem:[%s6682_s5 + $0x40] sm:$0xf] }
 0x132   : > { %v4828_v29 = vld [vmem:[%s6682_s5 + $0x150] sm:$0xf]  ;;  %3957 = vmatpush.bf16.msra.mxu0 %v4709_v17  ;;  %v5729_v31 = vld [vmem:[%s6682_s5 + $0x154] sm:$0xf0]  ;;  %v4765_v34 = vor.u32 %v5713_v28, %v4764_v27  ;;  %v5695_v37 = vld [vmem:[%s6682_s5 + $0x44] sm:$0xf0] }
 0x133   : > { %v4892_v32 = vld [vmem:[%s6682_s5 + $0x1d0] sm:$0xf]  ;;  %v5745_v33 = vld [vmem:[%s6682_s5 + $0x1d4] sm:$0xf0]  ;;  %3970 = vmatpush.bf16.msra.mxu1 %v4773_v18  ;;  %v4829_v35 = vor.u32 %v5729_v31, %v4828_v29  ;;  %v4756_v38 = vld [vmem:[%s6682_s5 + $0xc0] sm:$0xf]  ;;  %v4693_v45 = vor.u32 %v5695_v37, %v4692_v36 }
 0x134   : > { %3983 = vmatpush.bf16.msra.mxu2 %v4837_v22  ;;  %v4893_v39 = vor.u32 %v5745_v33, %v4892_v32  ;;  %v5711_v40 = vld [vmem:[%s6682_s5 + $0xc4] sm:$0xf0]  ;;  %v4820_v41 = vld [vmem:[%s6682_s5 + $0x140] sm:$0xf]  ;;  %v4684_v48 = vld [vmem:[%s6682_s5 + $0x30] sm:$0xf] }
 0x135   : > { %3996 = vmatpush.bf16.msra.mxu3 %v4901_v26  ;;  %v5727_v42 = vld [vmem:[%s6682_s5 + $0x144] sm:$0xf0]  ;;  %v4884_v43 = vld [vmem:[%s6682_s5 + $0x1c0] sm:$0xf]  ;;  %v4757_v46 = vor.u32 %v5711_v40, %v4756_v38  ;;  %v5693_v49 = vld [vmem:[%s6682_s5 + $0x34] sm:$0xf0] }
 0x136   : > { %v5743_v44 = vld [vmem:[%s6682_s5 + $0x1c4] sm:$0xf0]  ;;  %3958 = vmatpush.bf16.msra.mxu0 %v4701_v30  ;;  %v4821_v47 = vor.u32 %v5727_v42, %v4820_v41  ;;  %v4748_v50 = vld [vmem:[%s6682_s5 + $0xb0] sm:$0xf]  ;;  %v5709_v52 = vld [vmem:[%s6682_s5 + $0xb4] sm:$0xf0]  ;;  %v4685_v57 = vor.u32 %v5693_v49, %v4684_v48 }
 0x137   : > { %3971 = vmatpush.bf16.msra.mxu1 %v4765_v34  ;;  %v4885_v51 = vor.u32 %v5743_v44, %v4884_v43  ;;  %v4812_v53 = vld [vmem:[%s6682_s5 + $0x130] sm:$0xf]  ;;  %v5725_v54 = vld [vmem:[%s6682_s5 + $0x134] sm:$0xf0]  ;;  %v4749_v58 = vor.u32 %v5709_v52, %v4748_v50  ;;  %v4676_v60 = vld [vmem:[%s6682_s5 + $0x20] sm:$0xf] }
 0x138   : > { %3984 = vmatpush.bf16.msra.mxu2 %v4829_v35  ;;  %v4876_v55 = vld [vmem:[%s6682_s5 + $0x1b0] sm:$0xf]  ;;  %v5741_v56 = vld [vmem:[%s6682_s5 + $0x1b4] sm:$0xf0]  ;;  %v4813_v59 = vor.u32 %v5725_v54, %v4812_v53  ;;  %v5691_v61 = vld [vmem:[%s6682_s5 + $0x24] sm:$0xf0] }
 0x139   : > { %3997 = vmatpush.bf16.msra.mxu3 %v4893_v39  ;;  %v4740_v62 = vld [vmem:[%s6682_s5 + $0xa0] sm:$0xf]  ;;  %v4877_v63 = vor.u32 %v5741_v56, %v4876_v55  ;;  %v5707_v0 = vld [vmem:[%s6682_s5 + $0xa4] sm:$0xf0]  ;;  %v4677_v5 = vor.u32 %v5691_v61, %v4676_v60  ;;  %v4668_v8 = vld [vmem:[%s6682_s5 + $0x10] sm:$0xf] }
 0x13a   : > { %3959 = vmatpush.bf16.msra.mxu0 %v4693_v45  ;;  %v4804_v1 = vld [vmem:[%s6682_s5 + $0x120] sm:$0xf]  ;;  %v5723_v2 = vld [vmem:[%s6682_s5 + $0x124] sm:$0xf0]  ;;  %v4741_v6 = vor.u32 %v5707_v0, %v4740_v62  ;;  %v5689_v9 = vld [vmem:[%s6682_s5 + $0x14] sm:$0xf0] }
 0x13b   : > { %3972 = vmatpush.bf16.msra.mxu1 %v4757_v46  ;;  %v4868_v3 = vld [vmem:[%s6682_s5 + $0x1a0] sm:$0xf]  ;;  %v5739_v4 = vld [vmem:[%s6682_s5 + $0x1a4] sm:$0xf0]  ;;  %v4805_v7 = vor.u32 %v5723_v2, %v4804_v1  ;;  %v4732_v10 = vld [vmem:[%s6682_s5 + $0x90] sm:$0xf]  ;;  %v4669_v17 = vor.u32 %v5689_v9, %v4668_v8 }
 0x13c   : > { %3985 = vmatpush.bf16.msra.mxu2 %v4821_v47  ;;  %v4869_v11 = vor.u32 %v5739_v4, %v4868_v3  ;;  %v5705_v12 = vld [vmem:[%s6682_s5 + $0x94] sm:$0xf0]  ;;  %v4796_v13 = vld [vmem:[%s6682_s5 + $0x110] sm:$0xf]  ;;  %v4660_v18 = vld [vmem:[%s6682_s5] sm:$0xf] }
 0x13d   : > { %3998 = vmatpush.bf16.msra.mxu3 %v4885_v51  ;;  %v5721_v14 = vld [vmem:[%s6682_s5 + $0x114] sm:$0xf0]  ;;  %v4860_v15 = vld [vmem:[%s6682_s5 + $0x190] sm:$0xf]  ;;  %v5687_v19 = vld [vmem:[%s6682_s5 + $0x4] sm:$0xf0]  ;;  %v4733_v20 = vor.u32 %v5705_v12, %v4732_v10 }
 0x13e   : > { %3960 = vmatpush.bf16.msra.mxu0 %v4685_v57  ;;  %v5737_v16 = vld [vmem:[%s6682_s5 + $0x194] sm:$0xf0]  ;;  %v4797_v21 = vor.u32 %v5721_v14, %v4796_v13  ;;  %v4724_v22 = vld [vmem:[%s6682_s5 + $0x80] sm:$0xf]  ;;  %v5703_v23 = vld [vmem:[%s6682_s5 + $0x84] sm:$0xf0]  ;;  %v4661_v32 = vor.u32 %v5687_v19, %v4660_v18 }
 0x13f   : > { %3973 = vmatpush.bf16.msra.mxu1 %v4749_v58  ;;  %v4788_v24 = vld [vmem:[%s6682_s5 + $0x100] sm:$0xf]  ;;  %v4861_v25 = vor.u32 %v5737_v16, %v4860_v15  ;;  %v5719_v26 = vld [vmem:[%s6682_s5 + $0x104] sm:$0xf0]  ;;  %v4972_v29 = vld [vmem:[%s6682_s5 + $0x270] sm:$0xf]  ;;  %v4725_v36 = vor.u32 %v5703_v23, %v4724_v22 }
 0x140   : > { %3986 = vmatpush.bf16.msra.mxu2 %v4813_v59  ;;  %v4852_v27 = vld [vmem:[%s6682_s5 + $0x180] sm:$0xf]  ;;  %v5735_v28 = vld [vmem:[%s6682_s5 + $0x184] sm:$0xf0]  ;;  %v5765_v30 = vld [vmem:[%s6682_s5 + $0x274] sm:$0xf0]  ;;  %v4789_v37 = vor.u32 %v5719_v26, %v4788_v24 }
 0x141   : > { %3999 = vmatpush.bf16.msra.mxu3 %v4877_v63  ;;  %v5036_v31 = vld [vmem:[%s6682_s5 + $0x2f0] sm:$0xf]  ;;  %v5781_v33 = vld [vmem:[%s6682_s5 + $0x2f4] sm:$0xf0]  ;;  %v4853_v40 = vor.u32 %v5735_v28, %v4852_v27  ;;  %v4973_v41 = vor.u32 %v5765_v30, %v4972_v29  ;;  %v4964_v44 = vld [vmem:[%s6682_s5 + $0x260] sm:$0xf] }
 0x142   : > { %3961 = vmatpush.bf16.msra.mxu0 %v4677_v5  ;;  %v5100_v34 = vld [vmem:[%s6682_s5 + $0x370] sm:$0xf]  ;;  %v5797_v35 = vld [vmem:[%s6682_s5 + $0x374] sm:$0xf0]  ;;  %v5037_v42 = vor.u32 %v5781_v33, %v5036_v31  ;;  %v5763_v45 = vld [vmem:[%s6682_s5 + $0x264] sm:$0xf0] }
 0x143   : > { %3974 = vmatpush.bf16.msra.mxu1 %v4741_v6  ;;  %v5164_v38 = vld [vmem:[%s6682_s5 + $0x3f0] sm:$0xf]  ;;  %v5813_v39 = vld [vmem:[%s6682_s5 + $0x3f4] sm:$0xf0]  ;;  %v5101_v43 = vor.u32 %v5797_v35, %v5100_v34  ;;  %v5028_v46 = vld [vmem:[%s6682_s5 + $0x2e0] sm:$0xf]  ;;  %v4965_v53 = vor.u32 %v5763_v45, %v4964_v44 }
 0x144   : > { %3987 = vmatpush.bf16.msra.mxu2 %v4805_v7  ;;  %v5165_v47 = vor.u32 %v5813_v39, %v5164_v38  ;;  %v5779_v48 = vld [vmem:[%s6682_s5 + $0x2e4] sm:$0xf0]  ;;  %v5092_v49 = vld [vmem:[%s6682_s5 + $0x360] sm:$0xf]  ;;  %v4956_v54 = vld [vmem:[%s6682_s5 + $0x250] sm:$0xf] }
 0x145   : > { %4000 = vmatpush.bf16.msra.mxu3 %v4869_v11  ;;  %v5795_v50 = vld [vmem:[%s6682_s5 + $0x364] sm:$0xf0]  ;;  %v5156_v51 = vld [vmem:[%s6682_s5 + $0x3e0] sm:$0xf]  ;;  %v5029_v55 = vor.u32 %v5779_v48, %v5028_v46  ;;  %v5761_v57 = vld [vmem:[%s6682_s5 + $0x254] sm:$0xf0] }
 0x146   : > { %3962 = vmatpush.bf16.msra.mxu0 %v4669_v17  ;;  %v5811_v52 = vld [vmem:[%s6682_s5 + $0x3e4] sm:$0xf0]  ;;  %v5093_v56 = vor.u32 %v5795_v50, %v5092_v49  ;;  %v5020_v58 = vld [vmem:[%s6682_s5 + $0x2d0] sm:$0xf]  ;;  %v2357_v59 = vld [vmem:[%s6668_s26 + $0x8] sm:$0xff]  ;;  %v4957_v4 = vor.u32 %v5761_v57, %v4956_v54  ;;  %p5682_p13 = scmp.ne.s32.totalorder %s6045_s14, 1 }
 0x147   : > { %3975 = vmatpush.bf16.msra.mxu1 %v4733_v20  ;;  %v5157_v60 = vor.u32 %v5811_v52, %v5156_v51  ;;  %v5777_v61 = vld [vmem:[%s6682_s5 + $0x2d4] sm:$0xf0]  ;;  %v5084_v62 = vld [vmem:[%s6682_s5 + $0x350] sm:$0xf]  ;;  %v2630_v0 = vunpack.c.l.b16 %v2357_v59  ;;  %v2631_v1 = vunpack.c.h.b16 %v2357_v59  ;;  %v4948_v10 = vld [vmem:[%s6682_s5 + $0x240] sm:$0xf] }
 0x148   : > { %3988 = vmatpush.bf16.msra.mxu2 %v4797_v21  ;;  %v5793_v63 = vld [vmem:[%s6682_s5 + $0x354] sm:$0xf0]  ;;  %v5148_v2 = vld [vmem:[%s6682_s5 + $0x3d0] sm:$0xf]  ;;  %v5021_v8 = vor.u32 %v5777_v61, %v5020_v58  ;;  %v5759_v11 = vld [vmem:[%s6682_s5 + $0x244] sm:$0xf0] }
 0x149   : > { %4001 = vmatpush.bf16.msra.mxu3 %v4861_v25  ;;  %v5809_v3 = vld [vmem:[%s6682_s5 + $0x3d4] sm:$0xf0]  ;;  %v6774_v5 = vpack.c.b16 %v2630_v0, %v2630_v0  ;;  %v2356_v6 = vld [vmem:[%s6668_s26] sm:$0xff]  ;;  %v6777_v7 = vpack.c.b16 %v2631_v1, %v2631_v1  ;;  %v5085_v9 = vor.u32 %v5793_v63, %v5084_v62  ;;  %v5012_v12 = vld [vmem:[%s6682_s5 + $0x2c0] sm:$0xf]  ;;  %v4949_v23 = vor.u32 %v5759_v11, %v4948_v10 }
 0x14a   : > { %3963 = vmatpush.bf16.msra.mxu0 %v4661_v32  ;;  %v2628_v13 = vunpack.c.l.b16 %v2356_v6  ;;  %v2629_v14 = vunpack.c.h.b16 %v2356_v6  ;;  %v5149_v15 = vor.u32 %v5809_v3, %v5148_v2  ;;  %v5775_v16 = vld [vmem:[%s6682_s5 + $0x2c4] sm:$0xf0]  ;;  %v5076_v17 = vld [vmem:[%s6682_s5 + $0x340] sm:$0xf]  ;;  %v4940_v26 = vld [vmem:[%s6682_s5 + $0x230] sm:$0xf] }
 0x14b   : > { %3976 = vmatpush.bf16.msra.mxu1 %v4725_v36  ;;  %v5791_v18 = vld [vmem:[%s6682_s5 + $0x344] sm:$0xf0]  ;;  %v5140_v19 = vld [vmem:[%s6682_s5 + $0x3c0] sm:$0xf]  ;;  %v5013_v24 = vor.u32 %v5775_v16, %v5012_v12  ;;  %v5757_v27 = vld [vmem:[%s6682_s5 + $0x234] sm:$0xf0] }
 0x14c   : > { %3989 = vmatpush.bf16.msra.mxu2 %v4789_v37  ;;  %v5807_v20 = vld [vmem:[%s6682_s5 + $0x3c4] sm:$0xf0]  ;;  %v6788_v21 = vpack.c.b16 %v2628_v13, %v2628_v13  ;;  %v6791_v22 = vpack.c.b16 %v2629_v14, %v2629_v14  ;;  %v5077_v25 = vor.u32 %v5791_v18, %v5076_v17  ;;  %v5004_v28 = vld [vmem:[%s6682_s5 + $0x2b0] sm:$0xf]  ;;  %v5773_v30 = vld [vmem:[%s6682_s5 + $0x2b4] sm:$0xf0]  ;;  %v4941_v35 = vor.u32 %v5757_v27, %v4940_v26 }
 0x14d   : > { %4002 = vmatpush.bf16.msra.mxu3 %v4853_v40  ;;  %v5141_v29 = vor.u32 %v5807_v20, %v5140_v19  ;;  %v5068_v31 = vld [vmem:[%s6682_s5 + $0x330] sm:$0xf]  ;;  %v5789_v32 = vld [vmem:[%s6682_s5 + $0x334] sm:$0xf0]  ;;  %v5005_v36 = vor.u32 %v5773_v30, %v5004_v28  ;;  %v4932_v38 = vld [vmem:[%s6682_s5 + $0x220] sm:$0xf] }
 0x14e   : > { %4008 = vmatpush.bf16.msrb.mxu0 %v4973_v41  ;;  %v5132_v33 = vld [vmem:[%s6682_s5 + $0x3b0] sm:$0xf]  ;;  %v5805_v34 = vld [vmem:[%s6682_s5 + $0x3b4] sm:$0xf0]  ;;  %3977 = vmatmul.bf16.vlgmr.msra.gmra.mxu1 %v6791_v22  ;;  %v5069_v37 = vor.u32 %v5789_v32, %v5068_v31  ;;  %v5755_v39 = vld [vmem:[%s6682_s5 + $0x224] sm:$0xf0] }
 0x14f   : > { %4021 = vmatpush.bf16.msrb.mxu1 %v5037_v42  ;;  %3990 = vmatmul.bf16.vlgmr.msra.gmra.mxu2 %v6774_v5  ;;  %v4996_v40 = vld [vmem:[%s6682_s5 + $0x2a0] sm:$0xf]  ;;  %v5133_v41 = vor.u32 %v5805_v34, %v5132_v33  ;;  %v5771_v42 = vld [vmem:[%s6682_s5 + $0x2a4] sm:$0xf0]  ;;  %v4924_v50 = vld [vmem:[%s6682_s5 + $0x210] sm:$0xf] }
 0x150   : > { %4034 = vmatpush.bf16.msrb.mxu2 %v5101_v43  ;;  %4003 = vmatmul.bf16.vlgmr.msra.gmra.mxu3 %v6777_v7  ;;  %v5060_v43 = vld [vmem:[%s6682_s5 + $0x320] sm:$0xf]  ;;  %v5787_v44 = vld [vmem:[%s6682_s5 + $0x324] sm:$0xf0]  ;;  %v4997_v48 = vor.u32 %v5771_v42, %v4996_v40  ;;  %v5753_v51 = vld [vmem:[%s6682_s5 + $0x214] sm:$0xf0] }
 0x151   : > { %4047 = vmatpush.bf16.msrb.mxu3 %v5165_v47  ;;  %3964 = vmatmul.bf16.vlgmr.msra.gmra.mxu0 %v6788_v21  ;;  %v5124_v45 = vld [vmem:[%s6682_s5 + $0x3a0] sm:$0xf]  ;;  %v5803_v46 = vld [vmem:[%s6682_s5 + $0x3a4] sm:$0xf0]  ;;  %v4933_v47 = vor.u32 %v5755_v39, %v4932_v38  ;;  %v5061_v49 = vor.u32 %v5787_v44, %v5060_v43  ;;  %v4988_v52 = vld [vmem:[%s6682_s5 + $0x290] sm:$0xf] }
 0x152   : > { %4009 = vmatpush.bf16.msrb.mxu0 %v4965_v53  ;;  %v5125_v53 = vor.u32 %v5803_v46, %v5124_v45  ;;  %v5769_v54 = vld [vmem:[%s6682_s5 + $0x294] sm:$0xf0]  ;;  %v5116_v57 = vld [vmem:[%s6682_s5 + $0x390] sm:$0xf]  ;;  %v4916_v59 = vld [vmem:[%s6682_s5 + $0x200] sm:$0xf] }
 0x153   : > { %4022 = vmatpush.bf16.msrb.mxu1 %v5029_v55  ;;  %v5052_v55 = vld [vmem:[%s6682_s5 + $0x310] sm:$0xf]  ;;  %v5801_v58 = vld [vmem:[%s6682_s5 + $0x394] sm:$0xf0]  ;;  %v5751_v61 = vld [vmem:[%s6682_s5 + $0x204] sm:$0xf0]  ;;  %v4989_v0 = vor.u32 %v5769_v54, %v4988_v52 }
 0x154   : > { %4035 = vmatpush.bf16.msrb.mxu2 %v5093_v56  ;;  %v5785_v56 = vld [vmem:[%s6682_s5 + $0x314] sm:$0xf0]  ;;  %v4980_v62 = vld [vmem:[%s6682_s5 + $0x280] sm:$0xf]  ;;  %v5767_v63 = vld [vmem:[%s6682_s5 + $0x284] sm:$0xf0]  ;;  %v5117_v6 = vor.u32 %v5801_v58, %v5116_v57  ;;  %v4917_v14 = vor.u32 %v5751_v61, %v4916_v59 }
 0x155   : > { %4048 = vmatpush.bf16.msrb.mxu3 %v5157_v60  ;;  %v4925_v60 = vor.u32 %v5753_v51, %v4924_v50  ;;  %v5053_v1 = vor.u32 %v5785_v56, %v5052_v55  ;;  %v5044_v2 = vld [vmem:[%s6682_s5 + $0x300] sm:$0xf]  ;;  %v5783_v3 = vld [vmem:[%s6682_s5 + $0x304] sm:$0xf0]  ;;  %v5228_v11 = vld [vmem:[%s6682_s5 + $0x470] sm:$0xf]  ;;  %v4981_v19 = vor.u32 %v5767_v63, %v4980_v62 }
 0x156   : > { %4010 = vmatpush.bf16.msrb.mxu0 %v4957_v4  ;;  %v2359_v4 = vld [vmem:[%s6668_s26 + $0x18] sm:$0xff]  ;;  %v2358_v10 = vld [vmem:[%s6668_s26 + $0x10] sm:$0xff]  ;;  %v5829_v12 = vld [vmem:[%s6682_s5 + $0x474] sm:$0xf0]  ;;  %v5045_v20 = vor.u32 %v5783_v3, %v5044_v2 }
 0x157   : > { %4023 = vmatpush.bf16.msrb.mxu1 %v5021_v8  ;;  %v5108_v8 = vld [vmem:[%s6682_s5 + $0x380] sm:$0xf]  ;;  %v5292_v13 = vld [vmem:[%s6682_s5 + $0x4f0] sm:$0xf]  ;;  %v5861_v17 = vld [vmem:[%s6682_s5 + $0x574] sm:$0xf0]  ;;  %v2634_v18 = vunpack.c.l.b16 %v2359_v4  ;;  %v2635_v26 = vunpack.c.h.b16 %v2359_v4  ;;  %v5229_v28 = vor.u32 %v5829_v12, %v5228_v11 }
 0x158   : > { %4036 = vmatpush.bf16.msrb.mxu2 %v5085_v9  ;;  %v5799_v9 = vld [vmem:[%s6682_s5 + $0x384] sm:$0xf0]  ;;  %v5356_v16 = vld [vmem:[%s6682_s5 + $0x570] sm:$0xf]  ;;  %v5220_v32 = vld [vmem:[%s6682_s5 + $0x460] sm:$0xf] }
 0x159   : > { %4049 = vmatpush.bf16.msrb.mxu3 %v5149_v15  ;;  %v5845_v15 = vld [vmem:[%s6682_s5 + $0x4f4] sm:$0xf0]  ;;  %v5109_v27 = vor.u32 %v5799_v9, %v5108_v8  ;;  %v5357_v31 = vor.u32 %v5861_v17, %v5356_v16  ;;  %v5827_v33 = vld [vmem:[%s6682_s5 + $0x464] sm:$0xf0]  ;;  %v5284_v34 = vld [vmem:[%s6682_s5 + $0x4e0] sm:$0xf]  ;;  %v6843_v39 = vpack.c.b16 %v2634_v18, %v2634_v18  ;;  %v6849_v43 = vpack.c.b16 %v2635_v26, %v2635_v26 }
 0x15a   : > { %4011 = vmatpush.bf16.msrb.mxu0 %v4949_v23  ;;  %v5420_v23 = vld [vmem:[%s6682_s5 + $0x5f0] sm:$0xf]  ;;  %v5293_v30 = vor.u32 %v5845_v15, %v5292_v13  ;;  %v5859_v38 = vld [vmem:[%s6682_s5 + $0x564] sm:$0xf0]  ;;  %v5412_v40 = vld [vmem:[%s6682_s5 + $0x5e0] sm:$0xf]  ;;  %v5221_v44 = vor.u32 %v5827_v33, %v5220_v32 }
 0x15b   : > { %4024 = vmatpush.bf16.msrb.mxu1 %v5013_v24  ;;  %v5877_v24 = vld [vmem:[%s6682_s5 + $0x5f4] sm:$0xf0]  ;;  %v5276_v50 = vld [vmem:[%s6682_s5 + $0x4d0] sm:$0xf]  ;;  %v5823_v61 = vld [vmem:[%s6682_s5 + $0x444] sm:$0xf0] }
 0x15c   : > { %4037 = vmatpush.bf16.msrb.mxu2 %v5077_v25  ;;  %v2632_v25 = vunpack.c.l.b16 %v2358_v10  ;;  %v5841_v52 = vld [vmem:[%s6682_s5 + $0x4d4] sm:$0xf0]  ;;  %v5404_v55 = vld [vmem:[%s6682_s5 + $0x5d0] sm:$0xf]  ;;  %v5268_v62 = vld [vmem:[%s6682_s5 + $0x4c0] sm:$0xf] }
 0x15d   : > { %4050 = vmatpush.bf16.msrb.mxu3 %v5141_v29  ;;  %v2633_v29 = vunpack.c.h.b16 %v2358_v10  ;;  %v5857_v54 = vld [vmem:[%s6682_s5 + $0x554] sm:$0xf0]  ;;  %v5277_v58 = vor.u32 %v5841_v52, %v5276_v50  ;;  %v5855_v2 = vld [vmem:[%s6682_s5 + $0x544] sm:$0xf0]  ;;  %v5396_v3 = vld [vmem:[%s6682_s5 + $0x5c0] sm:$0xf] }
 0x15e   : > { %4012 = vmatpush.bf16.msrb.mxu0 %v4941_v35  ;;  %v5421_v35 = vor.u32 %v5877_v24, %v5420_v23  ;;  %v6847_v42 = vpack.c.b16 %v2632_v25, %v2632_v25  ;;  %v5873_v56 = vld [vmem:[%s6682_s5 + $0x5d4] sm:$0xf0]  ;;  %v5871_v4 = vld [vmem:[%s6682_s5 + $0x5c4] sm:$0xf0]  ;;  %v5196_v10 = vld [vmem:[%s6682_s5 + $0x430] sm:$0xf] }
 0x15f   : > { %4025 = vmatpush.bf16.msrb.mxu1 %v5005_v36  ;;  %v5843_v36 = vld [vmem:[%s6682_s5 + $0x4e4] sm:$0xf0]  ;;  %v6851_v45 = vpack.c.b16 %v2633_v29, %v2633_v29  ;;  %v5405_v63 = vor.u32 %v5873_v56, %v5404_v55  ;;  %v5821_v11 = vld [vmem:[%s6682_s5 + $0x434] sm:$0xf0]  ;;  %v5260_v12 = vld [vmem:[%s6682_s5 + $0x4b0] sm:$0xf]  ;;  %v5397_v13 = vor.u32 %v5871_v4, %v5396_v3 }
 0x160   : > { %4038 = vmatpush.bf16.msrb.mxu2 %v5069_v37  ;;  %v5348_v37 = vld [vmem:[%s6682_s5 + $0x560] sm:$0xf]  ;;  %v5285_v46 = vor.u32 %v5843_v36, %v5284_v34  ;;  %v5324_v15 = vld [vmem:[%s6682_s5 + $0x530] sm:$0xf]  ;;  %v5853_v16 = vld [vmem:[%s6682_s5 + $0x534] sm:$0xf0] }
 0x161   : > { %4051 = vmatpush.bf16.msrb.mxu3 %v5133_v41  ;;  %v5875_v41 = vld [vmem:[%s6682_s5 + $0x5e4] sm:$0xf0]  ;;  %v5388_v17 = vld [vmem:[%s6682_s5 + $0x5b0] sm:$0xf]  ;;  %v5869_v18 = vld [vmem:[%s6682_s5 + $0x5b4] sm:$0xf0]  ;;  %v5325_v23 = vor.u32 %v5853_v16, %v5324_v15 }
 0x162   : > { %4013 = vmatpush.bf16.msrb.mxu0 %v4933_v47  ;;  %v5349_v47 = vor.u32 %v5859_v38, %v5348_v37  ;;  %v5413_v51 = vor.u32 %v5875_v41, %v5412_v40  ;;  %v5188_v24 = vld [vmem:[%s6682_s5 + $0x420] sm:$0xf]  ;;  %v5819_v25 = vld [vmem:[%s6682_s5 + $0x424] sm:$0xf0]  ;;  %v5180_v36 = vld [vmem:[%s6682_s5 + $0x410] sm:$0xf] }
 0x163   : > { %4026 = vmatpush.bf16.msrb.mxu1 %v4997_v48  ;;  %v5212_v48 = vld [vmem:[%s6682_s5 + $0x450] sm:$0xf]  ;;  %v5252_v26 = vld [vmem:[%s6682_s5 + $0x4a0] sm:$0xf]  ;;  %v5867_v32 = vld [vmem:[%s6682_s5 + $0x5a4] sm:$0xf0]  ;;  %v5189_v33 = vor.u32 %v5819_v25, %v5188_v24 }
 0x164   : > { %4039 = vmatpush.bf16.msrb.mxu2 %v5061_v49  ;;  %v5825_v49 = vld [vmem:[%s6682_s5 + $0x454] sm:$0xf0]  ;;  %v5316_v29 = vld [vmem:[%s6682_s5 + $0x520] sm:$0xf]  ;;  %v5244_v38 = vld [vmem:[%s6682_s5 + $0x490] sm:$0xf] }
 0x165   : > { %4052 = vmatpush.bf16.msrb.mxu3 %v5125_v53  ;;  %v5340_v53 = vld [vmem:[%s6682_s5 + $0x550] sm:$0xf]  ;;  %v5213_v57 = vor.u32 %v5825_v49, %v5212_v48  ;;  %v5817_v37 = vld [vmem:[%s6682_s5 + $0x414] sm:$0xf0]  ;;  %v5172_v49 = vld [vmem:[%s6682_s5 + $0x400] sm:$0xf] }
 0x166   : > { %4014 = vmatpush.bf16.msrb.mxu0 %v4925_v60  ;;  %v5341_v59 = vor.u32 %v5857_v54, %v5340_v53  ;;  %v5204_v60 = vld [vmem:[%s6682_s5 + $0x440] sm:$0xf]  ;;  %v5833_v41 = vld [vmem:[%s6682_s5 + $0x494] sm:$0xf0]  ;;  %v5181_v50 = vor.u32 %v5817_v37, %v5180_v36  ;;  %v5831_v53 = vld [vmem:[%s6682_s5 + $0x484] sm:$0xf0] }
 0x167   : > { %4027 = vmatpush.bf16.msrb.mxu1 %v4989_v0  ;;  %v5839_v0 = vld [vmem:[%s6682_s5 + $0x4c4] sm:$0xf0]  ;;  %v5865_v48 = vld [vmem:[%s6682_s5 + $0x594] sm:$0xf0]  ;;  %v5236_v52 = vld [vmem:[%s6682_s5 + $0x480] sm:$0xf]  ;;  %v5245_v54 = vor.u32 %v5833_v41, %v5244_v38 }
 0x168   : > { %4040 = vmatpush.bf16.msrb.mxu2 %v5053_v1  ;;  %v5332_v1 = vld [vmem:[%s6682_s5 + $0x540] sm:$0xf]  ;;  %v5269_v8 = vor.u32 %v5839_v0, %v5268_v62  ;;  %v2361_v62 = vld [vmem:[%s6668_s26 + $0x28] sm:$0xff]  ;;  %v5612_v4 = vld [vmem:[%s6682_s5 + $0x770] sm:$0xf] }
 0x169   : > { %4053 = vmatpush.bf16.msrb.mxu3 %v5117_v6  ;;  %v5205_v6 = vor.u32 %v5823_v61, %v5204_v60  ;;  %v5333_v9 = vor.u32 %v5855_v2, %v5332_v1  ;;  %v5300_v56 = vld [vmem:[%s6682_s5 + $0x500] sm:$0xf]  ;;  %v5863_v61 = vld [vmem:[%s6682_s5 + $0x584] sm:$0xf0]  ;;  %v5893_v0 = vld [vmem:[%s6682_s5 + $0x674] sm:$0xf0] }
 0x16a   : > { %4015 = vmatpush.bf16.msrb.mxu0 %v4917_v14  ;;  %v5837_v14 = vld [vmem:[%s6682_s5 + $0x4b4] sm:$0xf0]  ;;  %v5364_v60 = vld [vmem:[%s6682_s5 + $0x580] sm:$0xf]  ;;  %v5548_v1 = vld [vmem:[%s6682_s5 + $0x6f0] sm:$0xf] }
 0x16b   : > { %4028 = vmatpush.bf16.msrb.mxu1 %v4981_v19  ;;  %v5197_v19 = vor.u32 %v5821_v11, %v5196_v10  ;;  %v5909_v3 = vld [vmem:[%s6682_s5 + $0x6f4] sm:$0xf0]  ;;  %v5676_v11 = vld [vmem:[%s6682_s5 + $0x7f0] sm:$0xf]  ;;  %v5365_v15 = vor.u32 %v5863_v61, %v5364_v60  ;;  %v5540_v24 = vld [vmem:[%s6682_s5 + $0x6e0] sm:$0xf] }
 0x16c   : > { %4041 = vmatpush.bf16.msrb.mxu2 %v5045_v20  ;;  %v5261_v20 = vor.u32 %v5837_v14, %v5260_v12  ;;  %v5941_v12 = vld [vmem:[%s6682_s5 + $0x7f4] sm:$0xf0]  ;;  %v5468_v38 = vld [vmem:[%s6682_s5 + $0x650] sm:$0xf]  ;;  %v5919_v60 = vld [vmem:[%s6682_s5 + $0x744] sm:$0xf0] }
 0x16d   : > { %4054 = vmatpush.bf16.msrb.mxu3 %v5109_v27  ;;  %4016 = vmatmul.bf16.vlgmr.msrb.gmra.mxu0 %v6847_v42  ;;  %v5389_v27 = vor.u32 %v5869_v18, %v5388_v17  ;;  %v2639_v17 = vunpack.c.h.b16 %v2361_v62  ;;  %v5549_v18 = vor.u32 %v5909_v3, %v5548_v1  ;;  %v5677_v25 = vor.u32 %v5941_v12, %v5676_v11  ;;  %v5532_v41 = vld [vmem:[%s6682_s5 + $0x6d0] sm:$0xf]  ;;  %v5652_v61 = vld [vmem:[%s6682_s5 + $0x7c0] sm:$0xf]  ;;  %v5885_v3 = vld [vmem:[%s6682_s5 + $0x634] sm:$0xf0] }
 0x16e   : > { %4060 = vmatpush.bf16.msra.mxu0 %v5229_v28  ;;  %4029 = vmatmul.bf16.vlgmr.msrb.gmra.mxu1 %v6851_v45  ;;  %v5835_v28 = vld [vmem:[%s6682_s5 + $0x4a4] sm:$0xf0]  ;;  %v5644_v11 = vld [vmem:[%s6682_s5 + $0x7b0] sm:$0xf]  ;;  %v5933_v12 = vld [vmem:[%s6682_s5 + $0x7b4] sm:$0xf0] }
 0x16f   : > { %4073 = vmatpush.bf16.msra.mxu1 %v5293_v30  ;;  %4042 = vmatmul.bf16.vlgmr.msrb.gmra.mxu2 %v6843_v39  ;;  %v5851_v30 = vld [vmem:[%s6682_s5 + $0x524] sm:$0xf0]  ;;  %v5253_v34 = vor.u32 %v5835_v28, %v5252_v26  ;;  %v5604_v28 = vld [vmem:[%s6682_s5 + $0x760] sm:$0xf] }
 0x170   : > { %4086 = vmatpush.bf16.msra.mxu2 %v5357_v31  ;;  %4055 = vmatmul.bf16.vlgmr.msrb.gmra.mxu3 %v6849_v43  ;;  %v5380_v31 = vld [vmem:[%s6682_s5 + $0x5a0] sm:$0xf] }
 0x171   : > { %4099 = vmatpush.bf16.msra.mxu3 %v5421_v35  ;;  %v5317_v35 = vor.u32 %v5851_v30, %v5316_v29  ;;  %v5381_v40 = vor.u32 %v5867_v32, %v5380_v31  ;;  %v5923_v29 = vld [vmem:[%s6682_s5 + $0x764] sm:$0xf0]  ;;  %v5668_v32 = vld [vmem:[%s6682_s5 + $0x7e0] sm:$0xf] }
 0x172   : > { %4061 = vmatpush.bf16.msra.mxu0 %v5221_v44  ;;  %v5308_v44 = vld [vmem:[%s6682_s5 + $0x510] sm:$0xf]  ;;  %v5605_v37 = vor.u32 %v5923_v29, %v5604_v28 }
 0x173   : > { %4074 = vmatpush.bf16.msra.mxu1 %v5285_v46  ;;  %v5849_v46 = vld [vmem:[%s6682_s5 + $0x514] sm:$0xf0] }
 0x174   : > { %4087 = vmatpush.bf16.msra.mxu2 %v5349_v47  ;;  %v5372_v47 = vld [vmem:[%s6682_s5 + $0x590] sm:$0xf]  ;;  %v5309_v55 = vor.u32 %v5849_v46, %v5308_v44  ;;  %v5905_v46 = vld [vmem:[%s6682_s5 + $0x6d4] sm:$0xf0] }
 0x175   : > { %4100 = vmatpush.bf16.msra.mxu3 %v5413_v51  ;;  %v5815_v51 = vld [vmem:[%s6682_s5 + $0x404] sm:$0xf0] }
 0x176   : > { %4062 = vmatpush.bf16.msra.mxu0 %v5213_v57  ;;  %v5847_v57 = vld [vmem:[%s6682_s5 + $0x504] sm:$0xf0]  ;;  %v5173_v2 = vor.u32 %v5815_v51, %v5172_v49  ;;  %v5660_v49 = vld [vmem:[%s6682_s5 + $0x7d0] sm:$0xf] }
 0x177   : > { %4075 = vmatpush.bf16.msra.mxu1 %v5277_v58  ;;  %v2360_v58 = vld [vmem:[%s6668_s26 + $0x20] sm:$0xff]  ;;  %v5301_v10 = vor.u32 %v5847_v57, %v5300_v56  ;;  %v5524_v56 = vld [vmem:[%s6682_s5 + $0x6c0] sm:$0xf] }
 0x178   : > { %4088 = vmatpush.bf16.msra.mxu2 %v5341_v59  ;;  %v5373_v59 = vor.u32 %v5865_v48, %v5372_v47  ;;  %v2637_v14 = vunpack.c.h.b16 %v2360_v58  ;;  %v5596_v47 = vld [vmem:[%s6682_s5 + $0x750] sm:$0xf]  ;;  %v5921_v48 = vld [vmem:[%s6682_s5 + $0x754] sm:$0xf0] }
 0x179   : > { %4101 = vmatpush.bf16.msra.mxu3 %v5405_v63  ;;  %v5484_v63 = vld [vmem:[%s6682_s5 + $0x670] sm:$0xf] }
 0x17a   : > { %4063 = vmatpush.bf16.msra.mxu0 %v5205_v6  ;;  %v5925_v6 = vld [vmem:[%s6682_s5 + $0x774] sm:$0xf0]  ;;  %v5485_v16 = vor.u32 %v5893_v0, %v5484_v63  ;;  %v6925_v31 = vpack.c.b16 %v2637_v14, %v2637_v14 }
 0x17b   : > { %4076 = vmatpush.bf16.msra.mxu1 %v5269_v8  ;;  %v2636_v8 = vunpack.c.l.b16 %v2360_v58  ;;  %v5903_v58 = vld [vmem:[%s6682_s5 + $0x6c4] sm:$0xf0] }
 0x17c   : > { %4089 = vmatpush.bf16.msra.mxu2 %v5333_v9  ;;  %v5237_v9 = vor.u32 %v5831_v53, %v5236_v52  ;;  %v5533_v52 = vor.u32 %v5905_v46, %v5532_v41  ;;  %v5597_v53 = vor.u32 %v5921_v48, %v5596_v47  ;;  %v5525_v0 = vor.u32 %v5903_v58, %v5524_v56  ;;  %v5913_v41 = vld [vmem:[%s6682_s5 + $0x714] sm:$0xf0]  ;;  %v5428_v47 = vld [vmem:[%s6682_s5 + $0x600] sm:$0xf] }
 0x17d   : > { %4102 = vmatpush.bf16.msra.mxu3 %v5397_v13  ;;  %v2638_v13 = vunpack.c.l.b16 %v2361_v62  ;;  %v6918_v26 = vpack.c.b16 %v2636_v8, %v2636_v8  ;;  %v5935_v62 = vld [vmem:[%s6682_s5 + $0x7c4] sm:$0xf0]  ;;  %v5901_v8 = vld [vmem:[%s6682_s5 + $0x6b4] sm:$0xf0]  ;;  %v2362_v56 = vld [vmem:[%s6668_s26 + $0x30] sm:$0xff] }
 0x17e   : > { %4064 = vmatpush.bf16.msra.mxu0 %v5197_v19  ;;  %v5613_v19 = vor.u32 %v5925_v6, %v5612_v4  ;;  %v5516_v4 = vld [vmem:[%s6682_s5 + $0x6b0] sm:$0xf]  ;;  %v5653_v6 = vor.u32 %v5935_v62, %v5652_v61  ;;  %v5929_v46 = vld [vmem:[%s6682_s5 + $0x794] sm:$0xf0]  ;;  %v5620_v58 = vld [vmem:[%s6682_s5 + $0x780] sm:$0xf] }
 0x17f   : > { %4077 = vmatpush.bf16.msra.mxu1 %v5261_v20  ;;  %v5476_v20 = vld [vmem:[%s6682_s5 + $0x660] sm:$0xf]  ;;  %v6923_v30 = vpack.c.b16 %v2638_v13, %v2638_v13  ;;  %v5517_v14 = vor.u32 %v5901_v8, %v5516_v4  ;;  %v5700_v61 = vld [vmem:[%s6682_s5 + $0x74] sm:$0xf]  ;;  %v4718_v62 = vld [vmem:[%s6682_s5 + $0x78] sm:$0xf0]  ;;  %v2640_v4 = vunpack.c.l.b16 %v2362_v56 }
 0x180   : > { %4090 = vmatpush.bf16.msra.mxu2 %v5325_v23  ;;  %v5891_v23 = vld [vmem:[%s6682_s5 + $0x664] sm:$0xf0] }
 0x181   : > { %4103 = vmatpush.bf16.msra.mxu3 %v5389_v27  ;;  %v5907_v27 = vld [vmem:[%s6682_s5 + $0x6e4] sm:$0xf0] }
 0x182   : > { %4065 = vmatpush.bf16.msra.mxu0 %v5189_v33  ;;  %v5939_v33 = vld [vmem:[%s6682_s5 + $0x7e4] sm:$0xf0]  ;;  %v5541_v36 = vor.u32 %v5907_v27, %v5540_v24 }
 0x183   : > { %4078 = vmatpush.bf16.msra.mxu1 %v5253_v34  ;;  %v6929_v34 = vpack.c.b16 %v2639_v17, %v2639_v17  ;;  %v5669_v44 = vor.u32 %v5939_v33, %v5668_v32  ;;  %v5883_v17 = vld [vmem:[%s6682_s5 + $0x624] sm:$0xf0]  ;;  %v5436_v33 = vld [vmem:[%s6682_s5 + $0x610] sm:$0xf] }
 0x184   : > { %4091 = vmatpush.bf16.msra.mxu2 %v5317_v35  ;;  %v5477_v35 = vor.u32 %v5891_v23, %v5476_v20  ;;  %v5899_v20 = vld [vmem:[%s6682_s5 + $0x6a4] sm:$0xf0]  ;;  %v5572_v23 = vld [vmem:[%s6682_s5 + $0x720] sm:$0xf] }
 0x185   : > { %4104 = vmatpush.bf16.msra.mxu3 %v5381_v40  ;;  %v5889_v40 = vld [vmem:[%s6682_s5 + $0x654] sm:$0xf0]  ;;  %v5915_v24 = vld [vmem:[%s6682_s5 + $0x724] sm:$0xf0] }
 0x186   : > { %4066 = vmatpush.bf16.msra.mxu0 %v5181_v50  ;;  %v5937_v50 = vld [vmem:[%s6682_s5 + $0x7d4] sm:$0xf0]  ;;  %v5469_v51 = vor.u32 %v5889_v40, %v5468_v38  ;;  %v5931_v27 = vld [vmem:[%s6682_s5 + $0x7a4] sm:$0xf0]  ;;  %v5573_v32 = vor.u32 %v5915_v24, %v5572_v23  ;;  %v5564_v40 = vld [vmem:[%s6682_s5 + $0x710] sm:$0xf]  ;;  %v6996_v24 = vpack.c.b16 %v2640_v4, %v2640_v4 }
 0x187   : > { %4079 = vmatpush.bf16.msra.mxu1 %v5245_v54  ;;  %v5460_v54 = vld [vmem:[%s6682_s5 + $0x640] sm:$0xf]  ;;  %v5661_v57 = vor.u32 %v5937_v50, %v5660_v49  ;;  %v5897_v38 = vld [vmem:[%s6682_s5 + $0x694] sm:$0xf0]  ;;  %v5879_v49 = vld [vmem:[%s6682_s5 + $0x604] sm:$0xf0] }
 0x188   : > { %4092 = vmatpush.bf16.msra.mxu2 %v5309_v55  ;;  %v5887_v55 = vld [vmem:[%s6682_s5 + $0x644] sm:$0xf0]  ;;  %v5492_v50 = vld [vmem:[%s6682_s5 + $0x680] sm:$0xf]  ;;  %v5692_v4 = vld [vmem:[%s6682_s5 + $0x34] sm:$0xf] }
 0x189   : > { %4105 = vmatpush.bf16.msra.mxu3 %v5373_v59  ;;  %v5588_v59 = vld [vmem:[%s6682_s5 + $0x740] sm:$0xf]  ;;  %v5461_v63 = vor.u32 %v5887_v55, %v5460_v54  ;;  %v5911_v55 = vld [vmem:[%s6682_s5 + $0x704] sm:$0xf0] }
 0x18a   : > { %4067 = vmatpush.bf16.msra.mxu0 %v5173_v2  ;;  %v5589_v1 = vor.u32 %v5919_v60, %v5588_v59  ;;  %v5452_v2 = vld [vmem:[%s6682_s5 + $0x630] sm:$0xf]  ;;  %v5556_v54 = vld [vmem:[%s6682_s5 + $0x700] sm:$0xf]  ;;  %v5927_v59 = vld [vmem:[%s6682_s5 + $0x784] sm:$0xf0] }
 0x18b   : > { %4080 = vmatpush.bf16.msra.mxu1 %v5237_v9  ;;  %v5580_v9 = vld [vmem:[%s6682_s5 + $0x730] sm:$0xf]  ;;  %v5453_v13 = vor.u32 %v5885_v3, %v5452_v2  ;;  %v2363_v60 = vld [vmem:[%s6668_s26 + $0x38] sm:$0xff]  ;;  %v5732_v2 = vld [vmem:[%s6682_s5 + $0x174] sm:$0xf]  ;;  %v5557_v8 = vor.u32 %v5911_v55, %v5556_v54 }
 0x18c   : > { %4093 = vmatpush.bf16.msra.mxu2 %v5301_v10  ;;  %v5917_v10 = vld [vmem:[%s6682_s5 + $0x734] sm:$0xf0]  ;;  %v4846_v3 = vld [vmem:[%s6682_s5 + $0x178] sm:$0xf0] }
 0x18d   : > { %4106 = vmatpush.bf16.msra.mxu3 %v5365_v15  ;;  %4068 = vmatmul.bf16.vlgmr.msra.gmra.mxu0 %v6918_v26  ;;  %v5581_v15 = vor.u32 %v5917_v10, %v5580_v9  ;;  %v5748_v9 = vld [vmem:[%s6682_s5 + $0x1f4] sm:$0xf]  ;;  %v4910_v10 = vld [vmem:[%s6682_s5 + $0x1f8] sm:$0xf0] }
 0x18e   : > { %4112 = vmatpush.bf16.msrb.mxu0 %v5485_v16  ;;  %4081 = vmatmul.bf16.vlgmr.msra.gmra.mxu1 %v6925_v31  ;;  %v5444_v16 = vld [vmem:[%s6682_s5 + $0x620] sm:$0xf]  ;;  %v4913_v23 = vor.u32 %v5748_v9, %v4910_v10  ;;  %v4750_v10 = vld [vmem:[%s6682_s5 + $0xb8] sm:$0xf0] }
 0x18f   : > { %4125 = vmatpush.bf16.msrb.mxu1 %v5549_v18  ;;  %4094 = vmatmul.bf16.vlgmr.msra.gmra.mxu2 %v6923_v30  ;;  %v5508_v18 = vld [vmem:[%s6682_s5 + $0x6a0] sm:$0xf]  ;;  %v5445_v28 = vor.u32 %v5883_v17, %v5444_v16  ;;  %v4849_v17 = vor.u32 %v5732_v2, %v4846_v3 }
 0x190   : > { %4138 = vmatpush.bf16.msrb.mxu2 %v5613_v19  ;;  %4107 = vmatmul.bf16.vlgmr.msra.gmra.mxu3 %v6929_v34  ;;  %v5645_v19 = vor.u32 %v5933_v12, %v5644_v11  ;;  %v5509_v29 = vor.u32 %v5899_v20, %v5508_v18  ;;  %v2642_v11 = vunpack.c.l.b16 %v2363_v60  ;;  %v2641_v12 = vunpack.c.h.b16 %v2362_v56  ;;  %v5698_v18 = vld [vmem:[%s6682_s5 + $0x64] sm:$0xf] }
 0x191   : > { %4151 = vmatpush.bf16.msrb.mxu3 %v5677_v25  ;;  %v5636_v25 = vld [vmem:[%s6682_s5 + $0x7a0] sm:$0xf]  ;;  %v5714_v20 = vld [vmem:[%s6682_s5 + $0xe4] sm:$0xf] }
 0x192   : > { %4113 = vmatpush.bf16.msrb.mxu0 %v5477_v35  ;;  %v5881_v35 = vld [vmem:[%s6682_s5 + $0x614] sm:$0xf0]  ;;  %v5694_v56 = vld [vmem:[%s6682_s5 + $0x44] sm:$0xf] }
 0x193   : > { %4126 = vmatpush.bf16.msrb.mxu1 %v5541_v36  ;;  %v5500_v36 = vld [vmem:[%s6682_s5 + $0x690] sm:$0xf]  ;;  %v5437_v48 = vor.u32 %v5881_v35, %v5436_v33  ;;  %v5746_v33 = vld [vmem:[%s6682_s5 + $0x1e4] sm:$0xf]  ;;  %v4902_v35 = vld [vmem:[%s6682_s5 + $0x1e8] sm:$0xf0] }
 0x194   : > { %4139 = vmatpush.bf16.msrb.mxu2 %v5605_v37  ;;  %v5637_v37 = vor.u32 %v5931_v27, %v5636_v25  ;;  %v4774_v25 = vld [vmem:[%s6682_s5 + $0xe8] sm:$0xf0]  ;;  %v5730_v27 = vld [vmem:[%s6682_s5 + $0x164] sm:$0xf] }
 0x195   : > { %4152 = vmatpush.bf16.msrb.mxu3 %v5669_v44  ;;  %v5628_v44 = vld [vmem:[%s6682_s5 + $0x790] sm:$0xf] }
 0x196   : > { %4114 = vmatpush.bf16.msrb.mxu0 %v5469_v51  ;;  %v5895_v51 = vld [vmem:[%s6682_s5 + $0x684] sm:$0xf0] }
 0x197   : > { %4127 = vmatpush.bf16.msrb.mxu1 %v5533_v52  ;;  %v5501_v52 = vor.u32 %v5897_v38, %v5500_v36  ;;  %v4777_v38 = vor.u32 %v5714_v20, %v4774_v25  ;;  %v5706_v20 = vld [vmem:[%s6682_s5 + $0xa4] sm:$0xf]  ;;  %v4742_v25 = vld [vmem:[%s6682_s5 + $0xa8] sm:$0xf0] }
 0x198   : > { %4140 = vmatpush.bf16.msrb.mxu2 %v5597_v53  ;;  %v5565_v53 = vor.u32 %v5913_v41, %v5564_v40  ;;  %v5696_v41 = vld [vmem:[%s6682_s5 + $0x54] sm:$0xf] }
 0x199   : > { %4153 = vmatpush.bf16.msrb.mxu3 %v5661_v57  ;;  %v5629_v57 = vor.u32 %v5929_v46, %v5628_v44  ;;  %v4702_v44 = vld [vmem:[%s6682_s5 + $0x58] sm:$0xf0]  ;;  %v5712_v46 = vld [vmem:[%s6682_s5 + $0xd4] sm:$0xf] }
 0x19a   : > { %4115 = vmatpush.bf16.msrb.mxu0 %v5461_v63  ;;  %v5716_v63 = vld [vmem:[%s6682_s5 + $0xf4] sm:$0xf] }
 0x19b   : > { %4128 = vmatpush.bf16.msrb.mxu1 %v5525_v0  ;;  %v5429_v0 = vor.u32 %v5879_v49, %v5428_v47  ;;  %v4905_v47 = vor.u32 %v5746_v33, %v4902_v35  ;;  %v5728_v49 = vld [vmem:[%s6682_s5 + $0x154] sm:$0xf]  ;;  %v5738_v33 = vld [vmem:[%s6682_s5 + $0x1a4] sm:$0xf]  ;;  %v4870_v35 = vld [vmem:[%s6682_s5 + $0x1a8] sm:$0xf0] }
 0x19c   : > { %4141 = vmatpush.bf16.msrb.mxu2 %v5589_v1  ;;  %v4782_v1 = vld [vmem:[%s6682_s5 + $0xf8] sm:$0xf0] }
 0x19d   : > { %4154 = vmatpush.bf16.msrb.mxu3 %v5653_v6  ;;  %v5493_v6 = vor.u32 %v5895_v51, %v5492_v50  ;;  %v4785_v16 = vor.u32 %v5716_v63, %v4782_v1  ;;  %v4830_v50 = vld [vmem:[%s6682_s5 + $0x158] sm:$0xf0]  ;;  %v5744_v51 = vld [vmem:[%s6682_s5 + $0x1d4] sm:$0xf]  ;;  %v5742_v63 = vld [vmem:[%s6682_s5 + $0x1c4] sm:$0xf] }
 0x19e   : > { %4116 = vmatpush.bf16.msrb.mxu0 %v5453_v13  ;;  %v5621_v13 = vor.u32 %v5927_v59, %v5620_v58  ;;  %v4833_v55 = vor.u32 %v5728_v49, %v4830_v50  ;;  %v5710_v58 = vld [vmem:[%s6682_s5 + $0xc4] sm:$0xf]  ;;  %v5720_v49 = vld [vmem:[%s6682_s5 + $0x114] sm:$0xf]  ;;  %v4798_v50 = vld [vmem:[%s6682_s5 + $0x118] sm:$0xf0] }
 0x19f   : > { %4129 = vmatpush.bf16.msrb.mxu1 %v5517_v14  ;;  %v4721_v14 = vor.u32 %v5700_v61, %v4718_v62  ;;  %v5726_v61 = vld [vmem:[%s6682_s5 + $0x144] sm:$0xf]  ;;  %v4822_v62 = vld [vmem:[%s6682_s5 + $0x148] sm:$0xf0] }
 0x1a0   : > { %4142 = vmatpush.bf16.msrb.mxu2 %v5581_v15  ;;  %v2643_v15 = vunpack.c.h.b16 %v2363_v60  ;;  %v4758_v60 = vld [vmem:[%s6682_s5 + $0xc8] sm:$0xf0]  ;;  %v4825_v3 = vor.u32 %v5726_v61, %v4822_v62 }
 0x1a1   : > { %4155 = vmatpush.bf16.msrb.mxu3 %v5645_v19  ;;  %v4710_v19 = vld [vmem:[%s6682_s5 + $0x68] sm:$0xf0]  ;;  %v4761_v2 = vor.u32 %v5710_v58, %v4758_v60  ;;  %v5702_v58 = vld [vmem:[%s6682_s5 + $0x84] sm:$0xf] }
 0x1a2   : > { %4117 = vmatpush.bf16.msrb.mxu0 %v5445_v28  ;;  %v4838_v28 = vld [vmem:[%s6682_s5 + $0x168] sm:$0xf0]  ;;  %v7007_v36 = vpack.c.b16 %v2643_v15, %v2643_v15  ;;  %v5718_v60 = vld [vmem:[%s6682_s5 + $0x104] sm:$0xf] }
 0x1a3   : > { %4130 = vmatpush.bf16.msrb.mxu1 %v5509_v29  ;;  %v7001_v29 = vpack.c.b16 %v2642_v11, %v2642_v11  ;;  %v4841_v40 = vor.u32 %v5730_v27, %v4838_v28  ;;  %v5724_v11 = vld [vmem:[%s6682_s5 + $0x134] sm:$0xf]  ;;  %v5722_v27 = vld [vmem:[%s6682_s5 + $0x124] sm:$0xf]  ;;  %v4806_v28 = vld [vmem:[%s6682_s5 + $0x128] sm:$0xf0] }
 0x1a4   : > { %4143 = vmatpush.bf16.msrb.mxu2 %v5573_v32  ;;  %v7003_v32 = vpack.c.b16 %v2641_v12, %v2641_v12  ;;  %v4814_v12 = vld [vmem:[%s6682_s5 + $0x138] sm:$0xf0]  ;;  %v4790_v62 = vld [vmem:[%s6682_s5 + $0x108] sm:$0xf0] }
 0x1a5   : > { %4156 = vmatpush.bf16.msrb.mxu3 %v5637_v37  ;;  %v4713_v37 = vor.u32 %v5698_v18, %v4710_v19  ;;  %v5690_v18 = vld [vmem:[%s6682_s5 + $0x24] sm:$0xf]  ;;  %v4678_v19 = vld [vmem:[%s6682_s5 + $0x28] sm:$0xf0] }
 0x1a6   : > { %4118 = vmatpush.bf16.msrb.mxu0 %v5437_v48  ;;  %v4766_v48 = vld [vmem:[%s6682_s5 + $0xd8] sm:$0xf0] }
 0x1a7   : > { %4131 = vmatpush.bf16.msrb.mxu1 %v5501_v52  ;;  %v4894_v52 = vld [vmem:[%s6682_s5 + $0x1d8] sm:$0xf0]  ;;  %v4769_v54 = vor.u32 %v5712_v46, %v4766_v48  ;;  %v5704_v46 = vld [vmem:[%s6682_s5 + $0x94] sm:$0xf] }
 0x1a8   : > { %4144 = vmatpush.bf16.msrb.mxu2 %v5565_v53  ;;  %v4705_v53 = vor.u32 %v5696_v41, %v4702_v44  ;;  %v4897_v59 = vor.u32 %v5744_v51, %v4894_v52  ;;  %v5688_v41 = vld [vmem:[%s6682_s5 + $0x14] sm:$0xf]  ;;  %v4670_v44 = vld [vmem:[%s6682_s5 + $0x18] sm:$0xf0] }
 0x1a9   : > { %4157 = vmatpush.bf16.msrb.mxu3 %v5629_v57  ;;  %v4694_v57 = vld [vmem:[%s6682_s5 + $0x48] sm:$0xf0]  ;;  %v4734_v48 = vld [vmem:[%s6682_s5 + $0x98] sm:$0xf0]  ;;  %v5736_v51 = vld [vmem:[%s6682_s5 + $0x194] sm:$0xf] }
 0x1aa   : > { %4119 = vmatpush.bf16.msrb.mxu0 %v5429_v0  ;;  %v4886_v0 = vld [vmem:[%s6682_s5 + $0x1c8] sm:$0xf0]  ;;  %v4697_v1 = vor.u32 %v5694_v56, %v4694_v57  ;;  %v4862_v52 = vld [vmem:[%s6682_s5 + $0x198] sm:$0xf0]  ;;  %v4737_v56 = vor.u32 %v5704_v46, %v4734_v48  ;;  %v4801_v57 = vor.u32 %v5720_v49, %v4798_v50  ;;  %v5776_v46 = vld [vmem:[%s6682_s5 + $0x2d4] sm:$0xf] }
 0x1ab   : > { %4132 = vmatpush.bf16.msrb.mxu1 %v5493_v6  ;;  %v4686_v6 = vld [vmem:[%s6682_s5 + $0x38] sm:$0xf0]  ;;  %v4889_v9 = vor.u32 %v5742_v63, %v4886_v0  ;;  %v4865_v61 = vor.u32 %v5736_v51, %v4862_v52  ;;  %v5734_v63 = vld [vmem:[%s6682_s5 + $0x184] sm:$0xf]  ;;  %v4854_v0 = vld [vmem:[%s6682_s5 + $0x188] sm:$0xf0] }
 0x1ac   : > { %4145 = vmatpush.bf16.msrb.mxu2 %v5557_v8  ;;  %v5708_v8 = vld [vmem:[%s6682_s5 + $0xb4] sm:$0xf]  ;;  %v4689_v15 = vor.u32 %v5692_v4, %v4686_v6  ;;  %v5038_v6 = vld [vmem:[%s6682_s5 + $0x2f8] sm:$0xf0] }
 0x1ad   : > { %4158 = vmatpush.bf16.msrb.mxu3 %v5621_v13  ;;  %4120 = vmatmul.bf16.vlgmr.msrb.gmra.mxu0 %v6996_v24  ;;  %v5740_v13 = vld [vmem:[%s6682_s5 + $0x1b4] sm:$0xf]  ;;  %v5022_v48 = vld [vmem:[%s6682_s5 + $0x2d8] sm:$0xf0] }
 0x1ae   : > { %4164 = vmatpush.bf16.msra.mxu0 %v4721_v14  ;;  %4133 = vmatmul.bf16.vlgmr.msrb.gmra.mxu1 %v7003_v32  ;;  %v4878_v14 = vld [vmem:[%s6682_s5 + $0x1b8] sm:$0xf0]  ;;  %v5792_v49 = vld [vmem:[%s6682_s5 + $0x354] sm:$0xf] }
 0x1af   : > { %4177 = vmatpush.bf16.msra.mxu1 %v4785_v16  ;;  %4146 = vmatmul.bf16.vlgmr.msrb.gmra.mxu2 %v7001_v29  ;;  %v4753_v16 = vor.u32 %v5708_v8, %v4750_v10  ;;  %v5796_v8 = vld [vmem:[%s6682_s5 + $0x374] sm:$0xf]  ;;  %v5086_v50 = vld [vmem:[%s6682_s5 + $0x358] sm:$0xf0] }
 0x1b0   : > { %4190 = vmatpush.bf16.msra.mxu2 %v4849_v17  ;;  %4159 = vmatmul.bf16.vlgmr.msrb.gmra.mxu3 %v7007_v36  ;;  %v4817_v17 = vor.u32 %v5724_v11, %v4814_v12  ;;  %v4793_v11 = vor.u32 %v5718_v60, %v4790_v62  ;;  %v5812_v12 = vld [vmem:[%s6682_s5 + $0x3f4] sm:$0xf]  ;;  %v5150_v52 = vld [vmem:[%s6682_s5 + $0x3d8] sm:$0xf0]  ;;  %v5806_v60 = vld [vmem:[%s6682_s5 + $0x3c4] sm:$0xf] }
 0x1b1   : > { %4203 = vmatpush.bf16.msra.mxu3 %v4913_v23  ;;  %v4881_v23 = vor.u32 %v5740_v13, %v4878_v14  ;;  %v5166_v13 = vld [vmem:[%s6682_s5 + $0x3f8] sm:$0xf0]  ;;  %v4857_v14 = vor.u32 %v5734_v63, %v4854_v0  ;;  %v5808_v51 = vld [vmem:[%s6682_s5 + $0x3d4] sm:$0xf] }
 0x1b2   : > { %4165 = vmatpush.bf16.msra.mxu0 %v4713_v37  ;;  %v4681_v37 = vor.u32 %v5690_v18, %v4678_v19  ;;  %v5762_v18 = vld [vmem:[%s6682_s5 + $0x264] sm:$0xf]  ;;  %v4966_v19 = vld [vmem:[%s6682_s5 + $0x268] sm:$0xf0]  ;;  %v5756_v0 = vld [vmem:[%s6682_s5 + $0x234] sm:$0xf] }
 0x1b3   : > { %4178 = vmatpush.bf16.msra.mxu1 %v4777_v38  ;;  %v4745_v38 = vor.u32 %v5706_v20, %v4742_v25  ;;  %v5778_v20 = vld [vmem:[%s6682_s5 + $0x2e4] sm:$0xf]  ;;  %v5030_v25 = vld [vmem:[%s6682_s5 + $0x2e8] sm:$0xf0] }
 0x1b4   : > { %4191 = vmatpush.bf16.msra.mxu2 %v4841_v40  ;;  %v4809_v40 = vor.u32 %v5722_v27, %v4806_v28  ;;  %v5794_v27 = vld [vmem:[%s6682_s5 + $0x364] sm:$0xf]  ;;  %v5094_v28 = vld [vmem:[%s6682_s5 + $0x368] sm:$0xf0] }
 0x1b5   : > { %4204 = vmatpush.bf16.msra.mxu3 %v4905_v47  ;;  %v4873_v47 = vor.u32 %v5738_v33, %v4870_v35  ;;  %v5810_v33 = vld [vmem:[%s6682_s5 + $0x3e4] sm:$0xf]  ;;  %v5158_v35 = vld [vmem:[%s6682_s5 + $0x3e8] sm:$0xf0] }
 0x1b6   : > { %4166 = vmatpush.bf16.msra.mxu0 %v4705_v53  ;;  %v4673_v53 = vor.u32 %v5688_v41, %v4670_v44  ;;  %v5760_v41 = vld [vmem:[%s6682_s5 + $0x254] sm:$0xf]  ;;  %v4958_v44 = vld [vmem:[%s6682_s5 + $0x258] sm:$0xf0] }
 0x1b7   : > { %4179 = vmatpush.bf16.msra.mxu1 %v4769_v54  ;;  %v5686_v54 = vld [vmem:[%s6682_s5 + $0x4] sm:$0xf] }
 0x1b8   : > { %4192 = vmatpush.bf16.msra.mxu2 %v4833_v55  ;;  %v4662_v55 = vld [vmem:[%s6682_s5 + $0x8] sm:$0xf0] }
 0x1b9   : > { %4205 = vmatpush.bf16.msra.mxu3 %v4897_v59  ;;  %v4726_v59 = vld [vmem:[%s6682_s5 + $0x88] sm:$0xf0]  ;;  %v4665_v4 = vor.u32 %v5686_v54, %v4662_v55  ;;  %v5025_v54 = vor.u32 %v5776_v46, %v5022_v48  ;;  %v5089_v55 = vor.u32 %v5792_v49, %v5086_v50  ;;  %v5784_v48 = vld [vmem:[%s6682_s5 + $0x314] sm:$0xf]  ;;  %v5054_v49 = vld [vmem:[%s6682_s5 + $0x318] sm:$0xf0] }
 0x1ba   : > { %4167 = vmatpush.bf16.msra.mxu0 %v4697_v1  ;;  %v5764_v1 = vld [vmem:[%s6682_s5 + $0x274] sm:$0xf]  ;;  %v4729_v10 = vor.u32 %v5702_v58, %v4726_v59  ;;  %v5014_v58 = vld [vmem:[%s6682_s5 + $0x2c8] sm:$0xf0] }
 0x1bb   : > { %4180 = vmatpush.bf16.msra.mxu1 %v4761_v2  ;;  %v4974_v2 = vld [vmem:[%s6682_s5 + $0x278] sm:$0xf0]  ;;  %v5078_v59 = vld [vmem:[%s6682_s5 + $0x348] sm:$0xf0] }
 0x1bc   : > { %4193 = vmatpush.bf16.msra.mxu2 %v4825_v3  ;;  %v5780_v3 = vld [vmem:[%s6682_s5 + $0x2f4] sm:$0xf] }
 0x1bd   : > { %4206 = vmatpush.bf16.msra.mxu3 %v4889_v9  ;;  %v5102_v9 = vld [vmem:[%s6682_s5 + $0x378] sm:$0xf0] }
 0x1be   : > { %4168 = vmatpush.bf16.msra.mxu0 %v4689_v15  ;;  %v4977_v15 = vor.u32 %v5764_v1, %v4974_v2  ;;  %v4942_v1 = vld [vmem:[%s6682_s5 + $0x238] sm:$0xf0]  ;;  %v5772_v2 = vld [vmem:[%s6682_s5 + $0x2b4] sm:$0xf] }
 0x1bf   : > { %4181 = vmatpush.bf16.msra.mxu1 %v4753_v16  ;;  %v5041_v16 = vor.u32 %v5780_v3, %v5038_v6  ;;  %v5788_v6 = vld [vmem:[%s6682_s5 + $0x334] sm:$0xf] }
 0x1c0   : > { %4194 = vmatpush.bf16.msra.mxu2 %v4817_v17  ;;  %v5105_v17 = vor.u32 %v5796_v8, %v5102_v9  ;;  %v5070_v8 = vld [vmem:[%s6682_s5 + $0x338] sm:$0xf0]  ;;  %v5804_v9 = vld [vmem:[%s6682_s5 + $0x3b4] sm:$0xf] }
 0x1c1   : > { %4207 = vmatpush.bf16.msra.mxu3 %v4881_v23  ;;  %v5169_v23 = vor.u32 %v5812_v12, %v5166_v13  ;;  %v5073_v13 = vor.u32 %v5788_v6, %v5070_v8 }
 0x1c2   : > { %4169 = vmatpush.bf16.msra.mxu0 %v4681_v37  ;;  %v4969_v37 = vor.u32 %v5762_v18, %v4966_v19  ;;  %v4998_v18 = vld [vmem:[%s6682_s5 + $0x2a8] sm:$0xf0]  ;;  %v5786_v19 = vld [vmem:[%s6682_s5 + $0x324] sm:$0xf] }
 0x1c3   : > { %4182 = vmatpush.bf16.msra.mxu1 %v4745_v38  ;;  %v5033_v38 = vor.u32 %v5778_v20, %v5030_v25  ;;  %v5062_v20 = vld [vmem:[%s6682_s5 + $0x328] sm:$0xf0] }
 0x1c4   : > { %4195 = vmatpush.bf16.msra.mxu2 %v4809_v40  ;;  %v5097_v40 = vor.u32 %v5794_v27, %v5094_v28  ;;  %v5126_v25 = vld [vmem:[%s6682_s5 + $0x3a8] sm:$0xf0] }
 0x1c5   : > { %4208 = vmatpush.bf16.msra.mxu3 %v4873_v47  ;;  %v5161_v47 = vor.u32 %v5810_v33, %v5158_v35 }
 0x1c6   : > { %4170 = vmatpush.bf16.msra.mxu0 %v4673_v53  ;;  %v4961_v53 = vor.u32 %v5760_v41, %v4958_v44  ;;  %v5768_v41 = vld [vmem:[%s6682_s5 + $0x294] sm:$0xf] }
 0x1c7   : > { %4183 = vmatpush.bf16.msra.mxu1 %v4737_v56  ;;  %v4950_v56 = vld [vmem:[%s6682_s5 + $0x248] sm:$0xf0] }
 0x1c8   : > { %4196 = vmatpush.bf16.msra.mxu2 %v4801_v57  ;;  %v5774_v57 = vld [vmem:[%s6682_s5 + $0x2c4] sm:$0xf] }
 0x1c9   : > { %4209 = vmatpush.bf16.msra.mxu3 %v4865_v61  ;;  %v5017_v62 = vor.u32 %v5774_v57, %v5014_v58  ;;  %v5766_v57 = vld [vmem:[%s6682_s5 + $0x284] sm:$0xf] }
 0x1ca   : > { %4171 = vmatpush.bf16.msra.mxu0 %v4665_v4  ;;  %v5006_v4 = vld [vmem:[%s6682_s5 + $0x2b8] sm:$0xf0]  ;;  %v5782_v58 = vld [vmem:[%s6682_s5 + $0x304] sm:$0xf] }
 0x1cb   : > { %4184 = vmatpush.bf16.msra.mxu1 %v4729_v10  ;;  %v5134_v10 = vld [vmem:[%s6682_s5 + $0x3b8] sm:$0xf0]  ;;  %v5009_v12 = vor.u32 %v5772_v2, %v5006_v4  ;;  %v7115_v33 = vpop.f32.mrf.mxu1 }
 0x1cc   : > { %4197 = vmatpush.bf16.msra.mxu2 %v4793_v11  ;;  %v4945_v11 = vor.u32 %v5756_v0, %v4942_v1  ;;  %v5294_v2 = vld [vmem:[%s6682_s5 + $0x4f8] sm:$0xf0] }
 0x1cd   : > { %4210 = vmatpush.bf16.msra.mxu3 %v4857_v14  ;;  %4172 = vmatmul.bf16.vlgmr.msra.gmra.mxu0 %v6788_v21  ;;  %v5153_v21 = vor.u32 %v5808_v51, %v5150_v52  ;;  %v5754_v14 = vld [vmem:[%s6682_s5 + $0x224] sm:$0xf]  ;;  %v5800_v51 = vld [vmem:[%s6682_s5 + $0x394] sm:$0xf]  ;;  %v5118_v52 = vld [vmem:[%s6682_s5 + $0x398] sm:$0xf0] }
 0x1ce   : > { %4216 = vmatpush.bf16.msrb.mxu0 %v4977_v15  ;;  %4185 = vmatmul.bf16.vlgmr.msra.gmra.mxu1 %v6791_v22  ;;  %v5142_v22 = vld [vmem:[%s6682_s5 + $0x3c8] sm:$0xf0]  ;;  %v7113_v27 = vpop.f32.mrf.mxu0  ;;  %v5358_v4 = vld [vmem:[%s6682_s5 + $0x578] sm:$0xf0] }
 0x1cf   : > { %4229 = vmatpush.bf16.msrb.mxu1 %v5041_v16  ;;  %4198 = vmatmul.bf16.vlgmr.msra.gmra.mxu2 %v6774_v5  ;;  %v5758_v5 = vld [vmem:[%s6682_s5 + $0x244] sm:$0xf]  ;;  %v5145_v3 = vor.u32 %v5806_v60, %v5142_v22  ;;  %v4934_v15 = vld [vmem:[%s6682_s5 + $0x228] sm:$0xf0] }
 0x1d0   : > { %4242 = vmatpush.bf16.msrb.mxu2 %v5105_v17  ;;  %4211 = vmatmul.bf16.vlgmr.msra.gmra.mxu3 %v6777_v7  ;;  %v5790_v7 = vld [vmem:[%s6682_s5 + $0x344] sm:$0xf]  ;;  %v4953_v61 = vor.u32 %v5758_v5, %v4950_v56  ;;  %v5137_v17 = vor.u32 %v5804_v9, %v5134_v10  ;;  %v4937_v28 = vor.u32 %v5754_v14, %v4934_v15  ;;  %v5110_v22 = vld [vmem:[%s6682_s5 + $0x388] sm:$0xf0]  ;;  %v5876_v10 = vld [vmem:[%s6682_s5 + $0x5f4] sm:$0xf] }
 0x1d1   : > { %4255 = vmatpush.bf16.msrb.mxu3 %v5169_v23  ;;  %v5081_v63 = vor.u32 %v5790_v7, %v5078_v59  ;;  %v5770_v16 = vld [vmem:[%s6682_s5 + $0x2a4] sm:$0xf]  ;;  %v5057_v56 = vor.u32 %v5784_v48, %v5054_v49  ;;  %v5121_v7 = vor.u32 %v5800_v51, %v5118_v52  ;;  %v5046_v59 = vld [vmem:[%s6682_s5 + $0x308] sm:$0xf0]  ;;  %v5214_v48 = vld [vmem:[%s6682_s5 + $0x458] sm:$0xf0] }
 0x1d2   : > { %4217 = vmatpush.bf16.msrb.mxu0 %v4969_v37  ;;  %v5802_v23 = vld [vmem:[%s6682_s5 + $0x3a4] sm:$0xf]  ;;  %v5001_v35 = vor.u32 %v5770_v16, %v4998_v18  ;;  %v5065_v37 = vor.u32 %v5786_v19, %v5062_v20  ;;  %v7120_v44 = vpop.f32.mrf.mxu2  ;;  %v5049_v9 = vor.u32 %v5782_v58, %v5046_v59  ;;  %v5222_v19 = vld [vmem:[%s6682_s5 + $0x468] sm:$0xf0]  ;;  %v5840_v49 = vld [vmem:[%s6682_s5 + $0x4d4] sm:$0xf] }
 0x1d3   : > { %4230 = vmatpush.bf16.msrb.mxu1 %v5033_v38  ;;  %v5752_v38 = vld [vmem:[%s6682_s5 + $0x214] sm:$0xf]  ;;  %v5129_v46 = vor.u32 %v5802_v23, %v5126_v25  ;;  %v7125_v50 = vpop.f32.mrf.mxu3  ;;  %v5798_v60 = vld [vmem:[%s6682_s5 + $0x384] sm:$0xf]  ;;  %v3980_v6 = vpop.f32.mrf.mxu1  ;;  %v5286_v25 = vld [vmem:[%s6682_s5 + $0x4e8] sm:$0xf0] }
 0x1d4   : > { %4243 = vmatpush.bf16.msrb.mxu2 %v5097_v40  ;;  %v4926_v40 = vld [vmem:[%s6682_s5 + $0x218] sm:$0xf0]  ;;  %v5826_v18 = vld [vmem:[%s6682_s5 + $0x464] sm:$0xf]  ;;  %v5206_v58 = vld [vmem:[%s6682_s5 + $0x448] sm:$0xf0] }
 0x1d5   : > { %4256 = vmatpush.bf16.msrb.mxu3 %v5161_v47  ;;  %v4990_v47 = vld [vmem:[%s6682_s5 + $0x298] sm:$0xf0]  ;;  %v5842_v20 = vld [vmem:[%s6682_s5 + $0x4e4] sm:$0xf] }
 0x1d6   : > { %4218 = vmatpush.bf16.msrb.mxu0 %v4961_v53  ;;  %v4929_v53 = vor.u32 %v5752_v38, %v4926_v40  ;;  %v4993_v5 = vor.u32 %v5768_v41, %v4990_v47  ;;  %v3967_v0 = vpop.f32.mrf.mxu0  ;;  %v5414_v38 = vld [vmem:[%s6682_s5 + $0x5e8] sm:$0xf0]  ;;  %v5225_v40 = vor.u32 %v5826_v18, %v5222_v19  ;;  %v5289_v41 = vor.u32 %v5842_v20, %v5286_v25  ;;  %v5824_v47 = vld [vmem:[%s6682_s5 + $0x454] sm:$0xf]  ;;  %v5278_v52 = vld [vmem:[%s6682_s5 + $0x4d8] sm:$0xf0] }
 0x1d7   : > { %4231 = vmatpush.bf16.msrb.mxu1 %v5025_v54  ;;  %v5750_v54 = vld [vmem:[%s6682_s5 + $0x204] sm:$0xf] }
 0x1d8   : > { %4244 = vmatpush.bf16.msrb.mxu2 %v5089_v55  ;;  %v4918_v55 = vld [vmem:[%s6682_s5 + $0x208] sm:$0xf0]  ;;  %v5854_v59 = vld [vmem:[%s6682_s5 + $0x544] sm:$0xf] }
 0x1d9   : > { %4257 = vmatpush.bf16.msrb.mxu3 %v5153_v21  ;;  %v4982_v21 = vld [vmem:[%s6682_s5 + $0x288] sm:$0xf0]  ;;  %v4921_v1 = vor.u32 %v5750_v54, %v4918_v55  ;;  %v5342_v54 = vld [vmem:[%s6682_s5 + $0x558] sm:$0xf0]  ;;  %v5872_v55 = vld [vmem:[%s6682_s5 + $0x5d4] sm:$0xf] }
 0x1da   : > { %4219 = vmatpush.bf16.msrb.mxu0 %v4953_v61  ;;  %v5828_v61 = vld [vmem:[%s6682_s5 + $0x474] sm:$0xf]  ;;  %v4985_v8 = vor.u32 %v5766_v57, %v4982_v21  ;;  %v5822_v21 = vld [vmem:[%s6682_s5 + $0x444] sm:$0xf] }
 0x1db   : > { %4232 = vmatpush.bf16.msrb.mxu1 %v5017_v62  ;;  %v5230_v62 = vld [vmem:[%s6682_s5 + $0x478] sm:$0xf0]  ;;  %v4006_v15 = vpop.f32.mrf.mxu3  ;;  %v5834_v18 = vld [vmem:[%s6682_s5 + $0x4a4] sm:$0xf] }
 0x1dc   : > { %4245 = vmatpush.bf16.msrb.mxu2 %v5081_v63  ;;  %v5844_v63 = vld [vmem:[%s6682_s5 + $0x4f4] sm:$0xf]  ;;  %v5233_v14 = vor.u32 %v5828_v61, %v5230_v62  ;;  %v5398_v61 = vld [vmem:[%s6682_s5 + $0x5c8] sm:$0xf0]  ;;  %v5850_v25 = vld [vmem:[%s6682_s5 + $0x524] sm:$0xf] }
 0x1dd   : > { %4258 = vmatpush.bf16.msrb.mxu3 %v5145_v3  ;;  %v5860_v3 = vld [vmem:[%s6682_s5 + $0x574] sm:$0xf]  ;;  %v5297_v16 = vor.u32 %v5844_v63, %v5294_v2  ;;  %v5198_v2 = vld [vmem:[%s6682_s5 + $0x438] sm:$0xf0] }
 0x1de   : > { %4220 = vmatpush.bf16.msrb.mxu0 %v4945_v11  ;;  %v5422_v11 = vld [vmem:[%s6682_s5 + $0x5f8] sm:$0xf0] }
 0x1df   : > { %4233 = vmatpush.bf16.msrb.mxu1 %v5009_v12  ;;  %v3993_v12 = vpop.f32.mrf.mxu2  ;;  %v5425_v23 = vor.u32 %v5876_v10, %v5422_v11  ;;  %v5326_v10 = vld [vmem:[%s6682_s5 + $0x538] sm:$0xf0]  ;;  %v5868_v11 = vld [vmem:[%s6682_s5 + $0x5b4] sm:$0xf] }
 0x1e0   : > { %4246 = vmatpush.bf16.msrb.mxu2 %v5073_v13  ;;  %v5113_v13 = vor.u32 %v5798_v60, %v5110_v22  ;;  %v5334_v60 = vld [vmem:[%s6682_s5 + $0x548] sm:$0xf0]  ;;  %v5870_v22 = vld [vmem:[%s6682_s5 + $0x5c4] sm:$0xf]  ;;  %v5390_v12 = vld [vmem:[%s6682_s5 + $0x5b8] sm:$0xf0] }
 0x1e1   : > { %4259 = vmatpush.bf16.msrb.mxu3 %v5137_v17  ;;  %v5361_v17 = vor.u32 %v5860_v3, %v5358_v4  ;;  %v5337_v0 = vor.u32 %v5854_v59, %v5334_v60  ;;  %v5836_v3 = vld [vmem:[%s6682_s5 + $0x4b4] sm:$0xf]  ;;  %v5401_v6 = vor.u32 %v5870_v22, %v5398_v61  ;;  %v5393_v20 = vor.u32 %v5868_v11, %v5390_v12  ;;  %v5238_v59 = vld [vmem:[%s6682_s5 + $0x488] sm:$0xf0]  ;;  %v5846_v60 = vld [vmem:[%s6682_s5 + $0x504] sm:$0xf] }
 0x1e2   : > { %4221 = vmatpush.bf16.msrb.mxu0 %v4937_v28  ;;  %v5858_v28 = vld [vmem:[%s6682_s5 + $0x564] sm:$0xf]  ;;  %v5614_v11 = vld [vmem:[%s6682_s5 + $0x778] sm:$0xf0] }
 0x1e3   : > { %4234 = vmatpush.bf16.msrb.mxu1 %v5001_v35  ;;  %v5350_v35 = vld [vmem:[%s6682_s5 + $0x568] sm:$0xf0] }
 0x1e4   : > { %4247 = vmatpush.bf16.msrb.mxu2 %v5065_v37  ;;  %v5874_v37 = vld [vmem:[%s6682_s5 + $0x5e4] sm:$0xf] }
 0x1e5   : > { %4260 = vmatpush.bf16.msrb.mxu3 %v5129_v46  ;;  %v5353_v46 = vor.u32 %v5858_v28, %v5350_v35  ;;  %v5417_v51 = vor.u32 %v5874_v37, %v5414_v38  ;;  %v5318_v28 = vld [vmem:[%s6682_s5 + $0x528] sm:$0xf0]  ;;  %v5866_v37 = vld [vmem:[%s6682_s5 + $0x5a4] sm:$0xf] }
 0x1e6   : > { %4222 = vmatpush.bf16.msrb.mxu0 %v4929_v53  ;;  %v5856_v53 = vld [vmem:[%s6682_s5 + $0x554] sm:$0xf]  ;;  %v5382_v38 = vld [vmem:[%s6682_s5 + $0x5a8] sm:$0xf0] }
 0x1e7   : > { %4235 = vmatpush.bf16.msrb.mxu1 %v4993_v5  ;;  %v5406_v5 = vld [vmem:[%s6682_s5 + $0x5d8] sm:$0xf0]  ;;  %v5345_v57 = vor.u32 %v5856_v53, %v5342_v54  ;;  %v5385_v53 = vor.u32 %v5866_v37, %v5382_v38  ;;  %v5542_v38 = vld [vmem:[%s6682_s5 + $0x6e8] sm:$0xf0] }
 0x1e8   : > { %4248 = vmatpush.bf16.msrb.mxu2 %v5057_v56  ;;  %v5217_v56 = vor.u32 %v5824_v47, %v5214_v48  ;;  %v5321_v47 = vor.u32 %v5850_v25, %v5318_v28  ;;  %v5816_v48 = vld [vmem:[%s6682_s5 + $0x414] sm:$0xf]  ;;  %v5246_v54 = vld [vmem:[%s6682_s5 + $0x498] sm:$0xf0]  ;;  %v5478_v25 = vld [vmem:[%s6682_s5 + $0x668] sm:$0xf0] }
 0x1e9   : > { %4261 = vmatpush.bf16.msrb.mxu3 %v5121_v7  ;;  %v5270_v7 = vld [vmem:[%s6682_s5 + $0x4c8] sm:$0xf0]  ;;  %v5906_v28 = vld [vmem:[%s6682_s5 + $0x6e4] sm:$0xf] }
 0x1ea   : > { %4223 = vmatpush.bf16.msrb.mxu0 %v4921_v1  ;;  %v7173_v62 = vpop.f32.mrf.mxu0  ;;  %v5820_v1 = vld [vmem:[%s6682_s5 + $0x434] sm:$0xf] }
 0x1eb   : > { %4236 = vmatpush.bf16.msrb.mxu1 %v4985_v8  ;;  %v7178_v4 = vpop.f32.mrf.mxu1  ;;  %v5262_v8 = vld [vmem:[%s6682_s5 + $0x4b8] sm:$0xf0] }
 0x1ec   : > { %4249 = vmatpush.bf16.msrb.mxu2 %v5049_v9  ;;  %v5852_v9 = vld [vmem:[%s6682_s5 + $0x534] sm:$0xf] }
 0x1ed   : > { %4262 = vmatpush.bf16.msrb.mxu3 %v5113_v13  ;;  %4224 = vmatmul.bf16.vlgmr.msrb.gmra.mxu0 %v6847_v42  ;;  %v5838_v42 = vld [vmem:[%s6682_s5 + $0x4c4] sm:$0xf]  ;;  %v5201_v13 = vor.u32 %v5820_v1, %v5198_v2  ;;  %v5329_v15 = vor.u32 %v5852_v9, %v5326_v10  ;;  %v5892_v2 = vld [vmem:[%s6682_s5 + $0x674] sm:$0xf]  ;;  %v5550_v9 = vld [vmem:[%s6682_s5 + $0x6f8] sm:$0xf0] }
 0x1ee   : > { %4268 = vmatpush.bf16.msra.mxu0 %v5233_v14  ;;  %4237 = vmatmul.bf16.vlgmr.msrb.gmra.mxu1 %v6851_v45  ;;  %v5209_v45 = vor.u32 %v5822_v21, %v5206_v58  ;;  %v5273_v63 = vor.u32 %v5838_v42, %v5270_v7  ;;  %v5265_v14 = vor.u32 %v5836_v3, %v5262_v8  ;;  %v5814_v21 = vld [vmem:[%s6682_s5 + $0x404] sm:$0xf]  ;;  %v5174_v58 = vld [vmem:[%s6682_s5 + $0x408] sm:$0xf0]  ;;  %v5486_v3 = vld [vmem:[%s6682_s5 + $0x678] sm:$0xf0] }
 0x1ef   : > { %4281 = vmatpush.bf16.msra.mxu1 %v5297_v16  ;;  %4250 = vmatmul.bf16.vlgmr.msrb.gmra.mxu2 %v6843_v39  ;;  %v5281_v39 = vor.u32 %v5840_v49, %v5278_v52  ;;  %v5818_v16 = vld [vmem:[%s6682_s5 + $0x424] sm:$0xf]  ;;  %v5182_v49 = vld [vmem:[%s6682_s5 + $0x418] sm:$0xf0]  ;;  %v5177_v8 = vor.u32 %v5814_v21, %v5174_v58  ;;  %v5924_v10 = vld [vmem:[%s6682_s5 + $0x774] sm:$0xf] }
 0x1f0   : > { %4294 = vmatpush.bf16.msra.mxu2 %v5361_v17  ;;  %4263 = vmatmul.bf16.vlgmr.msrb.gmra.mxu3 %v6849_v43  ;;  %v5409_v43 = vor.u32 %v5872_v55, %v5406_v5  ;;  %v5190_v17 = vld [vmem:[%s6682_s5 + $0x428] sm:$0xf0]  ;;  %v5848_v55 = vld [vmem:[%s6682_s5 + $0x514] sm:$0xf]  ;;  %v5310_v5 = vld [vmem:[%s6682_s5 + $0x518] sm:$0xf0] }
 0x1f1   : > { %4307 = vmatpush.bf16.msra.mxu3 %v5425_v23  ;;  %v5254_v23 = vld [vmem:[%s6682_s5 + $0x4a8] sm:$0xf0]  ;;  %v5830_v7 = vld [vmem:[%s6682_s5 + $0x484] sm:$0xf] }
 0x1f2   : > { %4269 = vmatpush.bf16.msra.mxu0 %v5225_v40  ;;  %v7188_v19 = vpop.f32.mrf.mxu2  ;;  %v5193_v40 = vor.u32 %v5818_v16, %v5190_v17  ;;  %v5241_v12 = vor.u32 %v5830_v7, %v5238_v59  ;;  %v5489_v17 = vor.u32 %v5892_v2, %v5486_v3  ;;  %v5526_v59 = vld [vmem:[%s6682_s5 + $0x6c8] sm:$0xf0]  ;;  %v5884_v3 = vld [vmem:[%s6682_s5 + $0x634] sm:$0xf] }
 0x1f3   : > { %4282 = vmatpush.bf16.msra.mxu1 %v5289_v41  ;;  %v7193_v35 = vpop.f32.mrf.mxu3  ;;  %v4019_v41 = vpop.f32.mrf.mxu0 }
 0x1f4   : > { %4295 = vmatpush.bf16.msra.mxu2 %v5353_v46  ;;  %v5257_v46 = vor.u32 %v5834_v18, %v5254_v23  ;;  %v4032_v52 = vpop.f32.mrf.mxu1  ;;  %v5890_v23 = vld [vmem:[%s6682_s5 + $0x664] sm:$0xf]  ;;  %v5606_v41 = vld [vmem:[%s6682_s5 + $0x768] sm:$0xf0] }
 0x1f5   : > { %4308 = vmatpush.bf16.msra.mxu3 %v5417_v51  ;;  %v5832_v51 = vld [vmem:[%s6682_s5 + $0x494] sm:$0xf] }
 0x1f6   : > { %4270 = vmatpush.bf16.msra.mxu0 %v5217_v56  ;;  %v5864_v56 = vld [vmem:[%s6682_s5 + $0x594] sm:$0xf]  ;;  %v5249_v42 = vor.u32 %v5832_v51, %v5246_v54  ;;  %v5545_v51 = vor.u32 %v5906_v28, %v5542_v38  ;;  %v5470_v54 = vld [vmem:[%s6682_s5 + $0x658] sm:$0xf0]  ;;  %v5914_v38 = vld [vmem:[%s6682_s5 + $0x724] sm:$0xf] }
 0x1f7   : > { %4283 = vmatpush.bf16.msra.mxu1 %v5281_v39  ;;  %v5374_v39 = vld [vmem:[%s6682_s5 + $0x598] sm:$0xf0] }
 0x1f8   : > { %4296 = vmatpush.bf16.msra.mxu2 %v5345_v57  ;;  %v5185_v57 = vor.u32 %v5816_v48, %v5182_v49  ;;  %v5377_v61 = vor.u32 %v5864_v56, %v5374_v39  ;;  %v5481_v48 = vor.u32 %v5890_v23, %v5478_v25  ;;  %v3979_v49 = vadd.f32 %v7115_v33, %v7113_v27  ;;  %v5534_v56 = vld [vmem:[%s6682_s5 + $0x6d8] sm:$0xf0]  ;;  %v5920_v39 = vld [vmem:[%s6682_s5 + $0x754] sm:$0xf]  ;;  %v5898_v23 = vld [vmem:[%s6682_s5 + $0x6a4] sm:$0xf] }
 0x1f9   : > { %4309 = vmatpush.bf16.msra.mxu3 %v5409_v43  ;;  %v5313_v43 = vor.u32 %v5848_v55, %v5310_v5  ;;  %v5904_v55 = vld [vmem:[%s6682_s5 + $0x6d4] sm:$0xf]  ;;  %v5662_v33 = vld [vmem:[%s6682_s5 + $0x7d8] sm:$0xf0] }
 0x1fa   : > { %4271 = vmatpush.bf16.msra.mxu0 %v5209_v45  ;;  %v4045_v22 = vpop.f32.mrf.mxu2  ;;  %v5302_v45 = vld [vmem:[%s6682_s5 + $0x508] sm:$0xf0]  ;;  %v5936_v27 = vld [vmem:[%s6682_s5 + $0x7d4] sm:$0xf]  ;;  %v3992_v21 = vadd.f32 %v7120_v44, %v3979_v49  ;;  %v5537_v58 = vor.u32 %v5904_v55, %v5534_v56  ;;  %v5438_v55 = vld [vmem:[%s6682_s5 + $0x618] sm:$0xf0] }
 0x1fb   : > { %4284 = vmatpush.bf16.msra.mxu1 %v5273_v63  ;;  %v5862_v63 = vld [vmem:[%s6682_s5 + $0x584] sm:$0xf]  ;;  %v4058_v1 = vpop.f32.mrf.mxu3  ;;  %v5665_v7 = vor.u32 %v5936_v27, %v5662_v33  ;;  %v5654_v44 = vld [vmem:[%s6682_s5 + $0x7c8] sm:$0xf0]  ;;  %v5566_v27 = vld [vmem:[%s6682_s5 + $0x718] sm:$0xf0] }
 0x1fc   : > { %4297 = vmatpush.bf16.msra.mxu2 %v5337_v0  ;;  %v5366_v0 = vld [vmem:[%s6682_s5 + $0x588] sm:$0xf0]  ;;  %v5928_v33 = vld [vmem:[%s6682_s5 + $0x794] sm:$0xf] }
 0x1fd   : > { %4310 = vmatpush.bf16.msra.mxu3 %v5401_v6  ;;  %v5908_v6 = vld [vmem:[%s6682_s5 + $0x6f4] sm:$0xf]  ;;  %v5369_v16 = vor.u32 %v5862_v63, %v5366_v0  ;;  %v4005_v0 = vadd.f32 %v7125_v50, %v3992_v21 }
 0x1fe   : > { %4272 = vmatpush.bf16.msra.mxu0 %v5201_v13  ;;  %v5305_v13 = vor.u32 %v5846_v60, %v5302_v45  ;;  %v5553_v18 = vor.u32 %v5908_v6, %v5550_v9  ;;  %v5590_v60 = vld [vmem:[%s6682_s5 + $0x748] sm:$0xf0]  ;;  %v5454_v6 = vld [vmem:[%s6682_s5 + $0x638] sm:$0xf0] }
 0x1ff   : > { %4285 = vmatpush.bf16.msra.mxu1 %v5265_v14  ;;  %v5940_v14 = vld [vmem:[%s6682_s5 + $0x7f4] sm:$0xf]  ;;  %v5457_v50 = vor.u32 %v5884_v3, %v5454_v6 }
 0x200   : > { %4298 = vmatpush.bf16.msra.mxu2 %v5329_v15  ;;  %v5678_v15 = vld [vmem:[%s6682_s5 + $0x7f8] sm:$0xf0] }
 0x201   : > { %4311 = vmatpush.bf16.msra.mxu3 %v5393_v20  ;;  %v5617_v20 = vor.u32 %v5924_v10, %v5614_v11  ;;  %v5681_v37 = vor.u32 %v5940_v14, %v5678_v15  ;;  %v5518_v10 = vld [vmem:[%s6682_s5 + $0x6b8] sm:$0xf0]  ;;  %v5916_v11 = vld [vmem:[%s6682_s5 + $0x734] sm:$0xf]  ;;  %v4018_v15 = vadd.f32 %v7173_v62, %v4005_v0  ;;  %v5930_v62 = vld [vmem:[%s6682_s5 + $0x7a4] sm:$0xf] }
 0x202   : > { %4273 = vmatpush.bf16.msra.mxu0 %v5193_v40  ;;  %v5922_v40 = vld [vmem:[%s6682_s5 + $0x764] sm:$0xf]  ;;  %v5646_v14 = vld [vmem:[%s6682_s5 + $0x7b8] sm:$0xf0] }
 0x203   : > { %4286 = vmatpush.bf16.msra.mxu1 %v5257_v46  ;;  %v5938_v46 = vld [vmem:[%s6682_s5 + $0x7e4] sm:$0xf]  ;;  %v5609_v52 = vor.u32 %v5922_v40, %v5606_v41  ;;  %v5574_v40 = vld [vmem:[%s6682_s5 + $0x728] sm:$0xf0] }
 0x204   : > { %4299 = vmatpush.bf16.msra.mxu2 %v5321_v47  ;;  %v5670_v47 = vld [vmem:[%s6682_s5 + $0x7e8] sm:$0xf0] }
 0x205   : > { %4312 = vmatpush.bf16.msra.mxu3 %v5385_v53  ;;  %v5888_v53 = vld [vmem:[%s6682_s5 + $0x654] sm:$0xf]  ;;  %v5673_v5 = vor.u32 %v5938_v46, %v5670_v47  ;;  %v5638_v46 = vld [vmem:[%s6682_s5 + $0x7a8] sm:$0xf0] }
 0x206   : > { %4274 = vmatpush.bf16.msra.mxu0 %v5185_v57  ;;  %v5598_v57 = vld [vmem:[%s6682_s5 + $0x758] sm:$0xf0]  ;;  %v5641_v56 = vor.u32 %v5930_v62, %v5638_v46 }
 0x207   : > { %4287 = vmatpush.bf16.msra.mxu1 %v5249_v42  ;;  %v5601_v42 = vor.u32 %v5920_v39, %v5598_v57  ;;  %v5502_v39 = vld [vmem:[%s6682_s5 + $0x698] sm:$0xf0]  ;;  %v5912_v57 = vld [vmem:[%s6682_s5 + $0x714] sm:$0xf] }
 0x208   : > { %4300 = vmatpush.bf16.msra.mxu2 %v5313_v43  ;;  %v5462_v43 = vld [vmem:[%s6682_s5 + $0x648] sm:$0xf0] }
 0x209   : > { %4313 = vmatpush.bf16.msra.mxu3 %v5377_v61  ;;  %v5934_v61 = vld [vmem:[%s6682_s5 + $0x7c4] sm:$0xf] }
 0x20a   : > { %4275 = vmatpush.bf16.msra.mxu0 %v5177_v8  ;;  %v7250_v22 = vpop.f32.mrf.mxu0  ;;  %v5900_v8 = vld [vmem:[%s6682_s5 + $0x6b4] sm:$0xf]  ;;  %v5657_v9 = vor.u32 %v5934_v61, %v5654_v44  ;;  %v5926_v44 = vld [vmem:[%s6682_s5 + $0x784] sm:$0xf] }
 0x20b   : > { %4288 = vmatpush.bf16.msra.mxu1 %v5241_v12  ;;  %v7254_v63 = vpop.f32.mrf.mxu1  ;;  %v5582_v12 = vld [vmem:[%s6682_s5 + $0x738] sm:$0xf0] }
 0x20c   : > { %4301 = vmatpush.bf16.msra.mxu2 %v5305_v13  ;;  %v5932_v13 = vld [vmem:[%s6682_s5 + $0x7b4] sm:$0xf] }
 0x20d   : > { %4314 = vmatpush.bf16.msra.mxu3 %v5369_v16  ;;  %4276 = vmatmul.bf16.vlgmr.msra.gmra.mxu0 %v6918_v26  ;;  %v5473_v26 = vor.u32 %v5888_v53, %v5470_v54  ;;  %v5521_v16 = vor.u32 %v5900_v8, %v5518_v10  ;;  %v5649_v25 = vor.u32 %v5932_v13, %v5646_v14  ;;  %v5880_v54 = vld [vmem:[%s6682_s5 + $0x614] sm:$0xf] }
 0x20e   : > { %4320 = vmatpush.bf16.msrb.mxu0 %v5489_v17  ;;  %4289 = vmatmul.bf16.vlgmr.msra.gmra.mxu1 %v6925_v31  ;;  %v5902_v31 = vld [vmem:[%s6682_s5 + $0x6c4] sm:$0xf]  ;;  %v5585_v17 = vor.u32 %v5916_v11, %v5582_v12  ;;  %v5577_v53 = vor.u32 %v5914_v38, %v5574_v40 }
 0x20f   : > { %4333 = vmatpush.bf16.msrb.mxu1 %v5553_v18  ;;  %4302 = vmatmul.bf16.vlgmr.msra.gmra.mxu2 %v6923_v30  ;;  %v5886_v30 = vld [vmem:[%s6682_s5 + $0x644] sm:$0xf]  ;;  %v5529_v1 = vor.u32 %v5902_v31, %v5526_v59  ;;  %v5494_v59 = vld [vmem:[%s6682_s5 + $0x688] sm:$0xf0] }
 0x210   : > { %4346 = vmatpush.bf16.msrb.mxu2 %v5617_v20  ;;  %4315 = vmatmul.bf16.vlgmr.msra.gmra.mxu3 %v6929_v34  ;;  %v5918_v34 = vld [vmem:[%s6682_s5 + $0x744] sm:$0xf]  ;;  %v5465_v45 = vor.u32 %v5886_v30, %v5462_v43  ;;  %v5446_v20 = vld [vmem:[%s6682_s5 + $0x628] sm:$0xf0] }
 0x211   : > { %4359 = vmatpush.bf16.msrb.mxu3 %v5681_v37  ;;  %v5593_v2 = vor.u32 %v5918_v34, %v5590_v60  ;;  %v5882_v18 = vld [vmem:[%s6682_s5 + $0x624] sm:$0xf]  ;;  %v5510_v37 = vld [vmem:[%s6682_s5 + $0x6a8] sm:$0xf0] }
 0x212   : > { %4321 = vmatpush.bf16.msrb.mxu0 %v5481_v48  ;;  %v7269_v28 = vpop.f32.mrf.mxu2  ;;  %v4071_v47 = vpop.f32.mrf.mxu0  ;;  %v5449_v48 = vor.u32 %v5882_v18, %v5446_v20  ;;  %v5878_v30 = vld [vmem:[%s6682_s5 + $0x604] sm:$0xf]  ;;  %v5430_v43 = vld [vmem:[%s6682_s5 + $0x608] sm:$0xf0] }
 0x213   : > { %4334 = vmatpush.bf16.msrb.mxu1 %v5545_v51  ;;  %v4108_v41 = vpop.f32.mrf.mxu3  ;;  %v4084_v49 = vpop.f32.mrf.mxu1  ;;  %v4031_v51 = vadd.f32 %v7178_v4, %v4018_v15  ;;  %v5630_v4 = vld [vmem:[%s6682_s5 + $0x798] sm:$0xf0]  ;;  %v5894_v31 = vld [vmem:[%s6682_s5 + $0x684] sm:$0xf]  ;;  %v5558_v60 = vld [vmem:[%s6682_s5 + $0x708] sm:$0xf0] }
 0x214   : > { %4347 = vmatpush.bf16.msrb.mxu2 %v5609_v52  ;;  %v5513_v52 = vor.u32 %v5898_v23, %v5510_v37  ;;  %v5910_v34 = vld [vmem:[%s6682_s5 + $0x704] sm:$0xf] }
 0x215   : > { %4360 = vmatpush.bf16.msrb.mxu3 %v5673_v5  ;;  %v5896_v5 = vld [vmem:[%s6682_s5 + $0x694] sm:$0xf]  ;;  %v4044_v21 = vadd.f32 %v7188_v19, %v4031_v51  ;;  %v5561_v3 = vor.u32 %v5910_v34, %v5558_v60 }
 0x216   : > { %4322 = vmatpush.bf16.msrb.mxu0 %v5473_v26  ;;  %v5441_v26 = vor.u32 %v5880_v54, %v5438_v55 }
 0x217   : > { %4335 = vmatpush.bf16.msrb.mxu1 %v5537_v58  ;;  %v5505_v58 = vor.u32 %v5896_v5, %v5502_v39  ;;  %v4057_v19 = vadd.f32 %v7193_v35, %v4044_v21 }
 0x218   : > { %4348 = vmatpush.bf16.msrb.mxu2 %v5601_v42  ;;  %v5569_v42 = vor.u32 %v5912_v57, %v5566_v27 }
 0x219   : > { %4361 = vmatpush.bf16.msrb.mxu3 %v5665_v7  ;;  %v5633_v7 = vor.u32 %v5928_v33, %v5630_v4  ;;  %v4070_v8 = vadd.f32 %v7250_v22, %v4057_v19 }
 0x21a   : > { %4323 = vmatpush.bf16.msrb.mxu0 %v5465_v45  ;;  %v4097_v61 = vpop.f32.mrf.mxu2  ;;  %v5622_v45 = vld [vmem:[%s6682_s5 + $0x788] sm:$0xf0] }
 0x21b   : > { %4336 = vmatpush.bf16.msrb.mxu1 %v5529_v1  ;;  %v4110_v0 = vpop.f32.mrf.mxu3  ;;  %v5433_v1 = vor.u32 %v5878_v30, %v5430_v43  ;;  %v5625_v6 = vor.u32 %v5926_v44, %v5622_v45 }
 0x21c   : > { %4349 = vmatpush.bf16.msrb.mxu2 %v5593_v2  ;;  %v5497_v2 = vor.u32 %v5894_v31, %v5494_v59 }
 0x21d   : > { %4362 = vmatpush.bf16.msrb.mxu3 %v5657_v9  ;;  %v4083_v9 = vadd.f32 %v7254_v63, %v4070_v8  ;;  %v2354_v63 = vld [vmem:[#allocation2] sm:$0xff] }
 0x21e   : > { %4324 = vmatpush.bf16.msrb.mxu0 %v5457_v50 }
 0x21f   : > { %4337 = vmatpush.bf16.msrb.mxu1 %v5521_v16  ;;  %v4096_v35 = vadd.f32 %v7269_v28, %v4083_v9 }
 0x220   : > { %4350 = vmatpush.bf16.msrb.mxu2 %v5585_v17 }
 0x221   : > { %4363 = vmatpush.bf16.msrb.mxu3 %v5649_v25  ;;  %v4109_v10 = vadd.f32 %v4108_v41, %v4096_v35 }
 0x222   : > { %4325 = vmatpush.bf16.msrb.mxu0 %v5449_v48 }
 0x223   : > { %4338 = vmatpush.bf16.msrb.mxu1 %v5513_v52 }
 0x224   : > { %4351 = vmatpush.bf16.msrb.mxu2 %v5577_v53 }
 0x225   : > { %4364 = vmatpush.bf16.msrb.mxu3 %v5641_v56 }
 0x226   : > { %4326 = vmatpush.bf16.msrb.mxu0 %v5441_v26 }
 0x227   : > { %4339 = vmatpush.bf16.msrb.mxu1 %v5505_v58 }
 0x228   : > { %4352 = vmatpush.bf16.msrb.mxu2 %v5569_v42 }
 0x229   : > { %4365 = vmatpush.bf16.msrb.mxu3 %v5633_v7 }
 0x22a   : > { %4327 = vmatpush.bf16.msrb.mxu0 %v5433_v1  ;;  %v4121_v11 = vpop.f32.mrf.mxu0 }
 0x22b   : > { %4340 = vmatpush.bf16.msrb.mxu1 %v5497_v2  ;;  %v4134_v12 = vpop.f32.mrf.mxu1  ;;  %v4122_v22 = vadd.f32 %v4121_v11, %v4109_v10  ;;  %v2355_v2 = vld [vmem:[#allocation2 + $0x8] sm:$0xff] }
 0x22c   : > { %4353 = vmatpush.bf16.msrb.mxu2 %v5561_v3 }
 0x22d   : > { %4366 = vmatpush.bf16.msrb.mxu3 %v5625_v6  ;;  %4328 = vmatmul.bf16.vlgmr.msrb.gmra.mxu0 %v6996_v24  ;;  %v4135_v13 = vadd.f32 %v4134_v12, %v4122_v22 }
 0x22e   : > { %4341 = vmatmul.bf16.vlgmr.msrb.gmra.mxu1 %v7003_v32 }
 0x22f   : > { %4354 = vmatmul.bf16.vlgmr.msrb.gmra.mxu2 %v7001_v29 }
 0x230   : > { %4367 = vmatmul.bf16.vlgmr.msrb.gmra.mxu3 %v7007_v36 }
 0x232   : > { %v4147_v14 = vpop.f32.mrf.mxu2  ;;  %v4123_v16 = vpop.f32.mrf.mxu0 }
 0x233   : > { %v4148_v50 = vadd.f32 %v4147_v14, %v4135_v13  ;;  %v4160_v15 = vpop.f32.mrf.mxu3  ;;  %v4136_v17 = vpop.f32.mrf.mxu1 }
 0x235   : > { %v4161_v24 = vadd.f32 %v4160_v15, %v4148_v50 }
 0x237   : > { %v4372_v18 = vadd.f32 %v4161_v24, %v2354_v63 }
 0x239   : > { %4374 = vst [vmem:[#allocation2] sm:$0xff] %v4372_v18 }
 0x23a   : > { %v4149_v32 = vpop.f32.mrf.mxu2 }
 0x23b   : > { %v4162_v29 = vpop.f32.mrf.mxu3 }
 0x24a   : > { %v4173_v20 = vpop.f32.mrf.mxu0 }
 0x24b   : > { %v4186_v23 = vpop.f32.mrf.mxu1 }
 0x24c   : > { %v4187_v25 = vadd.f32 %v4186_v23, %v4173_v20 }
 0x252   : > { %v4199_v36 = vpop.f32.mrf.mxu2  ;;  %v4175_v40 = vpop.f32.mrf.mxu0 }
 0x253   : > { %v4200_v28 = vadd.f32 %v4199_v36, %v4187_v25  ;;  %v4212_v37 = vpop.f32.mrf.mxu3  ;;  %v4188_v41 = vpop.f32.mrf.mxu1 }
 0x255   : > { %v4213_v38 = vadd.f32 %v4212_v37, %v4200_v28 }
 0x25a   : > { %v4201_v62 = vpop.f32.mrf.mxu2 }
 0x25b   : > { %v4214_v46 = vpop.f32.mrf.mxu3 }
 0x26a   : > { %v4225_v47 = vpop.f32.mrf.mxu0 }
 0x26b   : > { %v4238_v48 = vpop.f32.mrf.mxu1  ;;  %v4226_v39 = vadd.f32 %v4225_v47, %v4213_v38 }
 0x26d   : > { %v4239_v4 = vadd.f32 %v4238_v48, %v4226_v39 }
 0x272   : > { %v4251_v49 = vpop.f32.mrf.mxu2  ;;  %v4227_v52 = vpop.f32.mrf.mxu0 }
 0x273   : > { %v4264_v51 = vpop.f32.mrf.mxu3  ;;  %v4240_v53 = vpop.f32.mrf.mxu1  ;;  %v4252_v21 = vadd.f32 %v4251_v49, %v4239_v4 }
 0x275   : > { %v4265_v30 = vadd.f32 %v4264_v51, %v4252_v21 }
 0x27a   : > { %v4253_v54 = vpop.f32.mrf.mxu2 }
 0x27b   : > { %v4266_v55 = vpop.f32.mrf.mxu3 }
 0x28a   : > { %v4277_v5 = vpop.f32.mrf.mxu0 }
 0x28b   : > { %v4290_v56 = vpop.f32.mrf.mxu1  ;;  %v4278_v43 = vadd.f32 %v4277_v5, %v4265_v30 }
 0x28d   : > { %v4291_v31 = vadd.f32 %v4290_v56, %v4278_v43 }
 0x292   : > { %v4303_v57 = vpop.f32.mrf.mxu2  ;;  %v4279_v33 = vpop.f32.mrf.mxu0 }
 0x293   : > { %v4316_v27 = vpop.f32.mrf.mxu3  ;;  %v4292_v26 = vpop.f32.mrf.mxu1  ;;  %v4304_v7 = vadd.f32 %v4303_v57, %v4291_v31 }
 0x295   : > { %v4317_v59 = vadd.f32 %v4316_v27, %v4304_v7 }
 0x29a   : > { %v4305_v58 = vpop.f32.mrf.mxu2 }
 0x29b   : > { %v4318_v42 = vpop.f32.mrf.mxu3 }
 0x2aa   : > { %v4329_v34 = vpop.f32.mrf.mxu0 }
 0x2ab   : > { %v4342_v60 = vpop.f32.mrf.mxu1  ;;  %v4330_v61 = vadd.f32 %v4329_v34, %v4317_v59 }
 0x2ad   : > { %v4343_v44 = vadd.f32 %v4342_v60, %v4330_v61 }
 0x2b2   : > { %v4355_v45 = vpop.f32.mrf.mxu2  ;;  %v4331_v19 = vpop.f32.mrf.mxu0 }
 0x2b3   : > { %v4356_v0 = vadd.f32 %v4355_v45, %v4343_v44  ;;  %v4368_v1 = vpop.f32.mrf.mxu3  ;;  %v4344_v3 = vpop.f32.mrf.mxu1 }
 0x2b5   : > { %v4369_v6 = vadd.f32 %v4368_v1, %v4356_v0 }
 0x2b7   : > { %v4373_v8 = vadd.f32 %v4369_v6, %v2355_v2  ;;  %4379 = sbr.rel (%p5682_p13) target bundleno = 825 (0x339), region = 92 }
 0x2b9   : > { %4375 = vst [vmem:[#allocation2 + $0x8] sm:$0xff] %v4373_v8 }
 0x2ba   : > { %v4357_v9 = vpop.f32.mrf.mxu2 }
 0x2bb   : > { %v4370_v35 = vpop.f32.mrf.mxu3 }
 0x2bc   : > { %v4380_v10 = vld [vmem:[#allocation2] sm:$0xff]  ;;  %v4390_v22 = vlaneseq }
 0x2bd   : > { %v4382_v12 = vld [vmem:[%s2340_s12] sm:$0x3] }
 0x2be   : > { %v4384_v13 = vperm.slane %v4382_v12, 0  ;;  %v4385_v14 = vperm.slane %v4382_v12, 1  ;;  %v7308_v50 = vshrl.u32 %v4390_v22, 7 }
 0x2c0   : > { %v4381_v11 = vld [vmem:[#allocation2 + $0x8] sm:$0xff]  ;;  %v7310_v15 = vadd.f32 %v4384_v13, %v4380_v10  ;;  %vm4393_vm0 = vcmp.lt.s32.totalorder %v7308_v50, 4  ;;  %vm4459_vm7 = vcmp.ge.s32.totalorder %v7308_v50, 4 }
 0x2c1   : > { %v7312_v16 = vadd.f32 %v4385_v14, %v4381_v11 }
 0x2c2   : > { %v4397_v63 = vsel %vm4393_vm0, %v7310_v15, 0.0 }
 0x2c3   : > { %v4398_v17 = vsel %vm4393_vm0, %v7312_v16, 0.0  ;;  %v4399_v24 = vrot.slane %v4397_v63, 4 }
 0x2c4   : > { %v4405_v18 = vrot.slane %v4398_v17, 4 }
 0x2c5   : > { %v4400_v32 = vadd.f32 %v4399_v24, %v4397_v63 }
 0x2c6   : > { %v4406_v29 = vadd.f32 %v4405_v18, %v4398_v17 }
 0x2c7   : > { %v4401_v20 = vrot.slane %v4400_v32, 2 }
 0x2c8   : > { %v4407_v23 = vrot.slane %v4406_v29, 2 }
 0x2c9   : > { %v4402_v25 = vadd.f32 %v4401_v20, %v4400_v32 }
 0x2ca   : > { %v4408_v36 = vadd.f32 %v4407_v23, %v4406_v29 }
 0x2cb   : > { %v4403_v28 = vrot.slane %v4402_v25, 1 }
 0x2cc   : > { %v4409_v37 = vrot.slane %v4408_v36, 1 }
 0x2cd   : > { %v4404_v38 = vadd.f32 %v4403_v28, %v4402_v25 }
 0x2ce   : > { %v4410_v40 = vadd.f32 %v4409_v37, %v4408_v36 }
 0x2cf   : > { %v4411_v41 = vmul.f32 0.25, %v4404_v38 }
 0x2d0   : > { %v4412_v62 = vmul.f32 0.25, %v4410_v40 }
 0x2d1   : > { %v4413_v46 = vsub.f32 %v7310_v15, %v4411_v41 }
 0x2d2   : > { %v4414_v47 = vsub.f32 %v7312_v16, %v4412_v62 }
 0x2d3   : > { %v4415_v48 = vmul.f32 %v4413_v46, %v4413_v46 }
 0x2d4   : > { %v4416_v49 = vmul.f32 %v4414_v47, %v4414_v47 }
 0x2d5   : > { %v4417_v51 = vsel %vm4393_vm0, %v4415_v48, 0.0 }
 0x2d6   : > { %v4418_v52 = vsel %vm4393_vm0, %v4416_v49, 0.0  ;;  %v4419_v53 = vrot.slane %v4417_v51, 4 }
 0x2d7   : > { %v4425_v54 = vrot.slane %v4418_v52, 4 }
 0x2d8   : > { %v4420_v55 = vadd.f32 %v4419_v53, %v4417_v51 }
 0x2d9   : > { %v4426_v5 = vadd.f32 %v4425_v54, %v4418_v52 }
 0x2da   : > { %v4421_v56 = vrot.slane %v4420_v55, 2 }
 0x2db   : > { %v4427_v39 = vrot.slane %v4426_v5, 2 }
 0x2dc   : > { %v4422_v57 = vadd.f32 %v4421_v56, %v4420_v55 }
 0x2dd   : > { %v4428_v27 = vadd.f32 %v4427_v39, %v4426_v5 }
 0x2de   : > { %v4423_v33 = vrot.slane %v4422_v57, 1 }
 0x2df   : > { %v4429_v4 = vrot.slane %v4428_v27, 1 }
 0x2e0   : > { %v4424_v26 = vadd.f32 %v4423_v33, %v4422_v57 }
 0x2e1   : > { %v4430_v21 = vadd.f32 %v4429_v4, %v4428_v27 }
 0x2e2   : > { %v4431_v58 = vmul.f32 0.25, %v4424_v26 }
 0x2e3   : > { %v4432_v42 = vmul.f32 0.25, %v4430_v21 }
 0x2e4   : > { %v4433_v30 = vadd.f32 1e-05, %v4431_v58 }
 0x2e5   : > { %v4434_v43 = vadd.f32 1e-05, %v4432_v42 }
 0x2e6   : > { %5999 = vrsqrt.f32 %v4433_v30  ;;  %vm4441_vm1 = vweird.f32 %v4433_v30 }
 0x2e7   : > { %6001 = vrsqrt.f32 %v4434_v43  ;;  %vm4451_vm3 = vweird.f32 %v4434_v43 }
 0x2ec   : > { %v6000_v31 = vpop.eup %5999 }
 0x2ed   : > { %v6002_v7 = vpop.eup %6001  ;;  %v4436_v59 = vmul.f32 %v6000_v31, %v4433_v30  ;;  %vm4442_vm2 = vweird.f32 %v6000_v31 }
 0x2ee   : > { %v4446_v34 = vmul.f32 %v6002_v7, %v4434_v43  ;;  %vm4452_vm4 = vweird.f32 %v6002_v7  ;;  %vm4443_vm5 = vmor %vm4441_vm1, %vm4442_vm2 }
 0x2ef   : > { %v4437_v60 = vmul.f32 %v6000_v31, %v4436_v59  ;;  %vm4453_vm6 = vmor %vm4451_vm3, %vm4452_vm4 }
 0x2f0   : > { %v4447_v61 = vmul.f32 %v6002_v7, %v4446_v34 }
 0x2f1   : > { %v4438_v44 = vmul.f32 0.5, %v4437_v60 }
 0x2f2   : > { %v4448_v45 = vmul.f32 0.5, %v4447_v61 }
 0x2f3   : > { %v4439_v0 = vsub.f32 1.5, %v4438_v44 }
 0x2f4   : > { %v4449_v1 = vsub.f32 1.5, %v4448_v45 }
 0x2f5   : > { %v4440_v19 = vmul.f32 %v6000_v31, %v4439_v0 }
 0x2f6   : > { %v4450_v2 = vmul.f32 %v6002_v7, %v4449_v1 }
 0x2f7   : > { %v4444_v3 = vsel %vm4443_vm5, %v6000_v31, %v4440_v19 }
 0x2f8   : > { %v4454_v6 = vsel %vm4453_vm6, %v6002_v7, %v4450_v2  ;;  %v4455_v8 = vmul.f32 %v4444_v3, %v4413_v46 }
 0x2f9   : > { %v4456_v9 = vmul.f32 %v4454_v6, %v4414_v47 }
 0x2fa   : > { %v7331_v35 = vsel %vm4393_vm0, %v4455_v8, %v7310_v15 }
 0x2fb   : > { %v7336_v10 = vsel %vm4393_vm0, %v4456_v9, %v7312_v16  ;;  %v4464_v11 = vsel %vm4459_vm7, %v7331_v35, 0.0 }
 0x2fc   : > { %v4465_v12 = vsel %vm4459_vm7, %v7336_v10, 0.0  ;;  %v4466_v22 = vrot.slane %v4464_v11, 4 }
 0x2fd   : > { %v4472_v13 = vrot.slane %v4465_v12, 4 }
 0x2fe   : > { %v4467_v14 = vadd.f32 %v4466_v22, %v4464_v11 }
 0x2ff   : > { %v4473_v63 = vadd.f32 %v4472_v13, %v4465_v12 }
 0x300   : > { %v4468_v17 = vrot.slane %v4467_v14, 2 }
 0x301   : > { %v4474_v15 = vrot.slane %v4473_v63, 2 }
 0x302   : > { %v4469_v24 = vadd.f32 %v4468_v17, %v4467_v14 }
 0x303   : > { %v4475_v18 = vadd.f32 %v4474_v15, %v4473_v63 }
 0x304   : > { %v4470_v32 = vrot.slane %v4469_v24, 1 }
 0x305   : > { %v4476_v29 = vrot.slane %v4475_v18, 1 }
 0x306   : > { %v4471_v16 = vadd.f32 %v4470_v32, %v4469_v24 }
 0x307   : > { %v4477_v20 = vadd.f32 %v4476_v29, %v4475_v18 }
 0x308   : > { %v4478_v23 = vmul.f32 0.25, %v4471_v16 }
 0x309   : > { %v4479_v25 = vmul.f32 0.25, %v4477_v20 }
 0x30a   : > { %v4480_v36 = vsub.f32 %v7331_v35, %v4478_v23 }
 0x30b   : > { %v4481_v28 = vsub.f32 %v7336_v10, %v4479_v25 }
 0x30c   : > { %v4482_v37 = vmul.f32 %v4480_v36, %v4480_v36 }
 0x30d   : > { %v4483_v38 = vmul.f32 %v4481_v28, %v4481_v28 }
 0x30e   : > { %v4484_v40 = vsel %vm4459_vm7, %v4482_v37, 0.0 }
 0x30f   : > { %v4485_v41 = vsel %vm4459_vm7, %v4483_v38, 0.0  ;;  %v4486_v62 = vrot.slane %v4484_v40, 4 }
 0x310   : > { %v4492_v46 = vrot.slane %v4485_v41, 4 }
 0x311   : > { %v4487_v47 = vadd.f32 %v4486_v62, %v4484_v40 }
 0x312   : > { %v4493_v48 = vadd.f32 %v4492_v46, %v4485_v41 }
 0x313   : > { %v4488_v49 = vrot.slane %v4487_v47, 2 }
 0x314   : > { %v4494_v51 = vrot.slane %v4493_v48, 2 }
 0x315   : > { %v4489_v52 = vadd.f32 %v4488_v49, %v4487_v47 }
 0x316   : > { %v4495_v53 = vadd.f32 %v4494_v51, %v4493_v48 }
 0x317   : > { %v4490_v54 = vrot.slane %v4489_v52, 1 }
 0x318   : > { %v4496_v55 = vrot.slane %v4495_v53, 1 }
 0x319   : > { %v4491_v5 = vadd.f32 %v4490_v54, %v4489_v52 }
 0x31a   : > { %v4497_v56 = vadd.f32 %v4496_v55, %v4495_v53 }
 0x31b   : > { %v4498_v39 = vmul.f32 0.25, %v4491_v5 }
 0x31c   : > { %v4499_v57 = vmul.f32 0.25, %v4497_v56 }
 0x31d   : > { %v4500_v27 = vadd.f32 1e-05, %v4498_v39 }
 0x31e   : > { %v4501_v33 = vadd.f32 1e-05, %v4499_v57 }
 0x31f   : > { %6003 = vrsqrt.f32 %v4500_v27  ;;  %vm4508_vm8 = vweird.f32 %v4500_v27 }
 0x320   : > { %6005 = vrsqrt.f32 %v4501_v33  ;;  %vm4518_vm10 = vweird.f32 %v4501_v33 }
 0x325   : > { %v6004_v4 = vpop.eup %6003 }
 0x326   : > { %v6006_v26 = vpop.eup %6005  ;;  %v4503_v21 = vmul.f32 %v6004_v4, %v4500_v27  ;;  %vm4509_vm9 = vweird.f32 %v6004_v4 }
 0x327   : > { %v4513_v58 = vmul.f32 %v6006_v26, %v4501_v33  ;;  %vm4519_vm11 = vweird.f32 %v6006_v26  ;;  %vm4510_vm12 = vmor %vm4508_vm8, %vm4509_vm9 }
 0x328   : > { %v4504_v42 = vmul.f32 %v6004_v4, %v4503_v21  ;;  %vm4520_vm13 = vmor %vm4518_vm10, %vm4519_vm11 }
 0x329   : > { %v4514_v30 = vmul.f32 %v6006_v26, %v4513_v58 }
 0x32a   : > { %v4505_v43 = vmul.f32 0.5, %v4504_v42 }
 0x32b   : > { %v4515_v31 = vmul.f32 0.5, %v4514_v30 }
 0x32c   : > { %v4506_v7 = vsub.f32 1.5, %v4505_v43 }
 0x32d   : > { %v4516_v59 = vsub.f32 1.5, %v4515_v31 }
 0x32e   : > { %v4507_v34 = vmul.f32 %v6004_v4, %v4506_v7 }
 0x32f   : > { %v4517_v60 = vmul.f32 %v6006_v26, %v4516_v59 }
 0x330   : > { %v4511_v61 = vsel %vm4510_vm12, %v6004_v4, %v4507_v34 }
 0x331   : > { %v4521_v44 = vsel %vm4520_vm13, %v6006_v26, %v4517_v60  ;;  %v4522_v45 = vmul.f32 %v4511_v61, %v4480_v36 }
 0x332   : > { %v4523_v0 = vmul.f32 %v4521_v44, %v4481_v28 }
 0x333   : > { %v4524_v1 = vsel %vm4459_vm7, %v4522_v45, %v7331_v35 }
 0x334   : > { %v4525_v19 = vsel %vm4459_vm7, %v4523_v0, %v7336_v10  ;;  %vm4526_vm14 = vcmp.gt.f32.partialorder %v4524_v1, 0.0  ;;  %v4528_v2 = vmul.f32 0.2, %v4524_v1 }
 0x335   : > { %vm4527_vm15 = vcmp.gt.f32.partialorder %v4525_v19, 0.0  ;;  %v4529_v3 = vmul.f32 0.2, %v4525_v19 }
 0x336   : > { %v4530_v6 = vsel %vm4526_vm14, %v4524_v1, %v4528_v2 }
 0x337   : > { %v4531_v8 = vsel %vm4527_vm15, %v4525_v19, %v4529_v3  ;;  %4532 = vst [vmem:[%s6680_s15] sm:$0xff] %v4530_v6 }
 0x338   : > { %4533 = vst [vmem:[%s6680_s15 + $0x8] sm:$0xff] %v4531_v8 }
 0x339 PF: > { %s13_s18 = sadd.s32 1, %s6061_s18   ;;  %s7383_s12 = smov %s6041_s13 }
 0x33a   : > { %p10_p0 = scmp.ge.s32.totalorder %s13_s18, 6   ;;  %s7384_s13 = smov %s6135_s25 }
 0x33b   : > { %s7385_s14 = smov %s6053_s16  ;;  %s7386_s15 = smov %s6057_s17 }
 0x33c   : > { %s7387_s16 = smov %s7390_s19  ;;  %s7388_s17 = smov %s7394_s20 }
 0x33d   :  { %12 = sbr.rel (!%p10_p0) target bundleno = 4 (0x4), region = 139 }

// kernel: _lambda_.9
= control target key start
LH: loop header
LB: loop body
LE: loop exit
PB: predicated region body
PF: predicated region fallthrough
CT: control target
= control target key end

     0   :  { %s2356_s12 = smov 0   ;;  %s2358_s13 = smov 0   ;;  %s2541_s0 = inlined_call_operand.vmem [shape: bf16[8,8192], index: 0, kind: input, shape index: {}]   ;;  %s2542_s1 = inlined_call_operand.vmem [shape: bf16[8192,128], index: 1, kind: input, shape index: {}]   ;;  %s2543_s2 = inlined_call_operand.vmem [shape: f32[1,128], index: 2, kind: input, shape index: {}]   ;;  %s2544_s3 = inlined_call_operand.vmem [shape: f32[8,128], index: 3, kind: output, shape index: {}]  }
   0x1   :  { %s2360_s14 = smov 0  }
   0x2 LB: > { %s22_s15 = sadd.s32 1, %s2329_s13  ;;  %p1635_p0 = scmp.ge.s32.totalorder %s2333_s14, 1  ;;  %s2333_s14 = sphi %s2360_s14, %s13_s14   ;;  %s2329_s13 = sphi %s2358_s13, %s2546_s13   ;;  %s2325_s12 = sphi %s2356_s12, %s2545_s12  }
   0x3   : > { %p23_p1 = scmp.ge.s32.totalorder %s22_s15, 4  ;;  %p174_p2 = scmp.lt.s32.totalorder %s2333_s14, 5 }
   0x5   : > { %s2548_s15 = smov (%p23_p1, %s22_s15), 0  ;;  %p175_p3 = pnand %p1635_p0, %p174_p2 }
   0x6   : > { %s1636_s16 = sshll.u32 (!%p175_p3), %s2325_s12, 4  ;;  %s1638_s17 = sshll.u32 (!%p175_p3), %s2325_s12, 8 }
   0x7   : > { %178 = sbr.rel (%p175_p3) target bundleno = 301 (0x12d), region = 32  ;;  %p209_p4 = scmp.lt.s32.totalorder (!%p175_p3), %s1636_s16, 63 }
   0x8   : > { %p215_p5 = scmp.lt.s32.totalorder (!%p175_p3), %s1638_s17, 1023  ;;  %p1640_p6 = scmp.ne.s32.totalorder (!%p175_p3), %s2325_s12, 0 }
   0xc   : > { %s2550_s16 = smov (!%p209_p4, %s1636_s16), 63  ;;  %s2552_s17 = smov (!%p215_p5, %s1638_s17), 1023 }
   0xd   : > { %s1637_s18 = sshll.u32 %s2550_s16, 2  ;;  %s1639_s22 = sshll.u32 %s2552_s17, 2 }
   0xe   : > { %s2381_s21 = scalar_lea.vmem %s2541_s0, %s1637_s18  ;;  %s2386_s25 = scalar_lea.vmem %s2542_s1, %s1639_s22 }
   0xf   : > { %233 = sbr.rel (%p1640_p6) target bundleno = 22 (0x16), region = 36 }
  0x14   : > { %v2335_v0 = vmov 0.0  }
  0x15   : > { %234 = vst [vmem:[#allocation2] sm:$0xff] %v2335_v0 }
  0x16 PF: > { %v2164_v1 = vld [vmem:[%s2386_s25 + $0x38] sm:$0xff]  ;;  %v2163_v5 = vld [vmem:[%s2386_s25 + $0x30] sm:$0xff]  ;;  %v2162_v9 = vld [vmem:[%s2386_s25 + $0x28] sm:$0xff]  ;;  %p2153_p7 = scmp.ne.s32.totalorder %s2325_s12, 3 }
  0x17   : > { %v2172_v2 = vld [vmem:[%s2386_s25 + $0x78] sm:$0xff]  ;;  %1324 = vmatpush.bf16.msra.mxu0 %v2164_v1  ;;  %v2171_v6 = vld [vmem:[%s2386_s25 + $0x70] sm:$0xff]  ;;  %v2170_v10 = vld [vmem:[%s2386_s25 + $0x68] sm:$0xff] }
  0x18   : > { %v2180_v3 = vld [vmem:[%s2386_s25 + $0xb8] sm:$0xff]  ;;  %1337 = vmatpush.bf16.msra.mxu1 %v2172_v2  ;;  %v2179_v7 = vld [vmem:[%s2386_s25 + $0xb0] sm:$0xff]  ;;  %v2178_v11 = vld [vmem:[%s2386_s25 + $0xa8] sm:$0xff] }
  0x19   : > { %v2188_v4 = vld [vmem:[%s2386_s25 + $0xf8] sm:$0xff]  ;;  %1350 = vmatpush.bf16.msra.mxu2 %v2180_v3  ;;  %v2187_v8 = vld [vmem:[%s2386_s25 + $0xf0] sm:$0xff]  ;;  %v2186_v12 = vld [vmem:[%s2386_s25 + $0xe8] sm:$0xff] }
  0x1a   : > { %1363 = vmatpush.bf16.msra.mxu3 %v2188_v4  ;;  %v2161_v13 = vld [vmem:[%s2386_s25 + $0x20] sm:$0xff]  ;;  %v2160_v17 = vld [vmem:[%s2386_s25 + $0x18] sm:$0xff]  ;;  %v2159_v21 = vld [vmem:[%s2386_s25 + $0x10] sm:$0xff] }
  0x1b   : > { %1325 = vmatpush.bf16.msra.mxu0 %v2163_v5  ;;  %v2169_v14 = vld [vmem:[%s2386_s25 + $0x60] sm:$0xff]  ;;  %v2168_v18 = vld [vmem:[%s2386_s25 + $0x58] sm:$0xff]  ;;  %v2167_v22 = vld [vmem:[%s2386_s25 + $0x50] sm:$0xff] }
  0x1c   : > { %1338 = vmatpush.bf16.msra.mxu1 %v2171_v6  ;;  %v2177_v15 = vld [vmem:[%s2386_s25 + $0xa0] sm:$0xff]  ;;  %v2176_v19 = vld [vmem:[%s2386_s25 + $0x98] sm:$0xff]  ;;  %v2175_v23 = vld [vmem:[%s2386_s25 + $0x90] sm:$0xff] }
  0x1d   : > { %1351 = vmatpush.bf16.msra.mxu2 %v2179_v7  ;;  %v2185_v16 = vld [vmem:[%s2386_s25 + $0xe0] sm:$0xff]  ;;  %v2184_v20 = vld [vmem:[%s2386_s25 + $0xd8] sm:$0xff]  ;;  %v2183_v24 = vld [vmem:[%s2386_s25 + $0xd0] sm:$0xff] }
  0x1e   : > { %1364 = vmatpush.bf16.msra.mxu3 %v2187_v8  ;;  %v2158_v25 = vld [vmem:[%s2386_s25 + $0x8] sm:$0xff]  ;;  %v236_v30 = vld [vmem:[%s2381_s21] sm:$0xff]  ;;  %v2196_v39 = vld [vmem:[%s2386_s25 + $0x138] sm:$0xff] }
  0x1f   : > { %1326 = vmatpush.bf16.msra.mxu0 %v2162_v9  ;;  %v2166_v26 = vld [vmem:[%s2386_s25 + $0x48] sm:$0xff]  ;;  %v2157_v31 = vld [vmem:[%s2386_s25] sm:$0xff]  ;;  %v508_v34 = vunpack.c.l.b16 %v236_v30  ;;  %v509_v38 = vunpack.c.h.b16 %v236_v30  ;;  %v2204_v40 = vld [vmem:[%s2386_s25 + $0x178] sm:$0xff] }
  0x20   : > { %1339 = vmatpush.bf16.msra.mxu1 %v2170_v10  ;;  %v2174_v27 = vld [vmem:[%s2386_s25 + $0x88] sm:$0xff]  ;;  %v2165_v32 = vld [vmem:[%s2386_s25 + $0x40] sm:$0xff]  ;;  %v2212_v41 = vld [vmem:[%s2386_s25 + $0x1b8] sm:$0xff] }
  0x21   : > { %1352 = vmatpush.bf16.msra.mxu2 %v2178_v11  ;;  %v2182_v28 = vld [vmem:[%s2386_s25 + $0xc8] sm:$0xff]  ;;  %v2173_v35 = vld [vmem:[%s2386_s25 + $0x80] sm:$0xff]  ;;  %v2220_v42 = vld [vmem:[%s2386_s25 + $0x1f8] sm:$0xff]  ;;  %v524_v44 = vpack.c.b16 %v508_v34, %v508_v34  ;;  %v525_v46 = vpack.c.b16 %v509_v38, %v509_v38 }
  0x22   : > { %1365 = vmatpush.bf16.msra.mxu3 %v2186_v12  ;;  %v237_v29 = vld [vmem:[%s2381_s21 + $0x8] sm:$0xff]  ;;  %v2181_v36 = vld [vmem:[%s2386_s25 + $0xc0] sm:$0xff]  ;;  %v2195_v47 = vld [vmem:[%s2386_s25 + $0x130] sm:$0xff] }
  0x23   : > { %1327 = vmatpush.bf16.msra.mxu0 %v2161_v13  ;;  %v510_v33 = vunpack.c.l.b16 %v237_v29  ;;  %v511_v37 = vunpack.c.h.b16 %v237_v29  ;;  %v2203_v48 = vld [vmem:[%s2386_s25 + $0x170] sm:$0xff]  ;;  %v2194_v51 = vld [vmem:[%s2386_s25 + $0x128] sm:$0xff]  ;;  %v2193_v55 = vld [vmem:[%s2386_s25 + $0x120] sm:$0xff] }
  0x24   : > { %1340 = vmatpush.bf16.msra.mxu1 %v2169_v14  ;;  %v2211_v49 = vld [vmem:[%s2386_s25 + $0x1b0] sm:$0xff]  ;;  %v2202_v52 = vld [vmem:[%s2386_s25 + $0x168] sm:$0xff]  ;;  %v2201_v56 = vld [vmem:[%s2386_s25 + $0x160] sm:$0xff] }
  0x25   : > { %1353 = vmatpush.bf16.msra.mxu2 %v2177_v15  ;;  %v526_v43 = vpack.c.b16 %v510_v33, %v510_v33  ;;  %v527_v45 = vpack.c.b16 %v511_v37, %v511_v37  ;;  %v2219_v50 = vld [vmem:[%s2386_s25 + $0x1f0] sm:$0xff]  ;;  %v2210_v53 = vld [vmem:[%s2386_s25 + $0x1a8] sm:$0xff]  ;;  %v2209_v57 = vld [vmem:[%s2386_s25 + $0x1a0] sm:$0xff] }
  0x26   : > { %1366 = vmatpush.bf16.msra.mxu3 %v2185_v16  ;;  %v2218_v54 = vld [vmem:[%s2386_s25 + $0x1e8] sm:$0xff]  ;;  %v2217_v58 = vld [vmem:[%s2386_s25 + $0x1e0] sm:$0xff]  ;;  %v2192_v59 = vld [vmem:[%s2386_s25 + $0x118] sm:$0xff] }
  0x27   : > { %1328 = vmatpush.bf16.msra.mxu0 %v2160_v17  ;;  %v2200_v60 = vld [vmem:[%s2386_s25 + $0x158] sm:$0xff]  ;;  %v2191_v63 = vld [vmem:[%s2386_s25 + $0x110] sm:$0xff]  ;;  %v2190_v3 = vld [vmem:[%s2386_s25 + $0x108] sm:$0xff] }
  0x28   : > { %1341 = vmatpush.bf16.msra.mxu1 %v2168_v18  ;;  %v2208_v61 = vld [vmem:[%s2386_s25 + $0x198] sm:$0xff]  ;;  %v2199_v0 = vld [vmem:[%s2386_s25 + $0x150] sm:$0xff]  ;;  %v2198_v4 = vld [vmem:[%s2386_s25 + $0x148] sm:$0xff] }
  0x29   : > { %1354 = vmatpush.bf16.msra.mxu2 %v2176_v19  ;;  %v2216_v62 = vld [vmem:[%s2386_s25 + $0x1d8] sm:$0xff]  ;;  %v2207_v1 = vld [vmem:[%s2386_s25 + $0x190] sm:$0xff]  ;;  %v2206_v5 = vld [vmem:[%s2386_s25 + $0x188] sm:$0xff] }
  0x2a   : > { %1367 = vmatpush.bf16.msra.mxu3 %v2184_v20  ;;  %v2215_v2 = vld [vmem:[%s2386_s25 + $0x1d0] sm:$0xff]  ;;  %v2214_v6 = vld [vmem:[%s2386_s25 + $0x1c8] sm:$0xff]  ;;  %v239_v7 = vld [vmem:[%s2381_s21 + $0x18] sm:$0xff] }
  0x2b   : > { %1329 = vmatpush.bf16.msra.mxu0 %v2159_v21  ;;  %v238_v8 = vld [vmem:[%s2381_s21 + $0x10] sm:$0xff]  ;;  %v2189_v9 = vld [vmem:[%s2386_s25 + $0x100] sm:$0xff]  ;;  %v514_v11 = vunpack.c.l.b16 %v239_v7  ;;  %v515_v15 = vunpack.c.h.b16 %v239_v7  ;;  %v2228_v17 = vld [vmem:[%s2386_s25 + $0x238] sm:$0xff] }
  0x2c   : > { %1342 = vmatpush.bf16.msra.mxu1 %v2167_v22  ;;  %v2197_v10 = vld [vmem:[%s2386_s25 + $0x140] sm:$0xff]  ;;  %v512_v12 = vunpack.c.l.b16 %v238_v8  ;;  %v513_v16 = vunpack.c.h.b16 %v238_v8  ;;  %v2236_v18 = vld [vmem:[%s2386_s25 + $0x278] sm:$0xff]  ;;  %v2226_v29 = vld [vmem:[%s2386_s25 + $0x228] sm:$0xff] }
  0x2d   : > { %1355 = vmatpush.bf16.msra.mxu2 %v2175_v23  ;;  %v2205_v13 = vld [vmem:[%s2386_s25 + $0x180] sm:$0xff]  ;;  %v2244_v19 = vld [vmem:[%s2386_s25 + $0x2b8] sm:$0xff]  ;;  %v530_v21 = vpack.c.b16 %v514_v11, %v514_v11  ;;  %v531_v23 = vpack.c.b16 %v515_v15, %v515_v15  ;;  %v2234_v30 = vld [vmem:[%s2386_s25 + $0x268] sm:$0xff] }
  0x2e   : > { %1368 = vmatpush.bf16.msra.mxu3 %v2183_v24  ;;  %v2213_v14 = vld [vmem:[%s2386_s25 + $0x1c0] sm:$0xff]  ;;  %v2252_v20 = vld [vmem:[%s2386_s25 + $0x2f8] sm:$0xff]  ;;  %v528_v22 = vpack.c.b16 %v512_v12, %v512_v12  ;;  %v529_v24 = vpack.c.b16 %v513_v16, %v513_v16  ;;  %v2258_v7 = vld [vmem:[%s2386_s25 + $0x328] sm:$0xff] }
  0x2f   : > { %1330 = vmatpush.bf16.msra.mxu0 %v2158_v25  ;;  %v2227_v25 = vld [vmem:[%s2386_s25 + $0x230] sm:$0xff]  ;;  %v2225_v33 = vld [vmem:[%s2386_s25 + $0x220] sm:$0xff]  ;;  %v2224_v37 = vld [vmem:[%s2386_s25 + $0x218] sm:$0xff] }
  0x30   : > { %1343 = vmatpush.bf16.msra.mxu1 %v2166_v26  ;;  %v2235_v26 = vld [vmem:[%s2386_s25 + $0x270] sm:$0xff]  ;;  %v2233_v34 = vld [vmem:[%s2386_s25 + $0x260] sm:$0xff]  ;;  %v2232_v38 = vld [vmem:[%s2386_s25 + $0x258] sm:$0xff] }
  0x31   : > { %1356 = vmatpush.bf16.msra.mxu2 %v2174_v27  ;;  %v2243_v27 = vld [vmem:[%s2386_s25 + $0x2b0] sm:$0xff]  ;;  %v2266_v8 = vld [vmem:[%s2386_s25 + $0x368] sm:$0xff]  ;;  %v2257_v11 = vld [vmem:[%s2386_s25 + $0x320] sm:$0xff] }
  0x32   : > { %1369 = vmatpush.bf16.msra.mxu3 %v2182_v28  ;;  %v2251_v28 = vld [vmem:[%s2386_s25 + $0x2f0] sm:$0xff]  ;;  %v2265_v12 = vld [vmem:[%s2386_s25 + $0x360] sm:$0xff]  ;;  %v2256_v15 = vld [vmem:[%s2386_s25 + $0x318] sm:$0xff] }
  0x33   : > { %1331 = vmatpush.bf16.msra.mxu0 %v2157_v31  ;;  %v2242_v31 = vld [vmem:[%s2386_s25 + $0x2a8] sm:$0xff]  ;;  %v2264_v16 = vld [vmem:[%s2386_s25 + $0x358] sm:$0xff] }
  0x34   : > { %1344 = vmatpush.bf16.msra.mxu1 %v2165_v32  ;;  %v2250_v32 = vld [vmem:[%s2386_s25 + $0x2e8] sm:$0xff] }
  0x35   : > { %1357 = vmatpush.bf16.msra.mxu2 %v2173_v35  ;;  %v2241_v35 = vld [vmem:[%s2386_s25 + $0x2a0] sm:$0xff] }
  0x36   : > { %1370 = vmatpush.bf16.msra.mxu3 %v2181_v36  ;;  %1332 = vmatmul.bf16.vlgmr.msra.gmra.mxu0 %v524_v44  ;;  %v2249_v36 = vld [vmem:[%s2386_s25 + $0x2e0] sm:$0xff]  ;;  %v2247_v44 = vld [vmem:[%s2386_s25 + $0x2d0] sm:$0xff] }
  0x37   : > { %1376 = vmatpush.bf16.msrb.mxu0 %v2196_v39  ;;  %1345 = vmatmul.bf16.vlgmr.msra.gmra.mxu1 %v525_v46  ;;  %v2240_v39 = vld [vmem:[%s2386_s25 + $0x298] sm:$0xff]  ;;  %v2230_v46 = vld [vmem:[%s2386_s25 + $0x248] sm:$0xff] }
  0x38   : > { %1389 = vmatpush.bf16.msrb.mxu1 %v2204_v40  ;;  %1358 = vmatmul.bf16.vlgmr.msra.gmra.mxu2 %v526_v43  ;;  %v2248_v40 = vld [vmem:[%s2386_s25 + $0x2d8] sm:$0xff]  ;;  %v2239_v43 = vld [vmem:[%s2386_s25 + $0x290] sm:$0xff] }
  0x39   : > { %1402 = vmatpush.bf16.msrb.mxu2 %v2212_v41  ;;  %1371 = vmatmul.bf16.vlgmr.msra.gmra.mxu3 %v527_v45  ;;  %v2223_v41 = vld [vmem:[%s2386_s25 + $0x210] sm:$0xff]  ;;  %v2222_v45 = vld [vmem:[%s2386_s25 + $0x208] sm:$0xff] }
  0x3a   : > { %1415 = vmatpush.bf16.msrb.mxu3 %v2220_v42  ;;  %v2231_v42 = vld [vmem:[%s2386_s25 + $0x250] sm:$0xff] }
  0x3b   : > { %1377 = vmatpush.bf16.msrb.mxu0 %v2195_v47  ;;  %v2238_v47 = vld [vmem:[%s2386_s25 + $0x288] sm:$0xff] }
  0x3c   : > { %1390 = vmatpush.bf16.msrb.mxu1 %v2203_v48  ;;  %v2246_v48 = vld [vmem:[%s2386_s25 + $0x2c8] sm:$0xff] }
  0x3d   : > { %1403 = vmatpush.bf16.msrb.mxu2 %v2211_v49  ;;  %v240_v49 = vld [vmem:[%s2381_s21 + $0x20] sm:$0xff] }
  0x3e   : > { %1416 = vmatpush.bf16.msrb.mxu3 %v2219_v50  ;;  %v241_v50 = vld [vmem:[%s2381_s21 + $0x28] sm:$0xff] }
  0x3f   : > { %1378 = vmatpush.bf16.msrb.mxu0 %v2194_v51  ;;  %v2221_v51 = vld [vmem:[%s2386_s25 + $0x200] sm:$0xff] }
  0x40   : > { %1391 = vmatpush.bf16.msrb.mxu1 %v2202_v52  ;;  %v2229_v52 = vld [vmem:[%s2386_s25 + $0x240] sm:$0xff] }
  0x41   : > { %1404 = vmatpush.bf16.msrb.mxu2 %v2210_v53  ;;  %v516_v53 = vunpack.c.l.b16 %v240_v49 }
  0x42   : > { %1417 = vmatpush.bf16.msrb.mxu3 %v2218_v54  ;;  %v518_v54 = vunpack.c.l.b16 %v241_v50 }
  0x43   : > { %1379 = vmatpush.bf16.msrb.mxu0 %v2193_v55  ;;  %v2237_v55 = vld [vmem:[%s2386_s25 + $0x280] sm:$0xff] }
  0x44   : > { %1392 = vmatpush.bf16.msrb.mxu1 %v2201_v56  ;;  %v2245_v56 = vld [vmem:[%s2386_s25 + $0x2c0] sm:$0xff] }
  0x45   : > { %1405 = vmatpush.bf16.msrb.mxu2 %v2209_v57  ;;  %v517_v57 = vunpack.c.h.b16 %v240_v49 }
  0x46   : > { %1418 = vmatpush.bf16.msrb.mxu3 %v2217_v58  ;;  %v519_v58 = vunpack.c.h.b16 %v241_v50 }
  0x47   : > { %1380 = vmatpush.bf16.msrb.mxu0 %v2192_v59  ;;  %v2260_v59 = vld [vmem:[%s2386_s25 + $0x338] sm:$0xff] }
  0x48   : > { %1393 = vmatpush.bf16.msrb.mxu1 %v2200_v60  ;;  %v2268_v60 = vld [vmem:[%s2386_s25 + $0x378] sm:$0xff] }
  0x49   : > { %1406 = vmatpush.bf16.msrb.mxu2 %v2208_v61  ;;  %v2276_v61 = vld [vmem:[%s2386_s25 + $0x3b8] sm:$0xff] }
  0x4a   : > { %1419 = vmatpush.bf16.msrb.mxu3 %v2216_v62  ;;  %v2284_v62 = vld [vmem:[%s2386_s25 + $0x3f8] sm:$0xff] }
  0x4b   : > { %1381 = vmatpush.bf16.msrb.mxu0 %v2191_v63  ;;  %v532_v63 = vpack.c.b16 %v516_v53, %v516_v53 }
  0x4c   : > { %1394 = vmatpush.bf16.msrb.mxu1 %v2199_v0  ;;  %v534_v0 = vpack.c.b16 %v518_v54, %v518_v54 }
  0x4d   : > { %1407 = vmatpush.bf16.msrb.mxu2 %v2207_v1  ;;  %v533_v1 = vpack.c.b16 %v517_v57, %v517_v57 }
  0x4e   : > { %1420 = vmatpush.bf16.msrb.mxu3 %v2215_v2  ;;  %v535_v2 = vpack.c.b16 %v519_v58, %v519_v58 }
  0x4f   : > { %1382 = vmatpush.bf16.msrb.mxu0 %v2190_v3  ;;  %v2259_v3 = vld [vmem:[%s2386_s25 + $0x330] sm:$0xff] }
  0x50   : > { %1395 = vmatpush.bf16.msrb.mxu1 %v2198_v4  ;;  %v2267_v4 = vld [vmem:[%s2386_s25 + $0x370] sm:$0xff] }
  0x51   : > { %1408 = vmatpush.bf16.msrb.mxu2 %v2206_v5  ;;  %v2275_v5 = vld [vmem:[%s2386_s25 + $0x3b0] sm:$0xff] }
  0x52   : > { %1421 = vmatpush.bf16.msrb.mxu3 %v2214_v6  ;;  %v2283_v6 = vld [vmem:[%s2386_s25 + $0x3f0] sm:$0xff] }
  0x53   : > { %1383 = vmatpush.bf16.msrb.mxu0 %v2189_v9  ;;  %v2274_v9 = vld [vmem:[%s2386_s25 + $0x3a8] sm:$0xff] }
  0x54   : > { %1396 = vmatpush.bf16.msrb.mxu1 %v2197_v10  ;;  %v2282_v10 = vld [vmem:[%s2386_s25 + $0x3e8] sm:$0xff] }
  0x55   : > { %1409 = vmatpush.bf16.msrb.mxu2 %v2205_v13  ;;  %v2273_v13 = vld [vmem:[%s2386_s25 + $0x3a0] sm:$0xff] }
  0x56   : > { %1422 = vmatpush.bf16.msrb.mxu3 %v2213_v14  ;;  %1384 = vmatmul.bf16.vlgmr.msrb.gmra.mxu0 %v528_v22  ;;  %v2281_v14 = vld [vmem:[%s2386_s25 + $0x3e0] sm:$0xff]  ;;  %v2279_v22 = vld [vmem:[%s2386_s25 + $0x3d0] sm:$0xff] }
  0x57   : > { %1428 = vmatpush.bf16.msra.mxu0 %v2228_v17  ;;  %1397 = vmatmul.bf16.vlgmr.msrb.gmra.mxu1 %v529_v24  ;;  %v2272_v17 = vld [vmem:[%s2386_s25 + $0x398] sm:$0xff]  ;;  %v2262_v24 = vld [vmem:[%s2386_s25 + $0x348] sm:$0xff] }
  0x58   : > { %1441 = vmatpush.bf16.msra.mxu1 %v2236_v18  ;;  %1410 = vmatmul.bf16.vlgmr.msrb.gmra.mxu2 %v530_v21  ;;  %v2280_v18 = vld [vmem:[%s2386_s25 + $0x3d8] sm:$0xff]  ;;  %v2271_v21 = vld [vmem:[%s2386_s25 + $0x390] sm:$0xff] }
  0x59   : > { %1454 = vmatpush.bf16.msra.mxu2 %v2244_v19  ;;  %1423 = vmatmul.bf16.vlgmr.msrb.gmra.mxu3 %v531_v23  ;;  %v2255_v19 = vld [vmem:[%s2386_s25 + $0x310] sm:$0xff]  ;;  %v2254_v23 = vld [vmem:[%s2386_s25 + $0x308] sm:$0xff] }
  0x5a   : > { %1467 = vmatpush.bf16.msra.mxu3 %v2252_v20  ;;  %v2263_v20 = vld [vmem:[%s2386_s25 + $0x350] sm:$0xff] }
  0x5b   : > { %1429 = vmatpush.bf16.msra.mxu0 %v2227_v25  ;;  %v242_v25 = vld [vmem:[%s2381_s21 + $0x30] sm:$0xff] }
  0x5c   : > { %1442 = vmatpush.bf16.msra.mxu1 %v2235_v26  ;;  %v2270_v26 = vld [vmem:[%s2386_s25 + $0x388] sm:$0xff] }
  0x5d   : > { %1455 = vmatpush.bf16.msra.mxu2 %v2243_v27  ;;  %v2278_v27 = vld [vmem:[%s2386_s25 + $0x3c8] sm:$0xff] }
  0x5e   : > { %1468 = vmatpush.bf16.msra.mxu3 %v2251_v28  ;;  %v243_v28 = vld [vmem:[%s2381_s21 + $0x38] sm:$0xff] }
  0x5f   : > { %1430 = vmatpush.bf16.msra.mxu0 %v2226_v29  ;;  %v520_v29 = vunpack.c.l.b16 %v242_v25 }
  0x60   : > { %1443 = vmatpush.bf16.msra.mxu1 %v2234_v30  ;;  %v521_v30 = vunpack.c.h.b16 %v242_v25 }
  0x61   : > { %1456 = vmatpush.bf16.msra.mxu2 %v2242_v31  ;;  %v2253_v31 = vld [vmem:[%s2386_s25 + $0x300] sm:$0xff] }
  0x62   : > { %1469 = vmatpush.bf16.msra.mxu3 %v2250_v32  ;;  %v2261_v32 = vld [vmem:[%s2386_s25 + $0x340] sm:$0xff] }
  0x63   : > { %1431 = vmatpush.bf16.msra.mxu0 %v2225_v33  ;;  %v522_v33 = vunpack.c.l.b16 %v243_v28 }
  0x64   : > { %1444 = vmatpush.bf16.msra.mxu1 %v2233_v34  ;;  %v523_v34 = vunpack.c.h.b16 %v243_v28 }
  0x65   : > { %1457 = vmatpush.bf16.msra.mxu2 %v2241_v35  ;;  %v2269_v35 = vld [vmem:[%s2386_s25 + $0x380] sm:$0xff] }
  0x66   : > { %1470 = vmatpush.bf16.msra.mxu3 %v2249_v36  ;;  %v2277_v36 = vld [vmem:[%s2386_s25 + $0x3c0] sm:$0xff] }
  0x67   : > { %1432 = vmatpush.bf16.msra.mxu0 %v2224_v37  ;;  %v536_v37 = vpack.c.b16 %v520_v29, %v520_v29 }
  0x68   : > { %1445 = vmatpush.bf16.msra.mxu1 %v2232_v38  ;;  %v537_v38 = vpack.c.b16 %v521_v30, %v521_v30 }
  0x69   : > { %1458 = vmatpush.bf16.msra.mxu2 %v2240_v39  ;;  %v538_v39 = vpack.c.b16 %v522_v33, %v522_v33 }
  0x6a   : > { %1471 = vmatpush.bf16.msra.mxu3 %v2248_v40  ;;  %v539_v40 = vpack.c.b16 %v523_v34, %v523_v34 }
  0x6b   : > { %1433 = vmatpush.bf16.msra.mxu0 %v2223_v41 }
  0x6c   : > { %1446 = vmatpush.bf16.msra.mxu1 %v2231_v42 }
  0x6d   : > { %1459 = vmatpush.bf16.msra.mxu2 %v2239_v43 }
  0x6e   : > { %1472 = vmatpush.bf16.msra.mxu3 %v2247_v44 }
  0x6f   : > { %1434 = vmatpush.bf16.msra.mxu0 %v2222_v45 }
  0x70   : > { %1447 = vmatpush.bf16.msra.mxu1 %v2230_v46 }
  0x71   : > { %1460 = vmatpush.bf16.msra.mxu2 %v2238_v47 }
  0x72   : > { %1473 = vmatpush.bf16.msra.mxu3 %v2246_v48 }
  0x73   : > { %1435 = vmatpush.bf16.msra.mxu0 %v2221_v51 }
  0x74   : > { %1448 = vmatpush.bf16.msra.mxu1 %v2229_v52 }
  0x75   : > { %1461 = vmatpush.bf16.msra.mxu2 %v2237_v55 }
  0x76   : > { %1474 = vmatpush.bf16.msra.mxu3 %v2245_v56  ;;  %1436 = vmatmul.bf16.vlgmr.msra.gmra.mxu0 %v532_v63 }
  0x77   : > { %1480 = vmatpush.bf16.msrb.mxu0 %v2260_v59  ;;  %1449 = vmatmul.bf16.vlgmr.msra.gmra.mxu1 %v533_v1 }
  0x78   : > { %1493 = vmatpush.bf16.msrb.mxu1 %v2268_v60  ;;  %1462 = vmatmul.bf16.vlgmr.msra.gmra.mxu2 %v534_v0 }
  0x79   : > { %1506 = vmatpush.bf16.msrb.mxu2 %v2276_v61  ;;  %1475 = vmatmul.bf16.vlgmr.msra.gmra.mxu3 %v535_v2 }
  0x7a   : > { %1519 = vmatpush.bf16.msrb.mxu3 %v2284_v62 }
  0x7b   : > { %1481 = vmatpush.bf16.msrb.mxu0 %v2259_v3 }
  0x7c   : > { %1494 = vmatpush.bf16.msrb.mxu1 %v2267_v4 }
  0x7d   : > { %1507 = vmatpush.bf16.msrb.mxu2 %v2275_v5 }
  0x7e   : > { %1520 = vmatpush.bf16.msrb.mxu3 %v2283_v6 }
  0x7f   : > { %1482 = vmatpush.bf16.msrb.mxu0 %v2258_v7 }
  0x80   : > { %1495 = vmatpush.bf16.msrb.mxu1 %v2266_v8 }
  0x81   : > { %1508 = vmatpush.bf16.msrb.mxu2 %v2274_v9 }
  0x82   : > { %1521 = vmatpush.bf16.msrb.mxu3 %v2282_v10 }
  0x83   : > { %1483 = vmatpush.bf16.msrb.mxu0 %v2257_v11 }
  0x84   : > { %1496 = vmatpush.bf16.msrb.mxu1 %v2265_v12 }
  0x85   : > { %1509 = vmatpush.bf16.msrb.mxu2 %v2273_v13 }
  0x86   : > { %1522 = vmatpush.bf16.msrb.mxu3 %v2281_v14 }
  0x87   : > { %1484 = vmatpush.bf16.msrb.mxu0 %v2256_v15 }
  0x88   : > { %1497 = vmatpush.bf16.msrb.mxu1 %v2264_v16 }
  0x89   : > { %1510 = vmatpush.bf16.msrb.mxu2 %v2272_v17 }
  0x8a   : > { %1523 = vmatpush.bf16.msrb.mxu3 %v2280_v18 }
  0x8b   : > { %1485 = vmatpush.bf16.msrb.mxu0 %v2255_v19 }
  0x8c   : > { %1498 = vmatpush.bf16.msrb.mxu1 %v2263_v20 }
  0x8d   : > { %1511 = vmatpush.bf16.msrb.mxu2 %v2271_v21  ;;  %v235_v21 = vld [vmem:[#allocation2] sm:$0xff] }
  0x8e   : > { %1524 = vmatpush.bf16.msrb.mxu3 %v2279_v22 }
  0x8f   : > { %1486 = vmatpush.bf16.msrb.mxu0 %v2254_v23 }
  0x90   : > { %1499 = vmatpush.bf16.msrb.mxu1 %v2262_v24 }
  0x91   : > { %1512 = vmatpush.bf16.msrb.mxu2 %v2270_v26 }
  0x92   : > { %1525 = vmatpush.bf16.msrb.mxu3 %v2278_v27 }
  0x93   : > { %1487 = vmatpush.bf16.msrb.mxu0 %v2253_v31 }
  0x94   : > { %1500 = vmatpush.bf16.msrb.mxu1 %v2261_v32 }
  0x95   : > { %1513 = vmatpush.bf16.msrb.mxu2 %v2269_v35 }
  0x96   : > { %1526 = vmatpush.bf16.msrb.mxu3 %v2277_v36  ;;  %1488 = vmatmul.bf16.vlgmr.msrb.gmra.mxu0 %v536_v37 }
  0x97   : > { %1501 = vmatmul.bf16.vlgmr.msrb.gmra.mxu1 %v537_v38 }
  0x98   : > { %1514 = vmatmul.bf16.vlgmr.msrb.gmra.mxu2 %v538_v39 }
  0x99   : > { %1527 = vmatmul.bf16.vlgmr.msrb.gmra.mxu3 %v539_v40 }
  0xb3   : > { %v1333_v41 = vpop.f32.mrf.mxu0 }
  0xb4   : > { %v1346_v42 = vpop.f32.mrf.mxu1 }
  0xb5   : > { %v1347_v43 = vadd.f32 %v1346_v42, %v1333_v41 }
  0xbb   : > { %v1359_v44 = vpop.f32.mrf.mxu2  ;;  %v1335_v47 = vpop.f32.mrf.mxu0 }
  0xbc   : > { %v1360_v45 = vadd.f32 %v1359_v44, %v1347_v43  ;;  %v1372_v46 = vpop.f32.mrf.mxu3  ;;  %v1348_v49 = vpop.f32.mrf.mxu1 }
  0xbe   : > { %v1373_v48 = vadd.f32 %v1372_v46, %v1360_v45 }
  0xc3   : > { %v1361_v50 = vpop.f32.mrf.mxu2 }
  0xc4   : > { %v1374_v51 = vpop.f32.mrf.mxu3 }
  0xd3   : > { %v1385_v52 = vpop.f32.mrf.mxu0 }
  0xd4   : > { %v1398_v53 = vpop.f32.mrf.mxu1  ;;  %v1386_v62 = vadd.f32 %v1385_v52, %v1373_v48 }
  0xd6   : > { %v1399_v2 = vadd.f32 %v1398_v53, %v1386_v62 }
  0xdb   : > { %v1411_v54 = vpop.f32.mrf.mxu2  ;;  %v1387_v56 = vpop.f32.mrf.mxu0 }
  0xdc   : > { %v1424_v55 = vpop.f32.mrf.mxu3  ;;  %v1400_v57 = vpop.f32.mrf.mxu1  ;;  %v1412_v4 = vadd.f32 %v1411_v54, %v1399_v2 }
  0xde   : > { %v1425_v7 = vadd.f32 %v1424_v55, %v1412_v4 }
  0xe3   : > { %v1413_v58 = vpop.f32.mrf.mxu2 }
  0xe4   : > { %v1426_v59 = vpop.f32.mrf.mxu3 }
  0xf3   : > { %v1437_v60 = vpop.f32.mrf.mxu0 }
  0xf4   : > { %v1450_v61 = vpop.f32.mrf.mxu1  ;;  %v1438_v8 = vadd.f32 %v1437_v60, %v1425_v7 }
  0xf6   : > { %v1451_v9 = vadd.f32 %v1450_v61, %v1438_v8 }
  0xfb   : > { %v1463_v63 = vpop.f32.mrf.mxu2  ;;  %v1439_v1 = vpop.f32.mrf.mxu0 }
  0xfc   : > { %v1476_v0 = vpop.f32.mrf.mxu3  ;;  %v1452_v3 = vpop.f32.mrf.mxu1  ;;  %v1464_v10 = vadd.f32 %v1463_v63, %v1451_v9 }
  0xfe   : > { %v1477_v11 = vadd.f32 %v1476_v0, %v1464_v10 }
 0x103   : > { %v1465_v5 = vpop.f32.mrf.mxu2 }
 0x104   : > { %v1478_v6 = vpop.f32.mrf.mxu3 }
 0x113   : > { %v1489_v12 = vpop.f32.mrf.mxu0 }
 0x114   : > { %v1502_v13 = vpop.f32.mrf.mxu1  ;;  %v1490_v14 = vadd.f32 %v1489_v12, %v1477_v11 }
 0x116   : > { %v1503_v15 = vadd.f32 %v1502_v13, %v1490_v14 }
 0x11b   : > { %v1515_v16 = vpop.f32.mrf.mxu2  ;;  %v1491_v19 = vpop.f32.mrf.mxu0 }
 0x11c   : > { %v1528_v17 = vpop.f32.mrf.mxu3  ;;  %v1516_v18 = vadd.f32 %v1515_v16, %v1503_v15  ;;  %v1504_v20 = vpop.f32.mrf.mxu1 }
 0x11e   : > { %v1529_v22 = vadd.f32 %v1528_v17, %v1516_v18 }
 0x120   : > { %v1532_v23 = vadd.f32 %v1529_v22, %v235_v21  ;;  %1537 = sbr.rel (%p2153_p7) target bundleno = 301 (0x12d), region = 40 }
 0x122   : > { %1533 = vst [vmem:[#allocation2] sm:$0xff] %v1532_v23 }
 0x123   : > { %v1517_v24 = vpop.f32.mrf.mxu2 }
 0x124   : > { %v1530_v25 = vpop.f32.mrf.mxu3 }
 0x125   : > { %v2310_v27 = vld [vmem:[%s2543_s2] ss:$0 sm:$0xff] }
 0x129   : > { %v1538_v26 = vld [vmem:[#allocation2] sm:$0xff] }
 0x12a   : > { %v1543_v28 = vadd.f32 %v2310_v27, %v1538_v26 }
 0x12c   : > { %1544 = vst [vmem:[%s2544_s3] sm:$0xff] %v1543_v28 }
 0x12d PF: > { %s13_s14 = sadd.s32 1, %s2333_s14   ;;  %s2545_s12 = smov %s2329_s13 }
 0x12e   : > { %p10_p8 = scmp.ge.s32.totalorder %s13_s14, 6   ;;  %s2546_s13 = smov %s2548_s15 }
 0x130   :  { %12 = sbr.rel (!%p10_p8) target bundleno = 2 (0x2), region = 76 }

</bundles_post_ra>
